<compile_context>
chip_gen: v7x
topology: tpu7x:2x2x1
jax: 0.10.0
libtpu: 0.0.40
codegen_flags: <defaults>
</compile_context>

<pallas_src>
import functools

import jax
import jax.numpy as jnp
from jax import lax
from jax.experimental import pallas as pl
from jax.experimental.pallas import tpu as pltpu

# ----------------------------- hyperparameters -----------------------------
N_EMBD = 384
N_HEADS = 6
HEAD_SIZE = N_EMBD // N_HEADS
N_LAYERS = 6
BLOCK_SIZE = 128          # max context length (position table size)
VOCAB_SIZE = 65           # e.g. tiny-shakespeare char vocab
VOCAB_PAD = 128           # lane-dense padded lm_head width
LN_EPS = 1e-5
FF_HIDDEN = 4 * N_EMBD


# ------------------------------- helpers ------------------------------------
def _layer_norm(x, gamma, beta):
    # x: (M, C) f32; gamma/beta: (1, C) f32
    mu = jnp.mean(x, axis=-1, keepdims=True)
    var = jnp.mean((x - mu) ** 2, axis=-1, keepdims=True)
    return (x - mu) * lax.rsqrt(var + LN_EPS) * gamma + beta


def _mm(a, b):
    # (M, K) @ (K, N) -> (M, N), f32 accumulate on MXU
    return jnp.dot(a, b, preferred_element_type=jnp.float32)


def _mm_tn(a, b):
    # (M, K) x (N, K) -> (M, N): contract last dims of both (a @ b.T without a transpose)
    return lax.dot_general(a, b, (((1,), (1,)), ((), ())),
                           preferred_element_type=jnp.float32)


# ------------------------------- fused kernel -------------------------------
def fused_forward_kernel(
    x0_ref,            # (M, C) f32 : tok+pos embeddings, batch folded into M
    bias_ref,          # (M, M) f32 : block-diagonal causal additive mask (0 / -1e30)
    ln1_g_ref, ln1_b_ref,            # (1, C) f32 each (layer l)
    wq_ref, wk_ref, wv_ref,          # (H, HS, C) bf16  (per-head, transposed, lane-dense)
    wproj_ref,                       # (H, HS, C) bf16
    bproj_ref,                       # (1, C) f32
    ln2_g_ref, ln2_b_ref,            # (1, C) f32
    w1_ref, b1_ref,                  # (C, 4C) bf16 / (1, 4C) f32
    w2_ref, b2_ref,                  # (4C, C) bf16 / (1, C) f32
    lnf_g_ref, lnf_b_ref,            # (1, C) f32   (constant across layers)
    lm_w_ref, lm_b_ref,              # (C, VPAD) bf16 / (1, VPAD) f32
    o_ref,                           # (M, VPAD) f32 output logits (written at last layer)
    x_sc,                            # VMEM scratch (M, C) f32 : resident activation
):
    l = pl.program_id(0)

    @pl.when(l == 0)
    def _():
        x_sc[...] = x0_ref[...]

    x = x_sc[...]                           # (M, C) f32
    M, C = x.shape
    n_heads = wq_ref.shape[0]

    # ---- multi-head causal self-attention branch ----
    xn = _layer_norm(x, ln1_g_ref[...], ln1_b_ref[...])
    xnb = xn.astype(jnp.bfloat16)

    # NOTE: reference code ADDS C**-0.5 instead of multiplying — reproduced.
    scale_add = float(C) ** -0.5
    bias = bias_ref[...]                    # (M, M): 0 where attended, -1e30 elsewhere

    attn = jnp.zeros((M, C), jnp.float32)
    for h in range(n_heads):
        qh = _mm_tn(xnb, wq_ref[h])         # (M, HS) f32
        kh = _mm_tn(xnb, wk_ref[h])         # (M, HS) f32
        vh = _mm_tn(xnb, wv_ref[h])         # (M, HS) f32

        wei = _mm_tn(qh.astype(jnp.bfloat16), kh.astype(jnp.bfloat16))   # (M, M)
        wei = wei + scale_add + bias
        m = jnp.max(wei, axis=-1, keepdims=True)
        e = jnp.exp(wei - m)
        p = e * pl.reciprocal(jnp.sum(e, axis=-1, keepdims=True), approx=True)
        # TODO(synk): attention-dropout (train mode) skipped (eval-mode identity).

        oh = _mm(p.astype(jnp.bfloat16), vh.astype(jnp.bfloat16))        # (M, HS)
        attn = attn + _mm(oh.astype(jnp.bfloat16), wproj_ref[h])         # (M, C)

    x = x + attn + bproj_ref[...]           # residual 1 (+ proj bias)

    # ---- feed-forward branch ----
    xn2 = _layer_norm(x, ln2_g_ref[...], ln2_b_ref[...])
    h1 = _mm(xn2.astype(jnp.bfloat16), w1_ref[...]) + b1_ref[...]
    h1 = jnp.maximum(h1, 0.0)               # ReLU
    ff = _mm(h1.astype(jnp.bfloat16), w2_ref[...]) + b2_ref[...]
    x = x + ff                              # residual 2

    x_sc[...] = x

    # ---- final LayerNorm + LM head, fused into the last layer step ----
    @pl.when(l == pl.num_programs(0) - 1)
    def _():
        xnf = _layer_norm(x, lnf_g_ref[...], lnf_b_ref[...])
        o_ref[...] = _mm(xnf.astype(jnp.bfloat16), lm_w_ref[...]) + lm_b_ref[...]


# ------------------------------ wrapper --------------------------------------
def _layer_spec(shape):
    nd = len(shape)
    # leading L axis is indexed by the grid and squeezed out of the kernel view
    return pl.BlockSpec((None,) + tuple(shape[1:]),
                        lambda l, _nd=nd: (l,) + (0,) * (_nd - 1))


def _const_spec(shape):
    nd = len(shape)
    return pl.BlockSpec(tuple(shape), lambda l, _nd=nd: (0,) * _nd)


def run_fused_model(x0, attn_bias, params):
    M, C = x0.shape
    L = params["wq"].shape[0]
    VPAD = params["lm_w"].shape[1]

    stacked = [params[k] for k in (
        "ln1_g", "ln1_b", "wq", "wk", "wv", "wproj", "bproj",
        "ln2_g", "ln2_b", "w1", "b1", "w2", "b2")]
    consts = [params[k] for k in ("lnf_g", "lnf_b", "lm_w", "lm_b")]

    in_specs = ([_const_spec(x0.shape), _const_spec(attn_bias.shape)]
                + [_layer_spec(w.shape) for w in stacked]
                + [_const_spec(w.shape) for w in consts])

    return pl.pallas_call(
        fused_forward_kernel,
        out_shape=jax.ShapeDtypeStruct((M, VPAD), jnp.float32),
        grid=(L,),
        in_specs=in_specs,
        out_specs=pl.BlockSpec((M, VPAD), lambda l: (0, 0)),
        scratch_shapes=[pltpu.VMEM((M, C), jnp.float32)],
        compiler_params=pltpu.CompilerParams(
            # sequential dependence through the resident activation scratch
            dimension_semantics=("arbitrary",),
            # actual footprint (~8 MB with double-buffered bf16 layer weights);
            # stays well inside v7x's 64 MiB physical VMEM
            vmem_limit_bytes=24 << 20,
        ),
    )(x0, attn_bias, *stacked, *consts)


# --------------------------- parameter creation -------------------------------
def init_params(key):
    def normal(k, shape, scale=0.02):
        return scale * jax.random.normal(k, shape, dtype=jnp.float32)

    C, H, HS, FF, L = N_EMBD, N_HEADS, HEAD_SIZE, FF_HIDDEN, N_LAYERS
    keys = iter(jax.random.split(key, 3 + L * 6))

    tok_emb = normal(next(keys), (VOCAB_SIZE, C))
    pos_emb = normal(next(keys), (BLOCK_SIZE, C))

    lm_w = normal(next(keys), (C, VOCAB_SIZE))
    lm_w_pad = jnp.zeros((C, VOCAB_PAD), jnp.float32).at[:, :VOCAB_SIZE].set(lm_w)
    lm_b_pad = jnp.zeros((1, VOCAB_PAD), jnp.float32)

    ln1_g, ln1_b, ln2_g, ln2_b = [], [], [], []
    wq, wk, wv, wproj, bproj = [], [], [], [], []
    w1, b1, w2, b2 = [], [], [], []
    for _ in range(L):
        Wq = normal(next(keys), (C, C))     # "x @ W" (in, out) convention
        Wk = normal(next(keys), (C, C))
        Wv = normal(next(keys), (C, C))
        Wp = normal(next(keys), (C, C))
        W1 = normal(next(keys), (C, FF))
        W2 = normal(next(keys), (FF, C))
        # per-head, lane-dense layouts:
        #   wq[h] = Wq[:, h*HS:(h+1)*HS].T  -> (HS, C)   (same for wk, wv)
        #   wproj[h] = Wp[h*HS:(h+1)*HS, :] -> (HS, C)
        wq.append(Wq.T.reshape(H, HS, C))
        wk.append(Wk.T.reshape(H, HS, C))
        wv.append(Wv.T.reshape(H, HS, C))
        wproj.append(Wp.reshape(H, HS, C))
        bproj.append(jnp.zeros((1, C), jnp.float32))
        ln1_g.append(jnp.ones((1, C), jnp.float32))
        ln1_b.append(jnp.zeros((1, C), jnp.float32))
        ln2_g.append(jnp.ones((1, C), jnp.float32))
        ln2_b.append(jnp.zeros((1, C), jnp.float32))
        w1.append(W1)
        b1.append(jnp.zeros((1, FF), jnp.float32))
        w2.append(W2)
        b2.append(jnp.zeros((1, C), jnp.float32))

    stack = lambda xs: jnp.stack(xs, axis=0)
    bf16 = lambda a: a.astype(jnp.bfloat16)

    return {
        "tok_emb": tok_emb, "pos_emb": pos_emb,
        "ln1_g": stack(ln1_g), "ln1_b": stack(ln1_b),
        "wq": bf16(stack(wq)), "wk": bf16(stack(wk)), "wv": bf16(stack(wv)),
        "wproj": bf16(stack(wproj)), "bproj": stack(bproj),
        "ln2_g": stack(ln2_g), "ln2_b": stack(ln2_b),
        "w1": bf16(stack(w1)), "b1": stack(b1),
        "w2": bf16(stack(w2)), "b2": stack(b2),
        "lnf_g": jnp.ones((1, C), jnp.float32),
        "lnf_b": jnp.zeros((1, C), jnp.float32),
        "lm_w": bf16(lm_w_pad), "lm_b": lm_b_pad,
    }


# ------------------------------ full forward ----------------------------------
@jax.jit
def bigram_lm_forward(idx, params):
    """idx: (B, T) int32 token ids. Returns logits (B, T, VOCAB_SIZE) f32."""
    B, T = idx.shape
    # Glue: embedding gathers in plain JAX.
    tok_emb = jnp.take(params["tok_emb"], idx, axis=0)          # (B, T, C)
    pos_emb = params["pos_emb"][:T]                             # (T, C)
    x = (tok_emb + pos_emb[None, :, :]).reshape(B * T, N_EMBD)  # fold batch into M

    # Pad M up to a sublane multiple; padded rows are isolated by the mask.
    M = B * T
    M_pad = ((M + 7) // 8) * 8
    if M_pad != M:
        x = jnp.pad(x, ((0, M_pad - M), (0, 0)))

    # Block-diagonal causal additive bias over folded rows (0 keep / -1e30 drop).
    ri = jnp.arange(M_pad)[:, None]
    ci = jnp.arange(M_pad)[None, :]
    keep = (ci <= ri) & ((ri // T) == (ci // T))
    attn_bias = jnp.where(keep, 0.0, -1e30).astype(jnp.float32)

    logits_pad = run_fused_model(x, attn_bias, params)          # (M_pad, VOCAB_PAD)
    logits = logits_pad[:M].reshape(B, T, VOCAB_PAD)[..., :VOCAB_SIZE]
    return logits                                               # loss=None path


# --------------------------------- main ---------------------------------------
if __name__ == "__main__":
    key = jax.random.PRNGKey(0)
    pkey, dkey = jax.random.split(key)
    params = init_params(pkey)

    B, T = 2, 16            # small shapes; T <= block_size (128)
    idx = jax.random.randint(dkey, (B, T), 0, VOCAB_SIZE, dtype=jnp.int32)

    logits = bigram_lm_forward(idx, params)
    logits = jax.block_until_ready(logits)

    assert logits.shape == (B, T, VOCAB_SIZE)
    assert logits.dtype == jnp.float32
    assert bool(jnp.isfinite(logits).all())
    print("KERNEL_OK")
</pallas_src>

<mosaic_0001>
module attributes {stable_mosaic.version = 11 : i64} {
  func.func @fused_forward_kernel(%arg0: i32, %arg1: memref<32x384xf32, #tpu.memory_space<vmem>>, %arg2: memref<32x32xf32, #tpu.memory_space<vmem>>, %arg3: memref<1x1x384xf32, #tpu.memory_space<vmem>>, %arg4: memref<1x1x384xf32, #tpu.memory_space<vmem>>, %arg5: memref<1x6x64x384xbf16, #tpu.memory_space<vmem>>, %arg6: memref<1x6x64x384xbf16, #tpu.memory_space<vmem>>, %arg7: memref<1x6x64x384xbf16, #tpu.memory_space<vmem>>, %arg8: memref<1x6x64x384xbf16, #tpu.memory_space<vmem>>, %arg9: memref<1x1x384xf32, #tpu.memory_space<vmem>>, %arg10: memref<1x1x384xf32, #tpu.memory_space<vmem>>, %arg11: memref<1x1x384xf32, #tpu.memory_space<vmem>>, %arg12: memref<1x384x1536xbf16, #tpu.memory_space<vmem>>, %arg13: memref<1x1x1536xf32, #tpu.memory_space<vmem>>, %arg14: memref<1x1536x384xbf16, #tpu.memory_space<vmem>>, %arg15: memref<1x1x384xf32, #tpu.memory_space<vmem>>, %arg16: memref<1x384xf32, #tpu.memory_space<vmem>>, %arg17: memref<1x384xf32, #tpu.memory_space<vmem>>, %arg18: memref<384x128xbf16, #tpu.memory_space<vmem>>, %arg19: memref<1x128xf32, #tpu.memory_space<vmem>>, %arg20: memref<32x128xf32, #tpu.memory_space<vmem>>, %arg21: memref<32x384xf32, #tpu.memory_space<vmem>>) attributes {dimension_semantics = [#tpu.dimension_semantics<arbitrary>], iteration_bounds = array<i64: 6>, scalar_prefetch = 0 : i64, scratch_operands = 1 : i64, tpu.core_type = #tpu.core_type<tc>, window_params = [{pipeline_mode = #tpu.pipeline_mode<synchronous>, transform_indices = @transform_0, window_bounds = array<i64: 32, 384>}, {pipeline_mode = #tpu.pipeline_mode<synchronous>, transform_indices = @transform_1, window_bounds = array<i64: 32, 32>}, {transform_indices = @transform_2, window_bounds = array<i64: 1, 1, 384>}, {transform_indices = @transform_3, window_bounds = array<i64: 1, 1, 384>}, {transform_indices = @transform_4, window_bounds = array<i64: 1, 6, 64, 384>}, {transform_indices = @transform_5, window_bounds = array<i64: 1, 6, 64, 384>}, {transform_indices = @transform_6, window_bounds = array<i64: 1, 6, 64, 384>}, {transform_indices = @transform_7, window_bounds = array<i64: 1, 6, 64, 384>}, {transform_indices = @transform_8, window_bounds = array<i64: 1, 1, 384>}, {transform_indices = @transform_9, window_bounds = array<i64: 1, 1, 384>}, {transform_indices = @transform_10, window_bounds = array<i64: 1, 1, 384>}, {transform_indices = @transform_11, window_bounds = array<i64: 1, 384, 1536>}, {transform_indices = @transform_12, window_bounds = array<i64: 1, 1, 1536>}, {transform_indices = @transform_13, window_bounds = array<i64: 1, 1536, 384>}, {transform_indices = @transform_14, window_bounds = array<i64: 1, 1, 384>}, {pipeline_mode = #tpu.pipeline_mode<synchronous>, transform_indices = @transform_15, window_bounds = array<i64: 1, 384>}, {pipeline_mode = #tpu.pipeline_mode<synchronous>, transform_indices = @transform_16, window_bounds = array<i64: 1, 384>}, {pipeline_mode = #tpu.pipeline_mode<synchronous>, transform_indices = @transform_17, window_bounds = array<i64: 384, 128>}, {pipeline_mode = #tpu.pipeline_mode<synchronous>, transform_indices = @transform_18, window_bounds = array<i64: 1, 128>}, {pipeline_mode = #tpu.pipeline_mode<synchronous>, transform_indices = @transform_19, window_bounds = array<i64: 32, 128>}]} {
    %c0_i32 = arith.constant 0 : i32
    %0 = arith.cmpi eq, %arg0, %c0_i32 : i32
    %1 = arith.extui %0 : i1 to i32
    %c0_i32_0 = arith.constant 0 : i32
    %2 = arith.cmpi ne, %1, %c0_i32_0 : i32
    scf.if %2 {
      %c0_192 = arith.constant 0 : index
      %c0_193 = arith.constant 0 : index
      %285 = vector.load %arg1[%c0_192, %c0_193] : memref<32x384xf32, #tpu.memory_space<vmem>>, vector<32x384xf32>
      %c0_194 = arith.constant 0 : index
      %c0_195 = arith.constant 0 : index
      %286 = vector.load %arg21[%c0_194, %c0_195] : memref<32x384xf32, #tpu.memory_space<vmem>>, vector<32x384xf32>
      tpu.vector_store %arg21[%c0_194, %c0_195], %285 {strides = array<i32>} : memref<32x384xf32, #tpu.memory_space<vmem>>, vector<32x384xf32>,
    } else {
    }
    %c0 = arith.constant 0 : index
    %c0_1 = arith.constant 0 : index
    %3 = vector.load %arg21[%c0, %c0_1] : memref<32x384xf32, #tpu.memory_space<vmem>>, vector<32x384xf32>
    %c0_2 = arith.constant 0 : index
    %c0_3 = arith.constant 0 : index
    %c0_4 = arith.constant 0 : index
    %4 = vector.load %arg3[%c0_2, %c0_3, %c0_4] : memref<1x1x384xf32, #tpu.memory_space<vmem>>, vector<1x1x384xf32>
    %5 = vector.shape_cast %4 : vector<1x1x384xf32> to vector<1x384xf32>
    %c0_5 = arith.constant 0 : index
    %c0_6 = arith.constant 0 : index
    %c0_7 = arith.constant 0 : index
    %6 = vector.load %arg4[%c0_5, %c0_6, %c0_7] : memref<1x1x384xf32, #tpu.memory_space<vmem>>, vector<1x1x384xf32>
    %7 = vector.shape_cast %6 : vector<1x1x384xf32> to vector<1x384xf32>
    %cst = arith.constant dense<0.000000e+00> : vector<32xf32>
    %8 = vector.multi_reduction <add>, %3, %cst [1] : vector<32x384xf32> to vector<32xf32>
    %9 = vector.shape_cast %8 : vector<32xf32> to vector<32x1xf32>
    %cst_8 = arith.constant 3.840000e+02 : f32
    %10 = vector.broadcast %cst_8 : f32 to vector<32x1xf32>
    %11 = arith.divf %9, %10 : vector<32x1xf32>
    %12 = vector.broadcast %11 : vector<32x1xf32> to vector<32x384xf32>
    %13 = arith.subf %3, %12 : vector<32x384xf32>
    %14 = arith.mulf %13, %13 : vector<32x384xf32>
    %cst_9 = arith.constant dense<0.000000e+00> : vector<32xf32>
    %15 = vector.multi_reduction <add>, %14, %cst_9 [1] : vector<32x384xf32> to vector<32xf32>
    %16 = vector.shape_cast %15 : vector<32xf32> to vector<32x1xf32>
    %cst_10 = arith.constant 3.840000e+02 : f32
    %17 = vector.broadcast %cst_10 : f32 to vector<32x1xf32>
    %18 = arith.divf %16, %17 : vector<32x1xf32>
    %19 = vector.broadcast %11 : vector<32x1xf32> to vector<32x384xf32>
    %20 = arith.subf %3, %19 : vector<32x384xf32>
    %cst_11 = arith.constant 9.99999974E-6 : f32
    %21 = vector.broadcast %cst_11 : f32 to vector<32x1xf32>
    %22 = arith.addf %18, %21 : vector<32x1xf32>
    %23 = math.rsqrt %22 : vector<32x1xf32>
    %24 = vector.broadcast %23 : vector<32x1xf32> to vector<32x384xf32>
    %25 = arith.mulf %20, %24 : vector<32x384xf32>
    %26 = vector.broadcast %5 : vector<1x384xf32> to vector<32x384xf32>
    %27 = arith.mulf %25, %26 : vector<32x384xf32>
    %28 = vector.broadcast %7 : vector<1x384xf32> to vector<32x384xf32>
    %29 = arith.addf %27, %28 : vector<32x384xf32>
    %30 = arith.truncf %29 : vector<32x384xf32> to vector<32x384xbf16>
    %c0_12 = arith.constant 0 : index
    %c0_13 = arith.constant 0 : index
    %31 = vector.load %arg2[%c0_12, %c0_13] : memref<32x32xf32, #tpu.memory_space<vmem>>, vector<32x32xf32>
    %cst_14 = arith.constant 0.000000e+00 : f32
    %32 = vector.broadcast %cst_14 : f32 to vector<32x384xf32>
    %c0_15 = arith.constant 0 : index
    %c0_16 = arith.constant 0 : index
    %c0_17 = arith.constant 0 : index
    %c0_18 = arith.constant 0 : index
    %33 = vector.load %arg5[%c0_15, %c0_16, %c0_17, %c0_18] : memref<1x6x64x384xbf16, #tpu.memory_space<vmem>>, vector<1x1x64x384xbf16>
    %34 = vector.shape_cast %33 : vector<1x1x64x384xbf16> to vector<64x384xbf16>
    %cst_19 = arith.constant dense<0.000000e+00> : vector<32x64xf32>
    %35 = tpu.matmul %30, %34, %cst_19 {dimension_numbers = #tpu.dot_dimension_numbers<[1], [1], [0], [0], [0, 0, 1, 0], [], []>} : vector<32x384xbf16>, vector<64x384xbf16>, vector<32x64xf32> -> vector<32x64xf32>
    %c0_20 = arith.constant 0 : index
    %c0_21 = arith.constant 0 : index
    %c0_22 = arith.constant 0 : index
    %c0_23 = arith.constant 0 : index
    %36 = vector.load %arg6[%c0_20, %c0_21, %c0_22, %c0_23] : memref<1x6x64x384xbf16, #tpu.memory_space<vmem>>, vector<1x1x64x384xbf16>
    %37 = vector.shape_cast %36 : vector<1x1x64x384xbf16> to vector<64x384xbf16>
    %cst_24 = arith.constant dense<0.000000e+00> : vector<32x64xf32>
    %38 = tpu.matmul %30, %37, %cst_24 {dimension_numbers = #tpu.dot_dimension_numbers<[1], [1], [0], [0], [0, 0, 1, 0], [], []>} : vector<32x384xbf16>, vector<64x384xbf16>, vector<32x64xf32> -> vector<32x64xf32>
    %c0_25 = arith.constant 0 : index
    %c0_26 = arith.constant 0 : index
    %c0_27 = arith.constant 0 : index
    %c0_28 = arith.constant 0 : index
    %39 = vector.load %arg7[%c0_25, %c0_26, %c0_27, %c0_28] : memref<1x6x64x384xbf16, #tpu.memory_space<vmem>>, vector<1x1x64x384xbf16>
    %40 = vector.shape_cast %39 : vector<1x1x64x384xbf16> to vector<64x384xbf16>
    %cst_29 = arith.constant dense<0.000000e+00> : vector<32x64xf32>
    %41 = tpu.matmul %30, %40, %cst_29 {dimension_numbers = #tpu.dot_dimension_numbers<[1], [1], [0], [0], [0, 0, 1, 0], [], []>} : vector<32x384xbf16>, vector<64x384xbf16>, vector<32x64xf32> -> vector<32x64xf32>
    %42 = arith.truncf %35 : vector<32x64xf32> to vector<32x64xbf16>
    %43 = arith.truncf %38 : vector<32x64xf32> to vector<32x64xbf16>
    %cst_30 = arith.constant dense<0.000000e+00> : vector<32x32xf32>
    %44 = tpu.matmul %42, %43, %cst_30 {dimension_numbers = #tpu.dot_dimension_numbers<[1], [1], [0], [0], [0, 0, 1, 0], [], []>} : vector<32x64xbf16>, vector<32x64xbf16>, vector<32x32xf32> -> vector<32x32xf32>
    %cst_31 = arith.constant 0.0510310382 : f32
    %45 = vector.broadcast %cst_31 : f32 to vector<32x32xf32>
    %46 = arith.addf %44, %45 : vector<32x32xf32>
    %47 = arith.addf %46, %31 : vector<32x32xf32>
    %cst_32 = arith.constant dense<0xFF800000> : vector<32xf32>
    %48 = vector.multi_reduction <maximumf>, %47, %cst_32 [1] : vector<32x32xf32> to vector<32xf32>
    %49 = vector.shape_cast %48 : vector<32xf32> to vector<32x1xf32>
    %50 = vector.broadcast %49 : vector<32x1xf32> to vector<32x32xf32>
    %51 = arith.subf %47, %50 : vector<32x32xf32>
    %52 = math.exp %51 : vector<32x32xf32>
    %cst_33 = arith.constant dense<0.000000e+00> : vector<32xf32>
    %53 = vector.multi_reduction <add>, %52, %cst_33 [1] : vector<32x32xf32> to vector<32xf32>
    %54 = vector.shape_cast %53 : vector<32xf32> to vector<32x1xf32>
    %55 = tpu.reciprocal %54 {approx = true} : vector<32x1xf32> -> vector<32x1xf32>
    %56 = vector.broadcast %55 : vector<32x1xf32> to vector<32x32xf32>
    %57 = arith.mulf %52, %56 : vector<32x32xf32>
    %58 = arith.truncf %57 : vector<32x32xf32> to vector<32x32xbf16>
    %59 = arith.truncf %41 : vector<32x64xf32> to vector<32x64xbf16>
    %cst_34 = arith.constant dense<0.000000e+00> : vector<32x64xf32>
    %60 = tpu.matmul %58, %59, %cst_34 {dimension_numbers = #tpu.dot_dimension_numbers<[1], [0], [0], [1], [0, 0, 1, 1], [], []>} : vector<32x32xbf16>, vector<32x64xbf16>, vector<32x64xf32> -> vector<32x64xf32>
    %61 = arith.truncf %60 : vector<32x64xf32> to vector<32x64xbf16>
    %c0_35 = arith.constant 0 : index
    %c0_36 = arith.constant 0 : index
    %c0_37 = arith.constant 0 : index
    %c0_38 = arith.constant 0 : index
    %62 = vector.load %arg8[%c0_35, %c0_36, %c0_37, %c0_38] : memref<1x6x64x384xbf16, #tpu.memory_space<vmem>>, vector<1x1x64x384xbf16>
    %63 = vector.shape_cast %62 : vector<1x1x64x384xbf16> to vector<64x384xbf16>
    %cst_39 = arith.constant dense<0.000000e+00> : vector<32x384xf32>
    %64 = tpu.matmul %61, %63, %cst_39 {dimension_numbers = #tpu.dot_dimension_numbers<[1], [0], [0], [1], [0, 0, 1, 1], [], []>} : vector<32x64xbf16>, vector<64x384xbf16>, vector<32x384xf32> -> vector<32x384xf32>
    %65 = arith.addf %32, %64 : vector<32x384xf32>
    %c0_40 = arith.constant 0 : index
    %c1 = arith.constant 1 : index
    %c0_41 = arith.constant 0 : index
    %c0_42 = arith.constant 0 : index
    %66 = vector.load %arg5[%c0_40, %c1, %c0_41, %c0_42] : memref<1x6x64x384xbf16, #tpu.memory_space<vmem>>, vector<1x1x64x384xbf16>
    %67 = vector.shape_cast %66 : vector<1x1x64x384xbf16> to vector<64x384xbf16>
    %cst_43 = arith.constant dense<0.000000e+00> : vector<32x64xf32>
    %68 = tpu.matmul %30, %67, %cst_43 {dimension_numbers = #tpu.dot_dimension_numbers<[1], [1], [0], [0], [0, 0, 1, 0], [], []>} : vector<32x384xbf16>, vector<64x384xbf16>, vector<32x64xf32> -> vector<32x64xf32>
    %c0_44 = arith.constant 0 : index
    %c1_45 = arith.constant 1 : index
    %c0_46 = arith.constant 0 : index
    %c0_47 = arith.constant 0 : index
    %69 = vector.load %arg6[%c0_44, %c1_45, %c0_46, %c0_47] : memref<1x6x64x384xbf16, #tpu.memory_space<vmem>>, vector<1x1x64x384xbf16>
    %70 = vector.shape_cast %69 : vector<1x1x64x384xbf16> to vector<64x384xbf16>
    %cst_48 = arith.constant dense<0.000000e+00> : vector<32x64xf32>
    %71 = tpu.matmul %30, %70, %cst_48 {dimension_numbers = #tpu.dot_dimension_numbers<[1], [1], [0], [0], [0, 0, 1, 0], [], []>} : vector<32x384xbf16>, vector<64x384xbf16>, vector<32x64xf32> -> vector<32x64xf32>
    %c0_49 = arith.constant 0 : index
    %c1_50 = arith.constant 1 : index
    %c0_51 = arith.constant 0 : index
    %c0_52 = arith.constant 0 : index
    %72 = vector.load %arg7[%c0_49, %c1_50, %c0_51, %c0_52] : memref<1x6x64x384xbf16, #tpu.memory_space<vmem>>, vector<1x1x64x384xbf16>
    %73 = vector.shape_cast %72 : vector<1x1x64x384xbf16> to vector<64x384xbf16>
    %cst_53 = arith.constant dense<0.000000e+00> : vector<32x64xf32>
    %74 = tpu.matmul %30, %73, %cst_53 {dimension_numbers = #tpu.dot_dimension_numbers<[1], [1], [0], [0], [0, 0, 1, 0], [], []>} : vector<32x384xbf16>, vector<64x384xbf16>, vector<32x64xf32> -> vector<32x64xf32>
    %75 = arith.truncf %68 : vector<32x64xf32> to vector<32x64xbf16>
    %76 = arith.truncf %71 : vector<32x64xf32> to vector<32x64xbf16>
    %cst_54 = arith.constant dense<0.000000e+00> : vector<32x32xf32>
    %77 = tpu.matmul %75, %76, %cst_54 {dimension_numbers = #tpu.dot_dimension_numbers<[1], [1], [0], [0], [0, 0, 1, 0], [], []>} : vector<32x64xbf16>, vector<32x64xbf16>, vector<32x32xf32> -> vector<32x32xf32>
    %cst_55 = arith.constant 0.0510310382 : f32
    %78 = vector.broadcast %cst_55 : f32 to vector<32x32xf32>
    %79 = arith.addf %77, %78 : vector<32x32xf32>
    %80 = arith.addf %79, %31 : vector<32x32xf32>
    %cst_56 = arith.constant dense<0xFF800000> : vector<32xf32>
    %81 = vector.multi_reduction <maximumf>, %80, %cst_56 [1] : vector<32x32xf32> to vector<32xf32>
    %82 = vector.shape_cast %81 : vector<32xf32> to vector<32x1xf32>
    %83 = vector.broadcast %82 : vector<32x1xf32> to vector<32x32xf32>
    %84 = arith.subf %80, %83 : vector<32x32xf32>
    %85 = math.exp %84 : vector<32x32xf32>
    %cst_57 = arith.constant dense<0.000000e+00> : vector<32xf32>
    %86 = vector.multi_reduction <add>, %85, %cst_57 [1] : vector<32x32xf32> to vector<32xf32>
    %87 = vector.shape_cast %86 : vector<32xf32> to vector<32x1xf32>
    %88 = tpu.reciprocal %87 {approx = true} : vector<32x1xf32> -> vector<32x1xf32>
    %89 = vector.broadcast %88 : vector<32x1xf32> to vector<32x32xf32>
    %90 = arith.mulf %85, %89 : vector<32x32xf32>
    %91 = arith.truncf %90 : vector<32x32xf32> to vector<32x32xbf16>
    %92 = arith.truncf %74 : vector<32x64xf32> to vector<32x64xbf16>
    %cst_58 = arith.constant dense<0.000000e+00> : vector<32x64xf32>
    %93 = tpu.matmul %91, %92, %cst_58 {dimension_numbers = #tpu.dot_dimension_numbers<[1], [0], [0], [1], [0, 0, 1, 1], [], []>} : vector<32x32xbf16>, vector<32x64xbf16>, vector<32x64xf32> -> vector<32x64xf32>
    %94 = arith.truncf %93 : vector<32x64xf32> to vector<32x64xbf16>
    %c0_59 = arith.constant 0 : index
    %c1_60 = arith.constant 1 : index
    %c0_61 = arith.constant 0 : index
    %c0_62 = arith.constant 0 : index
    %95 = vector.load %arg8[%c0_59, %c1_60, %c0_61, %c0_62] : memref<1x6x64x384xbf16, #tpu.memory_space<vmem>>, vector<1x1x64x384xbf16>
    %96 = vector.shape_cast %95 : vector<1x1x64x384xbf16> to vector<64x384xbf16>
    %cst_63 = arith.constant dense<0.000000e+00> : vector<32x384xf32>
    %97 = tpu.matmul %94, %96, %cst_63 {dimension_numbers = #tpu.dot_dimension_numbers<[1], [0], [0], [1], [0, 0, 1, 1], [], []>} : vector<32x64xbf16>, vector<64x384xbf16>, vector<32x384xf32> -> vector<32x384xf32>
    %98 = arith.addf %65, %97 : vector<32x384xf32>
    %c0_64 = arith.constant 0 : index
    %c2 = arith.constant 2 : index
    %c0_65 = arith.constant 0 : index
    %c0_66 = arith.constant 0 : index
    %99 = vector.load %arg5[%c0_64, %c2, %c0_65, %c0_66] : memref<1x6x64x384xbf16, #tpu.memory_space<vmem>>, vector<1x1x64x384xbf16>
    %100 = vector.shape_cast %99 : vector<1x1x64x384xbf16> to vector<64x384xbf16>
    %cst_67 = arith.constant dense<0.000000e+00> : vector<32x64xf32>
    %101 = tpu.matmul %30, %100, %cst_67 {dimension_numbers = #tpu.dot_dimension_numbers<[1], [1], [0], [0], [0, 0, 1, 0], [], []>} : vector<32x384xbf16>, vector<64x384xbf16>, vector<32x64xf32> -> vector<32x64xf32>
    %c0_68 = arith.constant 0 : index
    %c2_69 = arith.constant 2 : index
    %c0_70 = arith.constant 0 : index
    %c0_71 = arith.constant 0 : index
    %102 = vector.load %arg6[%c0_68, %c2_69, %c0_70, %c0_71] : memref<1x6x64x384xbf16, #tpu.memory_space<vmem>>, vector<1x1x64x384xbf16>
    %103 = vector.shape_cast %102 : vector<1x1x64x384xbf16> to vector<64x384xbf16>
    %cst_72 = arith.constant dense<0.000000e+00> : vector<32x64xf32>
    %104 = tpu.matmul %30, %103, %cst_72 {dimension_numbers = #tpu.dot_dimension_numbers<[1], [1], [0], [0], [0, 0, 1, 0], [], []>} : vector<32x384xbf16>, vector<64x384xbf16>, vector<32x64xf32> -> vector<32x64xf32>
    %c0_73 = arith.constant 0 : index
    %c2_74 = arith.constant 2 : index
    %c0_75 = arith.constant 0 : index
    %c0_76 = arith.constant 0 : index
    %105 = vector.load %arg7[%c0_73, %c2_74, %c0_75, %c0_76] : memref<1x6x64x384xbf16, #tpu.memory_space<vmem>>, vector<1x1x64x384xbf16>
    %106 = vector.shape_cast %105 : vector<1x1x64x384xbf16> to vector<64x384xbf16>
    %cst_77 = arith.constant dense<0.000000e+00> : vector<32x64xf32>
    %107 = tpu.matmul %30, %106, %cst_77 {dimension_numbers = #tpu.dot_dimension_numbers<[1], [1], [0], [0], [0, 0, 1, 0], [], []>} : vector<32x384xbf16>, vector<64x384xbf16>, vector<32x64xf32> -> vector<32x64xf32>
    %108 = arith.truncf %101 : vector<32x64xf32> to vector<32x64xbf16>
    %109 = arith.truncf %104 : vector<32x64xf32> to vector<32x64xbf16>
    %cst_78 = arith.constant dense<0.000000e+00> : vector<32x32xf32>
    %110 = tpu.matmul %108, %109, %cst_78 {dimension_numbers = #tpu.dot_dimension_numbers<[1], [1], [0], [0], [0, 0, 1, 0], [], []>} : vector<32x64xbf16>, vector<32x64xbf16>, vector<32x32xf32> -> vector<32x32xf32>
    %cst_79 = arith.constant 0.0510310382 : f32
    %111 = vector.broadcast %cst_79 : f32 to vector<32x32xf32>
    %112 = arith.addf %110, %111 : vector<32x32xf32>
    %113 = arith.addf %112, %31 : vector<32x32xf32>
    %cst_80 = arith.constant dense<0xFF800000> : vector<32xf32>
    %114 = vector.multi_reduction <maximumf>, %113, %cst_80 [1] : vector<32x32xf32> to vector<32xf32>
    %115 = vector.shape_cast %114 : vector<32xf32> to vector<32x1xf32>
    %116 = vector.broadcast %115 : vector<32x1xf32> to vector<32x32xf32>
    %117 = arith.subf %113, %116 : vector<32x32xf32>
    %118 = math.exp %117 : vector<32x32xf32>
    %cst_81 = arith.constant dense<0.000000e+00> : vector<32xf32>
    %119 = vector.multi_reduction <add>, %118, %cst_81 [1] : vector<32x32xf32> to vector<32xf32>
    %120 = vector.shape_cast %119 : vector<32xf32> to vector<32x1xf32>
    %121 = tpu.reciprocal %120 {approx = true} : vector<32x1xf32> -> vector<32x1xf32>
    %122 = vector.broadcast %121 : vector<32x1xf32> to vector<32x32xf32>
    %123 = arith.mulf %118, %122 : vector<32x32xf32>
    %124 = arith.truncf %123 : vector<32x32xf32> to vector<32x32xbf16>
    %125 = arith.truncf %107 : vector<32x64xf32> to vector<32x64xbf16>
    %cst_82 = arith.constant dense<0.000000e+00> : vector<32x64xf32>
    %126 = tpu.matmul %124, %125, %cst_82 {dimension_numbers = #tpu.dot_dimension_numbers<[1], [0], [0], [1], [0, 0, 1, 1], [], []>} : vector<32x32xbf16>, vector<32x64xbf16>, vector<32x64xf32> -> vector<32x64xf32>
    %127 = arith.truncf %126 : vector<32x64xf32> to vector<32x64xbf16>
    %c0_83 = arith.constant 0 : index
    %c2_84 = arith.constant 2 : index
    %c0_85 = arith.constant 0 : index
    %c0_86 = arith.constant 0 : index
    %128 = vector.load %arg8[%c0_83, %c2_84, %c0_85, %c0_86] : memref<1x6x64x384xbf16, #tpu.memory_space<vmem>>, vector<1x1x64x384xbf16>
    %129 = vector.shape_cast %128 : vector<1x1x64x384xbf16> to vector<64x384xbf16>
    %cst_87 = arith.constant dense<0.000000e+00> : vector<32x384xf32>
    %130 = tpu.matmul %127, %129, %cst_87 {dimension_numbers = #tpu.dot_dimension_numbers<[1], [0], [0], [1], [0, 0, 1, 1], [], []>} : vector<32x64xbf16>, vector<64x384xbf16>, vector<32x384xf32> -> vector<32x384xf32>
    %131 = arith.addf %98, %130 : vector<32x384xf32>
    %c0_88 = arith.constant 0 : index
    %c3 = arith.constant 3 : index
    %c0_89 = arith.constant 0 : index
    %c0_90 = arith.constant 0 : index
    %132 = vector.load %arg5[%c0_88, %c3, %c0_89, %c0_90] : memref<1x6x64x384xbf16, #tpu.memory_space<vmem>>, vector<1x1x64x384xbf16>
    %133 = vector.shape_cast %132 : vector<1x1x64x384xbf16> to vector<64x384xbf16>
    %cst_91 = arith.constant dense<0.000000e+00> : vector<32x64xf32>
    %134 = tpu.matmul %30, %133, %cst_91 {dimension_numbers = #tpu.dot_dimension_numbers<[1], [1], [0], [0], [0, 0, 1, 0], [], []>} : vector<32x384xbf16>, vector<64x384xbf16>, vector<32x64xf32> -> vector<32x64xf32>
    %c0_92 = arith.constant 0 : index
    %c3_93 = arith.constant 3 : index
    %c0_94 = arith.constant 0 : index
    %c0_95 = arith.constant 0 : index
    %135 = vector.load %arg6[%c0_92, %c3_93, %c0_94, %c0_95] : memref<1x6x64x384xbf16, #tpu.memory_space<vmem>>, vector<1x1x64x384xbf16>
    %136 = vector.shape_cast %135 : vector<1x1x64x384xbf16> to vector<64x384xbf16>
    %cst_96 = arith.constant dense<0.000000e+00> : vector<32x64xf32>
    %137 = tpu.matmul %30, %136, %cst_96 {dimension_numbers = #tpu.dot_dimension_numbers<[1], [1], [0], [0], [0, 0, 1, 0], [], []>} : vector<32x384xbf16>, vector<64x384xbf16>, vector<32x64xf32> -> vector<32x64xf32>
    %c0_97 = arith.constant 0 : index
    %c3_98 = arith.constant 3 : index
    %c0_99 = arith.constant 0 : index
    %c0_100 = arith.constant 0 : index
    %138 = vector.load %arg7[%c0_97, %c3_98, %c0_99, %c0_100] : memref<1x6x64x384xbf16, #tpu.memory_space<vmem>>, vector<1x1x64x384xbf16>
    %139 = vector.shape_cast %138 : vector<1x1x64x384xbf16> to vector<64x384xbf16>
    %cst_101 = arith.constant dense<0.000000e+00> : vector<32x64xf32>
    %140 = tpu.matmul %30, %139, %cst_101 {dimension_numbers = #tpu.dot_dimension_numbers<[1], [1], [0], [0], [0, 0, 1, 0], [], []>} : vector<32x384xbf16>, vector<64x384xbf16>, vector<32x64xf32> -> vector<32x64xf32>
    %141 = arith.truncf %134 : vector<32x64xf32> to vector<32x64xbf16>
    %142 = arith.truncf %137 : vector<32x64xf32> to vector<32x64xbf16>
    %cst_102 = arith.constant dense<0.000000e+00> : vector<32x32xf32>
    %143 = tpu.matmul %141, %142, %cst_102 {dimension_numbers = #tpu.dot_dimension_numbers<[1], [1], [0], [0], [0, 0, 1, 0], [], []>} : vector<32x64xbf16>, vector<32x64xbf16>, vector<32x32xf32> -> vector<32x32xf32>
    %cst_103 = arith.constant 0.0510310382 : f32
    %144 = vector.broadcast %cst_103 : f32 to vector<32x32xf32>
    %145 = arith.addf %143, %144 : vector<32x32xf32>
    %146 = arith.addf %145, %31 : vector<32x32xf32>
    %cst_104 = arith.constant dense<0xFF800000> : vector<32xf32>
    %147 = vector.multi_reduction <maximumf>, %146, %cst_104 [1] : vector<32x32xf32> to vector<32xf32>
    %148 = vector.shape_cast %147 : vector<32xf32> to vector<32x1xf32>
    %149 = vector.broadcast %148 : vector<32x1xf32> to vector<32x32xf32>
    %150 = arith.subf %146, %149 : vector<32x32xf32>
    %151 = math.exp %150 : vector<32x32xf32>
    %cst_105 = arith.constant dense<0.000000e+00> : vector<32xf32>
    %152 = vector.multi_reduction <add>, %151, %cst_105 [1] : vector<32x32xf32> to vector<32xf32>
    %153 = vector.shape_cast %152 : vector<32xf32> to vector<32x1xf32>
    %154 = tpu.reciprocal %153 {approx = true} : vector<32x1xf32> -> vector<32x1xf32>
    %155 = vector.broadcast %154 : vector<32x1xf32> to vector<32x32xf32>
    %156 = arith.mulf %151, %155 : vector<32x32xf32>
    %157 = arith.truncf %156 : vector<32x32xf32> to vector<32x32xbf16>
    %158 = arith.truncf %140 : vector<32x64xf32> to vector<32x64xbf16>
    %cst_106 = arith.constant dense<0.000000e+00> : vector<32x64xf32>
    %159 = tpu.matmul %157, %158, %cst_106 {dimension_numbers = #tpu.dot_dimension_numbers<[1], [0], [0], [1], [0, 0, 1, 1], [], []>} : vector<32x32xbf16>, vector<32x64xbf16>, vector<32x64xf32> -> vector<32x64xf32>
    %160 = arith.truncf %159 : vector<32x64xf32> to vector<32x64xbf16>
    %c0_107 = arith.constant 0 : index
    %c3_108 = arith.constant 3 : index
    %c0_109 = arith.constant 0 : index
    %c0_110 = arith.constant 0 : index
    %161 = vector.load %arg8[%c0_107, %c3_108, %c0_109, %c0_110] : memref<1x6x64x384xbf16, #tpu.memory_space<vmem>>, vector<1x1x64x384xbf16>
    %162 = vector.shape_cast %161 : vector<1x1x64x384xbf16> to vector<64x384xbf16>
    %cst_111 = arith.constant dense<0.000000e+00> : vector<32x384xf32>
    %163 = tpu.matmul %160, %162, %cst_111 {dimension_numbers = #tpu.dot_dimension_numbers<[1], [0], [0], [1], [0, 0, 1, 1], [], []>} : vector<32x64xbf16>, vector<64x384xbf16>, vector<32x384xf32> -> vector<32x384xf32>
    %164 = arith.addf %131, %163 : vector<32x384xf32>
    %c0_112 = arith.constant 0 : index
    %c4 = arith.constant 4 : index
    %c0_113 = arith.constant 0 : index
    %c0_114 = arith.constant 0 : index
    %165 = vector.load %arg5[%c0_112, %c4, %c0_113, %c0_114] : memref<1x6x64x384xbf16, #tpu.memory_space<vmem>>, vector<1x1x64x384xbf16>
    %166 = vector.shape_cast %165 : vector<1x1x64x384xbf16> to vector<64x384xbf16>
    %cst_115 = arith.constant dense<0.000000e+00> : vector<32x64xf32>
    %167 = tpu.matmul %30, %166, %cst_115 {dimension_numbers = #tpu.dot_dimension_numbers<[1], [1], [0], [0], [0, 0, 1, 0], [], []>} : vector<32x384xbf16>, vector<64x384xbf16>, vector<32x64xf32> -> vector<32x64xf32>
    %c0_116 = arith.constant 0 : index
    %c4_117 = arith.constant 4 : index
    %c0_118 = arith.constant 0 : index
    %c0_119 = arith.constant 0 : index
    %168 = vector.load %arg6[%c0_116, %c4_117, %c0_118, %c0_119] : memref<1x6x64x384xbf16, #tpu.memory_space<vmem>>, vector<1x1x64x384xbf16>
    %169 = vector.shape_cast %168 : vector<1x1x64x384xbf16> to vector<64x384xbf16>
    %cst_120 = arith.constant dense<0.000000e+00> : vector<32x64xf32>
    %170 = tpu.matmul %30, %169, %cst_120 {dimension_numbers = #tpu.dot_dimension_numbers<[1], [1], [0], [0], [0, 0, 1, 0], [], []>} : vector<32x384xbf16>, vector<64x384xbf16>, vector<32x64xf32> -> vector<32x64xf32>
    %c0_121 = arith.constant 0 : index
    %c4_122 = arith.constant 4 : index
    %c0_123 = arith.constant 0 : index
    %c0_124 = arith.constant 0 : index
    %171 = vector.load %arg7[%c0_121, %c4_122, %c0_123, %c0_124] : memref<1x6x64x384xbf16, #tpu.memory_space<vmem>>, vector<1x1x64x384xbf16>
    %172 = vector.shape_cast %171 : vector<1x1x64x384xbf16> to vector<64x384xbf16>
    %cst_125 = arith.constant dense<0.000000e+00> : vector<32x64xf32>
    %173 = tpu.matmul %30, %172, %cst_125 {dimension_numbers = #tpu.dot_dimension_numbers<[1], [1], [0], [0], [0, 0, 1, 0], [], []>} : vector<32x384xbf16>, vector<64x384xbf16>, vector<32x64xf32> -> vector<32x64xf32>
    %174 = arith.truncf %167 : vector<32x64xf32> to vector<32x64xbf16>
    %175 = arith.truncf %170 : vector<32x64xf32> to vector<32x64xbf16>
    %cst_126 = arith.constant dense<0.000000e+00> : vector<32x32xf32>
    %176 = tpu.matmul %174, %175, %cst_126 {dimension_numbers = #tpu.dot_dimension_numbers<[1], [1], [0], [0], [0, 0, 1, 0], [], []>} : vector<32x64xbf16>, vector<32x64xbf16>, vector<32x32xf32> -> vector<32x32xf32>
    %cst_127 = arith.constant 0.0510310382 : f32
    %177 = vector.broadcast %cst_127 : f32 to vector<32x32xf32>
    %178 = arith.addf %176, %177 : vector<32x32xf32>
    %179 = arith.addf %178, %31 : vector<32x32xf32>
    %cst_128 = arith.constant dense<0xFF800000> : vector<32xf32>
    %180 = vector.multi_reduction <maximumf>, %179, %cst_128 [1] : vector<32x32xf32> to vector<32xf32>
    %181 = vector.shape_cast %180 : vector<32xf32> to vector<32x1xf32>
    %182 = vector.broadcast %181 : vector<32x1xf32> to vector<32x32xf32>
    %183 = arith.subf %179, %182 : vector<32x32xf32>
    %184 = math.exp %183 : vector<32x32xf32>
    %cst_129 = arith.constant dense<0.000000e+00> : vector<32xf32>
    %185 = vector.multi_reduction <add>, %184, %cst_129 [1] : vector<32x32xf32> to vector<32xf32>
    %186 = vector.shape_cast %185 : vector<32xf32> to vector<32x1xf32>
    %187 = tpu.reciprocal %186 {approx = true} : vector<32x1xf32> -> vector<32x1xf32>
    %188 = vector.broadcast %187 : vector<32x1xf32> to vector<32x32xf32>
    %189 = arith.mulf %184, %188 : vector<32x32xf32>
    %190 = arith.truncf %189 : vector<32x32xf32> to vector<32x32xbf16>
    %191 = arith.truncf %173 : vector<32x64xf32> to vector<32x64xbf16>
    %cst_130 = arith.constant dense<0.000000e+00> : vector<32x64xf32>
    %192 = tpu.matmul %190, %191, %cst_130 {dimension_numbers = #tpu.dot_dimension_numbers<[1], [0], [0], [1], [0, 0, 1, 1], [], []>} : vector<32x32xbf16>, vector<32x64xbf16>, vector<32x64xf32> -> vector<32x64xf32>
    %193 = arith.truncf %192 : vector<32x64xf32> to vector<32x64xbf16>
    %c0_131 = arith.constant 0 : index
    %c4_132 = arith.constant 4 : index
    %c0_133 = arith.constant 0 : index
    %c0_134 = arith.constant 0 : index
    %194 = vector.load %arg8[%c0_131, %c4_132, %c0_133, %c0_134] : memref<1x6x64x384xbf16, #tpu.memory_space<vmem>>, vector<1x1x64x384xbf16>
    %195 = vector.shape_cast %194 : vector<1x1x64x384xbf16> to vector<64x384xbf16>
    %cst_135 = arith.constant dense<0.000000e+00> : vector<32x384xf32>
    %196 = tpu.matmul %193, %195, %cst_135 {dimension_numbers = #tpu.dot_dimension_numbers<[1], [0], [0], [1], [0, 0, 1, 1], [], []>} : vector<32x64xbf16>, vector<64x384xbf16>, vector<32x384xf32> -> vector<32x384xf32>
    %197 = arith.addf %164, %196 : vector<32x384xf32>
    %c0_136 = arith.constant 0 : index
    %c5 = arith.constant 5 : index
    %c0_137 = arith.constant 0 : index
    %c0_138 = arith.constant 0 : index
    %198 = vector.load %arg5[%c0_136, %c5, %c0_137, %c0_138] : memref<1x6x64x384xbf16, #tpu.memory_space<vmem>>, vector<1x1x64x384xbf16>
    %199 = vector.shape_cast %198 : vector<1x1x64x384xbf16> to vector<64x384xbf16>
    %cst_139 = arith.constant dense<0.000000e+00> : vector<32x64xf32>
    %200 = tpu.matmul %30, %199, %cst_139 {dimension_numbers = #tpu.dot_dimension_numbers<[1], [1], [0], [0], [0, 0, 1, 0], [], []>} : vector<32x384xbf16>, vector<64x384xbf16>, vector<32x64xf32> -> vector<32x64xf32>
    %c0_140 = arith.constant 0 : index
    %c5_141 = arith.constant 5 : index
    %c0_142 = arith.constant 0 : index
    %c0_143 = arith.constant 0 : index
    %201 = vector.load %arg6[%c0_140, %c5_141, %c0_142, %c0_143] : memref<1x6x64x384xbf16, #tpu.memory_space<vmem>>, vector<1x1x64x384xbf16>
    %202 = vector.shape_cast %201 : vector<1x1x64x384xbf16> to vector<64x384xbf16>
    %cst_144 = arith.constant dense<0.000000e+00> : vector<32x64xf32>
    %203 = tpu.matmul %30, %202, %cst_144 {dimension_numbers = #tpu.dot_dimension_numbers<[1], [1], [0], [0], [0, 0, 1, 0], [], []>} : vector<32x384xbf16>, vector<64x384xbf16>, vector<32x64xf32> -> vector<32x64xf32>
    %c0_145 = arith.constant 0 : index
    %c5_146 = arith.constant 5 : index
    %c0_147 = arith.constant 0 : index
    %c0_148 = arith.constant 0 : index
    %204 = vector.load %arg7[%c0_145, %c5_146, %c0_147, %c0_148] : memref<1x6x64x384xbf16, #tpu.memory_space<vmem>>, vector<1x1x64x384xbf16>
    %205 = vector.shape_cast %204 : vector<1x1x64x384xbf16> to vector<64x384xbf16>
    %cst_149 = arith.constant dense<0.000000e+00> : vector<32x64xf32>
    %206 = tpu.matmul %30, %205, %cst_149 {dimension_numbers = #tpu.dot_dimension_numbers<[1], [1], [0], [0], [0, 0, 1, 0], [], []>} : vector<32x384xbf16>, vector<64x384xbf16>, vector<32x64xf32> -> vector<32x64xf32>
    %207 = arith.truncf %200 : vector<32x64xf32> to vector<32x64xbf16>
    %208 = arith.truncf %203 : vector<32x64xf32> to vector<32x64xbf16>
    %cst_150 = arith.constant dense<0.000000e+00> : vector<32x32xf32>
    %209 = tpu.matmul %207, %208, %cst_150 {dimension_numbers = #tpu.dot_dimension_numbers<[1], [1], [0], [0], [0, 0, 1, 0], [], []>} : vector<32x64xbf16>, vector<32x64xbf16>, vector<32x32xf32> -> vector<32x32xf32>
    %cst_151 = arith.constant 0.0510310382 : f32
    %210 = vector.broadcast %cst_151 : f32 to vector<32x32xf32>
    %211 = arith.addf %209, %210 : vector<32x32xf32>
    %212 = arith.addf %211, %31 : vector<32x32xf32>
    %cst_152 = arith.constant dense<0xFF800000> : vector<32xf32>
    %213 = vector.multi_reduction <maximumf>, %212, %cst_152 [1] : vector<32x32xf32> to vector<32xf32>
    %214 = vector.shape_cast %213 : vector<32xf32> to vector<32x1xf32>
    %215 = vector.broadcast %214 : vector<32x1xf32> to vector<32x32xf32>
    %216 = arith.subf %212, %215 : vector<32x32xf32>
    %217 = math.exp %216 : vector<32x32xf32>
    %cst_153 = arith.constant dense<0.000000e+00> : vector<32xf32>
    %218 = vector.multi_reduction <add>, %217, %cst_153 [1] : vector<32x32xf32> to vector<32xf32>
    %219 = vector.shape_cast %218 : vector<32xf32> to vector<32x1xf32>
    %220 = tpu.reciprocal %219 {approx = true} : vector<32x1xf32> -> vector<32x1xf32>
    %221 = vector.broadcast %220 : vector<32x1xf32> to vector<32x32xf32>
    %222 = arith.mulf %217, %221 : vector<32x32xf32>
    %223 = arith.truncf %222 : vector<32x32xf32> to vector<32x32xbf16>
    %224 = arith.truncf %206 : vector<32x64xf32> to vector<32x64xbf16>
    %cst_154 = arith.constant dense<0.000000e+00> : vector<32x64xf32>
    %225 = tpu.matmul %223, %224, %cst_154 {dimension_numbers = #tpu.dot_dimension_numbers<[1], [0], [0], [1], [0, 0, 1, 1], [], []>} : vector<32x32xbf16>, vector<32x64xbf16>, vector<32x64xf32> -> vector<32x64xf32>
    %226 = arith.truncf %225 : vector<32x64xf32> to vector<32x64xbf16>
    %c0_155 = arith.constant 0 : index
    %c5_156 = arith.constant 5 : index
    %c0_157 = arith.constant 0 : index
    %c0_158 = arith.constant 0 : index
    %227 = vector.load %arg8[%c0_155, %c5_156, %c0_157, %c0_158] : memref<1x6x64x384xbf16, #tpu.memory_space<vmem>>, vector<1x1x64x384xbf16>
    %228 = vector.shape_cast %227 : vector<1x1x64x384xbf16> to vector<64x384xbf16>
    %cst_159 = arith.constant dense<0.000000e+00> : vector<32x384xf32>
    %229 = tpu.matmul %226, %228, %cst_159 {dimension_numbers = #tpu.dot_dimension_numbers<[1], [0], [0], [1], [0, 0, 1, 1], [], []>} : vector<32x64xbf16>, vector<64x384xbf16>, vector<32x384xf32> -> vector<32x384xf32>
    %230 = arith.addf %197, %229 : vector<32x384xf32>
    %231 = arith.addf %3, %230 : vector<32x384xf32>
    %c0_160 = arith.constant 0 : index
    %c0_161 = arith.constant 0 : index
    %c0_162 = arith.constant 0 : index
    %232 = vector.load %arg9[%c0_160, %c0_161, %c0_162] : memref<1x1x384xf32, #tpu.memory_space<vmem>>, vector<1x1x384xf32>
    %233 = vector.shape_cast %232 : vector<1x1x384xf32> to vector<1x384xf32>
    %234 = vector.broadcast %233 : vector<1x384xf32> to vector<32x384xf32>
    %235 = arith.addf %231, %234 : vector<32x384xf32>
    %c0_163 = arith.constant 0 : index
    %c0_164 = arith.constant 0 : index
    %c0_165 = arith.constant 0 : index
    %236 = vector.load %arg10[%c0_163, %c0_164, %c0_165] : memref<1x1x384xf32, #tpu.memory_space<vmem>>, vector<1x1x384xf32>
    %237 = vector.shape_cast %236 : vector<1x1x384xf32> to vector<1x384xf32>
    %c0_166 = arith.constant 0 : index
    %c0_167 = arith.constant 0 : index
    %c0_168 = arith.constant 0 : index
    %238 = vector.load %arg11[%c0_166, %c0_167, %c0_168] : memref<1x1x384xf32, #tpu.memory_space<vmem>>, vector<1x1x384xf32>
    %239 = vector.shape_cast %238 : vector<1x1x384xf32> to vector<1x384xf32>
    %cst_169 = arith.constant dense<0.000000e+00> : vector<32xf32>
    %240 = vector.multi_reduction <add>, %235, %cst_169 [1] : vector<32x384xf32> to vector<32xf32>
    %241 = vector.shape_cast %240 : vector<32xf32> to vector<32x1xf32>
    %cst_170 = arith.constant 3.840000e+02 : f32
    %242 = vector.broadcast %cst_170 : f32 to vector<32x1xf32>
    %243 = arith.divf %241, %242 : vector<32x1xf32>
    %244 = vector.broadcast %243 : vector<32x1xf32> to vector<32x384xf32>
    %245 = arith.subf %235, %244 : vector<32x384xf32>
    %246 = arith.mulf %245, %245 : vector<32x384xf32>
    %cst_171 = arith.constant dense<0.000000e+00> : vector<32xf32>
    %247 = vector.multi_reduction <add>, %246, %cst_171 [1] : vector<32x384xf32> to vector<32xf32>
    %248 = vector.shape_cast %247 : vector<32xf32> to vector<32x1xf32>
    %cst_172 = arith.constant 3.840000e+02 : f32
    %249 = vector.broadcast %cst_172 : f32 to vector<32x1xf32>
    %250 = arith.divf %248, %249 : vector<32x1xf32>
    %251 = vector.broadcast %243 : vector<32x1xf32> to vector<32x384xf32>
    %252 = arith.subf %235, %251 : vector<32x384xf32>
    %cst_173 = arith.constant 9.99999974E-6 : f32
    %253 = vector.broadcast %cst_173 : f32 to vector<32x1xf32>
    %254 = arith.addf %250, %253 : vector<32x1xf32>
    %255 = math.rsqrt %254 : vector<32x1xf32>
    %256 = vector.broadcast %255 : vector<32x1xf32> to vector<32x384xf32>
    %257 = arith.mulf %252, %256 : vector<32x384xf32>
    %258 = vector.broadcast %237 : vector<1x384xf32> to vector<32x384xf32>
    %259 = arith.mulf %257, %258 : vector<32x384xf32>
    %260 = vector.broadcast %239 : vector<1x384xf32> to vector<32x384xf32>
    %261 = arith.addf %259, %260 : vector<32x384xf32>
    %262 = arith.truncf %261 : vector<32x384xf32> to vector<32x384xbf16>
    %c0_174 = arith.constant 0 : index
    %c0_175 = arith.constant 0 : index
    %c0_176 = arith.constant 0 : index
    %263 = vector.load %arg12[%c0_174, %c0_175, %c0_176] : memref<1x384x1536xbf16, #tpu.memory_space<vmem>>, vector<1x384x1536xbf16>
    %264 = vector.shape_cast %263 : vector<1x384x1536xbf16> to vector<384x1536xbf16>
    %cst_177 = arith.constant dense<0.000000e+00> : vector<32x1536xf32>
    %265 = tpu.matmul %262, %264, %cst_177 {dimension_numbers = #tpu.dot_dimension_numbers<[1], [0], [0], [1], [0, 0, 1, 1], [], []>} : vector<32x384xbf16>, vector<384x1536xbf16>, vector<32x1536xf32> -> vector<32x1536xf32>
    %c0_178 = arith.constant 0 : index
    %c0_179 = arith.constant 0 : index
    %c0_180 = arith.constant 0 : index
    %266 = vector.load %arg13[%c0_178, %c0_179, %c0_180] : memref<1x1x1536xf32, #tpu.memory_space<vmem>>, vector<1x1x1536xf32>
    %267 = vector.shape_cast %266 : vector<1x1x1536xf32> to vector<1x1536xf32>
    %268 = vector.broadcast %267 : vector<1x1536xf32> to vector<32x1536xf32>
    %269 = arith.addf %265, %268 : vector<32x1536xf32>
    %cst_181 = arith.constant 0.000000e+00 : f32
    %270 = vector.broadcast %cst_181 : f32 to vector<32x1536xf32>
    %271 = arith.maximumf %269, %270 : vector<32x1536xf32>
    %272 = arith.truncf %271 : vector<32x1536xf32> to vector<32x1536xbf16>
    %c0_182 = arith.constant 0 : index
    %c0_183 = arith.constant 0 : index
    %c0_184 = arith.constant 0 : index
    %273 = vector.load %arg14[%c0_182, %c0_183, %c0_184] : memref<1x1536x384xbf16, #tpu.memory_space<vmem>>, vector<1x1536x384xbf16>
    %274 = vector.shape_cast %273 : vector<1x1536x384xbf16> to vector<1536x384xbf16>
    %cst_185 = arith.constant dense<0.000000e+00> : vector<32x384xf32>
    %275 = tpu.matmul %272, %274, %cst_185 {dimension_numbers = #tpu.dot_dimension_numbers<[1], [0], [0], [1], [0, 0, 1, 1], [], []>} : vector<32x1536xbf16>, vector<1536x384xbf16>, vector<32x384xf32> -> vector<32x384xf32>
    %c0_186 = arith.constant 0 : index
    %c0_187 = arith.constant 0 : index
    %c0_188 = arith.constant 0 : index
    %276 = vector.load %arg15[%c0_186, %c0_187, %c0_188] : memref<1x1x384xf32, #tpu.memory_space<vmem>>, vector<1x1x384xf32>
    %277 = vector.shape_cast %276 : vector<1x1x384xf32> to vector<1x384xf32>
    %278 = vector.broadcast %277 : vector<1x384xf32> to vector<32x384xf32>
    %279 = arith.addf %275, %278 : vector<32x384xf32>
    %280 = arith.addf %235, %279 : vector<32x384xf32>
    %c0_189 = arith.constant 0 : index
    %c0_190 = arith.constant 0 : index
    %281 = vector.load %arg21[%c0_189, %c0_190] : memref<32x384xf32, #tpu.memory_space<vmem>>, vector<32x384xf32>
    tpu.vector_store %arg21[%c0_189, %c0_190], %280 {strides = array<i32>} : memref<32x384xf32, #tpu.memory_space<vmem>>, vector<32x384xf32>,
    %c5_i32 = arith.constant 5 : i32
    %282 = arith.cmpi eq, %arg0, %c5_i32 : i32
    %283 = arith.extui %282 : i1 to i32
    %c0_i32_191 = arith.constant 0 : i32
    %284 = arith.cmpi ne, %283, %c0_i32_191 : i32
    scf.if %284 {
      %c0_192 = arith.constant 0 : index
      %c0_193 = arith.constant 0 : index
      %285 = vector.load %arg16[%c0_192, %c0_193] : memref<1x384xf32, #tpu.memory_space<vmem>>, vector<1x384xf32>
      %c0_194 = arith.constant 0 : index
      %c0_195 = arith.constant 0 : index
      %286 = vector.load %arg17[%c0_194, %c0_195] : memref<1x384xf32, #tpu.memory_space<vmem>>, vector<1x384xf32>
      %cst_196 = arith.constant dense<0.000000e+00> : vector<32xf32>
      %287 = vector.multi_reduction <add>, %280, %cst_196 [1] : vector<32x384xf32> to vector<32xf32>
      %288 = vector.shape_cast %287 : vector<32xf32> to vector<32x1xf32>
      %cst_197 = arith.constant 3.840000e+02 : f32
      %289 = vector.broadcast %cst_197 : f32 to vector<32x1xf32>
      %290 = arith.divf %288, %289 : vector<32x1xf32>
      %291 = vector.broadcast %290 : vector<32x1xf32> to vector<32x384xf32>
      %292 = arith.subf %280, %291 : vector<32x384xf32>
      %293 = arith.mulf %292, %292 : vector<32x384xf32>
      %cst_198 = arith.constant dense<0.000000e+00> : vector<32xf32>
      %294 = vector.multi_reduction <add>, %293, %cst_198 [1] : vector<32x384xf32> to vector<32xf32>
      %295 = vector.shape_cast %294 : vector<32xf32> to vector<32x1xf32>
      %cst_199 = arith.constant 3.840000e+02 : f32
      %296 = vector.broadcast %cst_199 : f32 to vector<32x1xf32>
      %297 = arith.divf %295, %296 : vector<32x1xf32>
      %298 = vector.broadcast %290 : vector<32x1xf32> to vector<32x384xf32>
      %299 = arith.subf %280, %298 : vector<32x384xf32>
      %cst_200 = arith.constant 9.99999974E-6 : f32
      %300 = vector.broadcast %cst_200 : f32 to vector<32x1xf32>
      %301 = arith.addf %297, %300 : vector<32x1xf32>
      %302 = math.rsqrt %301 : vector<32x1xf32>
      %303 = vector.broadcast %302 : vector<32x1xf32> to vector<32x384xf32>
      %304 = arith.mulf %299, %303 : vector<32x384xf32>
      %305 = vector.broadcast %285 : vector<1x384xf32> to vector<32x384xf32>
      %306 = arith.mulf %304, %305 : vector<32x384xf32>
      %307 = vector.broadcast %286 : vector<1x384xf32> to vector<32x384xf32>
      %308 = arith.addf %306, %307 : vector<32x384xf32>
      %309 = arith.truncf %308 : vector<32x384xf32> to vector<32x384xbf16>
      %c0_201 = arith.constant 0 : index
      %c0_202 = arith.constant 0 : index
      %310 = vector.load %arg18[%c0_201, %c0_202] : memref<384x128xbf16, #tpu.memory_space<vmem>>, vector<384x128xbf16>
      %cst_203 = arith.constant dense<0.000000e+00> : vector<32x128xf32>
      %311 = tpu.matmul %309, %310, %cst_203 {dimension_numbers = #tpu.dot_dimension_numbers<[1], [0], [0], [1], [0, 0, 1, 1], [], []>} : vector<32x384xbf16>, vector<384x128xbf16>, vector<32x128xf32> -> vector<32x128xf32>
      %c0_204 = arith.constant 0 : index
      %c0_205 = arith.constant 0 : index
      %312 = vector.load %arg19[%c0_204, %c0_205] : memref<1x128xf32, #tpu.memory_space<vmem>>, vector<1x128xf32>
      %313 = vector.broadcast %312 : vector<1x128xf32> to vector<32x128xf32>
      %314 = arith.addf %311, %313 : vector<32x128xf32>
      %c0_206 = arith.constant 0 : index
      %c0_207 = arith.constant 0 : index
      %315 = vector.load %arg20[%c0_206, %c0_207] : memref<32x128xf32, #tpu.memory_space<vmem>>, vector<32x128xf32>
      tpu.vector_store %arg20[%c0_206, %c0_207], %314 {strides = array<i32>} : memref<32x128xf32, #tpu.memory_space<vmem>>, vector<32x128xf32>,
    } else {
    }
    return
  }
  func.func @transform_0(%arg0: i32) -> (i32, i32) {
    %c0_i32 = arith.constant 0 : i32
    %c0_i32_0 = arith.constant 0 : i32
    %c0_i32_1 = arith.constant 0 : i32
    return %c0_i32, %c0_i32_0 : i32, i32
  }
  func.func @transform_1(%arg0: i32) -> (i32, i32) {
    %c0_i32 = arith.constant 0 : i32
    %c0_i32_0 = arith.constant 0 : i32
    %c0_i32_1 = arith.constant 0 : i32
    return %c0_i32, %c0_i32_0 : i32, i32
  }
  func.func @transform_2(%arg0: i32) -> (i32, i32, i32) {
    %c0_i32 = arith.constant 0 : i32
    %c0_i32_0 = arith.constant 0 : i32
    %c0_i32_1 = arith.constant 0 : i32
    return %arg0, %c0_i32, %c0_i32_0 : i32, i32, i32
  }
  func.func @transform_3(%arg0: i32) -> (i32, i32, i32) {
    %c0_i32 = arith.constant 0 : i32
    %c0_i32_0 = arith.constant 0 : i32
    %c0_i32_1 = arith.constant 0 : i32
    return %arg0, %c0_i32, %c0_i32_0 : i32, i32, i32
  }
  func.func @transform_4(%arg0: i32) -> (i32, i32, i32, i32) {
    %c0_i32 = arith.constant 0 : i32
    %c0_i32_0 = arith.constant 0 : i32
    %c0_i32_1 = arith.constant 0 : i32
    %c0_i32_2 = arith.constant 0 : i32
    return %arg0, %c0_i32, %c0_i32_0, %c0_i32_1 : i32, i32, i32, i32
  }
  func.func @transform_5(%arg0: i32) -> (i32, i32, i32, i32) {
    %c0_i32 = arith.constant 0 : i32
    %c0_i32_0 = arith.constant 0 : i32
    %c0_i32_1 = arith.constant 0 : i32
    %c0_i32_2 = arith.constant 0 : i32
    return %arg0, %c0_i32, %c0_i32_0, %c0_i32_1 : i32, i32, i32, i32
  }
  func.func @transform_6(%arg0: i32) -> (i32, i32, i32, i32) {
    %c0_i32 = arith.constant 0 : i32
    %c0_i32_0 = arith.constant 0 : i32
    %c0_i32_1 = arith.constant 0 : i32
    %c0_i32_2 = arith.constant 0 : i32
    return %arg0, %c0_i32, %c0_i32_0, %c0_i32_1 : i32, i32, i32, i32
  }
  func.func @transform_7(%arg0: i32) -> (i32, i32, i32, i32) {
    %c0_i32 = arith.constant 0 : i32
    %c0_i32_0 = arith.constant 0 : i32
    %c0_i32_1 = arith.constant 0 : i32
    %c0_i32_2 = arith.constant 0 : i32
    return %arg0, %c0_i32, %c0_i32_0, %c0_i32_1 : i32, i32, i32, i32
  }
  func.func @transform_8(%arg0: i32) -> (i32, i32, i32) {
    %c0_i32 = arith.constant 0 : i32
    %c0_i32_0 = arith.constant 0 : i32
    %c0_i32_1 = arith.constant 0 : i32
    return %arg0, %c0_i32, %c0_i32_0 : i32, i32, i32
  }
  func.func @transform_9(%arg0: i32) -> (i32, i32, i32) {
    %c0_i32 = arith.constant 0 : i32
    %c0_i32_0 = arith.constant 0 : i32
    %c0_i32_1 = arith.constant 0 : i32
    return %arg0, %c0_i32, %c0_i32_0 : i32, i32, i32
  }
  func.func @transform_10(%arg0: i32) -> (i32, i32, i32) {
    %c0_i32 = arith.constant 0 : i32
    %c0_i32_0 = arith.constant 0 : i32
    %c0_i32_1 = arith.constant 0 : i32
    return %arg0, %c0_i32, %c0_i32_0 : i32, i32, i32
  }
  func.func @transform_11(%arg0: i32) -> (i32, i32, i32) {
    %c0_i32 = arith.constant 0 : i32
    %c0_i32_0 = arith.constant 0 : i32
    %c0_i32_1 = arith.constant 0 : i32
    return %arg0, %c0_i32, %c0_i32_0 : i32, i32, i32
  }
  func.func @transform_12(%arg0: i32) -> (i32, i32, i32) {
    %c0_i32 = arith.constant 0 : i32
    %c0_i32_0 = arith.constant 0 : i32
    %c0_i32_1 = arith.constant 0 : i32
    return %arg0, %c0_i32, %c0_i32_0 : i32, i32, i32
  }
  func.func @transform_13(%arg0: i32) -> (i32, i32, i32) {
    %c0_i32 = arith.constant 0 : i32
    %c0_i32_0 = arith.constant 0 : i32
    %c0_i32_1 = arith.constant 0 : i32
    return %arg0, %c0_i32, %c0_i32_0 : i32, i32, i32
  }
  func.func @transform_14(%arg0: i32) -> (i32, i32, i32) {
    %c0_i32 = arith.constant 0 : i32
    %c0_i32_0 = arith.constant 0 : i32
    %c0_i32_1 = arith.constant 0 : i32
    return %arg0, %c0_i32, %c0_i32_0 : i32, i32, i32
  }
  func.func @transform_15(%arg0: i32) -> (i32, i32) {
    %c0_i32 = arith.constant 0 : i32
    %c0_i32_0 = arith.constant 0 : i32
    %c0_i32_1 = arith.constant 0 : i32
    return %c0_i32, %c0_i32_0 : i32, i32
  }
  func.func @transform_16(%arg0: i32) -> (i32, i32) {
    %c0_i32 = arith.constant 0 : i32
    %c0_i32_0 = arith.constant 0 : i32
    %c0_i32_1 = arith.constant 0 : i32
    return %c0_i32, %c0_i32_0 : i32, i32
  }
  func.func @transform_17(%arg0: i32) -> (i32, i32) {
    %c0_i32 = arith.constant 0 : i32
    %c0_i32_0 = arith.constant 0 : i32
    %c0_i32_1 = arith.constant 0 : i32
    return %c0_i32, %c0_i32_0 : i32, i32
  }
  func.func @transform_18(%arg0: i32) -> (i32, i32) {
    %c0_i32 = arith.constant 0 : i32
    %c0_i32_0 = arith.constant 0 : i32
    %c0_i32_1 = arith.constant 0 : i32
    return %c0_i32, %c0_i32_0 : i32, i32
  }
  func.func @transform_19(%arg0: i32) -> (i32, i32) {
    %c0_i32 = arith.constant 0 : i32
    %c0_i32_0 = arith.constant 0 : i32
    %c0_i32_1 = arith.constant 0 : i32
    return %c0_i32, %c0_i32_0 : i32, i32
  }
}

</mosaic_0001>

<bundles_post_ra>
// kernel: bigram_lm_forward.1
= control target key start
LH: loop header
LB: loop body
LE: loop exit
PB: predicated region body
PF: predicated region fallthrough
CT: control target
= control target key end

     0   :  { %s19853_s0 = inlined_call_operand.vmem [shape: f32[32,384], index: 0, kind: input, shape index: {}]   ;;  %s19854_s1 = inlined_call_operand.vmem [shape: f32[32,32], index: 1, kind: input, shape index: {}]   ;;  %s19855_s2 = inlined_call_operand.hbm [shape: f32[6,1,384], index: 2, kind: input, shape index: {}]   ;;  %s19856_s3 = inlined_call_operand.hbm [shape: f32[6,1,384], index: 3, kind: input, shape index: {}]   ;;  %s19857_s4 = inlined_call_operand.hbm [shape: bf16[6,6,64,384], index: 4, kind: input, shape index: {}]   ;;  %s19858_s5 = inlined_call_operand.hbm [shape: bf16[6,6,64,384], index: 5, kind: input, shape index: {}]   ;;  %s19859_s6 = inlined_call_operand.hbm [shape: bf16[6,6,64,384], index: 6, kind: input, shape index: {}]   ;;  %s19860_s7 = inlined_call_operand.hbm [shape: bf16[6,6,64,384], index: 7, kind: input, shape index: {}]   ;;  %s19861_s8 = inlined_call_operand.hbm [shape: f32[6,1,384], index: 8, kind: input, shape index: {}]   ;;  %s19862_s9 = inlined_call_operand.hbm [shape: f32[6,1,384], index: 9, kind: input, shape index: {}]   ;;  %s19863_s10 = inlined_call_operand.hbm [shape: f32[6,1,384], index: 10, kind: input, shape index: {}]   ;;  %s19864_s11 = inlined_call_operand.hbm [shape: bf16[6,384,1536], index: 11, kind: input, shape index: {}]   ;;  %s19865_s12 = inlined_call_operand.hbm [shape: f32[6,1,1536], index: 12, kind: input, shape index: {}]   ;;  %s19866_s13 = inlined_call_operand.hbm [shape: bf16[6,1536,384], index: 13, kind: input, shape index: {}]   ;;  %s19867_s14 = inlined_call_operand.hbm [shape: f32[6,1,384], index: 14, kind: input, shape index: {}]   ;;  %s19868_s15 = inlined_call_operand.hbm [shape: f32[1,384], index: 15, kind: input, shape index: {}]   ;;  %s19869_s16 = inlined_call_operand.hbm [shape: f32[1,384], index: 16, kind: input, shape index: {}]   ;;  %s19870_s17 = inlined_call_operand.hbm [shape: bf16[384,128], index: 17, kind: input, shape index: {}]   ;;  %s19871_s18 = inlined_call_operand.hbm [shape: f32[1,128], index: 18, kind: input, shape index: {}]   ;;  %s19872_s19 = inlined_call_operand.hbm [shape: f32[32,128], index: 19, kind: output, shape index: {}]  }
   0x1   :  { %19901 = sst [smem:[#allocation47_spill]] %s19853_s0 }
   0x2   :  { %19902 = sst [smem:[#allocation48_spill]] %s19854_s1 }
   0x3   :  { %19903 = sst [smem:[#allocation49_spill]] %s19855_s2 }
   0x4   :  { %19904 = sst [smem:[#allocation50_spill]] %s19856_s3 }
   0x5   :  { %19905 = sst [smem:[#allocation51_spill]] %s19858_s5 }
   0x6   :  { %19906 = sst [smem:[#allocation52_spill]] %s19860_s7 }
   0x7   :  { %19907 = sst [smem:[#allocation53_spill]] %s19862_s9 }
   0x8   :  { %19908 = sst [smem:[#allocation54_spill]] %s19864_s11 }
   0x9   :  { %19909 = sst [smem:[#allocation55_spill]] %s19867_s14 }
   0xa   :  { %19910 = sst [smem:[#allocation56_spill]] %s19868_s15 }
   0xb   :  { %19911 = sst [smem:[#allocation57_spill]] %s19869_s16 }
   0xc   :  { %19912 = sst [smem:[#allocation58_spill]] %s19870_s17 }
   0xd   :  { %19913 = sst [smem:[#allocation59_spill]] %s19871_s18 }
   0xe   :  { %19914 = sst [smem:[#allocation60_spill]] %s19872_s19 }
   0xf   :  { %24 = vsyncpa [#allocation4], 0 }
  0x10   :  { %26 = vsyncpa [#allocation4 + $0x1], 0 }
  0x11   :  { %27 = vsyncpa [#allocation7], 0 }
  0x12   :  { %29 = vsyncpa [#allocation7 + $0x1], 0 }
  0x13   :  { %30 = vsyncpa [#allocation10], 0 }
  0x14   :  { %32 = vsyncpa [#allocation10 + $0x1], 0 }
  0x15   :  { %33 = vsyncpa [#allocation13], 0 }
  0x16   :  { %35 = vsyncpa [#allocation13 + $0x1], 0 }
  0x17   :  { %36 = vsyncpa [#allocation16], 0 }
  0x18   :  { %38 = vsyncpa [#allocation16 + $0x1], 0 }
  0x19   :  { %39 = vsyncpa [#allocation19], 0 }
  0x1a   :  { %41 = vsyncpa [#allocation19 + $0x1], 0 }
  0x1b   :  { %42 = vsyncpa [#allocation22], 0 }
  0x1c   :  { %44 = vsyncpa [#allocation22 + $0x1], 0 }
  0x1d   :  { %45 = vsyncpa [#allocation25], 0 }
  0x1e   :  { %46 = vsyncpa [#allocation28], 0 }
  0x1f   :  { %47 = vsyncpa [#allocation5], 0  ;;  %s17336_s0 = smov 0   ;;  %s17338_s30 = smov 0  }
  0x20   :  { %s17340_s20 = smov 0   ;;  %s17342_s21 = smov 0  }
  0x21 LB: > { %19915 = sst [smem:[#allocation41_spill]] %s17199_s30  ;;  %s17355_s1 = sadd.s32 4294967295, %s17207_s21   ;;  %s17207_s21 = sphi %s17342_s21, %s19967_s21   ;;  %s17203_s20 = sphi %s17340_s20, %s19971_s20   ;;  %s17199_s30 = sphi %s17338_s30, %s19970_s30   ;;  %s17195_s0 = sphi %s17336_s0, %s19968_s0  }
  0x22   : > { %19916 = sst [smem:[#allocation42_spill]] %s17355_s1  ;;  %s17358_s22 = sadd.s32 1, %s17207_s21  }
  0x23   : > { %19917 = sst [smem:[#allocation43_spill]] %s17358_s22  ;;  %s99_s2 = ssub.s32 %s17207_s21, %s17358_s22 }
  0x24   : > { %s102_s23 = sadd.s32 1, %s17203_s20  ;;  %p100_p0 = scmp.eq.s32.totalorder %s99_s2, 0 }
  0x25   : > { %p109_p1 = scmp.ne.s32.totalorder %s17203_s20, %s17199_s30  ;;  %p110_p2 = scmp.eq.s32.totalorder %s17207_s21, 0 }
  0x26   : > { %p115_p3 = scmp.ne.s32.totalorder %s17199_s30, %s17195_s0  ;;  %p19886_p5 = scmp.eq.s32.totalorder %s17355_s1, 0 }
  0x27   : > { %s17368_s24 = scalar_select %p100_p0, %s17203_s20, %s102_s23  }
  0x28   : > { %p17370_p4 = por %p110_p2, %p109_p1  ;;  %p12820_p6 = scmp.ge.s32.totalorder %s17207_s21, 1 }
  0x29   : > { %19918 = sst [smem:[#allocation44_spill]] %s17368_s24  ;;  %p543_p7 = scmp.lt.s32.totalorder %s17207_s21, 7 }
  0x2a   : > { %s19919_s25 = scalar_select %p17370_p4, 1, 0 }
  0x2b   : > { %p17379_p8 = por %p19886_p5, %p115_p3  ;;  %p17384_p10 = pnand %p12820_p6, %p543_p7 }
  0x2c   : > { %s17209_s27 = smov [#allocation24]   ;;  %s17210_s29 = smov [#allocation27]  }
  0x2d   : > { %s19920_s3 = scalar_select %p17379_p8, 1, 0 }
  0x2e   : > { %s19922_s26 = scalar_select %p17384_p10, 1, 0 }
  0x2f   : > { %19921 = sst [smem:[#allocation45_spill]] %s19920_s3  ;;  %s562_s28 = sshll.u32 %s17209_s27, 4  ;;  %s563_s28 = int_to_ptr.vmem [resolvable:$true] %s562_s28 }
  0x30   : > { %19923 = sst [smem:[#allocation46_spill]] %s19922_s26  ;;  %p15201_p11 = pneg %p17384_p10 }
  0x31   : > { %s583_s0 = sshll.u32 %s17210_s29, 4  ;;  %s17211_s23 = smov [#allocation26]   ;;  %s17396_s0 = int_to_ptr.vmem [resolvable:$true] %s583_s0 }
  0x32   : > { %p17392_p12 = pnand %p15201_p11, %p19886_p5  ;;  %s17398_s24 = sshll.u32 %s17211_s23, 4  ;;  %s574_s24 = int_to_ptr.vmem [resolvable:$true] %s17398_s24 }
  0x33   : > { %s19925_s15 = sld [smem:[#allocation56_spill]] }
  0x34   : > { %p17408_p0 = pneg %p17392_p12 }
  0x39   : > { %s16635_s27 = scalar_lea.hbm %s19925_s15, 48 }
  0x3a   : > { %p16636_p13 = scmp.ne.s32.totalorder %s19925_s15, %s16635_s27  ;;  %p16642_p3 = scmp.lt.u32.totalorder %s16635_s27, %s19925_s15 }
  0x3c   : > { %p16638_p1 = pnand %p17408_p0, %p16636_p13 }
  0x3e   : > { %p16639_p2 = pneg %p16638_p1 }
  0x40   : > { %p16644_p6 = pnand %p16642_p3, %p16639_p2 }
  0x42   : > { %16647 = shalt.err (!%p16644_p6)
}
  0x43   : > { %s16648_s19 = scalar_lea.vmem %s563_s28, 48  ;;  %s16655_s30 = scalar_lea.vmem %s563_s28, 64 }
  0x44   : > { %p16649_p7 = scmp.ne.s32.totalorder %s563_s28, %s16648_s19  ;;  %p16656_p5 = scmp.lt.s32.totalorder %s563_s28, %s563_s28 }
  0x45   : > { %p16657_p8 = scmp.lt.s32.totalorder %s16655_s30, %s16648_s19 }
  0x46   : > { %p16651_p11 = pnand %p16649_p7, %p17408_p0 }
  0x47   : > { %p16658_p10 = por %p16657_p8, %p16656_p5 }
  0x48   : > { %p16652_p9 = pneg %p16651_p11 }
  0x4a   : > { %p16659_p4 = pnand %p16658_p10, %p16652_p9 }
  0x4c   : > { %16662 = shalt.err (!%p16659_p4)
}
  0x4d   : > { %15204 = dma.hbm_to_vmem [thread:$0]  (!%p17392_p12), %s19925_s15, 48, %s563_s28, [#allocation25]  }
  0x4e   : > { %s19927_s17 = sld [smem:[#allocation58_spill]] }
  0x54   : > { %s16663_s23 = scalar_lea.hbm %s19927_s17, 3072 }
  0x55   : > { %p16664_p13 = scmp.ne.s32.totalorder %s19927_s17, %s16663_s23  ;;  %p16670_p4 = scmp.lt.u32.totalorder %s16663_s23, %s19927_s17 }
  0x57   : > { %p16666_p1 = pnand %p16664_p13, %p17408_p0 }
  0x59   : > { %p16667_p5 = pneg %p16666_p1 }
  0x5b   : > { %p16672_p8 = pnand %p16670_p4, %p16667_p5 }
  0x5d   : > { %16675 = shalt.err (!%p16672_p8)
}
  0x5e   : > { %s16676_s28 = scalar_lea.vmem %s17396_s0, 3072  ;;  %p16684_p3 = scmp.lt.s32.totalorder %s17396_s0, %s17396_s0 }
  0x5f   : > { %p16677_p9 = scmp.ne.s32.totalorder %s17396_s0, %s16676_s28  ;;  %p16685_p6 = scmp.lt.s32.totalorder %s16676_s28, %s16676_s28 }
  0x61   : > { %p16679_p10 = pnand %p16677_p9, %p17408_p0  ;;  %p16686_p7 = por %p16685_p6, %p16684_p3 }
  0x63   : > { %p16680_p2 = pneg %p16679_p10 }
  0x65   : > { %p16687_p11 = pnand %p16686_p7, %p16680_p2 }
  0x67   : > { %16690 = shalt.err (!%p16687_p11)
}
  0x68   : > { %s17212_s14 = smov 64   ;;  %s17213_s26 = smov 4  }
  0x69   : > { %15210 = dma.hbm_to_vmem [thread:$0]  (!%p17392_p12), %s19927_s17, 3072, %s17396_s0, [#allocation28], %s17212_s14, %s17212_s14, %s17213_s26  }
  0x6a   : > { %s19928_s16 = sld [smem:[#allocation57_spill]] }
  0x70   : > { %s16691_s23 = scalar_lea.hbm %s19928_s16, 48 }
  0x71   : > { %p16692_p13 = scmp.ne.s32.totalorder %s19928_s16, %s16691_s23  ;;  %p16698_p4 = scmp.lt.u32.totalorder %s16691_s23, %s19928_s16 }
  0x73   : > { %p16694_p1 = pnand %p16692_p13, %p17408_p0 }
  0x75   : > { %p16695_p5 = pneg %p16694_p1 }
  0x77   : > { %p16700_p8 = pnand %p16698_p4, %p16695_p5 }
  0x79   : > { %16703 = shalt.err (!%p16700_p8)
}
  0x7a   : > { %s16704_s22 = scalar_lea.vmem %s574_s24, 48  ;;  %s16711_s0 = scalar_lea.vmem %s574_s24, 64 }
  0x7b   : > { %p16705_p9 = scmp.ne.s32.totalorder %s574_s24, %s16704_s22  ;;  %p16712_p3 = scmp.lt.s32.totalorder %s574_s24, %s574_s24 }
  0x7c   : > { %p16713_p6 = scmp.lt.s32.totalorder %s16711_s0, %s16704_s22 }
  0x7d   : > { %p16707_p10 = pnand %p16705_p9, %p17408_p0 }
  0x7e   : > { %p16714_p7 = por %p16713_p6, %p16712_p3 }
  0x7f   : > { %p16708_p2 = pneg %p16707_p10 }
  0x81   : > { %p16715_p11 = pnand %p16714_p7, %p16708_p2 }
  0x83   : > { %16718 = shalt.err (!%p16715_p11)
}
  0x84   : > { %15207 = dma.hbm_to_vmem [thread:$0]  (!%p17392_p12), %s19928_s16, 48, %s574_s24, [#allocation25]  }
  0x85   : > { %s17214_s15 = smov [#allocation29]   ;;  %s19929_s18 = sld [smem:[#allocation59_spill]] }
  0x86   : > { %s597_s3 = sshll.u32 %s17214_s15, 4  ;;  %s598_s3 = int_to_ptr.vmem [resolvable:$true] %s597_s3 }
  0x8b   : > { %s16719_s23 = scalar_lea.hbm %s19929_s18, 16 }
  0x8c   : > { %p16720_p13 = scmp.ne.s32.totalorder %s19929_s18, %s16719_s23  ;;  %p16726_p4 = scmp.lt.u32.totalorder %s16719_s23, %s19929_s18 }
  0x8e   : > { %p16722_p1 = pnand %p16720_p13, %p17408_p0 }
  0x90   : > { %p16723_p5 = pneg %p16722_p1 }
  0x92   : > { %p16728_p8 = pnand %p16726_p4, %p16723_p5 }
  0x94   : > { %16731 = shalt.err (!%p16728_p8)
}
  0x95   : > { %s16732_s24 = scalar_lea.vmem %s598_s3, 16  ;;  %s16739_s0 = scalar_lea.vmem %s598_s3, 32 }
  0x96   : > { %p16733_p9 = scmp.ne.s32.totalorder %s598_s3, %s16732_s24  ;;  %p16740_p3 = scmp.lt.s32.totalorder %s598_s3, %s598_s3 }
  0x97   : > { %p16741_p6 = scmp.lt.s32.totalorder %s16739_s0, %s16732_s24 }
  0x98   : > { %p16735_p10 = pnand %p16733_p9, %p17408_p0 }
  0x99   : > { %p16742_p7 = por %p16741_p6, %p16740_p3 }
  0x9a   : > { %p16736_p2 = pneg %p16735_p10 }
  0x9c   : > { %p16743_p11 = pnand %p16742_p7, %p16736_p2 }
  0x9e   : > { %16746 = shalt.err (!%p16743_p11)
}
  0x9f   : > { %15213 = dma.hbm_to_vmem [thread:$0]  (!%p17392_p12), %s19929_s18, 16, %s598_s3, [#allocation28]  }
  0xa0   : > { %p12825_p13 = scmp.ge.s32.totalorder %s17207_s21, 6 }
  0xa1   : > { %s17486_s29 = sand.u32 (!%p12825_p13), 1, %s17203_s20   ;;  %s17489_s15 = smul.u32 (!%p12825_p13), 48, %s17207_s21 }
  0xa2   : > { %604 = sbr.rel (%p12825_p13) target bundleno = 505 (0x1f9), region = 40  ;;  %s17495_s1 = sand.u32 (!%p12825_p13), 1, %s17207_s21  }
  0xa3   : > { %s17492_s2 = smul.u32 (!%p12825_p13), 3, %s17486_s29  ;;  %s19930_s23 = sld [smem:[#allocation50_spill]] (!%p12825_p13) }
  0xa4   : > { %s17504_s30 = smul.u32 (!%p12825_p13), 576, %s17486_s29  ;;  %p19931_p0 = scmp.ne.s32.totalorder (!%p12825_p13), %s19919_s25, 0 }
  0xa5   : > { %s631_s28 = scalar_lea.vmem (!%p12825_p13), [#allocation6], %s17492_s2  ;;  %s17508_s24 = smul.u32 (!%p12825_p13), 9216, %s17207_s21 }
  0xa6   : > { %s639_s22 = sshll.u32 (!%p12825_p13), %s631_s28, 4  ;;  %s640_s22 = int_to_ptr.vmem [resolvable:$true] %s639_s22 }
  0xa9   : > { %s17501_s19 = scalar_lea.hbm %s19930_s23, %s17489_s15  ;;  %s16751_s27 = scalar_lea.hbm %s19930_s23, 288 }
  0xaa   : > { %s16747_s14 = scalar_lea.hbm %s17501_s19, 48  ;;  %p16752_p4 = scmp.lt.u32.totalorder %s17501_s19, %s19930_s23 }
  0xab   : > { %p16748_p12 = scmp.ne.s32.totalorder %s17501_s19, %s16747_s14  ;;  %p16753_p8 = scmp.lt.u32.totalorder %s16751_s27, %s16747_s14 }
  0xac   : > { %p16755_p10 = scmp.lt.u32.totalorder %s16747_s14, %s17501_s19 }
  0xad   : > { %p16749_p1 = pnand %p16748_p12, %p19931_p0  ;;  %p16754_p9 = por %p16753_p8, %p16752_p4 }
  0xaf   : > { %p16750_p5 = pneg %p16749_p1  ;;  %p16756_p2 = por %p16755_p10, %p16754_p9 }
  0xb1   : > { %p16757_p3 = pnand %p16756_p2, %p16750_p5 }
  0xb3   : > { %16760 = shalt.err (!%p16757_p3)
}
  0xb4   : > { %s16761_s28 = scalar_lea.vmem %s640_s22, 48  ;;  %s17215_s0 = smov [#allocation6]  }
  0xb5   : > { %p16762_p6 = scmp.ne.s32.totalorder %s640_s22, %s16761_s28  ;;  %s16765_s18 = sshll.u32 %s17215_s0, 4  ;;  %s16766_s18 = int_to_ptr.vmem [resolvable:$false] %s16765_s18 }
  0xb6   : > { %s16767_s26 = scalar_lea.vmem %s16766_s18, 96  ;;  %p16768_p13 = scmp.lt.s32.totalorder %s640_s22, %s16766_s18 }
  0xb7   : > { %p16763_p7 = pnand %p16762_p6, %p19931_p0  ;;  %p16769_p12 = scmp.lt.s32.totalorder %s16767_s26, %s16761_s28 }
  0xb9   : > { %p16764_p11 = pneg %p16763_p7  ;;  %p16770_p1 = por %p16769_p12, %p16768_p13 }
  0xbb   : > { %p16771_p4 = pnand %p16770_p1, %p16764_p11 }
  0xbd   : > { %16774 = shalt.err (!%p16771_p4)
}
  0xbe   : > { %s19932_s16 = scalar_lea.sflag [#allocation7], %s17495_s1  ;;  %s19933_s5 = sld [smem:[#allocation51_spill]] }
  0xbf   : > { %15164 = dma.hbm_to_vmem [thread:$0]  (%p19931_p0), %s17501_s19, 48, %s640_s22, %s19932_s16  }
  0xc0   : > { %s671_s18 = scalar_lea.vmem [#allocation9], %s17504_s30  ;;  %s19892_s27 = scalar_lea.sflag [#allocation10], %s17495_s1 }
  0xc1   : > { %s678_s3 = sshll.u32 %s671_s18, 4  ;;  %s17537_s3 = int_to_ptr.vmem [resolvable:$true] %s678_s3 }
  0xc4   : > { %s17534_s0 = scalar_lea.hbm %s19933_s5, %s17508_s24  ;;  %s16779_s26 = scalar_lea.hbm %s19933_s5, 55296 }
  0xc5   : > { %s16775_s28 = scalar_lea.hbm %s17534_s0, 9216  ;;  %p16780_p10 = scmp.lt.u32.totalorder %s17534_s0, %s19933_s5 }
  0xc6   : > { %p16776_p5 = scmp.ne.s32.totalorder %s17534_s0, %s16775_s28  ;;  %p16781_p2 = scmp.lt.u32.totalorder %s16779_s26, %s16775_s28 }
  0xc7   : > { %p16783_p6 = scmp.lt.u32.totalorder %s16775_s28, %s17534_s0 }
  0xc8   : > { %p16777_p8 = pnand %p16776_p5, %p19931_p0  ;;  %p16782_p3 = por %p16781_p2, %p16780_p10 }
  0xca   : > { %p16778_p9 = pneg %p16777_p8  ;;  %p16784_p7 = por %p16783_p6, %p16782_p3 }
  0xcc   : > { %p16785_p11 = pnand %p16784_p7, %p16778_p9 }
  0xce   : > { %16788 = shalt.err (!%p16785_p11)
}
  0xcf   : > { %s16789_s14 = scalar_lea.vmem %s17537_s3, 9216  ;;  %s17216_s18 = smov [#allocation9]  }
  0xd0   : > { %p16790_p13 = scmp.ne.s32.totalorder %s17537_s3, %s16789_s14  ;;  %s16793_s19 = sshll.u32 %s17216_s18, 4  ;;  %s16794_s19 = int_to_ptr.vmem [resolvable:$false] %s16793_s19 }
  0xd1   : > { %s16795_s22 = scalar_lea.vmem %s16794_s19, 18432  ;;  %p16796_p4 = scmp.lt.s32.totalorder %s17537_s3, %s16794_s19 }
  0xd2   : > { %p16791_p12 = pnand %p16790_p13, %p19931_p0  ;;  %p16797_p5 = scmp.lt.s32.totalorder %s16795_s22, %s16789_s14 }
  0xd4   : > { %p16792_p1 = pneg %p16791_p12  ;;  %p16798_p8 = por %p16797_p5, %p16796_p4 }
  0xd6   : > { %p16799_p10 = pnand %p16798_p8, %p16792_p1 }
  0xd8   : > { %16802 = shalt.err (!%p16799_p10)
}
  0xd9   : > { %s19894_s28 = smov 192   ;;  %s19897_s26 = smov 12  }
  0xda   : > { %15166 = dma.hbm_to_vmem [thread:$0]  (%p19931_p0), %s17534_s0, 9216, %s17537_s3, %s19892_s27, %s19894_s28, %s19894_s28, %s19897_s26  }
  0xdb   : > { %s19934_s7 = sld [smem:[#allocation52_spill]]  ;;  %s713_s18 = scalar_lea.vmem [#allocation12], %s17504_s30 }
  0xdc   : > { %s720_s19 = sshll.u32 %s713_s18, 4  ;;  %s19893_s22 = scalar_lea.sflag [#allocation13], %s17495_s1  ;;  %s17573_s19 = int_to_ptr.vmem [resolvable:$true] %s720_s19 }
  0xe1   : > { %s17570_s14 = scalar_lea.hbm %s19934_s7, %s17508_s24  ;;  %s16807_s16 = scalar_lea.hbm %s19934_s7, 55296 }
  0xe2   : > { %s16803_s5 = scalar_lea.hbm %s17570_s14, 9216  ;;  %p16808_p6 = scmp.lt.u32.totalorder %s17570_s14, %s19934_s7 }
  0xe3   : > { %p16804_p9 = scmp.ne.s32.totalorder %s17570_s14, %s16803_s5  ;;  %p16809_p7 = scmp.lt.u32.totalorder %s16807_s16, %s16803_s5 }
  0xe4   : > { %p16811_p13 = scmp.lt.u32.totalorder %s16803_s5, %s17570_s14 }
  0xe5   : > { %p16805_p2 = pnand %p16804_p9, %p19931_p0  ;;  %p16810_p11 = por %p16809_p7, %p16808_p6 }
  0xe7   : > { %p16806_p3 = pneg %p16805_p2  ;;  %p16812_p12 = por %p16811_p13, %p16810_p11 }
  0xe9   : > { %p16813_p1 = pnand %p16812_p12, %p16806_p3 }
  0xeb   : > { %16816 = shalt.err (!%p16813_p1)
}
  0xec   : > { %s16817_s18 = scalar_lea.vmem %s17573_s19, 9216  ;;  %s17219_s0 = smov [#allocation12]  }
  0xed   : > { %p16818_p4 = scmp.ne.s32.totalorder %s17573_s19, %s16817_s18  ;;  %s16821_s3 = sshll.u32 %s17219_s0, 4  ;;  %s16822_s3 = int_to_ptr.vmem [resolvable:$false] %s16821_s3 }
  0xee   : > { %s16823_s27 = scalar_lea.vmem %s16822_s3, 18432  ;;  %p16824_p10 = scmp.lt.s32.totalorder %s17573_s19, %s16822_s3 }
  0xef   : > { %p16819_p5 = pnand %p16818_p4, %p19931_p0  ;;  %p16825_p9 = scmp.lt.s32.totalorder %s16823_s27, %s16817_s18 }
  0xf1   : > { %p16820_p8 = pneg %p16819_p5  ;;  %p16826_p2 = por %p16825_p9, %p16824_p10 }
  0xf3   : > { %p16827_p6 = pnand %p16826_p2, %p16820_p8 }
  0xf5   : > { %16830 = shalt.err (!%p16827_p6)
}
  0xf6   : > { %15168 = dma.hbm_to_vmem [thread:$0]  (%p19931_p0), %s17570_s14, 9216, %s17573_s19, %s19893_s22, %s19894_s28, %s19894_s28, %s19897_s26  }
  0xf7   : > { %s19935_s9 = sld [smem:[#allocation53_spill]]  ;;  %s753_s18 = scalar_lea.vmem [#allocation15], %s17492_s2 }
  0xf8   : > { %s761_s0 = sshll.u32 %s753_s18, 4  ;;  %s15143_s3 = smul.u32 2304, %s17486_s29  ;;  %s17609_s0 = int_to_ptr.vmem [resolvable:$true] %s761_s0 }
  0xf9   : > { %s19896_s27 = scalar_lea.sflag [#allocation16], %s17495_s1 }
  0xfd   : > { %s17606_s17 = scalar_lea.hbm %s19935_s9, %s17489_s15  ;;  %s16835_s5 = scalar_lea.hbm %s19935_s9, 288 }
  0xfe   : > { %s16831_s7 = scalar_lea.hbm %s17606_s17, 48  ;;  %p16836_p13 = scmp.lt.u32.totalorder %s17606_s17, %s19935_s9 }
  0xff   : > { %p16832_p3 = scmp.ne.s32.totalorder %s17606_s17, %s16831_s7  ;;  %p16837_p12 = scmp.lt.u32.totalorder %s16835_s5, %s16831_s7 }
 0x100   : > { %p16839_p4 = scmp.lt.u32.totalorder %s16831_s7, %s17606_s17 }
 0x101   : > { %p16833_p7 = pnand %p16832_p3, %p19931_p0  ;;  %p16838_p1 = por %p16837_p12, %p16836_p13 }
 0x103   : > { %p16834_p11 = pneg %p16833_p7  ;;  %p16840_p5 = por %p16839_p4, %p16838_p1 }
 0x105   : > { %p16841_p8 = pnand %p16840_p5, %p16834_p11 }
 0x107   : > { %16844 = shalt.err (!%p16841_p8)
}
 0x108   : > { %s16845_s18 = scalar_lea.vmem %s17609_s0, 48  ;;  %s17220_s14 = smov [#allocation15]  }
 0x109   : > { %p16846_p10 = scmp.ne.s32.totalorder %s17609_s0, %s16845_s18  ;;  %s16849_s19 = sshll.u32 %s17220_s14, 4  ;;  %s16850_s19 = int_to_ptr.vmem [resolvable:$false] %s16849_s19 }
 0x10a   : > { %s16851_s22 = scalar_lea.vmem %s16850_s19, 96  ;;  %p16852_p6 = scmp.lt.s32.totalorder %s17609_s0, %s16850_s19 }
 0x10b   : > { %p16847_p9 = pnand %p16846_p10, %p19931_p0  ;;  %p16853_p3 = scmp.lt.s32.totalorder %s16851_s22, %s16845_s18 }
 0x10d   : > { %p16848_p2 = pneg %p16847_p9  ;;  %p16854_p7 = por %p16853_p3, %p16852_p6 }
 0x10f   : > { %p16855_p13 = pnand %p16854_p7, %p16848_p2 }
 0x111   : > { %16858 = shalt.err (!%p16855_p13)
}
 0x112   : > { %15170 = dma.hbm_to_vmem [thread:$0]  (%p19931_p0), %s17606_s17, 48, %s17609_s0, %s19896_s27  }
 0x113   : > { %s15144_s7 = smul.u32 36864, %s17207_s21  ;;  %s791_s5 = scalar_lea.vmem [#allocation18], %s15143_s3 }
 0x114   : > { %s798_s16 = sshll.u32 %s791_s5, 4  ;;  %s19936_s11 = sld [smem:[#allocation54_spill]]  ;;  %s17646_s16 = int_to_ptr.vmem [resolvable:$true] %s798_s16 }
 0x115   : > { %s19899_s22 = scalar_lea.sflag [#allocation19], %s17495_s1 }
 0x11a   : > { %s17644_s19 = scalar_lea.hbm %s19936_s11, %s15144_s7  ;;  %s16863_s5 = scalar_lea.hbm %s19936_s11, 221184 }
 0x11b   : > { %s16859_s28 = scalar_lea.hbm %s17644_s19, 36864  ;;  %p16864_p4 = scmp.lt.u32.totalorder %s17644_s19, %s19936_s11 }
 0x11c   : > { %p16860_p11 = scmp.ne.s32.totalorder %s17644_s19, %s16859_s28  ;;  %p16865_p5 = scmp.lt.u32.totalorder %s16863_s5, %s16859_s28 }
 0x11d   : > { %p16867_p10 = scmp.lt.u32.totalorder %s16859_s28, %s17644_s19 }
 0x11e   : > { %p16861_p12 = pnand %p16860_p11, %p19931_p0  ;;  %p16866_p8 = por %p16865_p5, %p16864_p4 }
 0x120   : > { %p16862_p1 = pneg %p16861_p12  ;;  %p16868_p9 = por %p16867_p10, %p16866_p8 }
 0x122   : > { %p16869_p2 = pnand %p16868_p9, %p16862_p1 }
 0x124   : > { %16872 = shalt.err (!%p16869_p2)
}
 0x125   : > { %s16873_s14 = scalar_lea.vmem %s17646_s16, 36864  ;;  %s17221_s17 = smov [#allocation18]  }
 0x126   : > { %p16874_p6 = scmp.ne.s32.totalorder %s17646_s16, %s16873_s14  ;;  %s16877_s0 = sshll.u32 %s17221_s17, 4  ;;  %s16878_s0 = int_to_ptr.vmem [resolvable:$false] %s16877_s0 }
 0x127   : > { %s16879_s27 = scalar_lea.vmem %s16878_s0, 73728  ;;  %p16880_p13 = scmp.lt.s32.totalorder %s17646_s16, %s16878_s0 }
 0x128   : > { %p16875_p3 = pnand %p16874_p6, %p19931_p0  ;;  %p16881_p11 = scmp.lt.s32.totalorder %s16879_s27, %s16873_s14 }
 0x12a   : > { %p16876_p7 = pneg %p16875_p3  ;;  %p16882_p12 = por %p16881_p11, %p16880_p13 }
 0x12c   : > { %p16883_p4 = pnand %p16882_p12, %p16876_p7 }
 0x12e   : > { %16886 = shalt.err (!%p16883_p4)
}
 0x12f   : > { %s17222_s28 = smov 768   ;;  %s17223_s5 = smov 48  }
 0x130   : > { %15172 = dma.hbm_to_vmem [thread:$0]  (%p19931_p0), %s17644_s19, 36864, %s17646_s16, %s19899_s22, %s17222_s28, %s17222_s28, %s17223_s5  }
 0x131   : > { %s17677_s14 = scalar_lea.hbm %s19866_s13, %s15144_s7  ;;  %s831_s0 = scalar_lea.vmem [#allocation21], %s15143_s3 }
 0x132   : > { %s838_s27 = sshll.u32 %s831_s0, 4  ;;  %s19900_s26 = scalar_lea.sflag [#allocation22], %s17495_s1  ;;  %s17681_s27 = int_to_ptr.vmem [resolvable:$true] %s838_s27 }
 0x133   : > { %s16887_s9 = scalar_lea.hbm %s17677_s14, 36864  ;;  %s16891_s7 = scalar_lea.hbm %s19866_s13, 221184 }
 0x134   : > { %p16888_p1 = scmp.ne.s32.totalorder %s17677_s14, %s16887_s9  ;;  %p16892_p10 = scmp.lt.u32.totalorder %s17677_s14, %s19866_s13 }
 0x135   : > { %p16893_p9 = scmp.lt.u32.totalorder %s16891_s7, %s16887_s9  ;;  %p16895_p6 = scmp.lt.u32.totalorder %s16887_s9, %s17677_s14 }
 0x136   : > { %p16889_p5 = pnand %p16888_p1, %p19931_p0 }
 0x137   : > { %p16894_p2 = por %p16893_p9, %p16892_p10 }
 0x138   : > { %p16890_p8 = pneg %p16889_p5 }
 0x139   : > { %p16896_p3 = por %p16895_p6, %p16894_p2 }
 0x13b   : > { %p16897_p7 = pnand %p16896_p3, %p16890_p8 }
 0x13d   : > { %16900 = shalt.err (!%p16897_p7)
}
 0x13e   : > { %s16901_s3 = scalar_lea.vmem %s17681_s27, 36864  ;;  %s17224_s18 = smov [#allocation21]  }
 0x13f   : > { %p16902_p13 = scmp.ne.s32.totalorder %s17681_s27, %s16901_s3  ;;  %s16905_s17 = sshll.u32 %s17224_s18, 4  ;;  %s16906_s17 = int_to_ptr.vmem [resolvable:$false] %s16905_s17 }
 0x140   : > { %s16907_s0 = scalar_lea.vmem %s16906_s17, 73728  ;;  %p16908_p4 = scmp.lt.s32.totalorder %s17681_s27, %s16906_s17 }
 0x141   : > { %p16903_p11 = pnand %p16902_p13, %p19931_p0  ;;  %p16909_p1 = scmp.lt.s32.totalorder %s16907_s0, %s16901_s3 }
 0x143   : > { %p16904_p12 = pneg %p16903_p11  ;;  %p16910_p5 = por %p16909_p1, %p16908_p4 }
 0x145   : > { %p16911_p10 = pnand %p16910_p5, %p16904_p12 }
 0x147   : > { %16914 = shalt.err (!%p16911_p10)
}
 0x148   : > { %s19937_s9 = smov 12   ;;  %s19938_s16 = smov 192  }
 0x149   : > { %15174 = dma.hbm_to_vmem [thread:$0]  (%p19931_p0), %s17677_s14, 36864, %s17681_s27, %s19900_s26, %s19938_s16, %s19938_s16, %s19937_s9  }
 0x14a   : > { %s19939_s28 = sld [smem:[#allocation49_spill]]  ;;  %s612_s3 = scalar_lea.vmem [#allocation3], %s17492_s2 }
 0x14b   : > { %s620_s18 = sshll.u32 %s612_s3, 4  ;;  %s609_s17 = scalar_lea.sflag [#allocation4], %s17486_s29  ;;  %s621_s18 = int_to_ptr.vmem [resolvable:$true] %s620_s18 }
 0x150   : > { %s17714_s5 = scalar_lea.hbm %s19939_s28, %s17489_s15  ;;  %s16919_s27 = scalar_lea.hbm %s19939_s28, 288 }
 0x151   : > { %s16915_s0 = scalar_lea.hbm %s17714_s5, 48  ;;  %p16920_p6 = scmp.lt.u32.totalorder %s17714_s5, %s19939_s28 }
 0x152   : > { %p16916_p8 = scmp.ne.s32.totalorder %s17714_s5, %s16915_s0  ;;  %p16921_p3 = scmp.lt.u32.totalorder %s16919_s27, %s16915_s0 }
 0x153   : > { %p16923_p13 = scmp.lt.u32.totalorder %s16915_s0, %s17714_s5 }
 0x154   : > { %p16917_p9 = pnand %p16916_p8, %p19931_p0  ;;  %p16922_p7 = por %p16921_p3, %p16920_p6 }
 0x156   : > { %p16918_p2 = pneg %p16917_p9  ;;  %p16924_p11 = por %p16923_p13, %p16922_p7 }
 0x158   : > { %p16925_p12 = pnand %p16924_p11, %p16918_p2 }
 0x15a   : > { %16928 = shalt.err (!%p16925_p12)
}
 0x15b   : > { %s16929_s3 = scalar_lea.vmem %s621_s18, 48  ;;  %s17225_s26 = smov [#allocation3]  }
 0x15c   : > { %p16930_p4 = scmp.ne.s32.totalorder %s621_s18, %s16929_s3  ;;  %s16933_s11 = sshll.u32 %s17225_s26, 4  ;;  %s16934_s11 = int_to_ptr.vmem [resolvable:$false] %s16933_s11 }
 0x15d   : > { %s16935_s22 = scalar_lea.vmem %s16934_s11, 96  ;;  %p16936_p10 = scmp.lt.s32.totalorder %s621_s18, %s16934_s11 }
 0x15e   : > { %p16931_p1 = pnand %p16930_p4, %p19931_p0  ;;  %p16937_p8 = scmp.lt.s32.totalorder %s16935_s22, %s16929_s3 }
 0x160   : > { %p16932_p5 = pneg %p16931_p1  ;;  %p16938_p9 = por %p16937_p8, %p16936_p10 }
 0x162   : > { %p16939_p3 = pnand %p16938_p9, %p16932_p5 }
 0x164   : > { %16942 = shalt.err (!%p16939_p3)
}
 0x165   : > { %15163 = dma.hbm_to_vmem [thread:$0]  (%p19931_p0), %s17714_s5, 48, %s621_s18, %s609_s17  }
 0x166   : > { %s17739_s27 = scalar_lea.hbm %s19857_s4, %s17508_s24  ;;  %s650_s11 = scalar_lea.vmem [#allocation8], %s17504_s30 }
 0x167   : > { %s657_s26 = sshll.u32 %s650_s11, 4  ;;  %s16943_s19 = scalar_lea.hbm %s17739_s27, 9216  ;;  %s17742_s26 = int_to_ptr.vmem [resolvable:$true] %s657_s26 }
 0x168   : > { %p16944_p2 = scmp.ne.s32.totalorder %s17739_s27, %s16943_s19  ;;  %s16947_s18 = scalar_lea.hbm %s19857_s4, 55296 }
 0x169   : > { %p16948_p13 = scmp.lt.u32.totalorder %s17739_s27, %s19857_s4  ;;  %p16949_p11 = scmp.lt.u32.totalorder %s16947_s18, %s16943_s19 }
 0x16a   : > { %p16945_p6 = pnand %p16944_p2, %p19931_p0  ;;  %p16951_p4 = scmp.lt.u32.totalorder %s16943_s19, %s17739_s27 }
 0x16b   : > { %p16950_p12 = por %p16949_p11, %p16948_p13 }
 0x16c   : > { %p16946_p7 = pneg %p16945_p6 }
 0x16d   : > { %p16952_p1 = por %p16951_p4, %p16950_p12 }
 0x16f   : > { %p16953_p5 = pnand %p16952_p1, %p16946_p7 }
 0x171   : > { %16956 = shalt.err (!%p16953_p5)
}
 0x172   : > { %s16957_s22 = scalar_lea.vmem %s17742_s26, 9216  ;;  %s17226_s0 = smov [#allocation8]  }
 0x173   : > { %p16958_p10 = scmp.ne.s32.totalorder %s17742_s26, %s16957_s22  ;;  %s16961_s14 = sshll.u32 %s17226_s0, 4  ;;  %s16962_s14 = int_to_ptr.vmem [resolvable:$false] %s16961_s14 }
 0x174   : > { %s16963_s11 = scalar_lea.vmem %s16962_s14, 18432  ;;  %p16964_p3 = scmp.lt.s32.totalorder %s17742_s26, %s16962_s14 }
 0x175   : > { %p16959_p8 = pnand %p16958_p10, %p19931_p0  ;;  %p16965_p2 = scmp.lt.s32.totalorder %s16963_s11, %s16957_s22 }
 0x177   : > { %p16960_p9 = pneg %p16959_p8  ;;  %p16966_p6 = por %p16965_p2, %p16964_p3 }
 0x179   : > { %p16967_p13 = pnand %p16966_p6, %p16960_p9 }
 0x17b   : > { %16970 = shalt.err (!%p16967_p13)
}
 0x17c   : > { %s19940_s19 = scalar_lea.sflag [#allocation7], %s17495_s1  ;;  %s17774_s18 = scalar_lea.hbm %s19859_s6, %s17508_s24 }
 0x17d   : > { %15165 = dma.hbm_to_vmem [thread:$0]  (%p19931_p0), %s17739_s27, 9216, %s17742_s26, %s19940_s19, %s19938_s16, %s19938_s16, %s19937_s9  }
 0x17e   : > { %s692_s17 = scalar_lea.vmem [#allocation11], %s17504_s30  ;;  %s16971_s22 = scalar_lea.hbm %s17774_s18, 9216 }
 0x17f   : > { %s699_s3 = sshll.u32 %s692_s17, 4  ;;  %p16972_p7 = scmp.ne.s32.totalorder %s17774_s18, %s16971_s22  ;;  %s17777_s3 = int_to_ptr.vmem [resolvable:$true] %s699_s3 }
 0x180   : > { %s16975_s26 = scalar_lea.hbm %s19859_s6, 55296  ;;  %p16976_p4 = scmp.lt.u32.totalorder %s17774_s18, %s19859_s6 }
 0x181   : > { %p16973_p11 = pnand %p16972_p7, %p19931_p0  ;;  %p16977_p1 = scmp.lt.u32.totalorder %s16975_s26, %s16971_s22 }
 0x182   : > { %p16979_p10 = scmp.lt.u32.totalorder %s16971_s22, %s17774_s18 }
 0x183   : > { %p16974_p12 = pneg %p16973_p11  ;;  %p16978_p5 = por %p16977_p1, %p16976_p4 }
 0x185   : > { %p16980_p8 = por %p16979_p10, %p16978_p5 }
 0x187   : > { %p16981_p9 = pnand %p16980_p8, %p16974_p12 }
 0x189   : > { %16984 = shalt.err (!%p16981_p9)
}
 0x18a   : > { %s16985_s30 = scalar_lea.vmem %s17777_s3, 9216  ;;  %s17227_s11 = smov [#allocation11]  }
 0x18b   : > { %p16986_p3 = scmp.ne.s32.totalorder %s17777_s3, %s16985_s30  ;;  %s16989_s19 = sshll.u32 %s17227_s11, 4  ;;  %s16990_s19 = int_to_ptr.vmem [resolvable:$false] %s16989_s19 }
 0x18c   : > { %s16991_s7 = scalar_lea.vmem %s16990_s19, 18432  ;;  %p16992_p13 = scmp.lt.s32.totalorder %s17777_s3, %s16990_s19 }
 0x18d   : > { %p16987_p2 = pnand %p16986_p3, %p19931_p0  ;;  %p16993_p7 = scmp.lt.s32.totalorder %s16991_s7, %s16985_s30 }
 0x18f   : > { %p16988_p6 = pneg %p16987_p2  ;;  %p16994_p11 = por %p16993_p7, %p16992_p13 }
 0x191   : > { %p16995_p4 = pnand %p16994_p11, %p16988_p6 }
 0x193   : > { %16998 = shalt.err (!%p16995_p4)
}
 0x194   : > { %s19941_s5 = scalar_lea.sflag [#allocation10], %s17495_s1  ;;  %s17809_s0 = scalar_lea.hbm %s19861_s8, %s17489_s15 }
 0x195   : > { %15167 = dma.hbm_to_vmem [thread:$0]  (%p19931_p0), %s17774_s18, 9216, %s17777_s3, %s19941_s5, %s19938_s16, %s19938_s16, %s19937_s9  }
 0x196   : > { %s734_s27 = scalar_lea.vmem [#allocation14], %s17492_s2  ;;  %s16999_s14 = scalar_lea.hbm %s17809_s0, 48 }
 0x197   : > { %s742_s26 = sshll.u32 %s734_s27, 4  ;;  %p17000_p12 = scmp.ne.s32.totalorder %s17809_s0, %s16999_s14  ;;  %s743_s26 = int_to_ptr.vmem [resolvable:$true] %s742_s26 }
 0x198   : > { %s17003_s9 = scalar_lea.hbm %s19861_s8, 288  ;;  %p17004_p10 = scmp.lt.u32.totalorder %s17809_s0, %s19861_s8 }
 0x199   : > { %p17001_p1 = pnand %p17000_p12, %p19931_p0  ;;  %p17005_p8 = scmp.lt.u32.totalorder %s17003_s9, %s16999_s14 }
 0x19a   : > { %p17007_p3 = scmp.lt.u32.totalorder %s16999_s14, %s17809_s0 }
 0x19b   : > { %p17002_p5 = pneg %p17001_p1  ;;  %p17006_p9 = por %p17005_p8, %p17004_p10 }
 0x19d   : > { %p17008_p2 = por %p17007_p3, %p17006_p9 }
 0x19f   : > { %p17009_p6 = pnand %p17008_p2, %p17002_p5 }
 0x1a1   : > { %17012 = shalt.err (!%p17009_p6)
}
 0x1a2   : > { %s17013_s3 = scalar_lea.vmem %s743_s26, 48  ;;  %s17228_s11 = smov [#allocation14]  }
 0x1a3   : > { %p17014_p13 = scmp.ne.s32.totalorder %s743_s26, %s17013_s3  ;;  %s17017_s19 = sshll.u32 %s17228_s11, 4  ;;  %s17018_s19 = int_to_ptr.vmem [resolvable:$false] %s17017_s19 }
 0x1a4   : > { %s17019_s7 = scalar_lea.vmem %s17018_s19, 96  ;;  %p17020_p4 = scmp.lt.s32.totalorder %s743_s26, %s17018_s19 }
 0x1a5   : > { %p17015_p7 = pnand %p17014_p13, %p19931_p0  ;;  %p17021_p12 = scmp.lt.s32.totalorder %s17019_s7, %s17013_s3 }
 0x1a7   : > { %p17016_p11 = pneg %p17015_p7  ;;  %p17022_p1 = por %p17021_p12, %p17020_p4 }
 0x1a9   : > { %p17023_p8 = pnand %p17022_p1, %p17016_p11 }
 0x1ab   : > { %17026 = shalt.err (!%p17023_p8)
}
 0x1ac   : > { %s19942_s5 = scalar_lea.sflag [#allocation13], %s17495_s1  ;;  %s17835_s27 = scalar_lea.hbm %s19863_s10, %s17489_s15 }
 0x1ad   : > { %15169 = dma.hbm_to_vmem [thread:$0]  (%p19931_p0), %s17809_s0, 48, %s743_s26, %s19942_s5  }
 0x1ae   : > { %s772_s14 = scalar_lea.vmem [#allocation17], %s17492_s2  ;;  %s15145_s30 = smul.u32 12, %s17486_s29 }
 0x1af   : > { %s780_s24 = sshll.u32 %s772_s14, 4  ;;  %s17027_s9 = scalar_lea.hbm %s17835_s27, 48  ;;  %s781_s24 = int_to_ptr.vmem [resolvable:$true] %s780_s24 }
 0x1b0   : > { %p17028_p5 = scmp.ne.s32.totalorder %s17835_s27, %s17027_s9  ;;  %s17031_s26 = scalar_lea.hbm %s19863_s10, 288 }
 0x1b1   : > { %p17032_p3 = scmp.lt.u32.totalorder %s17835_s27, %s19863_s10  ;;  %p17033_p2 = scmp.lt.u32.totalorder %s17031_s26, %s17027_s9 }
 0x1b2   : > { %p17029_p10 = pnand %p17028_p5, %p19931_p0  ;;  %p17035_p13 = scmp.lt.u32.totalorder %s17027_s9, %s17835_s27 }
 0x1b3   : > { %p17034_p6 = por %p17033_p2, %p17032_p3 }
 0x1b4   : > { %p17030_p9 = pneg %p17029_p10 }
 0x1b5   : > { %p17036_p7 = por %p17035_p13, %p17034_p6 }
 0x1b7   : > { %p17037_p11 = pnand %p17036_p7, %p17030_p9 }
 0x1b9   : > { %17040 = shalt.err (!%p17037_p11)
}
 0x1ba   : > { %s17041_s29 = scalar_lea.vmem %s781_s24, 48  ;;  %s17229_s11 = smov [#allocation17]  }
 0x1bb   : > { %p17042_p4 = scmp.ne.s32.totalorder %s781_s24, %s17041_s29  ;;  %s17045_s19 = sshll.u32 %s17229_s11, 4  ;;  %s17046_s19 = int_to_ptr.vmem [resolvable:$false] %s17045_s19 }
 0x1bc   : > { %s17047_s7 = scalar_lea.vmem %s17046_s19, 96  ;;  %p17048_p8 = scmp.lt.s32.totalorder %s781_s24, %s17046_s19 }
 0x1bd   : > { %p17043_p12 = pnand %p17042_p4, %p19931_p0  ;;  %p17049_p5 = scmp.lt.s32.totalorder %s17047_s7, %s17041_s29 }
 0x1bf   : > { %p17044_p1 = pneg %p17043_p12  ;;  %p17050_p10 = por %p17049_p5, %p17048_p8 }
 0x1c1   : > { %p17051_p2 = pnand %p17050_p10, %p17044_p1 }
 0x1c3   : > { %17054 = shalt.err (!%p17051_p2)
}
 0x1c4   : > { %s19943_s5 = scalar_lea.sflag [#allocation16], %s17495_s1  ;;  %s15146_s17 = smul.u32 192, %s17207_s21 }
 0x1c5   : > { %15171 = dma.hbm_to_vmem [thread:$0]  (%p19931_p0), %s17835_s27, 48, %s781_s24, %s19943_s5  }
 0x1c6   : > { %s812_s22 = scalar_lea.vmem [#allocation20], %s15145_s30  ;;  %s818_s0 = scalar_lea.hbm %s19865_s12, %s15146_s17 }
 0x1c7   : > { %s820_s14 = sshll.u32 %s812_s22, 4  ;;  %s17055_s26 = scalar_lea.hbm %s818_s0, 192  ;;  %s821_s14 = int_to_ptr.vmem [resolvable:$true] %s820_s14 }
 0x1c8   : > { %p17056_p9 = scmp.ne.s32.totalorder %s818_s0, %s17055_s26  ;;  %s17059_s29 = scalar_lea.hbm %s19865_s12, 1152 }
 0x1c9   : > { %p17060_p13 = scmp.lt.u32.totalorder %s818_s0, %s19865_s12  ;;  %p17061_p7 = scmp.lt.u32.totalorder %s17059_s29, %s17055_s26 }
 0x1ca   : > { %p17057_p3 = pnand %p17056_p9, %p19931_p0  ;;  %p17063_p4 = scmp.lt.u32.totalorder %s17055_s26, %s818_s0 }
 0x1cb   : > { %p17062_p11 = por %p17061_p7, %p17060_p13 }
 0x1cc   : > { %p17058_p6 = pneg %p17057_p3 }
 0x1cd   : > { %p17064_p12 = por %p17063_p4, %p17062_p11 }
 0x1cf   : > { %p17065_p1 = pnand %p17064_p12, %p17058_p6 }
 0x1d1   : > { %17068 = shalt.err (!%p17065_p1)
}
 0x1d2   : > { %s17069_s21 = scalar_lea.vmem %s821_s14, 192  ;;  %s17230_s27 = smov [#allocation20]  }
 0x1d3   : > { %p17070_p8 = scmp.ne.s32.totalorder %s821_s14, %s17069_s21  ;;  %s17073_s24 = sshll.u32 %s17230_s27, 4  ;;  %s17074_s24 = int_to_ptr.vmem [resolvable:$false] %s17073_s24 }
 0x1d4   : > { %s17075_s30 = scalar_lea.vmem %s17074_s24, 384  ;;  %p17076_p2 = scmp.lt.s32.totalorder %s821_s14, %s17074_s24 }
 0x1d5   : > { %p17071_p5 = pnand %p17070_p8, %p19931_p0  ;;  %p17077_p9 = scmp.lt.s32.totalorder %s17075_s30, %s17069_s21 }
 0x1d7   : > { %p17072_p10 = pneg %p17071_p5  ;;  %p17078_p3 = por %p17077_p9, %p17076_p2 }
 0x1d9   : > { %p17079_p7 = pnand %p17078_p3, %p17072_p10 }
 0x1db   : > { %17082 = shalt.err (!%p17079_p7)
}
 0x1dc   : > { %s19944_s7 = scalar_lea.sflag [#allocation19], %s17495_s1  ;;  %s19945_s22 = sld [smem:[#allocation55_spill]] }
 0x1dd   : > { %15173 = dma.hbm_to_vmem [thread:$0]  (%p19931_p0), %s818_s0, 192, %s821_s14, %s19944_s7  }
 0x1de   : > { %s852_s16 = scalar_lea.vmem [#allocation23], %s17492_s2 }
 0x1df   : > { %s860_s26 = sshll.u32 %s852_s16, 4  ;;  %s861_s26 = int_to_ptr.vmem [resolvable:$true] %s860_s26 }
 0x1e2   : > { %s17880_s9 = scalar_lea.hbm %s19945_s22, %s17489_s15  ;;  %s17087_s14 = scalar_lea.hbm %s19945_s22, 288 }
 0x1e3   : > { %s17083_s18 = scalar_lea.hbm %s17880_s9, 48  ;;  %p17088_p4 = scmp.lt.u32.totalorder %s17880_s9, %s19945_s22 }
 0x1e4   : > { %p17084_p6 = scmp.ne.s32.totalorder %s17880_s9, %s17083_s18  ;;  %p17089_p12 = scmp.lt.u32.totalorder %s17087_s14, %s17083_s18 }
 0x1e5   : > { %p17091_p8 = scmp.lt.u32.totalorder %s17083_s18, %s17880_s9 }
 0x1e6   : > { %p17085_p13 = pnand %p17084_p6, %p19931_p0  ;;  %p17090_p1 = por %p17089_p12, %p17088_p4 }
 0x1e8   : > { %p17086_p11 = pneg %p17085_p13  ;;  %p17092_p5 = por %p17091_p8, %p17090_p1 }
 0x1ea   : > { %p17093_p10 = pnand %p17092_p5, %p17086_p11 }
 0x1ec   : > { %17096 = shalt.err (!%p17093_p10)
}
 0x1ed   : > { %s17097_s15 = scalar_lea.vmem %s861_s26, 48  ;;  %s17231_s2 = smov [#allocation23]  }
 0x1ee   : > { %p17098_p2 = scmp.ne.s32.totalorder %s861_s26, %s17097_s15  ;;  %s17101_s19 = sshll.u32 %s17231_s2, 4  ;;  %s17102_s19 = int_to_ptr.vmem [resolvable:$false] %s17101_s19 }
 0x1ef   : > { %s17103_s21 = scalar_lea.vmem %s17102_s19, 96  ;;  %p17104_p7 = scmp.lt.s32.totalorder %s861_s26, %s17102_s19 }
 0x1f0   : > { %p17099_p9 = pnand %p17098_p2, %p19931_p0  ;;  %p17105_p6 = scmp.lt.s32.totalorder %s17103_s21, %s17097_s15 }
 0x1f2   : > { %p17100_p3 = pneg %p17099_p9  ;;  %p17106_p13 = por %p17105_p6, %p17104_p7 }
 0x1f4   : > { %p17107_p4 = pnand %p17106_p13, %p17100_p3 }
 0x1f6   : > { %17110 = shalt.err (!%p17107_p4)
}
 0x1f7   : > { %s19946_s27 = scalar_lea.sflag [#allocation22], %s17495_s1 }
 0x1f8   : > { %15175 = dma.hbm_to_vmem [thread:$0]  (%p19931_p0), %s17880_s9, 48, %s861_s26, %s19946_s27  }
 0x1f9 PF: > { %s19947_s24 = sld [smem:[#allocation46_spill]] }
 0x1ff   : > { %p19948_p11 = scmp.ne.s32.totalorder %s19947_s24, 0 }
 0x200   : > { %s19949_s30 = sld [smem:[#allocation41_spill]] (!%p19948_p11)  ;;  %s19950_s7 = sld [smem:[#allocation45_spill]] (!%p19948_p11) }
 0x201   : > { %869 = sbr.rel (%p19948_p11) target bundleno = 8972 (0x230c), region = 96 }
 0x206   : > { %s17905_s5 = sand.u32 (!%p19948_p11), 1, %s19949_s30   ;;  %p19951_p12 = scmp.ne.s32.totalorder (!%p19948_p11), %s19950_s7, 0 }
 0x207   : > { %s17908_s17 = smul.u32 (!%p19948_p11), 3, %s17905_s5  ;;  %s872_s16 = scalar_lea.sflag (!%p19948_p11), [#allocation4], %s17905_s5 }
 0x209   : > { %s875_s18 = scalar_lea.vmem [#allocation3], %s17908_s17 }
 0x20a   : > { %17154 = dma.done.wait (%p19951_p12), %s872_s16, 48  }
 0x20b   : > { %17156 = vsyncadd (%p19951_p12), %s872_s16, 4294967248  ;;  %s19952_s25 = sld [smem:[#allocation42_spill]]  ;;  %s884_s26 = scalar_lea.vmem [#allocation6], %s17908_s17 }
 0x211   : > { %s17917_s1 = sand.u32 1, %s19952_s25  }
 0x212   : > { %s881_s9 = scalar_lea.sflag [#allocation7], %s17917_s1 }
 0x213   : > { %17158 = dma.done.wait (%p19951_p12), %s881_s9, 9264  }
 0x214   : > { %17160 = vsyncadd (%p19951_p12), %s881_s9, 4294958032  ;;  %s15152_s3 = smul.u32 576, %s17905_s5  ;;  %s899_s14 = scalar_lea.sflag [#allocation10], %s17917_s1 }
 0x216   : > { %s17926_s29 = scalar_lea.vmem [#allocation8], %s15152_s3  ;;  %s17929_s0 = scalar_lea.vmem [#allocation9], %s15152_s3 }
 0x217   : > { %17162 = dma.done.wait (%p19951_p12), %s899_s14, 18432  }
 0x218   : > { %17164 = vsyncadd (%p19951_p12), %s899_s14, 4294948864  ;;  %s17935_s11 = scalar_lea.vmem [#allocation11], %s15152_s3  ;;  %s917_s15 = scalar_lea.sflag [#allocation13], %s17917_s1 }
 0x219   : > { %s17938_s2 = scalar_lea.vmem [#allocation12], %s15152_s3 }
 0x21a   : > { %17166 = dma.done.wait (%p19951_p12), %s917_s15, 9264  }
 0x21b   : > { %17168 = vsyncadd (%p19951_p12), %s917_s15, 4294958032  ;;  %s935_s21 = scalar_lea.sflag [#allocation16], %s17917_s1 }
 0x21c   : > { %17170 = dma.done.wait (%p19951_p12), %s935_s21, 96  }
 0x21d   : > { %17172 = vsyncadd (%p19951_p12), %s935_s21, 4294967200  ;;  %s15153_s24 = smul.u32 2304, %s17905_s5  ;;  %s953_s16 = scalar_lea.sflag [#allocation19], %s17917_s1 }
 0x21f   : > { %s17954_s9 = scalar_lea.vmem [#allocation18], %s15153_s24 }
 0x220   : > { %17174 = dma.done.wait (%p19951_p12), %s953_s16, 37056  }
 0x221   : > { %17176 = vsyncadd (%p19951_p12), %s953_s16, 4294930240  ;;  %s15154_s3 = smul.u32 12, %s17905_s5  ;;  %s971_s15 = scalar_lea.sflag [#allocation22], %s17917_s1 }
 0x222   : > { %s17964_s21 = scalar_lea.vmem [#allocation21], %s15153_s24 }
 0x223   : > { %s17961_s14 = scalar_lea.vmem [#allocation20], %s15154_s3 }
 0x224   : > { %17178 = dma.done.wait (%p19951_p12), %s971_s15, 36912  }
 0x225   : > { %17180 = vsyncadd (%p19951_p12), %s971_s15, 4294930384  ;;  %p19953_p0 = scmp.eq.s32.totalorder %s19952_s25, 0 }
 0x227   : > { %17182 = dma.done.wait (%p19953_p0), [#allocation25], 96   ;;  %p19954_p1 = pmov %p19953_p0 }
 0x228   : > { %p19955_p8 = pmov %p19953_p0 }
 0x229   : > { %17184 = vsyncadd (%p19954_p1), [#allocation25], 4294967200 }
 0x22a   : > { %17186 = dma.done.wait (%p19955_p8), [#allocation28], 3088   ;;  %p19956_p5 = pmov %p19953_p0 }
 0x22b   : > { %p19957_p10 = scmp.ne.s32.totalorder %s19952_s25, 0 }
 0x22c   : > { %17188 = vsyncadd (%p19956_p5), [#allocation28], 4294964208  ;;  %s19958_s1 = sld [smem:[#allocation47_spill]] (!%p19957_p10) }
 0x22d   : > { %1113 = sbr.rel (%p19957_p10) target bundleno = 569 (0x239), region = 168 }
 0x232   : > { %v1114_v0 = vld [vmem:[%s19958_s1] sm:$0xff] (!%p19957_p10)  ;;  %v1115_v1 = vld [vmem:[%s19958_s1 + $0x8] sm:$0xff] (!%p19957_p10)  ;;  %v1116_v2 = vld [vmem:[%s19958_s1 + $0x10] sm:$0xff] (!%p19957_p10) }
 0x233   : > { %1126 = vst [vmem:[#allocation2] sm:$0xff] (!%p19957_p10), %v1114_v0  ;;  %1127 = vst [vmem:[#allocation2 + $0x8] sm:$0xff] (!%p19957_p10), %v1115_v1  ;;  %v1117_v3 = vld [vmem:[%s19958_s1 + $0x18] sm:$0xff] (!%p19957_p10)  ;;  %v1118_v4 = vld [vmem:[%s19958_s1 + $0x20] sm:$0xff] (!%p19957_p10) }
 0x234   : > { %1128 = vst [vmem:[#allocation2 + $0x10] sm:$0xff] %v1116_v2  ;;  %v1119_v5 = vld [vmem:[%s19958_s1 + $0x28] sm:$0xff]  ;;  %1129 = vst [vmem:[#allocation2 + $0x18] sm:$0xff] %v1117_v3  ;;  %v1120_v6 = vld [vmem:[%s19958_s1 + $0x30] sm:$0xff] }
 0x235   : > { %1130 = vst [vmem:[#allocation2 + $0x20] sm:$0xff] %v1118_v4  ;;  %1131 = vst [vmem:[#allocation2 + $0x28] sm:$0xff] %v1119_v5  ;;  %v1121_v7 = vld [vmem:[%s19958_s1 + $0x38] sm:$0xff]  ;;  %v1122_v8 = vld [vmem:[%s19958_s1 + $0x40] sm:$0xff] }
 0x236   : > { %1132 = vst [vmem:[#allocation2 + $0x30] sm:$0xff] %v1120_v6  ;;  %1133 = vst [vmem:[#allocation2 + $0x38] sm:$0xff] %v1121_v7  ;;  %v1123_v9 = vld [vmem:[%s19958_s1 + $0x48] sm:$0xff]  ;;  %v1124_v10 = vld [vmem:[%s19958_s1 + $0x50] sm:$0xff] }
 0x237   : > { %1134 = vst [vmem:[#allocation2 + $0x40] sm:$0xff] %v1122_v8  ;;  %v1125_v11 = vld [vmem:[%s19958_s1 + $0x58] sm:$0xff]  ;;  %1135 = vst [vmem:[#allocation2 + $0x48] sm:$0xff] %v1123_v9 }
 0x238   : > { %1136 = vst [vmem:[#allocation2 + $0x50] sm:$0xff] %v1124_v10  ;;  %1137 = vst [vmem:[#allocation2 + $0x58] sm:$0xff] %v1125_v11 }
 0x239 PF: > { %v15270_v32 = vld [vmem:[%s17926_s29 + $0x4] ss:$12 sps:$4 sm:$0xff]   ;;  %v15274_v34 = vld [vmem:[%s17926_s29] ss:$12 sps:$4 sm:$0xff]   ;;  %vm1841_vm0 = vcmask 523264   ;;  %s19959_s3 = sld [smem:[#allocation48_spill]] }
 0x23a   : > { %v15272_v33 = vld [vmem:[%s17929_s0 + $0x4] ss:$12 sps:$4 sm:$0xff]   ;;  %v15275_v35 = vld [vmem:[%s17929_s0] ss:$12 sps:$4 sm:$0xff]   ;;  %1383 = vmatprep.subr.bf16.mxu1 %v15270_v32  ;;  %vm1907_vm1 = vcmask 261120  }
 0x23b   : > { %1561 = vmatprep.subr.bf16.mxu0 %v15272_v33  ;;  %1384 = vmatpush1.bf16.xpose.msra.mxu1 %v15274_v34 }
 0x23c   : > { %v1142_v21 = vld [vmem:[#allocation2 + $0x20] sm:$0xff]  ;;  %v1143_v22 = vld [vmem:[#allocation2 + $0x28] sm:$0xff]  ;;  %1562 = vmatpush1.bf16.xpose.msra.mxu0 %v15275_v35 }
 0x23d   : > { %v1144_v16 = vld [vmem:[#allocation2 + $0x30] sm:$0xff]  ;;  %v1145_v17 = vld [vmem:[#allocation2 + $0x38] sm:$0xff] }
 0x23e   : > { %v1146_v18 = vld [vmem:[#allocation2 + $0x40] sm:$0xff]  ;;  %v1160_v19 = vadd.f32 %v1145_v17, %v1144_v16  ;;  %v1147_v25 = vld [vmem:[#allocation2 + $0x48] sm:$0xff] }
 0x23f   : > { %v1138_v12 = vld [vmem:[#allocation2] sm:$0xff]  ;;  %v1139_v13 = vld [vmem:[#allocation2 + $0x8] sm:$0xff]  ;;  %v1148_v26 = vld [vmem:[#allocation2 + $0x50] sm:$0xff] }
 0x240   : > { %v1140_v14 = vld [vmem:[#allocation2 + $0x10] sm:$0xff]  ;;  %v1152_v15 = vadd.f32 %v1139_v13, %v1138_v12  ;;  %v1141_v20 = vld [vmem:[#allocation2 + $0x18] sm:$0xff]  ;;  %v1161_v28 = vadd.f32 %v1160_v19, %v1146_v18  ;;  %v1164_v29 = vadd.f32 %v1148_v26, %v1147_v25 }
 0x241   : > { %v1156_v24 = vadd.f32 %v1142_v21, %v1141_v20  ;;  %v1149_v27 = vld [vmem:[#allocation2 + $0x58] sm:$0xff] }
 0x242   : > { %v1153_v23 = vadd.f32 %v1152_v15, %v1140_v14  ;;  %1162 = vadd.xlane.f32.xlu1 %v1161_v28  ;;  %v1165_v31 = vadd.f32 %v1164_v29, %v1149_v27  ;;  %v15281_v15 = vld [vmem:[%s17929_s0 + $0x18] ss:$12 sps:$4 sm:$0xff]   ;;  %v15287_v19 = vld [vmem:[%s17929_s0 + $0x30] ss:$12 sps:$4 sm:$0xff]   ;;  %v1238_v29 = vlaneseq }
 0x243   : > { %v1157_v30 = vadd.f32 %v1156_v24, %v1143_v22  ;;  %v18082_v24 = vld [vmem:[%s17926_s29 + $0x8] ss:$12 sps:$4 sm:$0xff]  }
 0x244   : > { %1154 = vadd.xlane.f32.xlu0 %v1153_v23  ;;  %v15293_v23 = vld [vmem:[%s17929_s0 + $0x48] ss:$12 sps:$4 sm:$0xff]  }
 0x246   : > { %1166 = vadd.xlane.f32.xlu1 %v1165_v31 }
 0x248   : > { %1158 = vadd.xlane.f32.xlu0 %v1157_v30 }
 0x2cf   : > { %v1163_v38 = vpop.xlane.xlu1 %1162 }
 0x2d0   : > { %v1171_v39 = vmul.f32 0.0026041667, %v1163_v38 }
 0x2d1   : > { %v1155_v36 = vpop.xlane.xlu0 %1154 }
 0x2d2   : > { %v1169_v37 = vmul.f32 0.0026041667, %v1155_v36  ;;  %v18027_v43 = vsub.f32 %v1144_v16, %v1171_v39  ;;  %v18029_v44 = vsub.f32 %v1145_v17, %v1171_v39  ;;  %v18031_v45 = vsub.f32 %v1146_v18, %v1171_v39  ;;  %v15282_v16 = vld [vmem:[%s17926_s29 + $0x34] ss:$12 sps:$4 sm:$0xff]   ;;  %v15286_v18 = vld [vmem:[%s17926_s29 + $0x30] ss:$12 sps:$4 sm:$0xff]  }
 0x2d3   : > { %v1167_v48 = vpop.xlane.xlu1 %1166  ;;  %v15284_v17 = vld [vmem:[%s17929_s0 + $0x34] ss:$12 sps:$4 sm:$0xff]   ;;  %v18086_v36 = vshrl.u32 %v1238_v29, 7 }
 0x2d4   : > { %v18021_v40 = vsub.f32 %v1138_v12, %v1169_v37  ;;  %v18023_v41 = vsub.f32 %v1139_v13, %v1169_v37  ;;  %v18025_v42 = vsub.f32 %v1140_v14, %v1169_v37  ;;  %v1172_v52 = vmul.f32 0.0026041667, %v1167_v48  ;;  %v15276_v12 = vld [vmem:[%s17926_s29 + $0x1c] ss:$12 sps:$4 sm:$0xff]   ;;  %v15280_v14 = vld [vmem:[%s17926_s29 + $0x18] ss:$12 sps:$4 sm:$0xff]  }
 0x2d5   : > { %v1159_v46 = vpop.xlane.xlu0 %1158  ;;  %v1191_v53 = vmul.f32 %v18027_v43, %v18027_v43  ;;  %v1192_v54 = vmul.f32 %v18029_v44, %v18029_v44  ;;  %v1193_v55 = vmul.f32 %v18031_v45, %v18031_v45  ;;  %v15278_v13 = vld [vmem:[%s17929_s0 + $0x1c] ss:$12 sps:$4 sm:$0xff]   ;;  %1385 = vmatprep.subr.bf16.mxu1 %v15276_v12  ;;  %v1150_v39 = vld [vmem:[%s875_s18] sm:$0x7]  ;;  %v18094_v48 = vsub.s32 1, %v18086_v36 }
 0x2d6   : > { %v1170_v47 = vmul.f32 0.0026041667, %v1159_v46  ;;  %v1185_v49 = vmul.f32 %v18021_v40, %v18021_v40  ;;  %v1186_v50 = vmul.f32 %v18023_v41, %v18023_v41  ;;  %v1187_v51 = vmul.f32 %v18025_v42, %v18025_v42  ;;  %1563 = vmatprep.subr.bf16.mxu0 %v15278_v13  ;;  %1386 = vmatpush1.bf16.xpose.msra.mxu1 %v15280_v14  ;;  %v15295_v13 = vld [vmem:[%s17935_s11] ss:$12 sps:$4 sm:$0xff]  }
 0x2d7   : > { %v18051_v60 = vsub.f32 %v1147_v25, %v1172_v52  ;;  %v18053_v61 = vsub.f32 %v1148_v26, %v1172_v52  ;;  %v18055_v62 = vsub.f32 %v1149_v27, %v1172_v52  ;;  %v1205_v63 = vadd.f32 %v1192_v54, %v1191_v53  ;;  %1564 = vmatpush1.bf16.xpose.msra.mxu0 %v15281_v15  ;;  %v15297_v25 = vld [vmem:[%s17935_s11 + $0x4] ss:$12 sps:$4 sm:$0xff]  }
 0x2d8   : > { %v18045_v56 = vsub.f32 %v1141_v20, %v1170_v47  ;;  %v18047_v57 = vsub.f32 %v1142_v21, %v1170_v47  ;;  %v18049_v58 = vsub.f32 %v1143_v22, %v1170_v47  ;;  %v1197_v59 = vadd.f32 %v1186_v50, %v1185_v49  ;;  %1387 = vmatprep.subr.bf16.mxu1 %v15282_v16  ;;  %v15288_v20 = vld [vmem:[%s17926_s29 + $0x4c] ss:$12 sps:$4 sm:$0xff]   ;;  %v15292_v22 = vld [vmem:[%s17926_s29 + $0x48] ss:$12 sps:$4 sm:$0xff]  }
 0x2d9   : > { %v1194_v3 = vmul.f32 %v18051_v60, %v18051_v60  ;;  %v1195_v4 = vmul.f32 %v18053_v61, %v18053_v61  ;;  %v1206_v5 = vadd.f32 %v1205_v63, %v1193_v55  ;;  %v1196_v8 = vmul.f32 %v18055_v62, %v18055_v62  ;;  %1565 = vmatprep.subr.bf16.mxu0 %v15284_v17  ;;  %v15290_v21 = vld [vmem:[%s17929_s0 + $0x4c] ss:$12 sps:$4 sm:$0xff]   ;;  %v15301_v17 = vld [vmem:[%s17935_s11 + $0x1c] ss:$12 sps:$4 sm:$0xff]  }
 0x2da   : > { %v1198_v0 = vadd.f32 %v1197_v59, %v1187_v51  ;;  %v1188_v1 = vmul.f32 %v18045_v56, %v18045_v56  ;;  %v1189_v2 = vmul.f32 %v18047_v57, %v18047_v57  ;;  %v1190_v6 = vmul.f32 %v18049_v58, %v18049_v58  ;;  %v1151_v50 = vld [vmem:[%s884_s26] sm:$0x7]  ;;  %v15298_v16 = vld [vmem:[%s17926_s29 + $0x20] ss:$12 sps:$4 sm:$0xff]  }
 0x2db   : > { %v1209_v9 = vadd.f32 %v1195_v4, %v1194_v3  ;;  %v18091_v47 = vsub.s32 0, %v18086_v36  ;;  %v1245_v53 = vrot.slane %v1150_v39, %v18094_v48 }
 0x2dc   : > { %1199 = vadd.xlane.f32.xlu0 %v1198_v0  ;;  %v1201_v7 = vadd.f32 %v1189_v2, %v1188_v1  ;;  %v1273_v2 = vrot.slane %v1151_v50, %v18094_v48 }
 0x2dd   : > { %v1210_v11 = vadd.f32 %v1209_v9, %v1196_v8  ;;  %v1241_v51 = vrot.slane %v1150_v39, %v18091_v47  ;;  %v1269_v63 = vrot.slane %v1151_v50, %v18091_v47 }
 0x2de   : > { %v1202_v10 = vadd.f32 %v1201_v7, %v1190_v6  ;;  %1388 = vmatpush1.bf16.xpose.msra.mxu1 %v15286_v18  ;;  %v18111_v6 = vsub.s32 2, %v18086_v36 }
 0x2df   : > { %1566 = vmatpush1.bf16.xpose.msra.mxu0 %v15287_v19  ;;  %1389 = vmatprep.subr.bf16.mxu1 %v15288_v20 }
 0x2e0   : > { %1207 = vadd.xlane.f32.xlu0 %v1206_v5  ;;  %1203 = vadd.xlane.f32.xlu1 %v1202_v10 }
 0x2e1   : > { %1567 = vmatprep.subr.bf16.mxu0 %v15290_v21 }
 0x2e4   : > { %1211 = vadd.xlane.f32.xlu1 %v1210_v11 }
 0x2e6   : > { %1390 = vmatpush1.bf16.xpose.msra.mxu1 %v15292_v22 }
 0x2e7   : > { %1568 = vmatpush1.bf16.xpose.msra.mxu0 %v15293_v23  ;;  %14505 = vmatprep.subr.bf16.mxu1 %v18082_v24 }
 0x2e8   : > { %1739 = vmatprep.subr.bf16.mxu0 %v15297_v25 }
 0x369   : > { %v1200_v26 = vpop.xlane.xlu0 %1199 }
 0x36a   : > { %v1213_v27 = vmul.f32 0.0026041667, %v1200_v26 }
 0x36c   : > { %v1217_v28 = vadd.f32 1e-05, %v1213_v27  ;;  %v15299_v27 = vld [vmem:[%s17935_s11 + $0x18] ss:$12 sps:$4 sm:$0xff]  }
 0x36d   : > { %v1204_v30 = vpop.xlane.xlu1 %1203  ;;  %v1208_v31 = vpop.xlane.xlu0 %1207 }
 0x36e   : > { %16470 = vrsqrt.f32 %v1217_v28  ;;  %v1214_v32 = vmul.f32 0.0026041667, %v1204_v30  ;;  %v1215_v33 = vmul.f32 0.0026041667, %v1208_v31  ;;  %v15302_v30 = vld [vmem:[%s17926_s29 + $0x38] ss:$12 sps:$4 sm:$0xff]  }
 0x36f   : > { %v15305_v31 = vld [vmem:[%s17935_s11 + $0x34] ss:$12 sps:$4 sm:$0xff]  }
 0x370   : > { %v1218_v34 = vadd.f32 1e-05, %v1214_v32  ;;  %v1219_v35 = vadd.f32 1e-05, %v1215_v33 }
 0x371   : > { %v1212_v37 = vpop.xlane.xlu1 %1211 }
 0x372   : > { %16472 = vrsqrt.f32 %v1218_v34  ;;  %v1216_v38 = vmul.f32 0.0026041667, %v1212_v37  ;;  %v15303_v34 = vld [vmem:[%s17935_s11 + $0x30] ss:$12 sps:$4 sm:$0xff]   ;;  %v15309_v37 = vld [vmem:[%s17935_s11 + $0x4c] ss:$12 sps:$4 sm:$0xff]  }
 0x373   : > { %16474 = vrsqrt.f32 %v1219_v35  ;;  %v15306_v35 = vld [vmem:[%s17926_s29 + $0x50] ss:$12 sps:$4 sm:$0xff]  }
 0x374   : > { %v1220_v46 = vadd.f32 1e-05, %v1216_v38 }
 0x376   : > { %16476 = vrsqrt.f32 %v1220_v46 }
 0x378   : > { %v16471_v49 = vpop.eup %16470 }
 0x379   : > { %v1225_v52 = vmul.f32 %v16471_v49, %v18021_v40  ;;  %v1226_v54 = vmul.f32 %v16471_v49, %v18023_v41 }
 0x37b   : > { %v1253_v0 = vmul.f32 %v1241_v51, %v1225_v52  ;;  %v1254_v3 = vmul.f32 %v1245_v53, %v1226_v54  ;;  %v15311_v54 = vld [vmem:[%s17929_s0 + $0x20] ss:$12 sps:$4 sm:$0xff]  }
 0x37c   : > { %v16473_v55 = vpop.eup %16472 }
 0x37d   : > { %v18102_v59 = vpop.eup %16474  ;;  %v1228_v1 = vmul.f32 %v16473_v55, %v18045_v56  ;;  %v1229_v4 = vmul.f32 %v16473_v55, %v18047_v57  ;;  %v1281_v8 = vadd.f32 %v1269_v63, %v1253_v0  ;;  %v1282_v11 = vadd.f32 %v1273_v2, %v1254_v3  ;;  %v15316_v0 = vld [vmem:[%s17935_s11 + $0x38] ss:$12 sps:$4 sm:$0xff]  }
 0x37e   : > { %v1232_v40 = vmul.f32 %v18102_v59, %v18029_v44  ;;  %v1230_v44 = vmul.f32 %v16473_v55, %v18049_v58  ;;  %v1231_v15 = vmul.f32 %v18102_v59, %v18027_v43  ;;  %v1233_v46 = vmul.f32 %v18102_v59, %v18031_v45  ;;  %v15312_v45 = vld [vmem:[%s17929_s0 + $0x38] ss:$12 sps:$4 sm:$0xff]   ;;  %v15314_v59 = vld [vmem:[%s17935_s11 + $0x8] ss:$12 sps:$4 sm:$0xff]  }
 0x37f   : > { %v1256_v5 = vmul.f32 %v1241_v51, %v1228_v1  ;;  %v1257_v7 = vmul.f32 %v1245_v53, %v1229_v4  ;;  %v15317_v1 = vld [vmem:[%s17935_s11 + $0x50] ss:$12 sps:$4 sm:$0xff]  }
 0x380   : > { %v16477_v41 = vpop.eup %16476  ;;  %v1260_v57 = vmul.f32 %v1245_v53, %v1232_v40  ;;  %v1259_v23 = vmul.f32 %v1241_v51, %v1231_v15 }
 0x381   : > { %v1284_v9 = vadd.f32 %v1269_v63, %v1256_v5  ;;  %v1234_v56 = vmul.f32 %v16477_v41, %v18051_v60  ;;  %v1235_v10 = vmul.f32 %v16477_v41, %v18053_v61  ;;  %v1285_v12 = vadd.f32 %v1273_v2, %v1257_v7 }
 0x382   : > { %v1249_v60 = vrot.slane %v1150_v39, %v18111_v6  ;;  %v1227_v61 = vmul.f32 %v16471_v49, %v18025_v42  ;;  %v1288_v21 = vadd.f32 %v1273_v2, %v1260_v57  ;;  %v1277_v42 = vrot.slane %v1151_v50, %v18111_v6  ;;  %v15307_v39 = vld [vmem:[%s17935_s11 + $0x48] ss:$12 sps:$4 sm:$0xff]  }
 0x383   : > { %v18117_v14 = vpack.c.bf16 %v1284_v9, %v1281_v8  ;;  %v18123_v18 = vpack.c.bf16 %v1285_v12, %v1282_v11  ;;  %v1263_v19 = vmul.f32 %v1245_v53, %v1235_v10  ;;  %v1262_v20 = vmul.f32 %v1241_v51, %v1234_v56  ;;  %v15310_v49 = vld [vmem:[%s17929_s0 + $0x8] ss:$12 sps:$4 sm:$0xff]  }
 0x384   : > { %v1258_v58 = vmul.f32 %v1249_v60, %v1230_v44  ;;  %v1255_v25 = vmul.f32 %v1249_v60, %v1227_v61  ;;  %v1287_v29 = vadd.f32 %v1269_v63, %v1259_v23  ;;  %v1236_v38 = vmul.f32 %v16477_v41, %v18055_v62  ;;  %v15313_v62 = vld [vmem:[%s17929_s0 + $0x50] ss:$12 sps:$4 sm:$0xff]  }
 0x385   : > { %v1291_v22 = vadd.f32 %v1273_v2, %v1263_v19  ;;  %1415 = vmatprep.mubr.bf16.mxu1 %v18123_v18  ;;  %1593 = vmatprep.mubr.bf16.mxu0 %v18123_v18  ;;  %v1290_v26 = vadd.f32 %v1269_v63, %v1262_v20  ;;  %v1261_v51 = vmul.f32 %v1249_v60, %v1233_v46  ;;  %v15315_v63 = vld [vmem:[%s17935_s11 + $0x20] ss:$12 sps:$4 sm:$0xff]  }
 0x386   : > { %1416 = vmatmul.mubr.bf16.vlgmr.msra.gmra.mrb[0].mxu1 %v18117_v14  ;;  %1594 = vmatmul.mubr.bf16.vlgmr.msra.gmra.mrb[0].mxu0 %v18117_v14  ;;  %v1286_v28 = vadd.f32 %v1277_v42, %v1258_v58  ;;  %v1264_v50 = vmul.f32 %v1249_v60, %v1236_v38 }
 0x387   : > { %v18131_v43 = vpack.c.bf16 %v1291_v22, %v1288_v21  ;;  %14506 = vmatpush3.bf16.xpose.msra.mxu1 %v18082_v24  ;;  %1740 = vmatpush1.bf16.xpose.msra.mxu0 %v15295_v13  ;;  %v1283_v24 = vadd.f32 %v1277_v42, %v1255_v25  ;;  %v18140_v32 = vpack.c.bf16 %v1290_v26, %v1287_v29 }
 0x388   : > { %14507 = vmatprep.subr.bf16.mxu1 %v15298_v16  ;;  %1741 = vmatprep.subr.bf16.mxu0 %v15301_v17  ;;  %v1292_v52 = vadd.f32 %v1277_v42, %v1264_v50  ;;  %v1289_v53 = vadd.f32 %v1277_v42, %v1261_v51 }
 0x389   : > { %1423 = vmatprep.mubr.bf16.mxu1 %v18131_v43  ;;  %1601 = vmatprep.mubr.bf16.mxu0 %v18131_v43  ;;  %v18142_v33 = vpack.c.bf16 %v1286_v28, %v1283_v24 }
 0x38a   : > { %v18157_v55 = vpack.c.bf16 %v1292_v52, %v1289_v53  ;;  %v15318_v52 = vld [vmem:[%s17926_s29 + $0x68] ss:$12 sps:$4 sm:$0xff]  }
 0x38e   : > { %1424 = vmatmul.mubr.bf16.gmra.mrb[4].mxu1 %v18140_v32  ;;  %1602 = vmatmul.mubr.bf16.gmra.mrb[4].mxu0 %v18140_v32 }
 0x38f   : > { %14508 = vmatpush3.bf16.xpose.msra.mxu1 %v15298_v16  ;;  %1742 = vmatpush1.bf16.xpose.msra.mxu0 %v15299_v27 }
 0x390   : > { %14513 = vmatprep.mubr.bf16.mxu1 %v18142_v33  ;;  %1771 = vmatprep.mubr.bf16.mxu0 %v18123_v18 }
 0x391   : > { %14509 = vmatprep.subr.bf16.mxu1 %v15302_v30  ;;  %1743 = vmatprep.subr.bf16.mxu0 %v15305_v31 }
 0x397   : > { %14510 = vmatpush3.bf16.xpose.msra.mxu1 %v15302_v30  ;;  %1744 = vmatpush1.bf16.xpose.msra.mxu0 %v15303_v34 }
 0x398   : > { %14511 = vmatprep.subr.bf16.mxu1 %v15306_v35  ;;  %1745 = vmatprep.subr.bf16.mxu0 %v15309_v37 }
 0x39f   : > { %14512 = vmatpush3.bf16.xpose.msra.mxu1 %v15306_v35  ;;  %1746 = vmatpush1.bf16.xpose.msra.mxu0 %v15307_v39 }
 0x3a0   : > { %14517 = vmatprep.subr.bf16.mxu1 %v15310_v49 }
 0x3a6   : > { %14514 = vmatmul.mubr.bf16.vlgmr.msra.gmra.mrb[8].mxu1 %v18157_v55  ;;  %1772 = vmatmul.mubr.bf16.vlgmr.msra.gmra.mrb[8].mxu0 %v18117_v14 }
 0x3a7   : > { %14518 = vmatpush3.bf16.xpose.msra.mxu1 %v15310_v49  ;;  %14525 = vmatprep.mubr.bf16.mxu1 %v18142_v33 }
 0x3a8   : > { %1779 = vmatprep.mubr.bf16.mxu0 %v18131_v43  ;;  %14519 = vmatprep.subr.bf16.mxu1 %v15311_v54 }
 0x3ae   : > { %1780 = vmatmul.mubr.bf16.gmra.mrb[12].mxu0 %v18140_v32 }
 0x3af   : > { %14520 = vmatpush3.bf16.xpose.msra.mxu1 %v15311_v54  ;;  %v15319_v54 = vld [vmem:[%s17926_s29 + $0x80] ss:$12 sps:$4 sm:$0xff]  }
 0x3b0   : > { %14521 = vmatprep.subr.bf16.mxu1 %v15312_v45 }
 0x3b7   : > { %14522 = vmatpush3.bf16.xpose.msra.mxu1 %v15312_v45  ;;  %v15320_v45 = vld [vmem:[%s17926_s29 + $0x98] ss:$12 sps:$4 sm:$0xff]  }
 0x3b8   : > { %14523 = vmatprep.subr.bf16.mxu1 %v15313_v62 }
 0x3bf   : > { %14524 = vmatpush3.bf16.xpose.msra.mxu1 %v15313_v62 }
 0x3c0   : > { %14529 = vmatprep.subr.bf16.mxu1 %v15314_v59 }
 0x3c6   : > { %14526 = vmatmul.mubr.bf16.vlgmr.msra.gmra.mrb[12].mxu1 %v18157_v55 }
 0x3c7   : > { %14530 = vmatpush3.bf16.xpose.msra.mxu1 %v15314_v59  ;;  %14537 = vmatprep.mubr.bf16.mxu1 %v18142_v33 }
 0x3c8   : > { %14531 = vmatprep.subr.bf16.mxu1 %v15315_v63 }
 0x3cf   : > { %14532 = vmatpush3.bf16.xpose.msra.mxu1 %v15315_v63 }
 0x3d0   : > { %14533 = vmatprep.subr.bf16.mxu1 %v15316_v0 }
 0x3d7   : > { %14534 = vmatpush3.bf16.xpose.msra.mxu1 %v15316_v0 }
 0x3d8   : > { %14535 = vmatprep.subr.bf16.mxu1 %v15317_v1 }
 0x3df   : > { %14536 = vmatpush3.bf16.xpose.msra.mxu1 %v15317_v1 }
 0x3e6   : > { %14538 = vmatmul.mubr.bf16.vlgmr.msra.gmra.mrb[16].mxu1 %v18157_v55 }
 0x459   : > { %v1417_v2 = vpop.f32.mrb[0].mxu1  ;;  %v1595_v3 = vpop.f32.mrb[0].mxu0 }
 0x45a   : > { %v1419_v4 = vpop.f32.mrb[1].mxu1  ;;  %v1597_v40 = vpop.f32.mrb[1].mxu0 }
 0x45b   : > { %v1420_v5 = vpop.f32.mrb[2].mxu1  ;;  %v1598_v41 = vpop.f32.mrb[2].mxu0 }
 0x45c   : > { %v1422_v7 = vpop.f32.mrb[3].mxu1  ;;  %v1600_v8 = vpop.f32.mrb[3].mxu0 }
 0x45d   : > { %v15322_v7 = vld [vmem:[%s17929_s0 + $0x68] ss:$12 sps:$4 sm:$0xff]   ;;  %v15323_v8 = vld [vmem:[%s17929_s0 + $0x80] ss:$12 sps:$4 sm:$0xff]  }
 0x461   : > { %v1425_v9 = vpop.f32.mrb[4].mxu1  ;;  %v1603_v56 = vpop.f32.mrb[4].mxu0 }
 0x462   : > { %v1427_v10 = vpop.f32.mrb[5].mxu1  ;;  %v1605_v11 = vpop.f32.mrb[5].mxu0 }
 0x463   : > { %v1428_v12 = vpop.f32.mrb[6].mxu1  ;;  %v1606_v57 = vpop.f32.mrb[6].mxu0  ;;  %v15326_v10 = vld [vmem:[%s17935_s11 + $0x68] ss:$12 sps:$4 sm:$0xff]   ;;  %v15327_v11 = vld [vmem:[%s17935_s11 + $0x80] ss:$12 sps:$4 sm:$0xff]  }
 0x464   : > { %v1430_v13 = vpop.f32.mrb[7].mxu1  ;;  %v1608_v44 = vpop.f32.mrb[7].mxu0 }
 0x479   : > { %v14515_v15 = vpop.f32.mrb[8].mxu1  ;;  %v1773_v16 = vpop.f32.mrb[8].mxu0 }
 0x47a   : > { %v1475_v17 = vadd.f32 %v14515_v15, %v1425_v9  ;;  %v1466_v19 = vpop.f32.mrb[9].mxu1  ;;  %v1775_v60 = vpop.f32.mrb[9].mxu0  ;;  %v15324_v9 = vld [vmem:[%s17929_s0 + $0x98] ss:$12 sps:$4 sm:$0xff]  }
 0x47b   : > { %v1467_v61 = vadd.f32 %v1466_v19, %v1417_v2  ;;  %v14516_v20 = vpop.f32.mrb[10].mxu1  ;;  %v1776_v21 = vpop.f32.mrb[10].mxu0  ;;  %v18200_v15 = vld [vmem:[%s19959_s3] sm:$0xff] }
 0x47c   : > { %v1478_v22 = vadd.f32 %v14516_v20, %v1428_v12  ;;  %v1469_v58 = vpop.f32.mrb[11].mxu1  ;;  %v1778_v23 = vpop.f32.mrb[11].mxu0  ;;  %v15328_v12 = vld [vmem:[%s17935_s11 + $0x98] ss:$12 sps:$4 sm:$0xff]  }
 0x47d   : > { %v1470_v42 = vadd.f32 %v1469_v58, %v1420_v5  ;;  %v18210_v20 = vld [vmem:[%s19959_s3 + $0x10] sm:$0xff]  ;;  %v18216_v23 = vld [vmem:[%s19959_s3 + $0x18] sm:$0xff] }
 0x47e   : > { %v1838_v25 = vpack.c.bf16 %v1478_v22, %v1475_v17 }
 0x47f   : > { %v1837_v26 = vpack.c.bf16 %v1470_v42, %v1467_v61  ;;  %v18205_v61 = vld [vmem:[%s19959_s3 + $0x8] sm:$0xff] }
 0x481   : > { %v1781_v27 = vpop.f32.mrb[12].mxu0  ;;  %14545 = vmatprep.mubr.msk.bf16.mxu0 %vm1841_vm0, %v1837_v26 }
 0x482   : > { %v1783_v28 = vpop.f32.mrb[13].mxu0 }
 0x483   : > { %v1784_v29 = vpop.f32.mrb[14].mxu0 }
 0x484   : > { %v1786_v30 = vpop.f32.mrb[15].mxu0 }
 0x499   : > { %v14527_v31 = vpop.f32.mrb[12].mxu1 }
 0x49a   : > { %v1653_v24 = vadd.f32 %v14527_v31, %v1603_v56  ;;  %v1644_v34 = vpop.f32.mrb[13].mxu1  ;;  %v15325_v56 = vld [vmem:[%s17929_s0 + $0xb0] ss:$12 sps:$4 sm:$0xff]  }
 0x49b   : > { %v1645_v35 = vadd.f32 %v1644_v34, %v1595_v3  ;;  %v14528_v37 = vpop.f32.mrb[14].mxu1 }
 0x49c   : > { %v1656_v38 = vadd.f32 %v14528_v37, %v1606_v57  ;;  %v1647_v39 = vpop.f32.mrb[15].mxu1  ;;  %v15329_v57 = vld [vmem:[%s17935_s11 + $0xb0] ss:$12 sps:$4 sm:$0xff]  }
 0x49d   : > { %v1648_v46 = vadd.f32 %v1647_v39, %v1598_v41  ;;  %v15321_v41 = vld [vmem:[%s17926_s29 + $0xb0] ss:$12 sps:$4 sm:$0xff]  }
 0x49e   : > { %v1840_v49 = vpack.c.bf16 %v1656_v38, %v1653_v24 }
 0x49f   : > { %v1839_v50 = vpack.c.bf16 %v1648_v46, %v1645_v35 }
 0x4a0   : > { %v1852_v53 = vsel %vm1841_vm0, %v1840_v49, 0 }
 0x4a1   : > { %15113 = vmatprep.subr.msk.bf16.mxu0 %vm1841_vm0, %v1839_v50  ;;  %v1849_v51 = vsel %vm1841_vm0, %v1839_v50, 0 }
 0x4a2   : > { %14542 = vmatpush3.bf16.xpose.msra.mxu0 %v1849_v51 }
 0x4a3   : > { %15114 = vmatprep.subr.msk.bf16.mxu0 %vm1841_vm0, %v1840_v49 }
 0x4aa   : > { %14544 = vmatpush3.bf16.xpose.msra.mxu0 %v1852_v53 }
 0x4ab   : > { %14557 = vmatprep.subr.bf16.mxu0 %v15318_v52 }
 0x4b1   : > { %14546 = vmatmul.mubr.msk.bf16.vlgmr.msra.gmra.mrb[16].mxu0 %vm1841_vm0, %v1838_v25 }
 0x4b2   : > { %14558 = vmatpush3.bf16.xpose.msra.mxu0 %v15318_v52  ;;  %14565 = vmatprep.mubr.bf16.mxu0 %v18142_v33 }
 0x4b3   : > { %14559 = vmatprep.subr.bf16.mxu0 %v15319_v54 }
 0x4b9   : > { %v14539_v62 = vpop.f32.mrb[16].mxu1 }
 0x4ba   : > { %v1831_v59 = vadd.f32 %v14539_v62, %v1781_v27  ;;  %v1822_v63 = vpop.f32.mrb[17].mxu1  ;;  %14560 = vmatpush3.bf16.xpose.msra.mxu0 %v15319_v54 }
 0x4bb   : > { %v1823_v0 = vadd.f32 %v1822_v63, %v1773_v16  ;;  %v14540_v1 = vpop.f32.mrb[18].mxu1  ;;  %14561 = vmatprep.subr.bf16.mxu0 %v15320_v45 }
 0x4bc   : > { %v1834_v2 = vadd.f32 %v14540_v1, %v1784_v29  ;;  %v1825_v3 = vpop.f32.mrb[19].mxu1 }
 0x4bd   : > { %v1826_v4 = vadd.f32 %v1825_v3, %v1776_v21 }
 0x4be   : > { %v1955_v40 = vpack.c.bf16 %v1834_v2, %v1831_v59 }
 0x4bf   : > { %v1954_v5 = vpack.c.bf16 %v1826_v4, %v1823_v0 }
 0x4c1   : > { %14549 = vmatprep.subr.bf16.mxu1 %v1954_v5 }
 0x4c2   : > { %14550 = vmatpush3.bf16.msra.mxu1 %v1954_v5  ;;  %14562 = vmatpush3.bf16.xpose.msra.mxu0 %v15320_v45 }
 0x4c3   : > { %14551 = vmatprep.subr.bf16.mxu1 %v1955_v40  ;;  %14563 = vmatprep.subr.bf16.mxu0 %v15321_v41 }
 0x4c6   : > { %14552 = vmatpush3.bf16.msra.mxu1 %v1955_v40 }
 0x4ca   : > { %14564 = vmatpush3.bf16.xpose.msra.mxu0 %v15321_v41 }
 0x4cb   : > { %14569 = vmatprep.subr.bf16.mxu0 %v15322_v7 }
 0x4d1   : > { %14566 = vmatmul.mubr.bf16.vlgmr.msra.gmra.mrb[20].mxu0 %v18157_v55 }
 0x4d2   : > { %14570 = vmatpush3.bf16.xpose.msra.mxu0 %v15322_v7  ;;  %14577 = vmatprep.mubr.bf16.mxu0 %v18142_v33 }
 0x4d3   : > { %14571 = vmatprep.subr.bf16.mxu0 %v15323_v8 }
 0x4da   : > { %14572 = vmatpush3.bf16.xpose.msra.mxu0 %v15323_v8 }
 0x4db   : > { %14573 = vmatprep.subr.bf16.mxu0 %v15324_v9 }
 0x4e2   : > { %14574 = vmatpush3.bf16.xpose.msra.mxu0 %v15324_v9 }
 0x4e3   : > { %14575 = vmatprep.subr.bf16.mxu0 %v15325_v56 }
 0x4ea   : > { %14576 = vmatpush3.bf16.xpose.msra.mxu0 %v15325_v56 }
 0x4eb   : > { %14581 = vmatprep.subr.bf16.mxu0 %v15326_v10 }
 0x4f1   : > { %14578 = vmatmul.mubr.bf16.vlgmr.msra.gmra.mrb[24].mxu0 %v18157_v55 }
 0x4f2   : > { %14582 = vmatpush3.bf16.xpose.msra.mxu0 %v15326_v10  ;;  %14589 = vmatprep.mubr.bf16.mxu0 %v18142_v33 }
 0x4f3   : > { %14583 = vmatprep.subr.bf16.mxu0 %v15327_v11 }
 0x4fa   : > { %14584 = vmatpush3.bf16.xpose.msra.mxu0 %v15327_v11 }
 0x4fb   : > { %14585 = vmatprep.subr.bf16.mxu0 %v15328_v12 }
 0x502   : > { %14586 = vmatpush3.bf16.xpose.msra.mxu0 %v15328_v12  ;;  %v15332_v12 = vld [vmem:[%s17926_s29 + $0x64] ss:$12 sps:$4 sm:$0xff]  }
 0x503   : > { %14587 = vmatprep.subr.bf16.mxu0 %v15329_v57  ;;  %2110 = vmatprep.subr.bf16.mxu1 %v15332_v12 }
 0x50a   : > { %14588 = vmatpush3.bf16.xpose.msra.mxu0 %v15329_v57 }
 0x511   : > { %14590 = vmatmul.mubr.bf16.vlgmr.msra.gmra.mrb[28].mxu0 %v18157_v55 }
 0x584   : > { %v14547_v13 = vpop.f32.mrb[16].mxu0 }
 0x585   : > { %v1888_v44 = vpop.f32.mrb[17].mxu0  ;;  %v1897_v16 = vadd.f32 0.05103104, %v14547_v13 }
 0x586   : > { %v1889_v17 = vadd.f32 0.05103104, %v1888_v44  ;;  %v14548_v19 = vpop.f32.mrb[18].mxu0 }
 0x587   : > { %v1891_v60 = vpop.f32.mrb[19].mxu0  ;;  %v1900_v21 = vadd.f32 0.05103104, %v14548_v19  ;;  %v1905_v26 = vadd.f32 %v1897_v16, %v18210_v20 }
 0x588   : > { %v1892_v22 = vadd.f32 0.05103104, %v1891_v60  ;;  %v1903_v58 = vadd.f32 %v1889_v17, %v18200_v15 }
 0x589   : > { %v1906_v28 = vadd.f32 %v1900_v21, %v18216_v23  ;;  %v1914_v29 = vsel %vm1907_vm1, %v1905_v26, -inf }
 0x58a   : > { %v1908_v42 = vsel %vm1907_vm1, %v1903_v58, -inf  ;;  %v1904_v25 = vadd.f32 %v1892_v22, %v18205_v61 }
 0x58b   : > { %1909 = vmax.xlane.f32.xlu0 %v1908_v42  ;;  %v1917_v30 = vsel %vm1907_vm1, %v1906_v28, -inf }
 0x58c   : > { %v1911_v27 = vsel %vm1907_vm1, %v1904_v25, -inf }
 0x58d   : > { %1912 = vmax.xlane.f32.xlu1 %v1911_v27  ;;  %v15330_v27 = vld [vmem:[%s17926_s29 + $0x60] ss:$12 sps:$4 sm:$0xff]  }
 0x58f   : > { %1915 = vmax.xlane.f32.xlu0 %v1914_v29  ;;  %v15335_v29 = vld [vmem:[%s17926_s29 + $0x7c] ss:$12 sps:$4 sm:$0xff]  }
 0x591   : > { %1918 = vmax.xlane.f32.xlu1 %v1917_v30  ;;  %v15333_v30 = vld [vmem:[%s17926_s29 + $0x78] ss:$12 sps:$4 sm:$0xff]  }
 0x5a4   : > { %v18225_v31 = vpop.f32.mrb[20].mxu0 }
 0x5a5   : > { %v18227_v24 = vpop.f32.mrb[21].mxu0 }
 0x5a6   : > { %v18229_v34 = vpop.f32.mrb[22].mxu0 }
 0x5a7   : > { %v18231_v35 = vpop.f32.mrb[23].mxu0 }
 0x5c4   : > { %v18233_v37 = vpop.f32.mrb[24].mxu0 }
 0x5c5   : > { %v18235_v38 = vpop.f32.mrb[25].mxu0 }
 0x5c6   : > { %v18237_v39 = vpop.f32.mrb[26].mxu0 }
 0x5c7   : > { %v18239_v46 = vpop.f32.mrb[27].mxu0 }
 0x5e4   : > { %v18241_v49 = vpop.f32.mrb[28].mxu0 }
 0x5e5   : > { %v18243_v50 = vpop.f32.mrb[29].mxu0 }
 0x5e6   : > { %v18245_v51 = vpop.f32.mrb[30].mxu0 }
 0x5e7   : > { %v18247_v52 = vpop.f32.mrb[31].mxu0 }
 0x618   : > { %v1910_v53 = vpop.xlane.xlu0 %1909 }
 0x619   : > { %v1920_v54 = vsub.f32 %v1903_v58, %v1910_v53  ;;  %v15338_v53 = vld [vmem:[%s17926_s29 + $0x94] ss:$12 sps:$4 sm:$0xff]  }
 0x61a   : > { %v1913_v45 = vpop.xlane.xlu1 %1912 }
 0x61b   : > { %v1924_v62 = vmul.f32 1.442695, %v1920_v54  ;;  %v1921_v59 = vsub.f32 %v1904_v25, %v1913_v45  ;;  %v15336_v54 = vld [vmem:[%s17926_s29 + $0x90] ss:$12 sps:$4 sm:$0xff]   ;;  %v15341_v45 = vld [vmem:[%s17926_s29 + $0xac] ss:$12 sps:$4 sm:$0xff]  }
 0x61c   : > { %v1916_v63 = vpop.xlane.xlu0 %1915 }
 0x61d   : > { %16478 = vpow2.f32 %v1924_v62  ;;  %v1926_v0 = vmul.f32 1.442695, %v1921_v59  ;;  %v1922_v1 = vsub.f32 %v1905_v26, %v1916_v63  ;;  %v15339_v62 = vld [vmem:[%s17926_s29 + $0xa8] ss:$12 sps:$4 sm:$0xff]   ;;  %v15344_v59 = vld [vmem:[%s17929_s0 + $0x64] ss:$12 sps:$4 sm:$0xff]  }
 0x61e   : > { %v1919_v2 = vpop.xlane.xlu1 %1918  ;;  %v15342_v63 = vld [vmem:[%s17929_s0 + $0x60] ss:$12 sps:$4 sm:$0xff]  }
 0x61f   : > { %16480 = vpow2.f32 %v1926_v0  ;;  %v1928_v3 = vmul.f32 1.442695, %v1922_v1  ;;  %v1923_v4 = vsub.f32 %v1906_v28, %v1919_v2  ;;  %v15347_v0 = vld [vmem:[%s17929_s0 + $0x7c] ss:$12 sps:$4 sm:$0xff]   ;;  %v15345_v1 = vld [vmem:[%s17929_s0 + $0x78] ss:$12 sps:$4 sm:$0xff]  }
 0x620   : > { %v15350_v2 = vld [vmem:[%s17929_s0 + $0x94] ss:$12 sps:$4 sm:$0xff]  }
 0x621   : > { %16482 = vpow2.f32 %v1928_v3  ;;  %v1930_v40 = vmul.f32 1.442695, %v1923_v4  ;;  %v15348_v3 = vld [vmem:[%s17929_s0 + $0x90] ss:$12 sps:$4 sm:$0xff]   ;;  %v15353_v4 = vld [vmem:[%s17929_s0 + $0xac] ss:$12 sps:$4 sm:$0xff]  }
 0x623   : > { %16484 = vpow2.f32 %v1930_v40  ;;  %v15351_v40 = vld [vmem:[%s17929_s0 + $0xa8] ss:$12 sps:$4 sm:$0xff]  }
 0x627   : > { %v16479_v5 = vpop.eup %16478 }
 0x628   : > { %v1932_v41 = vsel %vm1907_vm1, %v16479_v5, 0.0 }
 0x629   : > { %v16481_v7 = vpop.eup %16480  ;;  %1933 = vadd.xlane.f32.xlu0 %v1932_v41  ;;  %v15354_v41 = vld [vmem:[%s17935_s11 + $0x60] ss:$12 sps:$4 sm:$0xff]  }
 0x62a   : > { %v1935_v8 = vsel %vm1907_vm1, %v16481_v7, 0.0 }
 0x62b   : > { %v16483_v9 = vpop.eup %16482  ;;  %1936 = vadd.xlane.f32.xlu1 %v1935_v8  ;;  %v15357_v8 = vld [vmem:[%s17935_s11 + $0x78] ss:$12 sps:$4 sm:$0xff]  }
 0x62c   : > { %v1938_v56 = vsel %vm1907_vm1, %v16483_v9, 0.0 }
 0x62d   : > { %v16485_v10 = vpop.eup %16484  ;;  %1939 = vadd.xlane.f32.xlu0 %v1938_v56  ;;  %v15360_v56 = vld [vmem:[%s17935_s11 + $0x90] ss:$12 sps:$4 sm:$0xff]  }
 0x62e   : > { %v1941_v11 = vsel %vm1907_vm1, %v16485_v10, 0.0 }
 0x62f   : > { %1942 = vadd.xlane.f32.xlu1 %v1941_v11  ;;  %v15363_v11 = vld [vmem:[%s17935_s11 + $0xa8] ss:$12 sps:$4 sm:$0xff]  }
 0x6b6   : > { %v1934_v57 = vpop.xlane.xlu0 %1933 }
 0x6b7   : > { %16486 = vrcp.f32 %v1934_v57 }
 0x6b8   : > { %v1937_v13 = vpop.xlane.xlu1 %1936 }
 0x6b9   : > { %16488 = vrcp.f32 %v1937_v13 }
 0x6ba   : > { %v1940_v44 = vpop.xlane.xlu0 %1939 }
 0x6bb   : > { %16490 = vrcp.f32 %v1940_v44 }
 0x6bc   : > { %v1943_v16 = vpop.xlane.xlu1 %1942 }
 0x6bd   : > { %16492 = vrcp.f32 %v1943_v16 }
 0x6c1   : > { %v16487_v17 = vpop.eup %16486 }
 0x6c2   : > { %v1948_v60 = vmul.f32 %v16487_v17, %v16479_v5  ;;  %v15356_v5 = vld [vmem:[%s17935_s11 + $0x64] ss:$12 sps:$4 sm:$0xff]  }
 0x6c3   : > { %v16489_v19 = vpop.eup %16488 }
 0x6c4   : > { %v1949_v21 = vmul.f32 %v16489_v19, %v16481_v7  ;;  %v15359_v7 = vld [vmem:[%s17935_s11 + $0x7c] ss:$12 sps:$4 sm:$0xff]  }
 0x6c5   : > { %v16491_v22 = vpop.eup %16490 }
 0x6c6   : > { %v1952_v58 = vpack.c.bf16 %v1949_v21, %v1948_v60  ;;  %v1950_v25 = vmul.f32 %v16491_v22, %v16483_v9  ;;  %v15362_v9 = vld [vmem:[%s17935_s11 + $0x94] ss:$12 sps:$4 sm:$0xff]  }
 0x6c7   : > { %v16493_v42 = vpop.eup %16492 }
 0x6c8   : > { %v1951_v26 = vmul.f32 %v16493_v42, %v16485_v10  ;;  %14553 = vmatprep.mubr.msk.bf16.mxu1 %vm1907_vm1, %v1952_v58  ;;  %v15365_v10 = vld [vmem:[%s17935_s11 + $0xac] ss:$12 sps:$4 sm:$0xff]  }
 0x6ca   : > { %v1953_v28 = vpack.c.bf16 %v1951_v26, %v1950_v25 }
 0x6cc   : > { %14554 = vmatmul.mubr.msk.bf16.vlgmr.msra.gmra.mrb[20].mxu1 %vm1907_vm1, %v1953_v28 }
 0x6cd   : > { %2111 = vmatpush1.bf16.xpose.msra.mxu1 %v15330_v27  ;;  %2142 = vmatprep.mubr.bf16.mxu1 %v18123_v18 }
 0x6ce   : > { %2112 = vmatprep.subr.bf16.mxu1 %v15335_v29 }
 0x6d5   : > { %2113 = vmatpush1.bf16.xpose.msra.mxu1 %v15333_v30 }
 0x6d6   : > { %2114 = vmatprep.subr.bf16.mxu1 %v15338_v53 }
 0x6dd   : > { %2115 = vmatpush1.bf16.xpose.msra.mxu1 %v15336_v54 }
 0x6de   : > { %2116 = vmatprep.subr.bf16.mxu1 %v15341_v45 }
 0x6e5   : > { %2117 = vmatpush1.bf16.xpose.msra.mxu1 %v15339_v62 }
 0x6e6   : > { %2289 = vmatprep.subr.bf16.mxu1 %v15344_v59 }
 0x6ec   : > { %2143 = vmatmul.mubr.bf16.vlgmr.msra.gmra.mrb[24].mxu1 %v18117_v14 }
 0x6ed   : > { %2150 = vmatprep.mubr.bf16.mxu1 %v18131_v43  ;;  %2290 = vmatpush1.bf16.xpose.msra.mxu1 %v15342_v63 }
 0x6ee   : > { %2291 = vmatprep.subr.bf16.mxu1 %v15347_v0 }
 0x6f4   : > { %2151 = vmatmul.mubr.bf16.gmra.mrb[28].mxu1 %v18140_v32 }
 0x6f5   : > { %2292 = vmatpush1.bf16.xpose.msra.mxu1 %v15345_v1  ;;  %2321 = vmatprep.mubr.bf16.mxu1 %v18123_v18 }
 0x6f6   : > { %2293 = vmatprep.subr.bf16.mxu1 %v15350_v2 }
 0x6fd   : > { %2294 = vmatpush1.bf16.xpose.msra.mxu1 %v15348_v3 }
 0x6fe   : > { %2295 = vmatprep.subr.bf16.mxu1 %v15353_v4 }
 0x705   : > { %2296 = vmatpush1.bf16.xpose.msra.mxu1 %v15351_v40 }
 0x706   : > { %2468 = vmatprep.subr.bf16.mxu1 %v15356_v5 }
 0x70c   : > { %2322 = vmatmul.mubr.bf16.vlgmr.msra.gmra.mrb[32].mxu1 %v18117_v14 }
 0x70d   : > { %2329 = vmatprep.mubr.bf16.mxu1 %v18131_v43  ;;  %2469 = vmatpush1.bf16.xpose.msra.mxu1 %v15354_v41 }
 0x70e   : > { %2470 = vmatprep.subr.bf16.mxu1 %v15359_v7 }
 0x714   : > { %2330 = vmatmul.mubr.bf16.gmra.mrb[36].mxu1 %v18140_v32 }
 0x715   : > { %2471 = vmatpush1.bf16.xpose.msra.mxu1 %v15357_v8  ;;  %2500 = vmatprep.mubr.bf16.mxu1 %v18123_v18 }
 0x716   : > { %2472 = vmatprep.subr.bf16.mxu1 %v15362_v9 }
 0x71d   : > { %2473 = vmatpush1.bf16.xpose.msra.mxu1 %v15360_v56 }
 0x71e   : > { %2474 = vmatprep.subr.bf16.mxu1 %v15365_v10 }
 0x725   : > { %2475 = vmatpush1.bf16.xpose.msra.mxu1 %v15363_v11 }
 0x72c   : > { %2501 = vmatmul.mubr.bf16.vlgmr.msra.gmra.mrb[40].mxu1 %v18117_v14 }
 0x72d   : > { %2508 = vmatprep.mubr.bf16.mxu1 %v18131_v43 }
 0x734   : > { %2509 = vmatmul.mubr.bf16.gmra.mrb[44].mxu1 %v18140_v32 }
 0x79f   : > { %v14555_v12 = vpop.f32.mrb[20].mxu1 }
 0x7a0   : > { %v1996_v57 = vpop.f32.mrb[21].mxu1 }
 0x7a1   : > { %v14556_v13 = vpop.f32.mrb[22].mxu1 }
 0x7a2   : > { %v18291_v44 = vpack.c.bf16 %v14556_v13, %v14555_v12  ;;  %v1999_v16 = vpop.f32.mrb[23].mxu1 }
 0x7a3   : > { %v18293_v17 = vpack.c.bf16 %v1999_v16, %v1996_v57 }
 0x7bf   : > { %v2144_v19 = vpop.f32.mrb[24].mxu1 }
 0x7c0   : > { %v2194_v60 = vadd.f32 %v18227_v24, %v2144_v19  ;;  %v2146_v21 = vpop.f32.mrb[25].mxu1 }
 0x7c1   : > { %v2147_v22 = vpop.f32.mrb[26].mxu1 }
 0x7c2   : > { %v2197_v58 = vadd.f32 %v18231_v35, %v2147_v22  ;;  %v2149_v42 = vpop.f32.mrb[27].mxu1 }
 0x7c4   : > { %v2566_v25 = vpack.c.bf16 %v2197_v58, %v2194_v60 }
 0x7c6   : > { %14597 = vmatprep.mubr.msk.bf16.mxu1 %vm1841_vm0, %v2566_v25 }
 0x7c7   : > { %v2152_v26 = vpop.f32.mrb[28].mxu1 }
 0x7c8   : > { %v2202_v27 = vadd.f32 %v18225_v31, %v2152_v26  ;;  %v2154_v28 = vpop.f32.mrb[29].mxu1 }
 0x7c9   : > { %v2155_v29 = vpop.f32.mrb[30].mxu1 }
 0x7ca   : > { %v2205_v30 = vadd.f32 %v18229_v34, %v2155_v29  ;;  %v2157_v53 = vpop.f32.mrb[31].mxu1 }
 0x7cc   : > { %v2567_v54 = vpack.c.bf16 %v2205_v30, %v2202_v27 }
 0x7df   : > { %v2323_v45 = vpop.f32.mrb[32].mxu1 }
 0x7e0   : > { %v2373_v24 = vadd.f32 %v18235_v38, %v2323_v45  ;;  %v2325_v62 = vpop.f32.mrb[33].mxu1 }
 0x7e1   : > { %v2326_v59 = vpop.f32.mrb[34].mxu1 }
 0x7e2   : > { %v2376_v35 = vadd.f32 %v18239_v46, %v2326_v59  ;;  %v2328_v63 = vpop.f32.mrb[35].mxu1 }
 0x7e4   : > { %v2568_v0 = vpack.c.bf16 %v2376_v35, %v2373_v24 }
 0x7e6   : > { %15115 = vmatprep.subr.msk.bf16.mxu1 %vm1841_vm0, %v2568_v0  ;;  %v2577_v1 = vsel %vm1841_vm0, %v2568_v0, 0 }
 0x7e7   : > { %v2331_v31 = vpop.f32.mrb[36].mxu1  ;;  %14594 = vmatpush3.bf16.xpose.msra.mxu1 %v2577_v1 }
 0x7e8   : > { %v2381_v2 = vadd.f32 %v18233_v37, %v2331_v31  ;;  %v2333_v34 = vpop.f32.mrb[37].mxu1 }
 0x7e9   : > { %v2334_v3 = vpop.f32.mrb[38].mxu1 }
 0x7ea   : > { %v2384_v4 = vadd.f32 %v18237_v39, %v2334_v3  ;;  %v2336_v40 = vpop.f32.mrb[39].mxu1 }
 0x7ec   : > { %v2569_v38 = vpack.c.bf16 %v2384_v4, %v2381_v2 }
 0x7ee   : > { %15116 = vmatprep.subr.msk.bf16.mxu1 %vm1841_vm0, %v2569_v38  ;;  %v2580_v46 = vsel %vm1841_vm0, %v2569_v38, 0  ;;  %v15368_v38 = vld [vmem:[%s17938_s2 + $0x64] ss:$12 sps:$4 sm:$0xff]  }
 0x7ef   : > { %14596 = vmatpush3.bf16.xpose.msra.mxu1 %v2580_v46  ;;  %v15369_v46 = vld [vmem:[%s17938_s2 + $0x68] ss:$12 sps:$4 sm:$0xff]  }
 0x7f0   : > { %14609 = vmatprep.subr.bf16.mxu1 %v15369_v46 }
 0x7f6   : > { %14598 = vmatmul.mubr.msk.bf16.vlgmr.msra.gmra.mrb[48].mxu1 %vm1841_vm0, %v2567_v54 }
 0x7f7   : > { %14610 = vmatpush3.bf16.msra.mxu1 %v15369_v46  ;;  %v15412_v46 = vld [vmem:[%s17926_s29 + $0x10c] ss:$12 sps:$4 sm:$0xff]  }
 0x7ff   : > { %v2502_v5 = vpop.f32.mrb[40].mxu1 }
 0x800   : > { %v2552_v41 = vadd.f32 %v18243_v50, %v2502_v5  ;;  %v2504_v7 = vpop.f32.mrb[41].mxu1  ;;  %v15373_v5 = vld [vmem:[%s17938_s2 + $0x80] ss:$12 sps:$4 sm:$0xff]  }
 0x801   : > { %v2505_v8 = vpop.f32.mrb[42].mxu1  ;;  %14611 = vmatprep.subr.bf16.mxu1 %v15373_v5 }
 0x802   : > { %v2555_v37 = vadd.f32 %v18247_v52, %v2505_v8  ;;  %v2507_v9 = vpop.f32.mrb[43].mxu1  ;;  %14612 = vmatpush3.bf16.msra.mxu1 %v15373_v5  ;;  %v15413_v5 = vld [vmem:[%s17926_s29 + $0x110] ss:$12 sps:$4 sm:$0xff]  }
 0x804   : > { %v2681_v56 = vpack.c.bf16 %v2555_v37, %v2552_v41  ;;  %v15377_v41 = vld [vmem:[%s17938_s2 + $0x98] ss:$12 sps:$4 sm:$0xff]  }
 0x805   : > { %14613 = vmatprep.subr.bf16.mxu1 %v15377_v41 }
 0x806   : > { %14601 = vmatprep.subr.bf16.mxu0 %v2681_v56  ;;  %14614 = vmatpush3.bf16.msra.mxu1 %v15377_v41  ;;  %v15416_v41 = vld [vmem:[%s17929_s0 + $0xc4] ss:$12 sps:$4 sm:$0xff]  }
 0x807   : > { %v2510_v39 = vpop.f32.mrb[44].mxu1  ;;  %14602 = vmatpush3.bf16.msra.mxu0 %v2681_v56 }
 0x808   : > { %v2560_v10 = vadd.f32 %v18241_v49, %v2510_v39  ;;  %v2512_v11 = vpop.f32.mrb[45].mxu1 }
 0x809   : > { %v2513_v12 = vpop.f32.mrb[46].mxu1 }
 0x80a   : > { %v2563_v57 = vadd.f32 %v18245_v51, %v2513_v12  ;;  %v2515_v13 = vpop.f32.mrb[47].mxu1 }
 0x80c   : > { %v2682_v16 = vpack.c.bf16 %v2563_v57, %v2560_v10 }
 0x80e   : > { %14603 = vmatprep.subr.bf16.mxu0 %v2682_v16 }
 0x80f   : > { %14604 = vmatpush3.bf16.msra.mxu0 %v2682_v16 }
 0x810   : > { %2827 = vmatprep.subr.bf16.mxu0 %v15368_v38  ;;  %v15406_v38 = vld [vmem:[%s17926_s29 + $0xf0] ss:$12 sps:$4 sm:$0xff]  }
 0x8c9   : > { %v14599_v50 = vpop.f32.mrb[48].mxu1 }
 0x8ca   : > { %v2616_v19 = vpop.f32.mrb[49].mxu1  ;;  %v2625_v60 = vadd.f32 0.05103104, %v14599_v50 }
 0x8cb   : > { %v2617_v21 = vadd.f32 0.05103104, %v2616_v19  ;;  %v14600_v52 = vpop.f32.mrb[50].mxu1  ;;  %v15366_v19 = vld [vmem:[%s17938_s2 + $0x60] ss:$12 sps:$4 sm:$0xff]  }
 0x8cc   : > { %v2619_v22 = vpop.f32.mrb[51].mxu1  ;;  %v2628_v58 = vadd.f32 0.05103104, %v14600_v52  ;;  %v2633_v51 = vadd.f32 %v2625_v60, %v18210_v20  ;;  %v15370_v52 = vld [vmem:[%s17938_s2 + $0x78] ss:$12 sps:$4 sm:$0xff]  }
 0x8cd   : > { %v2620_v42 = vadd.f32 0.05103104, %v2619_v22  ;;  %v2631_v25 = vadd.f32 %v2617_v21, %v18200_v15  ;;  %v15372_v21 = vld [vmem:[%s17938_s2 + $0x7c] ss:$12 sps:$4 sm:$0xff]   ;;  %v15376_v22 = vld [vmem:[%s17938_s2 + $0x94] ss:$12 sps:$4 sm:$0xff]  }
 0x8ce   : > { %v2634_v28 = vadd.f32 %v2628_v58, %v18216_v23  ;;  %v2641_v29 = vsel %vm1907_vm1, %v2633_v51, -inf  ;;  %v15374_v58 = vld [vmem:[%s17938_s2 + $0x90] ss:$12 sps:$4 sm:$0xff]  }
 0x8cf   : > { %v2635_v49 = vsel %vm1907_vm1, %v2631_v25, -inf  ;;  %v2632_v26 = vadd.f32 %v2620_v42, %v18205_v61  ;;  %v15380_v42 = vld [vmem:[%s17938_s2 + $0xac] ss:$12 sps:$4 sm:$0xff]  }
 0x8d0   : > { %2636 = vmax.xlane.f32.xlu0 %v2635_v49  ;;  %v2644_v30 = vsel %vm1907_vm1, %v2634_v28, -inf  ;;  %v15381_v49 = vld [vmem:[%s17938_s2 + $0xb0] ss:$12 sps:$4 sm:$0xff]  }
 0x8d1   : > { %v2638_v27 = vsel %vm1907_vm1, %v2632_v26, -inf  ;;  %14615 = vmatprep.subr.bf16.mxu1 %v15381_v49 }
 0x8d2   : > { %2639 = vmax.xlane.f32.xlu1 %v2638_v27  ;;  %14616 = vmatpush3.bf16.msra.mxu1 %v15381_v49  ;;  %v15385_v27 = vld [vmem:[%s17938_s2 + $0x8] ss:$12 sps:$4 sm:$0xff]   ;;  %v15445_v49 = vld [vmem:[%s17935_s11 + $0x110] ss:$12 sps:$4 sm:$0xff]  }
 0x8d3   : > { %14621 = vmatprep.subr.bf16.mxu1 %v15385_v27 }
 0x8d4   : > { %2642 = vmax.xlane.f32.xlu0 %v2641_v29 }
 0x8d6   : > { %2645 = vmax.xlane.f32.xlu1 %v2644_v30 }
 0x95d   : > { %v2637_v53 = vpop.xlane.xlu0 %2636 }
 0x95e   : > { %v2647_v15 = vsub.f32 %v2631_v25, %v2637_v53  ;;  %v15378_v25 = vld [vmem:[%s17938_s2 + $0xa8] ss:$12 sps:$4 sm:$0xff]  }
 0x95f   : > { %v2640_v54 = vpop.xlane.xlu1 %2639 }
 0x960   : > { %v2651_v45 = vmul.f32 1.442695, %v2647_v15  ;;  %v2648_v24 = vsub.f32 %v2632_v26, %v2640_v54  ;;  %v15384_v26 = vld [vmem:[%s17938_s2 + $0x4] ss:$12 sps:$4 sm:$0xff]   ;;  %v15382_v54 = vld [vmem:[%s17938_s2] ss:$12 sps:$4 sm:$0xff]  }
 0x961   : > { %v2643_v61 = vpop.xlane.xlu0 %2642 }
 0x962   : > { %16494 = vpow2.f32 %v2651_v45  ;;  %v2653_v20 = vmul.f32 1.442695, %v2648_v24  ;;  %v2649_v62 = vsub.f32 %v2633_v51, %v2643_v61  ;;  %v17232_v51 = vmov 0   ;;  %v15388_v24 = vld [vmem:[%s17938_s2 + $0x1c] ss:$12 sps:$4 sm:$0xff]  }
 0x963   : > { %v2646_v59 = vpop.xlane.xlu1 %2645  ;;  %v15389_v61 = vld [vmem:[%s17938_s2 + $0x20] ss:$12 sps:$4 sm:$0xff]  }
 0x964   : > { %16496 = vpow2.f32 %v2653_v20  ;;  %v2655_v35 = vmul.f32 1.442695, %v2649_v62  ;;  %v2650_v23 = vsub.f32 %v2634_v28, %v2646_v59  ;;  %v15386_v20 = vld [vmem:[%s17938_s2 + $0x18] ss:$12 sps:$4 sm:$0xff]   ;;  %v15392_v62 = vld [vmem:[%s17938_s2 + $0x34] ss:$12 sps:$4 sm:$0xff]  }
 0x965   : > { %v15393_v59 = vld [vmem:[%s17938_s2 + $0x38] ss:$12 sps:$4 sm:$0xff]  }
 0x966   : > { %16498 = vpow2.f32 %v2655_v35  ;;  %v2657_v63 = vmul.f32 1.442695, %v2650_v23  ;;  %v15390_v35 = vld [vmem:[%s17938_s2 + $0x30] ss:$12 sps:$4 sm:$0xff]   ;;  %v15396_v23 = vld [vmem:[%s17938_s2 + $0x4c] ss:$12 sps:$4 sm:$0xff]  }
 0x968   : > { %16500 = vpow2.f32 %v2657_v63  ;;  %v15397_v63 = vld [vmem:[%s17938_s2 + $0x50] ss:$12 sps:$4 sm:$0xff]  }
 0x96c   : > { %v16495_v0 = vpop.eup %16494 }
 0x96d   : > { %v2659_v1 = vsel %vm1907_vm1, %v16495_v0, 0.0 }
 0x96e   : > { %v16497_v31 = vpop.eup %16496  ;;  %2660 = vadd.xlane.f32.xlu0 %v2659_v1  ;;  %v15400_v1 = vld [vmem:[%s17926_s29 + $0xc4] ss:$12 sps:$4 sm:$0xff]  }
 0x96f   : > { %v2662_v2 = vsel %vm1907_vm1, %v16497_v31, 0.0 }
 0x970   : > { %v16499_v34 = vpop.eup %16498  ;;  %2663 = vadd.xlane.f32.xlu1 %v2662_v2  ;;  %v15398_v2 = vld [vmem:[%s17926_s29 + $0xc0] ss:$12 sps:$4 sm:$0xff]  }
 0x971   : > { %v2665_v3 = vsel %vm1907_vm1, %v16499_v34, 0.0 }
 0x972   : > { %v16501_v4 = vpop.eup %16500  ;;  %2666 = vadd.xlane.f32.xlu0 %v2665_v3  ;;  %v15405_v3 = vld [vmem:[%s17926_s29 + $0xe0] ss:$12 sps:$4 sm:$0xff]  }
 0x973   : > { %v2668_v40 = vsel %vm1907_vm1, %v16501_v4, 0.0 }
 0x974   : > { %2669 = vadd.xlane.f32.xlu1 %v2668_v40  ;;  %v15409_v40 = vld [vmem:[%s17926_s29 + $0xf8] ss:$12 sps:$4 sm:$0xff]  }
 0x9fb   : > { %v2661_v7 = vpop.xlane.xlu0 %2660 }
 0x9fc   : > { %16502 = vrcp.f32 %v2661_v7  ;;  %v15417_v7 = vld [vmem:[%s17929_s0 + $0xc8] ss:$12 sps:$4 sm:$0xff]  }
 0x9fd   : > { %v2664_v8 = vpop.xlane.xlu1 %2663 }
 0x9fe   : > { %16504 = vrcp.f32 %v2664_v8  ;;  %v15414_v8 = vld [vmem:[%s17929_s0 + $0xc0] ss:$12 sps:$4 sm:$0xff]  }
 0x9ff   : > { %v2667_v37 = vpop.xlane.xlu0 %2666 }
 0xa00   : > { %16506 = vrcp.f32 %v2667_v37  ;;  %v15420_v37 = vld [vmem:[%s17929_s0 + $0xdc] ss:$12 sps:$4 sm:$0xff]  }
 0xa01   : > { %v2670_v9 = vpop.xlane.xlu1 %2669 }
 0xa02   : > { %16508 = vrcp.f32 %v2670_v9  ;;  %v15421_v9 = vld [vmem:[%s17929_s0 + $0xe0] ss:$12 sps:$4 sm:$0xff]  }
 0xa06   : > { %v16503_v56 = vpop.eup %16502 }
 0xa07   : > { %v2675_v10 = vmul.f32 %v16503_v56, %v16495_v0  ;;  %v15394_v0 = vld [vmem:[%s17938_s2 + $0x48] ss:$12 sps:$4 sm:$0xff]   ;;  %v15418_v56 = vld [vmem:[%s17929_s0 + $0xd8] ss:$12 sps:$4 sm:$0xff]  }
 0xa08   : > { %v16505_v39 = vpop.eup %16504 }
 0xa09   : > { %v2676_v11 = vmul.f32 %v16505_v39, %v16497_v31  ;;  %v15401_v31 = vld [vmem:[%s17926_s29 + $0xc8] ss:$12 sps:$4 sm:$0xff]  }
 0xa0a   : > { %v16507_v12 = vpop.eup %16506  ;;  %v15424_v39 = vld [vmem:[%s17929_s0 + $0xf4] ss:$12 sps:$4 sm:$0xff]  }
 0xa0b   : > { %v2679_v57 = vpack.c.bf16 %v2676_v11, %v2675_v10  ;;  %v2677_v16 = vmul.f32 %v16507_v12, %v16499_v34  ;;  %v15404_v34 = vld [vmem:[%s17926_s29 + $0xdc] ss:$12 sps:$4 sm:$0xff]   ;;  %v15425_v10 = vld [vmem:[%s17929_s0 + $0xf8] ss:$12 sps:$4 sm:$0xff]  }
 0xa0c   : > { %v16509_v13 = vpop.eup %16508  ;;  %v15422_v11 = vld [vmem:[%s17929_s0 + $0xf0] ss:$12 sps:$4 sm:$0xff]   ;;  %v15428_v12 = vld [vmem:[%s17929_s0 + $0x10c] ss:$12 sps:$4 sm:$0xff]  }
 0xa0d   : > { %v2678_v50 = vmul.f32 %v16509_v13, %v16501_v4  ;;  %14605 = vmatprep.mubr.msk.bf16.mxu0 %vm1907_vm1, %v2679_v57  ;;  %v15408_v4 = vld [vmem:[%s17926_s29 + $0xf4] ss:$12 sps:$4 sm:$0xff]   ;;  %v15429_v57 = vld [vmem:[%s17929_s0 + $0x110] ss:$12 sps:$4 sm:$0xff]  }
 0xa0e   : > { %v15426_v13 = vld [vmem:[%s17929_s0 + $0x108] ss:$12 sps:$4 sm:$0xff]  }
 0xa0f   : > { %v2680_v60 = vpack.c.bf16 %v2678_v50, %v2677_v16  ;;  %v15432_v16 = vld [vmem:[%s17935_s11 + $0xc4] ss:$12 sps:$4 sm:$0xff]   ;;  %v15433_v50 = vld [vmem:[%s17935_s11 + $0xc8] ss:$12 sps:$4 sm:$0xff]  }
 0xa11   : > { %14606 = vmatmul.mubr.msk.bf16.vlgmr.msra.gmra.mrb[32].mxu0 %vm1907_vm1, %v2680_v60  ;;  %v15436_v60 = vld [vmem:[%s17935_s11 + $0xdc] ss:$12 sps:$4 sm:$0xff]  }
 0xa12   : > { %2828 = vmatpush1.bf16.msra.mxu0 %v15366_v19  ;;  %2859 = vmatprep.mubr.bf16.mxu0 %v17232_v51  ;;  %v15430_v19 = vld [vmem:[%s17935_s11 + $0xc0] ss:$12 sps:$4 sm:$0xff]  }
 0xa13   : > { %2829 = vmatprep.subr.bf16.mxu0 %v15372_v21  ;;  %v15437_v21 = vld [vmem:[%s17935_s11 + $0xe0] ss:$12 sps:$4 sm:$0xff]  }
 0xa16   : > { %2830 = vmatpush1.bf16.msra.mxu0 %v15370_v52  ;;  %v15434_v52 = vld [vmem:[%s17935_s11 + $0xd8] ss:$12 sps:$4 sm:$0xff]  }
 0xa17   : > { %2831 = vmatprep.subr.bf16.mxu0 %v15376_v22  ;;  %v15440_v22 = vld [vmem:[%s17935_s11 + $0xf4] ss:$12 sps:$4 sm:$0xff]  }
 0xa1a   : > { %2832 = vmatpush1.bf16.msra.mxu0 %v15374_v58  ;;  %v15441_v58 = vld [vmem:[%s17935_s11 + $0xf8] ss:$12 sps:$4 sm:$0xff]  }
 0xa1b   : > { %2833 = vmatprep.subr.bf16.mxu0 %v15380_v42  ;;  %v15438_v42 = vld [vmem:[%s17935_s11 + $0xf0] ss:$12 sps:$4 sm:$0xff]  }
 0xa1e   : > { %2834 = vmatpush1.bf16.msra.mxu0 %v15378_v25  ;;  %v15444_v25 = vld [vmem:[%s17935_s11 + $0x10c] ss:$12 sps:$4 sm:$0xff]  }
 0xa1f   : > { %2999 = vmatprep.subr.bf16.mxu0 %v15384_v26  ;;  %v15442_v26 = vld [vmem:[%s17935_s11 + $0x108] ss:$12 sps:$4 sm:$0xff]  }
 0xae4   : > { %v14607_v28 = vpop.f32.mrb[32].mxu0 }
 0xae5   : > { %v2723_v29 = vpop.f32.mrb[33].mxu0 }
 0xae6   : > { %v14608_v30 = vpop.f32.mrb[34].mxu0 }
 0xae7   : > { %v2739_v53 = vpack.c.bf16 %v14608_v30, %v14607_v28  ;;  %v2726_v15 = vpop.f32.mrb[35].mxu0 }
 0xae8   : > { %v2738_v45 = vpack.c.bf16 %v2726_v15, %v2723_v29 }
 0xaea   : > { %13001 = vmatmul.mubr.msk.bf16.vlgmr.msra.gmra.mrb[36].mxu0 %vm1841_vm0, %v2738_v45  ;;  %14617 = vmatprep.mubr.msk.bf16.mxu1 %vm1841_vm0, %v2738_v45 }
 0xaeb   : > { %3000 = vmatpush1.bf16.msra.mxu0 %v15382_v54  ;;  %14618 = vmatmul.mubr.msk.bf16.vlgmr.msra.gmra.mrb[52].mxu1 %vm1841_vm0, %v2739_v53 }
 0xaec   : > { %14622 = vmatpush3.bf16.msra.mxu1 %v15385_v27  ;;  %14629 = vmatprep.mubr.msk.bf16.mxu1 %vm1841_vm0, %v18293_v17 }
 0xaed   : > { %3001 = vmatprep.subr.bf16.mxu0 %v15388_v24  ;;  %14623 = vmatprep.subr.bf16.mxu1 %v15389_v61 }
 0xaee   : > { %2869 = vmatprep.mubr.bf16.mxu0 %v17232_v51 }
 0xaef   : > { %3002 = vmatpush1.bf16.msra.mxu0 %v15386_v20 }
 0xaf0   : > { %14624 = vmatpush3.bf16.msra.mxu1 %v15389_v61  ;;  %3003 = vmatprep.subr.bf16.mxu0 %v15392_v62 }
 0xaf1   : > { %14625 = vmatprep.subr.bf16.mxu1 %v15393_v59 }
 0xaf2   : > { %13002 = vmatmul.mubr.msk.bf16.gmra.mrb[40].mxu0 %vm1841_vm0, %v2739_v53 }
 0xaf3   : > { %3004 = vmatpush1.bf16.msra.mxu0 %v15390_v35  ;;  %3031 = vmatprep.mubr.bf16.mxu0 %v17232_v51 }
 0xaf4   : > { %14626 = vmatpush3.bf16.msra.mxu1 %v15393_v59  ;;  %3005 = vmatprep.subr.bf16.mxu0 %v15396_v23 }
 0xaf5   : > { %14627 = vmatprep.subr.bf16.mxu1 %v15397_v63 }
 0xaf7   : > { %3006 = vmatpush1.bf16.msra.mxu0 %v15394_v0 }
 0xaf8   : > { %14628 = vmatpush3.bf16.msra.mxu1 %v15397_v63  ;;  %3182 = vmatprep.subr.bf16.mxu0 %v15400_v1 }
 0xaf9   : > { %14633 = vmatprep.subr.bf16.mxu1 %v15401_v31 }
 0xafa   : > { %13017 = vmatmul.mubr.msk.bf16.vlgmr.msra.gmra.mrb[36].mxu0 %vm1841_vm0, %v18293_v17  ;;  %v15402_v17 = vld [vmem:[%s17926_s29 + $0xd8] ss:$12 sps:$4 sm:$0xff]  }
 0xafb   : > { %14630 = vmatmul.mubr.msk.bf16.vlgmr.msra.gmra.mrb[52].mxu1 %vm1841_vm0, %v18291_v44  ;;  %3041 = vmatprep.mubr.bf16.mxu0 %v17232_v51 }
 0xafc   : > { %14641 = vmatprep.mubr.bf16.mxu1 %v18142_v33 }
 0xb00   : > { %3183 = vmatpush1.bf16.xpose.msra.mxu0 %v15398_v2 }
 0xb01   : > { %14634 = vmatpush3.bf16.xpose.msra.mxu1 %v15401_v31  ;;  %3184 = vmatprep.subr.bf16.mxu0 %v15404_v34 }
 0xb02   : > { %13018 = vmatmul.mubr.msk.bf16.gmra.mrb[40].mxu0 %vm1841_vm0, %v18291_v44  ;;  %14635 = vmatprep.subr.bf16.mxu1 %v15405_v3  ;;  %v15410_v44 = vld [vmem:[%s17926_s29 + $0x108] ss:$12 sps:$4 sm:$0xff]  }
 0xb03   : > { %3214 = vmatprep.mubr.bf16.mxu0 %v18123_v18 }
 0xb08   : > { %3185 = vmatpush1.bf16.xpose.msra.mxu0 %v15402_v17 }
 0xb09   : > { %14636 = vmatpush3.bf16.xpose.msra.mxu1 %v15405_v3  ;;  %3186 = vmatprep.subr.bf16.mxu0 %v15408_v4 }
 0xb0a   : > { %14637 = vmatprep.subr.bf16.mxu1 %v15409_v40 }
 0xb10   : > { %3187 = vmatpush1.bf16.xpose.msra.mxu0 %v15406_v38 }
 0xb11   : > { %14638 = vmatpush3.bf16.xpose.msra.mxu1 %v15409_v40  ;;  %3188 = vmatprep.subr.bf16.mxu0 %v15412_v46 }
 0xb12   : > { %14639 = vmatprep.subr.bf16.mxu1 %v15413_v5 }
 0xb18   : > { %3189 = vmatpush1.bf16.xpose.msra.mxu0 %v15410_v44 }
 0xb19   : > { %14640 = vmatpush3.bf16.xpose.msra.mxu1 %v15413_v5  ;;  %3361 = vmatprep.subr.bf16.mxu0 %v15416_v41 }
 0xb1a   : > { %14645 = vmatprep.subr.bf16.mxu1 %v15417_v7 }
 0xb1f   : > { %3215 = vmatmul.mubr.bf16.vlgmr.msra.gmra.mrb[44].mxu0 %v18117_v14 }
 0xb20   : > { %3222 = vmatprep.mubr.bf16.mxu0 %v18131_v43  ;;  %14642 = vmatmul.mubr.bf16.vlgmr.msra.gmra.mrb[56].mxu1 %v18157_v55 }
 0xb21   : > { %3362 = vmatpush1.bf16.xpose.msra.mxu0 %v15414_v8  ;;  %14646 = vmatpush3.bf16.xpose.msra.mxu1 %v15417_v7 }
 0xb22   : > { %14653 = vmatprep.mubr.bf16.mxu1 %v18142_v33  ;;  %3363 = vmatprep.subr.bf16.mxu0 %v15420_v37 }
 0xb23   : > { %14647 = vmatprep.subr.bf16.mxu1 %v15421_v9 }
 0xb27   : > { %3223 = vmatmul.mubr.bf16.gmra.mrb[48].mxu0 %v18140_v32 }
 0xb28   : > { %3393 = vmatprep.mubr.bf16.mxu0 %v18123_v18 }
 0xb29   : > { %3364 = vmatpush1.bf16.xpose.msra.mxu0 %v15418_v56  ;;  %14648 = vmatpush3.bf16.xpose.msra.mxu1 %v15421_v9 }
 0xb2a   : > { %3365 = vmatprep.subr.bf16.mxu0 %v15424_v39  ;;  %14649 = vmatprep.subr.bf16.mxu1 %v15425_v10 }
 0xb31   : > { %3366 = vmatpush1.bf16.xpose.msra.mxu0 %v15422_v11  ;;  %14650 = vmatpush3.bf16.xpose.msra.mxu1 %v15425_v10 }
 0xb32   : > { %3367 = vmatprep.subr.bf16.mxu0 %v15428_v12  ;;  %14651 = vmatprep.subr.bf16.mxu1 %v15429_v57 }
 0xb39   : > { %3368 = vmatpush1.bf16.xpose.msra.mxu0 %v15426_v13  ;;  %14652 = vmatpush3.bf16.xpose.msra.mxu1 %v15429_v57 }
 0xb3a   : > { %3540 = vmatprep.subr.bf16.mxu0 %v15432_v16  ;;  %14657 = vmatprep.subr.bf16.mxu1 %v15433_v50 }
 0xb40   : > { %3394 = vmatmul.mubr.bf16.vlgmr.msra.gmra.mrb[52].mxu0 %v18117_v14  ;;  %14654 = vmatmul.mubr.bf16.vlgmr.msra.gmra.mrb[60].mxu1 %v18157_v55 }
 0xb41   : > { %3401 = vmatprep.mubr.bf16.mxu0 %v18131_v43  ;;  %3541 = vmatpush1.bf16.xpose.msra.mxu0 %v15430_v19 }
 0xb42   : > { %14658 = vmatpush3.bf16.xpose.msra.mxu1 %v15433_v50  ;;  %14665 = vmatprep.mubr.bf16.mxu1 %v18142_v33 }
 0xb43   : > { %3542 = vmatprep.subr.bf16.mxu0 %v15436_v60  ;;  %14659 = vmatprep.subr.bf16.mxu1 %v15437_v21 }
 0xb48   : > { %3402 = vmatmul.mubr.bf16.gmra.mrb[56].mxu0 %v18140_v32 }
 0xb49   : > { %3543 = vmatpush1.bf16.xpose.msra.mxu0 %v15434_v52  ;;  %3572 = vmatprep.mubr.bf16.mxu0 %v18123_v18 }
 0xb4a   : > { %14660 = vmatpush3.bf16.xpose.msra.mxu1 %v15437_v21  ;;  %3544 = vmatprep.subr.bf16.mxu0 %v15440_v22 }
 0xb4b   : > { %14661 = vmatprep.subr.bf16.mxu1 %v15441_v58 }
 0xb51   : > { %3545 = vmatpush1.bf16.xpose.msra.mxu0 %v15438_v42 }
 0xb52   : > { %14662 = vmatpush3.bf16.xpose.msra.mxu1 %v15441_v58  ;;  %3546 = vmatprep.subr.bf16.mxu0 %v15444_v25 }
 0xb53   : > { %14663 = vmatprep.subr.bf16.mxu1 %v15445_v49 }
 0xb59   : > { %3547 = vmatpush1.bf16.xpose.msra.mxu0 %v15442_v26 }
 0xb5a   : > { %14664 = vmatpush3.bf16.xpose.msra.mxu1 %v15445_v49 }
 0xb60   : > { %3573 = vmatmul.mubr.bf16.vlgmr.msra.gmra.mrb[60].mxu0 %v18117_v14 }
 0xb61   : > { %3580 = vmatprep.mubr.bf16.mxu0 %v18131_v43  ;;  %14666 = vmatmul.mubr.bf16.vlgmr.msra.gmra.mrb[64].mxu1 %v18157_v55 }
 0xb68   : > { %3581 = vmatmul.mubr.bf16.gmra.mrb[64].mxu0 %v18140_v32 }
 0xbf2   : > { %v3216_v27 = vpop.f32.mrb[44].mxu0 }
 0xbf3   : > { %v3218_v28 = vpop.f32.mrb[45].mxu0  ;;  %v14643_v29 = vpop.f32.mrb[56].mxu1 }
 0xbf4   : > { %v3219_v30 = vpop.f32.mrb[46].mxu0  ;;  %v3265_v53 = vpop.f32.mrb[57].mxu1 }
 0xbf5   : > { %v3266_v15 = vadd.f32 %v3265_v53, %v3216_v27  ;;  %v3221_v54 = vpop.f32.mrb[47].mxu0  ;;  %v14644_v45 = vpop.f32.mrb[58].mxu1 }
 0xbf6   : > { %v3268_v24 = vpop.f32.mrb[59].mxu1 }
 0xbf7   : > { %v3269_v61 = vadd.f32 %v3268_v24, %v3219_v30 }
 0xbf9   : > { %v3638_v20 = vpack.c.bf16 %v3269_v61, %v3266_v15 }
 0xbfa   : > { %v3224_v62 = vpop.f32.mrb[48].mxu0 }
 0xbfb   : > { %v3274_v59 = vadd.f32 %v14643_v29, %v3224_v62  ;;  %v3226_v35 = vpop.f32.mrb[49].mxu0  ;;  %14673 = vmatprep.mubr.msk.bf16.mxu0 %vm1841_vm0, %v3638_v20  ;;  %v18431_v62 = vld [vmem:[%s19959_s3] sm:$0xff] }
 0xbfc   : > { %v3227_v23 = vpop.f32.mrb[50].mxu0 }
 0xbfd   : > { %v3277_v63 = vadd.f32 %v14644_v45, %v3227_v23  ;;  %v3229_v0 = vpop.f32.mrb[51].mxu0  ;;  %v18438_v23 = vld [vmem:[%s19959_s3 + $0x8] sm:$0xff] }
 0xbfe   : > { %v18444_v0 = vld [vmem:[%s19959_s3 + $0x10] sm:$0xff] }
 0xbff   : > { %v3639_v1 = vpack.c.bf16 %v3277_v63, %v3274_v59 }
 0xc13   : > { %v3395_v31 = vpop.f32.mrb[52].mxu0  ;;  %v14655_v2 = vpop.f32.mrb[60].mxu1 }
 0xc14   : > { %v3397_v34 = vpop.f32.mrb[53].mxu0  ;;  %v3444_v3 = vpop.f32.mrb[61].mxu1 }
 0xc15   : > { %v3398_v17 = vpop.f32.mrb[54].mxu0  ;;  %v3445_v4 = vadd.f32 %v3444_v3, %v3395_v31  ;;  %v14656_v40 = vpop.f32.mrb[62].mxu1 }
 0xc16   : > { %v3400_v38 = vpop.f32.mrb[55].mxu0  ;;  %v3447_v46 = vpop.f32.mrb[63].mxu1 }
 0xc17   : > { %v3448_v5 = vadd.f32 %v3447_v46, %v3398_v17 }
 0xc19   : > { %v3640_v44 = vpack.c.bf16 %v3448_v5, %v3445_v4 }
 0xc1b   : > { %v3403_v41 = vpop.f32.mrb[56].mxu0  ;;  %15117 = vmatprep.subr.msk.bf16.mxu0 %vm1841_vm0, %v3640_v44  ;;  %v3649_v7 = vsel %vm1841_vm0, %v3640_v44, 0 }
 0xc1c   : > { %v3453_v8 = vadd.f32 %v14655_v2, %v3403_v41  ;;  %v3405_v37 = vpop.f32.mrb[57].mxu0  ;;  %14670 = vmatpush3.bf16.xpose.msra.mxu0 %v3649_v7  ;;  %v18451_v2 = vld [vmem:[%s19959_s3 + $0x18] sm:$0xff] }
 0xc1d   : > { %v3406_v9 = vpop.f32.mrb[58].mxu0 }
 0xc1e   : > { %v3456_v56 = vadd.f32 %v14656_v40, %v3406_v9  ;;  %v3408_v39 = vpop.f32.mrb[59].mxu0 }
 0xc20   : > { %v3641_v10 = vpack.c.bf16 %v3456_v56, %v3453_v8 }
 0xc22   : > { %15118 = vmatprep.subr.msk.bf16.mxu0 %vm1841_vm0, %v3641_v10  ;;  %v3652_v11 = vsel %vm1841_vm0, %v3641_v10, 0 }
 0xc24   : > { %14672 = vmatpush3.bf16.xpose.msra.mxu0 %v3652_v11 }
 0xc2b   : > { %14674 = vmatmul.mubr.msk.bf16.vlgmr.msra.gmra.mrb[68].mxu0 %vm1841_vm0, %v3639_v1 }
 0xc2c   : > { %3931 = vmatprep.mubr.bf16.mxu0 %v17232_v51 }
 0xc33   : > { %v3574_v12 = vpop.f32.mrb[60].mxu0 }
 0xc34   : > { %v3576_v57 = vpop.f32.mrb[61].mxu0  ;;  %v14667_v13 = vpop.f32.mrb[64].mxu1 }
 0xc35   : > { %v3577_v16 = vpop.f32.mrb[62].mxu0  ;;  %v3623_v50 = vpop.f32.mrb[65].mxu1 }
 0xc36   : > { %v3624_v19 = vadd.f32 %v3623_v50, %v3574_v12  ;;  %v3579_v60 = vpop.f32.mrb[63].mxu0  ;;  %v14668_v21 = vpop.f32.mrb[66].mxu1 }
 0xc37   : > { %v3626_v52 = vpop.f32.mrb[67].mxu1  ;;  %v15448_v60 = vld [vmem:[%s17938_s2 + $0xc4] ss:$12 sps:$4 sm:$0xff]  }
 0xc38   : > { %v3627_v22 = vadd.f32 %v3626_v52, %v3577_v16  ;;  %v15452_v52 = vld [vmem:[%s17938_s2 + $0xdc] ss:$12 sps:$4 sm:$0xff]   ;;  %3899 = vmatprep.subr.bf16.mxu0 %v15448_v60  ;;  %v15483_v60 = vld [vmem:[%s17929_s0 + $0x138] ss:$12 sps:$4 sm:$0xff]  }
 0xc3a   : > { %v3753_v58 = vpack.c.bf16 %v3627_v22, %v3624_v19  ;;  %v15446_v19 = vld [vmem:[%s17938_s2 + $0xc0] ss:$12 sps:$4 sm:$0xff]   ;;  %v15450_v22 = vld [vmem:[%s17938_s2 + $0xd8] ss:$12 sps:$4 sm:$0xff]  }
 0xc3b   : > { %v3582_v42 = vpop.f32.mrb[64].mxu0  ;;  %3900 = vmatpush1.bf16.msra.mxu0 %v15446_v19  ;;  %v15486_v19 = vld [vmem:[%s17929_s0 + $0x158] ss:$12 sps:$4 sm:$0xff]  }
 0xc3c   : > { %v3632_v25 = vadd.f32 %v14667_v13, %v3582_v42  ;;  %v3584_v49 = vpop.f32.mrb[65].mxu0  ;;  %14677 = vmatprep.subr.bf16.mxu1 %v3753_v58  ;;  %3901 = vmatprep.subr.bf16.mxu0 %v15452_v52  ;;  %v15454_v42 = vld [vmem:[%s17938_s2 + $0xf0] ss:$12 sps:$4 sm:$0xff]  }
 0xc3d   : > { %v3585_v26 = vpop.f32.mrb[66].mxu0  ;;  %14678 = vmatpush3.bf16.msra.mxu1 %v3753_v58  ;;  %v15456_v58 = vld [vmem:[%s17938_s2 + $0xf4] ss:$12 sps:$4 sm:$0xff]   ;;  %v15490_v52 = vld [vmem:[%s17929_s0 + $0x170] ss:$12 sps:$4 sm:$0xff]  }
 0xc3e   : > { %v3635_v27 = vadd.f32 %v14668_v21, %v3585_v26  ;;  %v3587_v28 = vpop.f32.mrb[67].mxu0  ;;  %v15449_v21 = vld [vmem:[%s17938_s2 + $0xc8] ss:$12 sps:$4 sm:$0xff]  }
 0xc3f   : > { %3902 = vmatpush1.bf16.msra.mxu0 %v15450_v22  ;;  %v15458_v49 = vld [vmem:[%s17938_s2 + $0x108] ss:$12 sps:$4 sm:$0xff]   ;;  %v15487_v22 = vld [vmem:[%s17929_s0 + $0x150] ss:$12 sps:$4 sm:$0xff]  }
 0xc40   : > { %v3754_v29 = vpack.c.bf16 %v3635_v27, %v3632_v25  ;;  %3903 = vmatprep.subr.bf16.mxu0 %v15456_v58  ;;  %v15460_v25 = vld [vmem:[%s17938_s2 + $0x10c] ss:$12 sps:$4 sm:$0xff]  }
 0xc41   : > { %v15493_v58 = vld [vmem:[%s17929_s0 + $0x16c] ss:$12 sps:$4 sm:$0xff]  }
 0xc42   : > { %14679 = vmatprep.subr.bf16.mxu1 %v3754_v29 }
 0xc43   : > { %14680 = vmatpush3.bf16.msra.mxu1 %v3754_v29  ;;  %3904 = vmatpush1.bf16.msra.mxu0 %v15454_v42  ;;  %v15494_v42 = vld [vmem:[%s17935_s11 + $0x128] ss:$12 sps:$4 sm:$0xff]  }
 0xc44   : > { %14685 = vmatprep.subr.bf16.mxu1 %v15449_v21  ;;  %3905 = vmatprep.subr.bf16.mxu0 %v15460_v25  ;;  %v15491_v25 = vld [vmem:[%s17929_s0 + $0x168] ss:$12 sps:$4 sm:$0xff]  }
 0xc47   : > { %3906 = vmatpush1.bf16.msra.mxu0 %v15458_v49  ;;  %v15497_v49 = vld [vmem:[%s17935_s11 + $0x124] ss:$12 sps:$4 sm:$0xff]  }
 0xcfe   : > { %v14675_v30 = vpop.f32.mrb[68].mxu0 }
 0xcff   : > { %v3688_v53 = vpop.f32.mrb[69].mxu0  ;;  %v3697_v15 = vadd.f32 0.05103104, %v14675_v30 }
 0xd00   : > { %v3689_v54 = vadd.f32 0.05103104, %v3688_v53  ;;  %v14676_v45 = vpop.f32.mrb[70].mxu0 }
 0xd01   : > { %v3691_v24 = vpop.f32.mrb[71].mxu0  ;;  %v3700_v61 = vadd.f32 0.05103104, %v14676_v45  ;;  %v3705_v1 = vadd.f32 %v18444_v0, %v3697_v15 }
 0xd02   : > { %v3692_v20 = vadd.f32 0.05103104, %v3691_v24  ;;  %v3703_v59 = vadd.f32 %v18431_v62, %v3689_v54 }
 0xd03   : > { %v3706_v34 = vadd.f32 %v18451_v2, %v3700_v61  ;;  %v3713_v3 = vsel %vm1907_vm1, %v3705_v1, -inf }
 0xd04   : > { %v3707_v35 = vsel %vm1907_vm1, %v3703_v59, -inf  ;;  %v3704_v63 = vadd.f32 %v18438_v23, %v3692_v20 }
 0xd05   : > { %3708 = vmax.xlane.f32.xlu0 %v3707_v35  ;;  %v3716_v17 = vsel %vm1907_vm1, %v3706_v34, -inf }
 0xd06   : > { %v3710_v31 = vsel %vm1907_vm1, %v3704_v63, -inf }
 0xd07   : > { %3711 = vmax.xlane.f32.xlu1 %v3710_v31  ;;  %v15461_v31 = vld [vmem:[%s17938_s2 + $0x110] ss:$12 sps:$4 sm:$0xff]  }
 0xd09   : > { %3714 = vmax.xlane.f32.xlu0 %v3713_v3  ;;  %v15465_v3 = vld [vmem:[%s17926_s29 + $0x124] ss:$12 sps:$4 sm:$0xff]  }
 0xd0b   : > { %3717 = vmax.xlane.f32.xlu1 %v3716_v17 }
 0xd92   : > { %v3709_v4 = vpop.xlane.xlu0 %3708 }
 0xd93   : > { %v3719_v40 = vsub.f32 %v3703_v59, %v3709_v4 }
 0xd94   : > { %v3712_v38 = vpop.xlane.xlu1 %3711 }
 0xd95   : > { %v3723_v46 = vmul.f32 1.442695, %v3719_v40  ;;  %v3720_v5 = vsub.f32 %v3704_v63, %v3712_v38  ;;  %v15453_v63 = vld [vmem:[%s17938_s2 + $0xe0] ss:$12 sps:$4 sm:$0xff]  }
 0xd96   : > { %v3715_v44 = vpop.xlane.xlu0 %3714 }
 0xd97   : > { %16510 = vpow2.f32 %v3723_v46  ;;  %v3725_v41 = vmul.f32 1.442695, %v3720_v5  ;;  %v3721_v7 = vsub.f32 %v3705_v1, %v3715_v44  ;;  %v15457_v1 = vld [vmem:[%s17938_s2 + $0xf8] ss:$12 sps:$4 sm:$0xff]   ;;  %v15463_v44 = vld [vmem:[%s17926_s29 + $0x120] ss:$12 sps:$4 sm:$0xff]  }
 0xd98   : > { %v3718_v8 = vpop.xlane.xlu1 %3717 }
 0xd99   : > { %16512 = vpow2.f32 %v3725_v41  ;;  %v3727_v37 = vmul.f32 1.442695, %v3721_v7  ;;  %v3722_v9 = vsub.f32 %v3706_v34, %v3718_v8  ;;  %v15462_v34 = vld [vmem:[%s17926_s29 + $0x128] ss:$12 sps:$4 sm:$0xff]   ;;  %v15466_v41 = vld [vmem:[%s17926_s29 + $0x140] ss:$12 sps:$4 sm:$0xff]  }
 0xd9a   : > { %14697 = vmatprep.subr.bf16.mxu0 %v15462_v34  ;;  %v15469_v7 = vld [vmem:[%s17926_s29 + $0x13c] ss:$12 sps:$4 sm:$0xff]   ;;  %v15467_v8 = vld [vmem:[%s17926_s29 + $0x138] ss:$12 sps:$4 sm:$0xff]  }
 0xd9b   : > { %16514 = vpow2.f32 %v3727_v37  ;;  %v3729_v56 = vmul.f32 1.442695, %v3722_v9  ;;  %v15470_v37 = vld [vmem:[%s17926_s29 + $0x158] ss:$12 sps:$4 sm:$0xff]   ;;  %v15473_v9 = vld [vmem:[%s17926_s29 + $0x154] ss:$12 sps:$4 sm:$0xff]  }
 0xd9d   : > { %16516 = vpow2.f32 %v3729_v56  ;;  %v15471_v56 = vld [vmem:[%s17926_s29 + $0x150] ss:$12 sps:$4 sm:$0xff]  }
 0xda1   : > { %v16511_v39 = vpop.eup %16510 }
 0xda2   : > { %v3731_v10 = vsel %vm1907_vm1, %v16511_v39, 0.0 }
 0xda3   : > { %v16513_v11 = vpop.eup %16512  ;;  %3732 = vadd.xlane.f32.xlu0 %v3731_v10  ;;  %v15477_v10 = vld [vmem:[%s17926_s29 + $0x16c] ss:$12 sps:$4 sm:$0xff]  }
 0xda4   : > { %v3734_v12 = vsel %vm1907_vm1, %v16513_v11, 0.0 }
 0xda5   : > { %v16515_v57 = vpop.eup %16514  ;;  %3735 = vadd.xlane.f32.xlu1 %v3734_v12  ;;  %v15478_v12 = vld [vmem:[%s17929_s0 + $0x128] ss:$12 sps:$4 sm:$0xff]  }
 0xda6   : > { %v3737_v13 = vsel %vm1907_vm1, %v16515_v57, 0.0 }
 0xda7   : > { %v16517_v16 = vpop.eup %16516  ;;  %3738 = vadd.xlane.f32.xlu0 %v3737_v13  ;;  %v15479_v13 = vld [vmem:[%s17929_s0 + $0x120] ss:$12 sps:$4 sm:$0xff]  }
 0xda8   : > { %v3740_v50 = vsel %vm1907_vm1, %v16517_v16, 0.0 }
 0xda9   : > { %3741 = vadd.xlane.f32.xlu1 %v3740_v50  ;;  %v15485_v50 = vld [vmem:[%s17929_s0 + $0x13c] ss:$12 sps:$4 sm:$0xff]  }
 0xe30   : > { %v3733_v26 = vpop.xlane.xlu0 %3732 }
 0xe31   : > { %16518 = vrcp.f32 %v3733_v26  ;;  %v15498_v26 = vld [vmem:[%s17935_s11 + $0x140] ss:$12 sps:$4 sm:$0xff]  }
 0xe32   : > { %v3736_v27 = vpop.xlane.xlu1 %3735 }
 0xe33   : > { %16520 = vrcp.f32 %v3736_v27  ;;  %v15495_v27 = vld [vmem:[%s17935_s11 + $0x120] ss:$12 sps:$4 sm:$0xff]  }
 0xe34   : > { %v3739_v28 = vpop.xlane.xlu0 %3738 }
 0xe35   : > { %16522 = vrcp.f32 %v3739_v28  ;;  %v15501_v28 = vld [vmem:[%s17935_s11 + $0x13c] ss:$12 sps:$4 sm:$0xff]  }
 0xe36   : > { %v3742_v29 = vpop.xlane.xlu1 %3741 }
 0xe37   : > { %16524 = vrcp.f32 %v3742_v29  ;;  %v15502_v29 = vld [vmem:[%s17935_s11 + $0x158] ss:$12 sps:$4 sm:$0xff]  }
 0xe3b   : > { %v16519_v30 = vpop.eup %16518 }
 0xe3c   : > { %v3747_v15 = vmul.f32 %v16519_v30, %v16511_v39  ;;  %v15474_v39 = vld [vmem:[%s17926_s29 + $0x170] ss:$12 sps:$4 sm:$0xff]   ;;  %v15499_v30 = vld [vmem:[%s17935_s11 + $0x138] ss:$12 sps:$4 sm:$0xff]  }
 0xe3d   : > { %v16521_v53 = vpop.eup %16520 }
 0xe3e   : > { %v3748_v54 = vmul.f32 %v16521_v53, %v16513_v11  ;;  %v15475_v11 = vld [vmem:[%s17926_s29 + $0x168] ss:$12 sps:$4 sm:$0xff]  }
 0xe3f   : > { %v16523_v45 = vpop.eup %16522  ;;  %v15505_v53 = vld [vmem:[%s17935_s11 + $0x154] ss:$12 sps:$4 sm:$0xff]  }
 0xe40   : > { %v3751_v24 = vpack.c.bf16 %v3748_v54, %v3747_v15  ;;  %v3749_v20 = vmul.f32 %v16523_v45, %v16515_v57  ;;  %v15481_v57 = vld [vmem:[%s17929_s0 + $0x124] ss:$12 sps:$4 sm:$0xff]   ;;  %v15509_v45 = vld [vmem:[%s17935_s11 + $0x16c] ss:$12 sps:$4 sm:$0xff]  }
 0xe41   : > { %v16525_v61 = vpop.eup %16524  ;;  %v15506_v15 = vld [vmem:[%s17935_s11 + $0x170] ss:$12 sps:$4 sm:$0xff]  }
 0xe42   : > { %v3750_v59 = vmul.f32 %v16525_v61, %v16517_v16  ;;  %14681 = vmatprep.mubr.msk.bf16.mxu1 %vm1907_vm1, %v3751_v24  ;;  %v15482_v16 = vld [vmem:[%s17929_s0 + $0x140] ss:$12 sps:$4 sm:$0xff]   ;;  %v15503_v54 = vld [vmem:[%s17935_s11 + $0x150] ss:$12 sps:$4 sm:$0xff]   ;;  %v15507_v24 = vld [vmem:[%s17935_s11 + $0x168] ss:$12 sps:$4 sm:$0xff]  }
 0xe44   : > { %v3752_v35 = vpack.c.bf16 %v3750_v59, %v3749_v20 }
 0xe46   : > { %14682 = vmatmul.mubr.msk.bf16.vlgmr.msra.gmra.mrb[68].mxu1 %vm1907_vm1, %v3752_v35 }
 0xe47   : > { %14686 = vmatpush3.bf16.msra.mxu1 %v15449_v21  ;;  %v15489_v21 = vld [vmem:[%s17929_s0 + $0x154] ss:$12 sps:$4 sm:$0xff]  }
 0xe48   : > { %14687 = vmatprep.subr.bf16.mxu1 %v15453_v63 }
 0xe4b   : > { %14688 = vmatpush3.bf16.msra.mxu1 %v15453_v63 }
 0xe4c   : > { %14689 = vmatprep.subr.bf16.mxu1 %v15457_v1 }
 0xe4f   : > { %14690 = vmatpush3.bf16.msra.mxu1 %v15457_v1 }
 0xe50   : > { %14691 = vmatprep.subr.bf16.mxu1 %v15461_v31 }
 0xe53   : > { %14692 = vmatpush3.bf16.msra.mxu1 %v15461_v31 }
 0xe54   : > { %4094 = vmatprep.subr.bf16.mxu1 %v15465_v3 }
 0xf19   : > { %v14683_v17 = vpop.f32.mrb[68].mxu1 }
 0xf1a   : > { %v3795_v4 = vpop.f32.mrb[69].mxu1 }
 0xf1b   : > { %v14684_v40 = vpop.f32.mrb[70].mxu1 }
 0xf1c   : > { %v3811_v38 = vpack.c.bf16 %v14684_v40, %v14683_v17  ;;  %v3798_v46 = vpop.f32.mrb[71].mxu1 }
 0xf1d   : > { %v3810_v5 = vpack.c.bf16 %v3798_v46, %v3795_v4 }
 0xf1f   : > { %13137 = vmatmul.mubr.msk.bf16.vlgmr.msra.gmra.mrb[36].mxu0 %vm1841_vm0, %v3810_v5  ;;  %14693 = vmatprep.mubr.msk.bf16.mxu1 %vm1841_vm0, %v3810_v5 }
 0xf20   : > { %14698 = vmatpush3.bf16.xpose.msra.mxu0 %v15462_v34  ;;  %14694 = vmatmul.mubr.msk.bf16.vlgmr.msra.gmra.mrb[52].mxu1 %vm1841_vm0, %v3811_v38 }
 0xf21   : > { %4095 = vmatpush1.bf16.xpose.msra.mxu1 %v15463_v44  ;;  %4126 = vmatprep.mubr.bf16.mxu1 %v18123_v18 }
 0xf22   : > { %3941 = vmatprep.mubr.bf16.mxu0 %v17232_v51  ;;  %14699 = vmatprep.subr.bf16.mxu0 %v15466_v41 }
 0xf23   : > { %4096 = vmatprep.subr.bf16.mxu1 %v15469_v7 }
 0xf27   : > { %13138 = vmatmul.mubr.msk.bf16.gmra.mrb[40].mxu0 %vm1841_vm0, %v3811_v38 }
 0xf28   : > { %14700 = vmatpush3.bf16.xpose.msra.mxu0 %v15466_v41  ;;  %14705 = vmatprep.mubr.bf16.mxu0 %v18142_v33 }
 0xf29   : > { %4097 = vmatpush1.bf16.xpose.msra.mxu1 %v15467_v8  ;;  %14701 = vmatprep.subr.bf16.mxu0 %v15470_v37 }
 0xf2a   : > { %4098 = vmatprep.subr.bf16.mxu1 %v15473_v9 }
 0xf30   : > { %14702 = vmatpush3.bf16.xpose.msra.mxu0 %v15470_v37 }
 0xf31   : > { %4099 = vmatpush1.bf16.xpose.msra.mxu1 %v15471_v56  ;;  %14703 = vmatprep.subr.bf16.mxu0 %v15474_v39 }
 0xf32   : > { %4100 = vmatprep.subr.bf16.mxu1 %v15477_v10 }
 0xf38   : > { %14704 = vmatpush3.bf16.xpose.msra.mxu0 %v15474_v39 }
 0xf39   : > { %4101 = vmatpush1.bf16.xpose.msra.mxu1 %v15475_v11  ;;  %14709 = vmatprep.subr.bf16.mxu0 %v15478_v12 }
 0xf3a   : > { %4273 = vmatprep.subr.bf16.mxu1 %v15481_v57 }
 0xf3f   : > { %14706 = vmatmul.mubr.bf16.vlgmr.msra.gmra.mrb[72].mxu0 %v18157_v55 }
 0xf40   : > { %4127 = vmatmul.mubr.bf16.vlgmr.msra.gmra.mrb[72].mxu1 %v18117_v14  ;;  %14710 = vmatpush3.bf16.xpose.msra.mxu0 %v15478_v12 }
 0xf41   : > { %14717 = vmatprep.mubr.bf16.mxu0 %v18142_v33  ;;  %4134 = vmatprep.mubr.bf16.mxu1 %v18131_v43 }
 0xf42   : > { %4274 = vmatpush1.bf16.xpose.msra.mxu1 %v15479_v13  ;;  %14711 = vmatprep.subr.bf16.mxu0 %v15482_v16 }
 0xf43   : > { %4275 = vmatprep.subr.bf16.mxu1 %v15485_v50 }
 0xf48   : > { %4135 = vmatmul.mubr.bf16.gmra.mrb[76].mxu1 %v18140_v32  ;;  %14712 = vmatpush3.bf16.xpose.msra.mxu0 %v15482_v16 }
 0xf49   : > { %4305 = vmatprep.mubr.bf16.mxu1 %v18123_v18  ;;  %14713 = vmatprep.subr.bf16.mxu0 %v15486_v19 }
 0xf4a   : > { %4276 = vmatpush1.bf16.xpose.msra.mxu1 %v15483_v60 }
 0xf4b   : > { %4277 = vmatprep.subr.bf16.mxu1 %v15489_v21 }
 0xf50   : > { %14714 = vmatpush3.bf16.xpose.msra.mxu0 %v15486_v19 }
 0xf51   : > { %14715 = vmatprep.subr.bf16.mxu0 %v15490_v52 }
 0xf52   : > { %4278 = vmatpush1.bf16.xpose.msra.mxu1 %v15487_v22 }
 0xf53   : > { %4279 = vmatprep.subr.bf16.mxu1 %v15493_v58 }
 0xf58   : > { %14716 = vmatpush3.bf16.xpose.msra.mxu0 %v15490_v52 }
 0xf59   : > { %14721 = vmatprep.subr.bf16.mxu0 %v15494_v42 }
 0xf5a   : > { %4280 = vmatpush1.bf16.xpose.msra.mxu1 %v15491_v25 }
 0xf5b   : > { %4452 = vmatprep.subr.bf16.mxu1 %v15497_v49 }
 0xf5f   : > { %14718 = vmatmul.mubr.bf16.vlgmr.msra.gmra.mrb[76].mxu0 %v18157_v55 }
 0xf60   : > { %14722 = vmatpush3.bf16.xpose.msra.mxu0 %v15494_v42  ;;  %14729 = vmatprep.mubr.bf16.mxu0 %v18142_v33 }
 0xf61   : > { %4306 = vmatmul.mubr.bf16.vlgmr.msra.gmra.mrb[80].mxu1 %v18117_v14  ;;  %14723 = vmatprep.subr.bf16.mxu0 %v15498_v26 }
 0xf62   : > { %4313 = vmatprep.mubr.bf16.mxu1 %v18131_v43  ;;  %4453 = vmatpush1.bf16.xpose.msra.mxu1 %v15495_v27 }
 0xf63   : > { %4454 = vmatprep.subr.bf16.mxu1 %v15501_v28 }
 0xf68   : > { %14724 = vmatpush3.bf16.xpose.msra.mxu0 %v15498_v26 }
 0xf69   : > { %4314 = vmatmul.mubr.bf16.gmra.mrb[84].mxu1 %v18140_v32  ;;  %14725 = vmatprep.subr.bf16.mxu0 %v15502_v29 }
 0xf6a   : > { %4455 = vmatpush1.bf16.xpose.msra.mxu1 %v15499_v30  ;;  %4484 = vmatprep.mubr.bf16.mxu1 %v18123_v18 }
 0xf6b   : > { %4456 = vmatprep.subr.bf16.mxu1 %v15505_v53 }
 0xf70   : > { %14726 = vmatpush3.bf16.xpose.msra.mxu0 %v15502_v29 }
 0xf71   : > { %14727 = vmatprep.subr.bf16.mxu0 %v15506_v15 }
 0xf72   : > { %4457 = vmatpush1.bf16.xpose.msra.mxu1 %v15503_v54 }
 0xf73   : > { %4458 = vmatprep.subr.bf16.mxu1 %v15509_v45 }
 0xf78   : > { %14728 = vmatpush3.bf16.xpose.msra.mxu0 %v15506_v15 }
 0xf7a   : > { %4459 = vmatpush1.bf16.xpose.msra.mxu1 %v15507_v24 }
 0xf7f   : > { %14730 = vmatmul.mubr.bf16.vlgmr.msra.gmra.mrb[80].mxu0 %v18157_v55 }
 0xf81   : > { %4485 = vmatmul.mubr.bf16.vlgmr.msra.gmra.mrb[88].mxu1 %v18117_v14 }
 0xf82   : > { %4492 = vmatprep.mubr.bf16.mxu1 %v18131_v43 }
 0xf89   : > { %4493 = vmatmul.mubr.bf16.gmra.mrb[92].mxu1 %v18140_v32 }
0x1012   : > { %v14707_v61 = vpop.f32.mrb[72].mxu0 }
0x1013   : > { %v4128_v20 = vpop.f32.mrb[72].mxu1  ;;  %v4177_v59 = vpop.f32.mrb[73].mxu0 }
0x1014   : > { %v4178_v35 = vadd.f32 %v4177_v59, %v4128_v20  ;;  %v4130_v63 = vpop.f32.mrb[73].mxu1  ;;  %v14708_v1 = vpop.f32.mrb[74].mxu0 }
0x1015   : > { %v4131_v31 = vpop.f32.mrb[74].mxu1  ;;  %v4180_v34 = vpop.f32.mrb[75].mxu0 }
0x1016   : > { %v4181_v3 = vadd.f32 %v4180_v34, %v4131_v31  ;;  %v4133_v17 = vpop.f32.mrb[75].mxu1 }
0x1018   : > { %v4550_v4 = vpack.c.bf16 %v4181_v3, %v4178_v35 }
0x101a   : > { %14737 = vmatprep.mubr.msk.bf16.mxu1 %vm1841_vm0, %v4550_v4 }
0x101b   : > { %v4136_v40 = vpop.f32.mrb[76].mxu1 }
0x101c   : > { %v4186_v38 = vadd.f32 %v14707_v61, %v4136_v40  ;;  %v4138_v46 = vpop.f32.mrb[77].mxu1 }
0x101d   : > { %v4139_v5 = vpop.f32.mrb[78].mxu1 }
0x101e   : > { %v4189_v44 = vadd.f32 %v14708_v1, %v4139_v5  ;;  %v4141_v41 = vpop.f32.mrb[79].mxu1 }
0x1020   : > { %v4551_v7 = vpack.c.bf16 %v4189_v44, %v4186_v38 }
0x1032   : > { %v14719_v8 = vpop.f32.mrb[76].mxu0 }
0x1033   : > { %v4356_v37 = vpop.f32.mrb[77].mxu0 }
0x1034   : > { %v4307_v9 = vpop.f32.mrb[80].mxu1  ;;  %v14720_v56 = vpop.f32.mrb[78].mxu0 }
0x1035   : > { %v4357_v39 = vadd.f32 %v4356_v37, %v4307_v9  ;;  %v4309_v10 = vpop.f32.mrb[81].mxu1  ;;  %v4359_v11 = vpop.f32.mrb[79].mxu0 }
0x1036   : > { %v4310_v12 = vpop.f32.mrb[82].mxu1 }
0x1037   : > { %v4360_v57 = vadd.f32 %v4359_v11, %v4310_v12  ;;  %v4312_v13 = vpop.f32.mrb[83].mxu1 }
0x1039   : > { %v4552_v16 = vpack.c.bf16 %v4360_v57, %v4357_v39 }
0x103b   : > { %15119 = vmatprep.subr.msk.bf16.mxu1 %vm1841_vm0, %v4552_v16  ;;  %v4561_v50 = vsel %vm1841_vm0, %v4552_v16, 0 }
0x103c   : > { %v4315_v19 = vpop.f32.mrb[84].mxu1  ;;  %14734 = vmatpush3.bf16.xpose.msra.mxu1 %v4561_v50 }
0x103d   : > { %v4365_v60 = vadd.f32 %v14719_v8, %v4315_v19  ;;  %v4317_v21 = vpop.f32.mrb[85].mxu1 }
0x103e   : > { %v4318_v52 = vpop.f32.mrb[86].mxu1 }
0x103f   : > { %v4368_v22 = vadd.f32 %v14720_v56, %v4318_v52  ;;  %v4320_v58 = vpop.f32.mrb[87].mxu1 }
0x1041   : > { %v4553_v42 = vpack.c.bf16 %v4368_v22, %v4365_v60 }
0x1043   : > { %15120 = vmatprep.subr.msk.bf16.mxu1 %vm1841_vm0, %v4553_v42  ;;  %v4564_v25 = vsel %vm1841_vm0, %v4553_v42, 0 }
0x1044   : > { %14736 = vmatpush3.bf16.xpose.msra.mxu1 %v4564_v25 }
0x104b   : > { %14738 = vmatmul.mubr.msk.bf16.vlgmr.msra.gmra.mrb[96].mxu1 %vm1841_vm0, %v4551_v7 }
0x1052   : > { %v14731_v49 = vpop.f32.mrb[80].mxu0 }
0x1053   : > { %v4535_v26 = vpop.f32.mrb[81].mxu0 }
0x1054   : > { %v4486_v27 = vpop.f32.mrb[88].mxu1  ;;  %v14732_v28 = vpop.f32.mrb[82].mxu0 }
0x1055   : > { %v4536_v29 = vadd.f32 %v4535_v26, %v4486_v27  ;;  %v4488_v30 = vpop.f32.mrb[89].mxu1  ;;  %v4538_v53 = vpop.f32.mrb[83].mxu0  ;;  %v15512_v26 = vld [vmem:[%s17938_s2 + $0x124] ss:$12 sps:$4 sm:$0xff]   ;;  %v15513_v27 = vld [vmem:[%s17938_s2 + $0x128] ss:$12 sps:$4 sm:$0xff]  }
0x1056   : > { %v4489_v15 = vpop.f32.mrb[90].mxu1  ;;  %14749 = vmatprep.subr.bf16.mxu1 %v15513_v27  ;;  %v15525_v30 = vld [vmem:[%s17938_s2 + $0x170] ss:$12 sps:$4 sm:$0xff]  }
0x1057   : > { %v4539_v54 = vadd.f32 %v4538_v53, %v4489_v15  ;;  %v4491_v45 = vpop.f32.mrb[91].mxu1  ;;  %14750 = vmatpush3.bf16.msra.mxu1 %v15513_v27  ;;  %v15557_v27 = vld [vmem:[%s17929_s0 + $0x1d0] ss:$12 sps:$4 sm:$0xff]  }
0x1059   : > { %v4665_v24 = vpack.c.bf16 %v4539_v54, %v4536_v29  ;;  %v15521_v29 = vld [vmem:[%s17938_s2 + $0x158] ss:$12 sps:$4 sm:$0xff]  }
0x105b   : > { %14741 = vmatprep.subr.bf16.mxu0 %v4665_v24 }
0x105c   : > { %v4494_v61 = vpop.f32.mrb[92].mxu1  ;;  %14742 = vmatpush3.bf16.msra.mxu0 %v4665_v24 }
0x105d   : > { %v4544_v20 = vadd.f32 %v14731_v49, %v4494_v61  ;;  %v4496_v59 = vpop.f32.mrb[93].mxu1 }
0x105e   : > { %v4497_v35 = vpop.f32.mrb[94].mxu1 }
0x105f   : > { %v4547_v63 = vadd.f32 %v14732_v28, %v4497_v35  ;;  %v4499_v1 = vpop.f32.mrb[95].mxu1  ;;  %v15517_v28 = vld [vmem:[%s17938_s2 + $0x140] ss:$12 sps:$4 sm:$0xff]  }
0x1060   : > { %14751 = vmatprep.subr.bf16.mxu1 %v15517_v28 }
0x1061   : > { %v4666_v31 = vpack.c.bf16 %v4547_v63, %v4544_v20  ;;  %14752 = vmatpush3.bf16.msra.mxu1 %v15517_v28  ;;  %v15554_v28 = vld [vmem:[%s17929_s0 + $0x1c8] ss:$12 sps:$4 sm:$0xff]  }
0x1062   : > { %14753 = vmatprep.subr.bf16.mxu1 %v15521_v29 }
0x1063   : > { %14743 = vmatprep.subr.bf16.mxu0 %v4666_v31 }
0x1064   : > { %14744 = vmatpush3.bf16.msra.mxu0 %v4666_v31 }
0x1065   : > { %4811 = vmatprep.subr.bf16.mxu0 %v15512_v26  ;;  %14754 = vmatpush3.bf16.msra.mxu1 %v15521_v29  ;;  %v15556_v26 = vld [vmem:[%s17929_s0 + $0x1cc] ss:$12 sps:$4 sm:$0xff]   ;;  %v15560_v29 = vld [vmem:[%s17935_s11 + $0x184] ss:$12 sps:$4 sm:$0xff]  }
0x1066   : > { %14755 = vmatprep.subr.bf16.mxu1 %v15525_v30 }
0x1069   : > { %14756 = vmatpush3.bf16.msra.mxu1 %v15525_v30  ;;  %v15561_v30 = vld [vmem:[%s17935_s11 + $0x188] ss:$12 sps:$4 sm:$0xff]  }
0x111e   : > { %v14739_v34 = vpop.f32.mrb[96].mxu1 }
0x111f   : > { %v4600_v3 = vpop.f32.mrb[97].mxu1  ;;  %v4609_v17 = vadd.f32 0.05103104, %v14739_v34 }
0x1120   : > { %v4601_v4 = vadd.f32 0.05103104, %v4600_v3  ;;  %v14740_v40 = vpop.f32.mrb[98].mxu1  ;;  %v15510_v3 = vld [vmem:[%s17938_s2 + $0x120] ss:$12 sps:$4 sm:$0xff]  }
0x1121   : > { %v4603_v38 = vpop.f32.mrb[99].mxu1  ;;  %v4612_v46 = vadd.f32 0.05103104, %v14740_v40  ;;  %v4617_v8 = vadd.f32 %v18444_v0, %v4609_v17  ;;  %v15514_v40 = vld [vmem:[%s17938_s2 + $0x138] ss:$12 sps:$4 sm:$0xff]  }
0x1122   : > { %v4604_v5 = vadd.f32 0.05103104, %v4603_v38  ;;  %v4615_v44 = vadd.f32 %v18431_v62, %v4601_v4  ;;  %v15516_v4 = vld [vmem:[%s17938_s2 + $0x13c] ss:$12 sps:$4 sm:$0xff]   ;;  %v15520_v38 = vld [vmem:[%s17938_s2 + $0x154] ss:$12 sps:$4 sm:$0xff]  }
0x1123   : > { %v4618_v9 = vadd.f32 %v18451_v2, %v4612_v46  ;;  %v4625_v56 = vsel %vm1907_vm1, %v4617_v8, -inf  ;;  %v15518_v46 = vld [vmem:[%s17938_s2 + $0x150] ss:$12 sps:$4 sm:$0xff]  }
0x1124   : > { %v4619_v41 = vsel %vm1907_vm1, %v4615_v44, -inf  ;;  %v4616_v7 = vadd.f32 %v18438_v23, %v4604_v5  ;;  %v15524_v5 = vld [vmem:[%s17938_s2 + $0x16c] ss:$12 sps:$4 sm:$0xff]  }
0x1125   : > { %4620 = vmax.xlane.f32.xlu0 %v4619_v41  ;;  %v4628_v39 = vsel %vm1907_vm1, %v4618_v9, -inf  ;;  %v15528_v41 = vld [vmem:[%s17926_s29 + $0x184] ss:$12 sps:$4 sm:$0xff]  }
0x1126   : > { %v4622_v37 = vsel %vm1907_vm1, %v4616_v7, -inf }
0x1127   : > { %4623 = vmax.xlane.f32.xlu1 %v4622_v37 }
0x1129   : > { %4626 = vmax.xlane.f32.xlu0 %v4625_v56 }
0x112b   : > { %4629 = vmax.xlane.f32.xlu1 %v4628_v39 }
0x11b2   : > { %v4621_v10 = vpop.xlane.xlu0 %4620 }
0x11b3   : > { %v4631_v62 = vsub.f32 %v4615_v44, %v4621_v10  ;;  %v15522_v44 = vld [vmem:[%s17938_s2 + $0x168] ss:$12 sps:$4 sm:$0xff]   ;;  %v15526_v10 = vld [vmem:[%s17926_s29 + $0x180] ss:$12 sps:$4 sm:$0xff]  }
0x11b4   : > { %v4624_v11 = vpop.xlane.xlu1 %4623 }
0x11b5   : > { %v4635_v12 = vmul.f32 1.442695, %v4631_v62  ;;  %v4632_v57 = vsub.f32 %v4616_v7, %v4624_v11  ;;  %v15529_v7 = vld [vmem:[%s17926_s29 + $0x188] ss:$12 sps:$4 sm:$0xff]  }
0x11b6   : > { %v4627_v23 = vpop.xlane.xlu0 %4626  ;;  %14761 = vmatprep.subr.bf16.mxu1 %v15529_v7  ;;  %v15532_v11 = vld [vmem:[%s17926_s29 + $0x19c] ss:$12 sps:$4 sm:$0xff]  }
0x11b7   : > { %16526 = vpow2.f32 %v4635_v12  ;;  %v4637_v0 = vmul.f32 1.442695, %v4632_v57  ;;  %v4633_v13 = vsub.f32 %v4617_v8, %v4627_v23  ;;  %v15533_v12 = vld [vmem:[%s17926_s29 + $0x1a0] ss:$12 sps:$4 sm:$0xff]   ;;  %v15530_v57 = vld [vmem:[%s17926_s29 + $0x198] ss:$12 sps:$4 sm:$0xff]  }
0x11b8   : > { %v4630_v16 = vpop.xlane.xlu1 %4629  ;;  %v15536_v23 = vld [vmem:[%s17926_s29 + $0x1b4] ss:$12 sps:$4 sm:$0xff]  }
0x11b9   : > { %16528 = vpow2.f32 %v4637_v0  ;;  %v4639_v50 = vmul.f32 1.442695, %v4633_v13  ;;  %v4634_v2 = vsub.f32 %v4618_v9, %v4630_v16  ;;  %v15537_v0 = vld [vmem:[%s17926_s29 + $0x1b8] ss:$12 sps:$4 sm:$0xff]   ;;  %v15534_v13 = vld [vmem:[%s17926_s29 + $0x1b0] ss:$12 sps:$4 sm:$0xff]  }
0x11ba   : > { %v15540_v16 = vld [vmem:[%s17926_s29 + $0x1cc] ss:$12 sps:$4 sm:$0xff]  }
0x11bb   : > { %16530 = vpow2.f32 %v4639_v50  ;;  %v4641_v19 = vmul.f32 1.442695, %v4634_v2  ;;  %v15541_v50 = vld [vmem:[%s17926_s29 + $0x1d0] ss:$12 sps:$4 sm:$0xff]   ;;  %v15538_v2 = vld [vmem:[%s17926_s29 + $0x1c8] ss:$12 sps:$4 sm:$0xff]  }
0x11bd   : > { %16532 = vpow2.f32 %v4641_v19  ;;  %v15544_v19 = vld [vmem:[%s17929_s0 + $0x184] ss:$12 sps:$4 sm:$0xff]  }
0x11c1   : > { %v16527_v60 = vpop.eup %16526 }
0x11c2   : > { %v4643_v21 = vsel %vm1907_vm1, %v16527_v60, 0.0 }
0x11c3   : > { %v16529_v52 = vpop.eup %16528  ;;  %4644 = vadd.xlane.f32.xlu0 %v4643_v21  ;;  %v15542_v21 = vld [vmem:[%s17929_s0 + $0x180] ss:$12 sps:$4 sm:$0xff]  }
0x11c4   : > { %v4646_v22 = vsel %vm1907_vm1, %v16529_v52, 0.0 }
0x11c5   : > { %v16531_v58 = vpop.eup %16530  ;;  %4647 = vadd.xlane.f32.xlu1 %v4646_v22  ;;  %v15549_v22 = vld [vmem:[%s17929_s0 + $0x1a0] ss:$12 sps:$4 sm:$0xff]  }
0x11c6   : > { %v4649_v42 = vsel %vm1907_vm1, %v16531_v58, 0.0 }
0x11c7   : > { %v16533_v25 = vpop.eup %16532  ;;  %4650 = vadd.xlane.f32.xlu0 %v4649_v42  ;;  %v15552_v42 = vld [vmem:[%s17929_s0 + $0x1b4] ss:$12 sps:$4 sm:$0xff]  }
0x11c8   : > { %v4652_v49 = vsel %vm1907_vm1, %v16533_v25, 0.0 }
0x11c9   : > { %4653 = vadd.xlane.f32.xlu1 %v4652_v49  ;;  %v15550_v49 = vld [vmem:[%s17929_s0 + $0x1b0] ss:$12 sps:$4 sm:$0xff]  }
0x1250   : > { %v4645_v53 = vpop.xlane.xlu0 %4644 }
0x1251   : > { %16534 = vrcp.f32 %v4645_v53  ;;  %v15558_v53 = vld [vmem:[%s17935_s11 + $0x180] ss:$12 sps:$4 sm:$0xff]  }
0x1252   : > { %v4648_v15 = vpop.xlane.xlu1 %4647 }
0x1253   : > { %16536 = vrcp.f32 %v4648_v15  ;;  %v15564_v15 = vld [vmem:[%s17935_s11 + $0x19c] ss:$12 sps:$4 sm:$0xff]  }
0x1254   : > { %v4651_v54 = vpop.xlane.xlu0 %4650 }
0x1255   : > { %16538 = vrcp.f32 %v4651_v54  ;;  %v15565_v54 = vld [vmem:[%s17935_s11 + $0x1a0] ss:$12 sps:$4 sm:$0xff]  }
0x1256   : > { %v4654_v45 = vpop.xlane.xlu1 %4653 }
0x1257   : > { %16540 = vrcp.f32 %v4654_v45  ;;  %v15562_v45 = vld [vmem:[%s17935_s11 + $0x198] ss:$12 sps:$4 sm:$0xff]  }
0x125b   : > { %v16535_v24 = vpop.eup %16534 }
0x125c   : > { %v4659_v20 = vmul.f32 %v16535_v24, %v16527_v60  ;;  %v15545_v60 = vld [vmem:[%s17929_s0 + $0x188] ss:$12 sps:$4 sm:$0xff]  }
0x125d   : > { %v16537_v61 = vpop.eup %16536  ;;  %v15568_v24 = vld [vmem:[%s17935_s11 + $0x1b4] ss:$12 sps:$4 sm:$0xff]  }
0x125e   : > { %v4660_v59 = vmul.f32 %v16537_v61, %v16529_v52  ;;  %v15548_v52 = vld [vmem:[%s17929_s0 + $0x19c] ss:$12 sps:$4 sm:$0xff]   ;;  %v15569_v61 = vld [vmem:[%s17935_s11 + $0x1b8] ss:$12 sps:$4 sm:$0xff]  }
0x125f   : > { %v16539_v35 = vpop.eup %16538 }
0x1260   : > { %v4663_v63 = vpack.c.bf16 %v4660_v59, %v4659_v20  ;;  %v4661_v31 = vmul.f32 %v16539_v35, %v16531_v58  ;;  %v15546_v58 = vld [vmem:[%s17929_s0 + $0x198] ss:$12 sps:$4 sm:$0xff]   ;;  %v15566_v20 = vld [vmem:[%s17935_s11 + $0x1b0] ss:$12 sps:$4 sm:$0xff]  }
0x1261   : > { %v16541_v1 = vpop.eup %16540  ;;  %v15572_v59 = vld [vmem:[%s17935_s11 + $0x1cc] ss:$12 sps:$4 sm:$0xff]   ;;  %v15573_v35 = vld [vmem:[%s17935_s11 + $0x1d0] ss:$12 sps:$4 sm:$0xff]  }
0x1262   : > { %v4662_v34 = vmul.f32 %v16541_v1, %v16533_v25  ;;  %14745 = vmatprep.mubr.msk.bf16.mxu0 %vm1907_vm1, %v4663_v63  ;;  %v15553_v25 = vld [vmem:[%s17929_s0 + $0x1b8] ss:$12 sps:$4 sm:$0xff]   ;;  %v15570_v63 = vld [vmem:[%s17935_s11 + $0x1c8] ss:$12 sps:$4 sm:$0xff]  }
0x1264   : > { %v4664_v17 = vpack.c.bf16 %v4662_v34, %v4661_v31 }
0x1266   : > { %14746 = vmatmul.mubr.msk.bf16.vlgmr.msra.gmra.mrb[84].mxu0 %vm1907_vm1, %v4664_v17 }
0x1267   : > { %4812 = vmatpush1.bf16.msra.mxu0 %v15510_v3  ;;  %4843 = vmatprep.mubr.bf16.mxu0 %v17232_v51 }
0x1268   : > { %4813 = vmatprep.subr.bf16.mxu0 %v15516_v4 }
0x126b   : > { %4814 = vmatpush1.bf16.msra.mxu0 %v15514_v40 }
0x126c   : > { %4815 = vmatprep.subr.bf16.mxu0 %v15520_v38 }
0x126f   : > { %4816 = vmatpush1.bf16.msra.mxu0 %v15518_v46 }
0x1270   : > { %4817 = vmatprep.subr.bf16.mxu0 %v15524_v5 }
0x1273   : > { %4818 = vmatpush1.bf16.msra.mxu0 %v15522_v44 }
0x1274   : > { %5006 = vmatprep.subr.bf16.mxu0 %v15528_v41 }
0x1339   : > { %v14747_v8 = vpop.f32.mrb[84].mxu0 }
0x133a   : > { %v4707_v37 = vpop.f32.mrb[85].mxu0 }
0x133b   : > { %v14748_v9 = vpop.f32.mrb[86].mxu0 }
0x133c   : > { %v4723_v56 = vpack.c.bf16 %v14748_v9, %v14747_v8  ;;  %v4710_v39 = vpop.f32.mrb[87].mxu0 }
0x133d   : > { %v4722_v62 = vpack.c.bf16 %v4710_v39, %v4707_v37 }
0x133f   : > { %13257 = vmatmul.mubr.msk.bf16.vlgmr.msra.gmra.mrb[36].mxu0 %vm1841_vm0, %v4722_v62  ;;  %14757 = vmatprep.mubr.msk.bf16.mxu1 %vm1841_vm0, %v4722_v62 }
0x1340   : > { %5007 = vmatpush1.bf16.xpose.msra.mxu0 %v15526_v10  ;;  %14758 = vmatmul.mubr.msk.bf16.vlgmr.msra.gmra.mrb[52].mxu1 %vm1841_vm0, %v4723_v56 }
0x1341   : > { %14762 = vmatpush3.bf16.xpose.msra.mxu1 %v15529_v7  ;;  %14769 = vmatprep.mubr.bf16.mxu1 %v18142_v33 }
0x1342   : > { %4853 = vmatprep.mubr.bf16.mxu0 %v17232_v51  ;;  %5008 = vmatprep.subr.bf16.mxu0 %v15532_v11 }
0x1343   : > { %14763 = vmatprep.subr.bf16.mxu1 %v15533_v12 }
0x1347   : > { %13258 = vmatmul.mubr.msk.bf16.gmra.mrb[40].mxu0 %vm1841_vm0, %v4723_v56 }
0x1348   : > { %5009 = vmatpush1.bf16.xpose.msra.mxu0 %v15530_v57  ;;  %5038 = vmatprep.mubr.bf16.mxu0 %v18123_v18 }
0x1349   : > { %14764 = vmatpush3.bf16.xpose.msra.mxu1 %v15533_v12  ;;  %5010 = vmatprep.subr.bf16.mxu0 %v15536_v23 }
0x134a   : > { %14765 = vmatprep.subr.bf16.mxu1 %v15537_v0 }
0x1350   : > { %5011 = vmatpush1.bf16.xpose.msra.mxu0 %v15534_v13 }
0x1351   : > { %14766 = vmatpush3.bf16.xpose.msra.mxu1 %v15537_v0  ;;  %5012 = vmatprep.subr.bf16.mxu0 %v15540_v16 }
0x1352   : > { %14767 = vmatprep.subr.bf16.mxu1 %v15541_v50 }
0x1358   : > { %5013 = vmatpush1.bf16.xpose.msra.mxu0 %v15538_v2 }
0x1359   : > { %14768 = vmatpush3.bf16.xpose.msra.mxu1 %v15541_v50  ;;  %5185 = vmatprep.subr.bf16.mxu0 %v15544_v19 }
0x135a   : > { %14773 = vmatprep.subr.bf16.mxu1 %v15545_v60 }
0x135f   : > { %5039 = vmatmul.mubr.bf16.vlgmr.msra.gmra.mrb[88].mxu0 %v18117_v14 }
0x1360   : > { %5046 = vmatprep.mubr.bf16.mxu0 %v18131_v43  ;;  %14770 = vmatmul.mubr.bf16.vlgmr.msra.gmra.mrb[100].mxu1 %v18157_v55 }
0x1361   : > { %5186 = vmatpush1.bf16.xpose.msra.mxu0 %v15542_v21  ;;  %14774 = vmatpush3.bf16.xpose.msra.mxu1 %v15545_v60 }
0x1362   : > { %14781 = vmatprep.mubr.bf16.mxu1 %v18142_v33  ;;  %5187 = vmatprep.subr.bf16.mxu0 %v15548_v52 }
0x1363   : > { %14775 = vmatprep.subr.bf16.mxu1 %v15549_v22 }
0x1367   : > { %5047 = vmatmul.mubr.bf16.gmra.mrb[92].mxu0 %v18140_v32 }
0x1368   : > { %5217 = vmatprep.mubr.bf16.mxu0 %v18123_v18 }
0x1369   : > { %5188 = vmatpush1.bf16.xpose.msra.mxu0 %v15546_v58  ;;  %14776 = vmatpush3.bf16.xpose.msra.mxu1 %v15549_v22 }
0x136a   : > { %5189 = vmatprep.subr.bf16.mxu0 %v15552_v42  ;;  %14777 = vmatprep.subr.bf16.mxu1 %v15553_v25 }
0x1371   : > { %5190 = vmatpush1.bf16.xpose.msra.mxu0 %v15550_v49  ;;  %14778 = vmatpush3.bf16.xpose.msra.mxu1 %v15553_v25 }
0x1372   : > { %5191 = vmatprep.subr.bf16.mxu0 %v15556_v26  ;;  %14779 = vmatprep.subr.bf16.mxu1 %v15557_v27 }
0x1379   : > { %5192 = vmatpush1.bf16.xpose.msra.mxu0 %v15554_v28  ;;  %14780 = vmatpush3.bf16.xpose.msra.mxu1 %v15557_v27 }
0x137a   : > { %5364 = vmatprep.subr.bf16.mxu0 %v15560_v29  ;;  %14785 = vmatprep.subr.bf16.mxu1 %v15561_v30 }
0x1380   : > { %5218 = vmatmul.mubr.bf16.vlgmr.msra.gmra.mrb[96].mxu0 %v18117_v14  ;;  %14782 = vmatmul.mubr.bf16.vlgmr.msra.gmra.mrb[104].mxu1 %v18157_v55 }
0x1381   : > { %5225 = vmatprep.mubr.bf16.mxu0 %v18131_v43  ;;  %5365 = vmatpush1.bf16.xpose.msra.mxu0 %v15558_v53 }
0x1382   : > { %14786 = vmatpush3.bf16.xpose.msra.mxu1 %v15561_v30  ;;  %14793 = vmatprep.mubr.bf16.mxu1 %v18142_v33 }
0x1383   : > { %5366 = vmatprep.subr.bf16.mxu0 %v15564_v15  ;;  %14787 = vmatprep.subr.bf16.mxu1 %v15565_v54 }
0x1388   : > { %5226 = vmatmul.mubr.bf16.gmra.mrb[100].mxu0 %v18140_v32 }
0x1389   : > { %5367 = vmatpush1.bf16.xpose.msra.mxu0 %v15562_v45  ;;  %5396 = vmatprep.mubr.bf16.mxu0 %v18123_v18 }
0x138a   : > { %14788 = vmatpush3.bf16.xpose.msra.mxu1 %v15565_v54  ;;  %5368 = vmatprep.subr.bf16.mxu0 %v15568_v24 }
0x138b   : > { %14789 = vmatprep.subr.bf16.mxu1 %v15569_v61 }
0x1391   : > { %5369 = vmatpush1.bf16.xpose.msra.mxu0 %v15566_v20 }
0x1392   : > { %14790 = vmatpush3.bf16.xpose.msra.mxu1 %v15569_v61  ;;  %5370 = vmatprep.subr.bf16.mxu0 %v15572_v59 }
0x1393   : > { %14791 = vmatprep.subr.bf16.mxu1 %v15573_v35 }
0x1399   : > { %5371 = vmatpush1.bf16.xpose.msra.mxu0 %v15570_v63 }
0x139a   : > { %14792 = vmatpush3.bf16.xpose.msra.mxu1 %v15573_v35 }
0x13a0   : > { %5397 = vmatmul.mubr.bf16.vlgmr.msra.gmra.mrb[104].mxu0 %v18117_v14 }
0x13a1   : > { %5404 = vmatprep.mubr.bf16.mxu0 %v18131_v43  ;;  %14794 = vmatmul.mubr.bf16.vlgmr.msra.gmra.mrb[108].mxu1 %v18157_v55 }
0x13a8   : > { %5405 = vmatmul.mubr.bf16.gmra.mrb[108].mxu0 %v18140_v32 }
0x1432   : > { %v5040_v1 = vpop.f32.mrb[88].mxu0 }
0x1433   : > { %v5042_v31 = vpop.f32.mrb[89].mxu0  ;;  %v14771_v34 = vpop.f32.mrb[100].mxu1 }
0x1434   : > { %v5043_v3 = vpop.f32.mrb[90].mxu0  ;;  %v5089_v17 = vpop.f32.mrb[101].mxu1 }
0x1435   : > { %v5090_v4 = vadd.f32 %v5089_v17, %v5040_v1  ;;  %v5045_v40 = vpop.f32.mrb[91].mxu0  ;;  %v14772_v38 = vpop.f32.mrb[102].mxu1 }
0x1436   : > { %v5092_v46 = vpop.f32.mrb[103].mxu1 }
0x1437   : > { %v5093_v5 = vadd.f32 %v5092_v46, %v5043_v3 }
0x1439   : > { %v5462_v44 = vpack.c.bf16 %v5093_v5, %v5090_v4 }
0x143a   : > { %v5048_v41 = vpop.f32.mrb[92].mxu0 }
0x143b   : > { %v5098_v7 = vadd.f32 %v14771_v34, %v5048_v41  ;;  %v5050_v8 = vpop.f32.mrb[93].mxu0  ;;  %14801 = vmatprep.mubr.msk.bf16.mxu0 %vm1841_vm0, %v5462_v44  ;;  %v18635_v41 = vld [vmem:[%s19959_s3] sm:$0xff] }
0x143c   : > { %v5051_v37 = vpop.f32.mrb[94].mxu0 }
0x143d   : > { %v5101_v9 = vadd.f32 %v14772_v38, %v5051_v37  ;;  %v5053_v56 = vpop.f32.mrb[95].mxu0  ;;  %v18642_v37 = vld [vmem:[%s19959_s3 + $0x8] sm:$0xff] }
0x143e   : > { %v18648_v56 = vld [vmem:[%s19959_s3 + $0x10] sm:$0xff] }
0x143f   : > { %v5463_v39 = vpack.c.bf16 %v5101_v9, %v5098_v7 }
0x1453   : > { %v5219_v10 = vpop.f32.mrb[96].mxu0  ;;  %v14783_v62 = vpop.f32.mrb[104].mxu1 }
0x1454   : > { %v5221_v11 = vpop.f32.mrb[97].mxu0  ;;  %v5268_v12 = vpop.f32.mrb[105].mxu1 }
0x1455   : > { %v5222_v57 = vpop.f32.mrb[98].mxu0  ;;  %v5269_v23 = vadd.f32 %v5268_v12, %v5219_v10  ;;  %v14784_v0 = vpop.f32.mrb[106].mxu1 }
0x1456   : > { %v5224_v13 = vpop.f32.mrb[99].mxu0  ;;  %v5271_v16 = vpop.f32.mrb[107].mxu1 }
0x1457   : > { %v5272_v50 = vadd.f32 %v5271_v16, %v5222_v57 }
0x1459   : > { %v5464_v2 = vpack.c.bf16 %v5272_v50, %v5269_v23 }
0x145b   : > { %v5227_v19 = vpop.f32.mrb[100].mxu0  ;;  %15121 = vmatprep.subr.msk.bf16.mxu0 %vm1841_vm0, %v5464_v2  ;;  %v5473_v60 = vsel %vm1841_vm0, %v5464_v2, 0 }
0x145c   : > { %v5277_v21 = vadd.f32 %v14783_v62, %v5227_v19  ;;  %v5229_v52 = vpop.f32.mrb[101].mxu0  ;;  %14798 = vmatpush3.bf16.xpose.msra.mxu0 %v5473_v60  ;;  %v18655_v62 = vld [vmem:[%s19959_s3 + $0x18] sm:$0xff] }
0x145d   : > { %v5230_v22 = vpop.f32.mrb[102].mxu0 }
0x145e   : > { %v5280_v58 = vadd.f32 %v14784_v0, %v5230_v22  ;;  %v5232_v42 = vpop.f32.mrb[103].mxu0 }
0x1460   : > { %v5465_v25 = vpack.c.bf16 %v5280_v58, %v5277_v21 }
0x1462   : > { %15122 = vmatprep.subr.msk.bf16.mxu0 %vm1841_vm0, %v5465_v25  ;;  %v5476_v49 = vsel %vm1841_vm0, %v5465_v25, 0 }
0x1464   : > { %14800 = vmatpush3.bf16.xpose.msra.mxu0 %v5476_v49 }
0x146b   : > { %14802 = vmatmul.mubr.msk.bf16.vlgmr.msra.gmra.mrb[112].mxu0 %vm1841_vm0, %v5463_v39 }
0x146c   : > { %5755 = vmatprep.mubr.bf16.mxu0 %v17232_v51 }
0x1473   : > { %v5398_v26 = vpop.f32.mrb[104].mxu0 }
0x1474   : > { %v5400_v27 = vpop.f32.mrb[105].mxu0  ;;  %v14795_v28 = vpop.f32.mrb[108].mxu1 }
0x1475   : > { %v5401_v29 = vpop.f32.mrb[106].mxu0  ;;  %v5447_v30 = vpop.f32.mrb[109].mxu1 }
0x1476   : > { %v5448_v53 = vadd.f32 %v5447_v30, %v5398_v26  ;;  %v5403_v15 = vpop.f32.mrb[107].mxu0  ;;  %v14796_v54 = vpop.f32.mrb[110].mxu1 }
0x1477   : > { %v5450_v45 = vpop.f32.mrb[111].mxu1  ;;  %v15576_v15 = vld [vmem:[%s17938_s2 + $0x184] ss:$12 sps:$4 sm:$0xff]  }
0x1478   : > { %v5451_v24 = vadd.f32 %v5450_v45, %v5401_v29  ;;  %v15580_v45 = vld [vmem:[%s17938_s2 + $0x19c] ss:$12 sps:$4 sm:$0xff]   ;;  %5723 = vmatprep.subr.bf16.mxu0 %v15576_v15  ;;  %v15611_v15 = vld [vmem:[%s17929_s0 + $0x1f8] ss:$12 sps:$4 sm:$0xff]  }
0x147a   : > { %v5577_v61 = vpack.c.bf16 %v5451_v24, %v5448_v53  ;;  %v15574_v53 = vld [vmem:[%s17938_s2 + $0x180] ss:$12 sps:$4 sm:$0xff]   ;;  %v15578_v24 = vld [vmem:[%s17938_s2 + $0x198] ss:$12 sps:$4 sm:$0xff]  }
0x147b   : > { %v5406_v20 = vpop.f32.mrb[108].mxu0  ;;  %5724 = vmatpush1.bf16.msra.mxu0 %v15574_v53  ;;  %v15614_v53 = vld [vmem:[%s17929_s0 + $0x218] ss:$12 sps:$4 sm:$0xff]  }
0x147c   : > { %v5456_v59 = vadd.f32 %v14795_v28, %v5406_v20  ;;  %v5408_v35 = vpop.f32.mrb[109].mxu0  ;;  %14805 = vmatprep.subr.bf16.mxu1 %v5577_v61  ;;  %5725 = vmatprep.subr.bf16.mxu0 %v15580_v45  ;;  %v15582_v20 = vld [vmem:[%s17938_s2 + $0x1b0] ss:$12 sps:$4 sm:$0xff]  }
0x147d   : > { %v5409_v63 = vpop.f32.mrb[110].mxu0  ;;  %14806 = vmatpush3.bf16.msra.mxu1 %v5577_v61  ;;  %v15584_v61 = vld [vmem:[%s17938_s2 + $0x1b4] ss:$12 sps:$4 sm:$0xff]   ;;  %v15618_v45 = vld [vmem:[%s17929_s0 + $0x230] ss:$12 sps:$4 sm:$0xff]  }
0x147e   : > { %v5459_v1 = vadd.f32 %v14796_v54, %v5409_v63  ;;  %v5411_v31 = vpop.f32.mrb[111].mxu0  ;;  %v15577_v54 = vld [vmem:[%s17938_s2 + $0x188] ss:$12 sps:$4 sm:$0xff]  }
0x147f   : > { %5726 = vmatpush1.bf16.msra.mxu0 %v15578_v24  ;;  %v15586_v35 = vld [vmem:[%s17938_s2 + $0x1c8] ss:$12 sps:$4 sm:$0xff]   ;;  %v15615_v24 = vld [vmem:[%s17929_s0 + $0x210] ss:$12 sps:$4 sm:$0xff]  }
0x1480   : > { %v5578_v34 = vpack.c.bf16 %v5459_v1, %v5456_v59  ;;  %5727 = vmatprep.subr.bf16.mxu0 %v15584_v61  ;;  %v15588_v59 = vld [vmem:[%s17938_s2 + $0x1cc] ss:$12 sps:$4 sm:$0xff]  }
0x1481   : > { %v15621_v61 = vld [vmem:[%s17929_s0 + $0x22c] ss:$12 sps:$4 sm:$0xff]  }
0x1482   : > { %14807 = vmatprep.subr.bf16.mxu1 %v5578_v34 }
0x1483   : > { %14808 = vmatpush3.bf16.msra.mxu1 %v5578_v34  ;;  %5728 = vmatpush1.bf16.msra.mxu0 %v15582_v20  ;;  %v15622_v20 = vld [vmem:[%s17935_s11 + $0x1e8] ss:$12 sps:$4 sm:$0xff]  }
0x1484   : > { %14813 = vmatprep.subr.bf16.mxu1 %v15577_v54  ;;  %5729 = vmatprep.subr.bf16.mxu0 %v15588_v59  ;;  %v15619_v59 = vld [vmem:[%s17929_s0 + $0x228] ss:$12 sps:$4 sm:$0xff]  }
0x1487   : > { %5730 = vmatpush1.bf16.msra.mxu0 %v15586_v35  ;;  %v15625_v35 = vld [vmem:[%s17935_s11 + $0x1e4] ss:$12 sps:$4 sm:$0xff]  }
0x153e   : > { %v14803_v3 = vpop.f32.mrb[112].mxu0 }
0x153f   : > { %v5512_v17 = vpop.f32.mrb[113].mxu0  ;;  %v5521_v4 = vadd.f32 0.05103104, %v14803_v3 }
0x1540   : > { %v5513_v40 = vadd.f32 0.05103104, %v5512_v17  ;;  %v14804_v38 = vpop.f32.mrb[114].mxu0 }
0x1541   : > { %v5515_v46 = vpop.f32.mrb[115].mxu0  ;;  %v5524_v5 = vadd.f32 0.05103104, %v14804_v38  ;;  %v5529_v39 = vadd.f32 %v18648_v56, %v5521_v4 }
0x1542   : > { %v5516_v44 = vadd.f32 0.05103104, %v5515_v46  ;;  %v5527_v7 = vadd.f32 %v18635_v41, %v5513_v40 }
0x1543   : > { %v5530_v11 = vadd.f32 %v18655_v62, %v5524_v5  ;;  %v5537_v12 = vsel %vm1907_vm1, %v5529_v39, -inf }
0x1544   : > { %v5531_v8 = vsel %vm1907_vm1, %v5527_v7, -inf  ;;  %v5528_v9 = vadd.f32 %v18642_v37, %v5516_v44 }
0x1545   : > { %5532 = vmax.xlane.f32.xlu0 %v5531_v8  ;;  %v5540_v57 = vsel %vm1907_vm1, %v5530_v11, -inf }
0x1546   : > { %v5534_v10 = vsel %vm1907_vm1, %v5528_v9, -inf }
0x1547   : > { %5535 = vmax.xlane.f32.xlu1 %v5534_v10  ;;  %v15589_v10 = vld [vmem:[%s17938_s2 + $0x1d0] ss:$12 sps:$4 sm:$0xff]  }
0x1549   : > { %5538 = vmax.xlane.f32.xlu0 %v5537_v12  ;;  %v15593_v12 = vld [vmem:[%s17926_s29 + $0x1e4] ss:$12 sps:$4 sm:$0xff]  }
0x154b   : > { %5541 = vmax.xlane.f32.xlu1 %v5540_v57 }
0x15d2   : > { %v5533_v23 = vpop.xlane.xlu0 %5532 }
0x15d3   : > { %v5543_v0 = vsub.f32 %v5527_v7, %v5533_v23 }
0x15d4   : > { %v5536_v13 = vpop.xlane.xlu1 %5535 }
0x15d5   : > { %v5547_v16 = vmul.f32 1.442695, %v5543_v0  ;;  %v5544_v50 = vsub.f32 %v5528_v9, %v5536_v13  ;;  %v15581_v9 = vld [vmem:[%s17938_s2 + $0x1a0] ss:$12 sps:$4 sm:$0xff]  }
0x15d6   : > { %v5539_v2 = vpop.xlane.xlu0 %5538 }
0x15d7   : > { %16542 = vpow2.f32 %v5547_v16  ;;  %v5549_v19 = vmul.f32 1.442695, %v5544_v50  ;;  %v5545_v60 = vsub.f32 %v5529_v39, %v5539_v2  ;;  %v15585_v39 = vld [vmem:[%s17938_s2 + $0x1b8] ss:$12 sps:$4 sm:$0xff]   ;;  %v15591_v2 = vld [vmem:[%s17926_s29 + $0x1e0] ss:$12 sps:$4 sm:$0xff]  }
0x15d8   : > { %v5542_v21 = vpop.xlane.xlu1 %5541 }
0x15d9   : > { %16544 = vpow2.f32 %v5549_v19  ;;  %v5551_v52 = vmul.f32 1.442695, %v5545_v60  ;;  %v5546_v22 = vsub.f32 %v5530_v11, %v5542_v21  ;;  %v15590_v11 = vld [vmem:[%s17926_s29 + $0x1e8] ss:$12 sps:$4 sm:$0xff]   ;;  %v15594_v19 = vld [vmem:[%s17926_s29 + $0x200] ss:$12 sps:$4 sm:$0xff]  }
0x15da   : > { %14825 = vmatprep.subr.bf16.mxu0 %v15590_v11  ;;  %v15597_v60 = vld [vmem:[%s17926_s29 + $0x1fc] ss:$12 sps:$4 sm:$0xff]   ;;  %v15595_v21 = vld [vmem:[%s17926_s29 + $0x1f8] ss:$12 sps:$4 sm:$0xff]  }
0x15db   : > { %16546 = vpow2.f32 %v5551_v52  ;;  %v5553_v58 = vmul.f32 1.442695, %v5546_v22  ;;  %v15598_v52 = vld [vmem:[%s17926_s29 + $0x218] ss:$12 sps:$4 sm:$0xff]   ;;  %v15601_v22 = vld [vmem:[%s17926_s29 + $0x214] ss:$12 sps:$4 sm:$0xff]  }
0x15dd   : > { %16548 = vpow2.f32 %v5553_v58  ;;  %v15599_v58 = vld [vmem:[%s17926_s29 + $0x210] ss:$12 sps:$4 sm:$0xff]  }
0x15e1   : > { %v16543_v42 = vpop.eup %16542 }
0x15e2   : > { %v5555_v25 = vsel %vm1907_vm1, %v16543_v42, 0.0 }
0x15e3   : > { %v16545_v49 = vpop.eup %16544  ;;  %5556 = vadd.xlane.f32.xlu0 %v5555_v25  ;;  %v15605_v25 = vld [vmem:[%s17926_s29 + $0x22c] ss:$12 sps:$4 sm:$0xff]  }
0x15e4   : > { %v5558_v26 = vsel %vm1907_vm1, %v16545_v49, 0.0 }
0x15e5   : > { %v16547_v27 = vpop.eup %16546  ;;  %5559 = vadd.xlane.f32.xlu1 %v5558_v26  ;;  %v15606_v26 = vld [vmem:[%s17929_s0 + $0x1e8] ss:$12 sps:$4 sm:$0xff]  }
0x15e6   : > { %v5561_v28 = vsel %vm1907_vm1, %v16547_v27, 0.0 }
0x15e7   : > { %v16549_v29 = vpop.eup %16548  ;;  %5562 = vadd.xlane.f32.xlu0 %v5561_v28  ;;  %v15607_v28 = vld [vmem:[%s17929_s0 + $0x1e0] ss:$12 sps:$4 sm:$0xff]  }
0x15e8   : > { %v5564_v30 = vsel %vm1907_vm1, %v16549_v29, 0.0 }
0x15e9   : > { %5565 = vadd.xlane.f32.xlu1 %v5564_v30  ;;  %v15613_v30 = vld [vmem:[%s17929_s0 + $0x1fc] ss:$12 sps:$4 sm:$0xff]  }
0x1670   : > { %v5557_v63 = vpop.xlane.xlu0 %5556 }
0x1671   : > { %16550 = vrcp.f32 %v5557_v63  ;;  %v15626_v63 = vld [vmem:[%s17935_s11 + $0x200] ss:$12 sps:$4 sm:$0xff]  }
0x1672   : > { %v5560_v1 = vpop.xlane.xlu1 %5559 }
0x1673   : > { %16552 = vrcp.f32 %v5560_v1  ;;  %v15623_v1 = vld [vmem:[%s17935_s11 + $0x1e0] ss:$12 sps:$4 sm:$0xff]  }
0x1674   : > { %v5563_v31 = vpop.xlane.xlu0 %5562 }
0x1675   : > { %16554 = vrcp.f32 %v5563_v31  ;;  %v15629_v31 = vld [vmem:[%s17935_s11 + $0x1fc] ss:$12 sps:$4 sm:$0xff]  }
0x1676   : > { %v5566_v34 = vpop.xlane.xlu1 %5565 }
0x1677   : > { %16556 = vrcp.f32 %v5566_v34  ;;  %v15630_v34 = vld [vmem:[%s17935_s11 + $0x218] ss:$12 sps:$4 sm:$0xff]  }
0x167b   : > { %v16551_v3 = vpop.eup %16550 }
0x167c   : > { %v5571_v4 = vmul.f32 %v16551_v3, %v16543_v42  ;;  %v15602_v42 = vld [vmem:[%s17926_s29 + $0x230] ss:$12 sps:$4 sm:$0xff]   ;;  %v15627_v3 = vld [vmem:[%s17935_s11 + $0x1f8] ss:$12 sps:$4 sm:$0xff]  }
0x167d   : > { %v16553_v17 = vpop.eup %16552 }
0x167e   : > { %v5572_v40 = vmul.f32 %v16553_v17, %v16545_v49  ;;  %v15603_v49 = vld [vmem:[%s17926_s29 + $0x228] ss:$12 sps:$4 sm:$0xff]   ;;  %s19960_s29 = scalar_lea.vmem [#allocation14], %s17908_s17 }
0x167f   : > { %v16555_v38 = vpop.eup %16554  ;;  %v15633_v17 = vld [vmem:[%s17935_s11 + $0x214] ss:$12 sps:$4 sm:$0xff]  }
0x1680   : > { %v5575_v46 = vpack.c.bf16 %v5572_v40, %v5571_v4  ;;  %v5573_v44 = vmul.f32 %v16555_v38, %v16547_v27  ;;  %v15609_v27 = vld [vmem:[%s17929_s0 + $0x1e4] ss:$12 sps:$4 sm:$0xff]   ;;  %v15637_v40 = vld [vmem:[%s17935_s11 + $0x22c] ss:$12 sps:$4 sm:$0xff]   ;;  %v15635_v38 = vld [vmem:[%s17935_s11 + $0x228] ss:$12 sps:$4 sm:$0xff]  }
0x1681   : > { %v16557_v5 = vpop.eup %16556  ;;  %v15631_v4 = vld [vmem:[%s17935_s11 + $0x210] ss:$12 sps:$4 sm:$0xff]  }
0x1682   : > { %v5574_v7 = vmul.f32 %v16557_v5, %v16549_v29  ;;  %14809 = vmatprep.mubr.msk.bf16.mxu1 %vm1907_vm1, %v5575_v46  ;;  %v15610_v29 = vld [vmem:[%s17929_s0 + $0x200] ss:$12 sps:$4 sm:$0xff]  }
0x1684   : > { %v5576_v8 = vpack.c.bf16 %v5574_v7, %v5573_v44 }
0x1686   : > { %14810 = vmatmul.mubr.msk.bf16.vlgmr.msra.gmra.mrb[112].mxu1 %vm1907_vm1, %v5576_v8 }
0x1687   : > { %14814 = vmatpush3.bf16.msra.mxu1 %v15577_v54  ;;  %v15617_v54 = vld [vmem:[%s17929_s0 + $0x214] ss:$12 sps:$4 sm:$0xff]   ;;  %s19961_s0 = scalar_lea.vmem [#allocation15], %s17908_s17 }
0x1688   : > { %14815 = vmatprep.subr.bf16.mxu1 %v15581_v9 }
0x168b   : > { %14816 = vmatpush3.bf16.msra.mxu1 %v15581_v9 }
0x168c   : > { %14817 = vmatprep.subr.bf16.mxu1 %v15585_v39 }
0x168f   : > { %14818 = vmatpush3.bf16.msra.mxu1 %v15585_v39 }
0x1690   : > { %14819 = vmatprep.subr.bf16.mxu1 %v15589_v10 }
0x1693   : > { %14820 = vmatpush3.bf16.msra.mxu1 %v15589_v10 }
0x1694   : > { %5918 = vmatprep.subr.bf16.mxu1 %v15593_v12 }
0x1759   : > { %v14811_v57 = vpop.f32.mrb[112].mxu1 }
0x175a   : > { %v5619_v23 = vpop.f32.mrb[113].mxu1 }
0x175b   : > { %v14812_v0 = vpop.f32.mrb[114].mxu1 }
0x175c   : > { %v5635_v13 = vpack.c.bf16 %v14812_v0, %v14811_v57  ;;  %v5622_v16 = vpop.f32.mrb[115].mxu1 }
0x175d   : > { %v5634_v50 = vpack.c.bf16 %v5622_v16, %v5619_v23 }
0x175f   : > { %13377 = vmatmul.mubr.msk.bf16.vlgmr.msra.gmra.mrb[36].mxu0 %vm1841_vm0, %v5634_v50  ;;  %14821 = vmatprep.mubr.msk.bf16.mxu1 %vm1841_vm0, %v5634_v50 }
0x1760   : > { %14826 = vmatpush3.bf16.xpose.msra.mxu0 %v15590_v11  ;;  %14822 = vmatmul.mubr.msk.bf16.vlgmr.msra.gmra.mrb[52].mxu1 %vm1841_vm0, %v5635_v13 }
0x1761   : > { %5919 = vmatpush1.bf16.xpose.msra.mxu1 %v15591_v2  ;;  %5950 = vmatprep.mubr.bf16.mxu1 %v18123_v18 }
0x1762   : > { %5765 = vmatprep.mubr.bf16.mxu0 %v17232_v51  ;;  %14827 = vmatprep.subr.bf16.mxu0 %v15594_v19 }
0x1763   : > { %5920 = vmatprep.subr.bf16.mxu1 %v15597_v60 }
0x1767   : > { %13378 = vmatmul.mubr.msk.bf16.gmra.mrb[40].mxu0 %vm1841_vm0, %v5635_v13 }
0x1768   : > { %14828 = vmatpush3.bf16.xpose.msra.mxu0 %v15594_v19  ;;  %14833 = vmatprep.mubr.bf16.mxu0 %v18142_v33 }
0x1769   : > { %5921 = vmatpush1.bf16.xpose.msra.mxu1 %v15595_v21  ;;  %14829 = vmatprep.subr.bf16.mxu0 %v15598_v52 }
0x176a   : > { %5922 = vmatprep.subr.bf16.mxu1 %v15601_v22 }
0x1770   : > { %14830 = vmatpush3.bf16.xpose.msra.mxu0 %v15598_v52 }
0x1771   : > { %5923 = vmatpush1.bf16.xpose.msra.mxu1 %v15599_v58  ;;  %14831 = vmatprep.subr.bf16.mxu0 %v15602_v42 }
0x1772   : > { %5924 = vmatprep.subr.bf16.mxu1 %v15605_v25 }
0x1778   : > { %14832 = vmatpush3.bf16.xpose.msra.mxu0 %v15602_v42 }
0x1779   : > { %5925 = vmatpush1.bf16.xpose.msra.mxu1 %v15603_v49  ;;  %14837 = vmatprep.subr.bf16.mxu0 %v15606_v26 }
0x177a   : > { %6097 = vmatprep.subr.bf16.mxu1 %v15609_v27 }
0x177f   : > { %14834 = vmatmul.mubr.bf16.vlgmr.msra.gmra.mrb[116].mxu0 %v18157_v55 }
0x1780   : > { %5951 = vmatmul.mubr.bf16.vlgmr.msra.gmra.mrb[116].mxu1 %v18117_v14  ;;  %14838 = vmatpush3.bf16.xpose.msra.mxu0 %v15606_v26 }
0x1781   : > { %14845 = vmatprep.mubr.bf16.mxu0 %v18142_v33  ;;  %5958 = vmatprep.mubr.bf16.mxu1 %v18131_v43 }
0x1782   : > { %6098 = vmatpush1.bf16.xpose.msra.mxu1 %v15607_v28  ;;  %14839 = vmatprep.subr.bf16.mxu0 %v15610_v29 }
0x1783   : > { %6099 = vmatprep.subr.bf16.mxu1 %v15613_v30 }
0x1788   : > { %5959 = vmatmul.mubr.bf16.gmra.mrb[120].mxu1 %v18140_v32  ;;  %14840 = vmatpush3.bf16.xpose.msra.mxu0 %v15610_v29 }
0x1789   : > { %6129 = vmatprep.mubr.bf16.mxu1 %v18123_v18  ;;  %14841 = vmatprep.subr.bf16.mxu0 %v15614_v53 }
0x178a   : > { %6100 = vmatpush1.bf16.xpose.msra.mxu1 %v15611_v15 }
0x178b   : > { %6101 = vmatprep.subr.bf16.mxu1 %v15617_v54 }
0x1790   : > { %14842 = vmatpush3.bf16.xpose.msra.mxu0 %v15614_v53 }
0x1791   : > { %14843 = vmatprep.subr.bf16.mxu0 %v15618_v45 }
0x1792   : > { %6102 = vmatpush1.bf16.xpose.msra.mxu1 %v15615_v24 }
0x1793   : > { %6103 = vmatprep.subr.bf16.mxu1 %v15621_v61 }
0x1798   : > { %14844 = vmatpush3.bf16.xpose.msra.mxu0 %v15618_v45 }
0x1799   : > { %14849 = vmatprep.subr.bf16.mxu0 %v15622_v20 }
0x179a   : > { %6104 = vmatpush1.bf16.xpose.msra.mxu1 %v15619_v59 }
0x179b   : > { %6276 = vmatprep.subr.bf16.mxu1 %v15625_v35 }
0x179f   : > { %14846 = vmatmul.mubr.bf16.vlgmr.msra.gmra.mrb[120].mxu0 %v18157_v55 }
0x17a0   : > { %14850 = vmatpush3.bf16.xpose.msra.mxu0 %v15622_v20  ;;  %14857 = vmatprep.mubr.bf16.mxu0 %v18142_v33  ;;  %v15634_v33 = vld [vmem:[%s17935_s11 + $0x230] ss:$12 sps:$4 sm:$0xff]   ;;  %s19962_s11 = scalar_lea.vmem [#allocation17], %s17908_s17 }
0x17a1   : > { %6130 = vmatmul.mubr.bf16.vlgmr.msra.gmra.mrb[124].mxu1 %v18117_v14  ;;  %14851 = vmatprep.subr.bf16.mxu0 %v15626_v63 }
0x17a2   : > { %6137 = vmatprep.mubr.bf16.mxu1 %v18131_v43  ;;  %6277 = vmatpush1.bf16.xpose.msra.mxu1 %v15623_v1 }
0x17a3   : > { %6278 = vmatprep.subr.bf16.mxu1 %v15629_v31 }
0x17a8   : > { %14852 = vmatpush3.bf16.xpose.msra.mxu0 %v15626_v63 }
0x17a9   : > { %6138 = vmatmul.mubr.bf16.gmra.mrb[128].mxu1 %v18140_v32  ;;  %14853 = vmatprep.subr.bf16.mxu0 %v15630_v34 }
0x17aa   : > { %6279 = vmatpush1.bf16.xpose.msra.mxu1 %v15627_v3  ;;  %6308 = vmatprep.mubr.bf16.mxu1 %v18123_v18 }
0x17ab   : > { %6280 = vmatprep.subr.bf16.mxu1 %v15633_v17 }
0x17b0   : > { %14854 = vmatpush3.bf16.xpose.msra.mxu0 %v15630_v34 }
0x17b1   : > { %14855 = vmatprep.subr.bf16.mxu0 %v15634_v33 }
0x17b2   : > { %6281 = vmatpush1.bf16.xpose.msra.mxu1 %v15631_v4 }
0x17b3   : > { %6282 = vmatprep.subr.bf16.mxu1 %v15637_v40 }
0x17b8   : > { %14856 = vmatpush3.bf16.xpose.msra.mxu0 %v15634_v33 }
0x17ba   : > { %6283 = vmatpush1.bf16.xpose.msra.mxu1 %v15635_v38 }
0x17bf   : > { %14858 = vmatmul.mubr.bf16.vlgmr.msra.gmra.mrb[124].mxu0 %v18157_v55 }
0x17c1   : > { %6309 = vmatmul.mubr.bf16.vlgmr.msra.gmra.mrb[132].mxu1 %v18117_v14 }
0x17c2   : > { %6316 = vmatprep.mubr.bf16.mxu1 %v18131_v43 }
0x17c9   : > { %6317 = vmatmul.mubr.bf16.gmra.mrb[136].mxu1 %v18140_v32 }
0x1852   : > { %v14835_v18 = vpop.f32.mrb[116].mxu0 }
0x1853   : > { %v5952_v46 = vpop.f32.mrb[116].mxu1  ;;  %v6001_v5 = vpop.f32.mrb[117].mxu0 }
0x1854   : > { %v6002_v44 = vadd.f32 %v6001_v5, %v5952_v46  ;;  %v5954_v7 = vpop.f32.mrb[117].mxu1  ;;  %v14836_v8 = vpop.f32.mrb[118].mxu0 }
0x1855   : > { %v5955_v9 = vpop.f32.mrb[118].mxu1  ;;  %v6004_v39 = vpop.f32.mrb[119].mxu0 }
0x1856   : > { %v6005_v10 = vadd.f32 %v6004_v39, %v5955_v9  ;;  %v5957_v11 = vpop.f32.mrb[119].mxu1 }
0x1858   : > { %v6374_v12 = vpack.c.bf16 %v6005_v10, %v6002_v44 }
0x185a   : > { %14865 = vmatprep.mubr.msk.bf16.mxu1 %vm1841_vm0, %v6374_v12 }
0x185b   : > { %v5960_v55 = vpop.f32.mrb[120].mxu1 }
0x185c   : > { %v6010_v57 = vadd.f32 %v14835_v18, %v5960_v55  ;;  %v5962_v14 = vpop.f32.mrb[121].mxu1 }
0x185d   : > { %v5963_v23 = vpop.f32.mrb[122].mxu1 }
0x185e   : > { %v6013_v43 = vadd.f32 %v14836_v8, %v5963_v23  ;;  %v5965_v0 = vpop.f32.mrb[123].mxu1 }
0x1860   : > { %v6375_v32 = vpack.c.bf16 %v6013_v43, %v6010_v57 }
0x1872   : > { %v14847_v13 = vpop.f32.mrb[120].mxu0 }
0x1873   : > { %v6180_v16 = vpop.f32.mrb[121].mxu0 }
0x1874   : > { %v6131_v50 = vpop.f32.mrb[124].mxu1  ;;  %v14848_v2 = vpop.f32.mrb[122].mxu0 }
0x1875   : > { %v6181_v19 = vadd.f32 %v6180_v16, %v6131_v50  ;;  %v6133_v60 = vpop.f32.mrb[125].mxu1  ;;  %v6183_v21 = vpop.f32.mrb[123].mxu0 }
0x1876   : > { %v6134_v52 = vpop.f32.mrb[126].mxu1 }
0x1877   : > { %v6184_v22 = vadd.f32 %v6183_v21, %v6134_v52  ;;  %v6136_v58 = vpop.f32.mrb[127].mxu1 }
0x1879   : > { %v6376_v42 = vpack.c.bf16 %v6184_v22, %v6181_v19 }
0x187b   : > { %15123 = vmatprep.subr.msk.bf16.mxu1 %vm1841_vm0, %v6376_v42  ;;  %v6385_v25 = vsel %vm1841_vm0, %v6376_v42, 0 }
0x187c   : > { %v6139_v49 = vpop.f32.mrb[128].mxu1  ;;  %14862 = vmatpush3.bf16.xpose.msra.mxu1 %v6385_v25 }
0x187d   : > { %v6189_v26 = vadd.f32 %v14847_v13, %v6139_v49  ;;  %v6141_v27 = vpop.f32.mrb[129].mxu1 }
0x187e   : > { %v6142_v28 = vpop.f32.mrb[130].mxu1 }
0x187f   : > { %v6192_v29 = vadd.f32 %v14848_v2, %v6142_v28  ;;  %v6144_v30 = vpop.f32.mrb[131].mxu1  ;;  %v15640_v28 = vld [vmem:[%s17938_s2 + $0x1e4] ss:$12 sps:$4 sm:$0xff]  }
0x1880   : > { %v15645_v30 = vld [vmem:[%s17938_s2 + $0x200] ss:$12 sps:$4 sm:$0xff]  }
0x1881   : > { %v6377_v53 = vpack.c.bf16 %v6192_v29, %v6189_v26  ;;  %v15641_v29 = vld [vmem:[%s17938_s2 + $0x1e8] ss:$12 sps:$4 sm:$0xff]  }
0x1883   : > { %15124 = vmatprep.subr.msk.bf16.mxu1 %vm1841_vm0, %v6377_v53  ;;  %v6388_v15 = vsel %vm1841_vm0, %v6377_v53, 0  ;;  %v15649_v53 = vld [vmem:[%s17938_s2 + $0x218] ss:$12 sps:$4 sm:$0xff]  }
0x1884   : > { %14864 = vmatpush3.bf16.xpose.msra.mxu1 %v6388_v15 }
0x1885   : > { %14877 = vmatprep.subr.bf16.mxu1 %v15641_v29 }
0x188b   : > { %14866 = vmatmul.mubr.msk.bf16.vlgmr.msra.gmra.mrb[140].mxu1 %vm1841_vm0, %v6375_v32 }
0x188c   : > { %14878 = vmatpush3.bf16.msra.mxu1 %v15641_v29 }
0x188d   : > { %14879 = vmatprep.subr.bf16.mxu1 %v15645_v30 }
0x1890   : > { %14880 = vmatpush3.bf16.msra.mxu1 %v15645_v30 }
0x1891   : > { %14881 = vmatprep.subr.bf16.mxu1 %v15649_v53 }
0x1892   : > { %v14859_v54 = vpop.f32.mrb[124].mxu0 }
0x1893   : > { %v6359_v45 = vpop.f32.mrb[125].mxu0 }
0x1894   : > { %v6310_v24 = vpop.f32.mrb[132].mxu1  ;;  %v14860_v61 = vpop.f32.mrb[126].mxu0  ;;  %14882 = vmatpush3.bf16.msra.mxu1 %v15649_v53 }
0x1895   : > { %v6360_v20 = vadd.f32 %v6359_v45, %v6310_v24  ;;  %v6312_v59 = vpop.f32.mrb[133].mxu1  ;;  %v6362_v35 = vpop.f32.mrb[127].mxu0 }
0x1896   : > { %v6313_v63 = vpop.f32.mrb[134].mxu1 }
0x1897   : > { %v6363_v1 = vadd.f32 %v6362_v35, %v6313_v63  ;;  %v6315_v31 = vpop.f32.mrb[135].mxu1 }
0x1899   : > { %v6489_v34 = vpack.c.bf16 %v6363_v1, %v6360_v20 }
0x189b   : > { %14869 = vmatprep.subr.bf16.mxu0 %v6489_v34 }
0x189c   : > { %v6318_v3 = vpop.f32.mrb[136].mxu1  ;;  %14870 = vmatpush3.bf16.msra.mxu0 %v6489_v34 }
0x189d   : > { %v6368_v17 = vadd.f32 %v14859_v54, %v6318_v3  ;;  %v6320_v33 = vpop.f32.mrb[137].mxu1 }
0x189e   : > { %v6321_v4 = vpop.f32.mrb[138].mxu1 }
0x189f   : > { %v6371_v40 = vadd.f32 %v14860_v61, %v6321_v4  ;;  %v6323_v38 = vpop.f32.mrb[139].mxu1  ;;  %v15644_v4 = vld [vmem:[%s17938_s2 + $0x1fc] ss:$12 sps:$4 sm:$0xff]  }
0x18a0   : > { %v15648_v38 = vld [vmem:[%s17938_s2 + $0x214] ss:$12 sps:$4 sm:$0xff]  }
0x18a1   : > { %v6490_v18 = vpack.c.bf16 %v6371_v40, %v6368_v17  ;;  %v15638_v17 = vld [vmem:[%s17938_s2 + $0x1e0] ss:$12 sps:$4 sm:$0xff]   ;;  %v15642_v40 = vld [vmem:[%s17938_s2 + $0x1f8] ss:$12 sps:$4 sm:$0xff]  }
0x18a3   : > { %14871 = vmatprep.subr.bf16.mxu0 %v6490_v18 }
0x18a4   : > { %14872 = vmatpush3.bf16.msra.mxu0 %v6490_v18  ;;  %v15646_v18 = vld [vmem:[%s17938_s2 + $0x210] ss:$12 sps:$4 sm:$0xff]  }
0x18a5   : > { %6635 = vmatprep.subr.bf16.mxu0 %v15640_v28 }
0x195e   : > { %v14867_v46 = vpop.f32.mrb[140].mxu1 }
0x195f   : > { %v6424_v5 = vpop.f32.mrb[141].mxu1  ;;  %v6433_v44 = vadd.f32 0.05103104, %v14867_v46  ;;  %v15652_v46 = vld [vmem:[%s17938_s2 + $0x22c] ss:$12 sps:$4 sm:$0xff]  }
0x1960   : > { %v6425_v7 = vadd.f32 0.05103104, %v6424_v5  ;;  %v14868_v8 = vpop.f32.mrb[142].mxu1  ;;  %v15650_v5 = vld [vmem:[%s17938_s2 + $0x228] ss:$12 sps:$4 sm:$0xff]  }
0x1961   : > { %v6427_v9 = vpop.f32.mrb[143].mxu1  ;;  %v6436_v39 = vadd.f32 0.05103104, %v14868_v8  ;;  %v6441_v57 = vadd.f32 %v18648_v56, %v6433_v44  ;;  %v15653_v44 = vld [vmem:[%s17938_s2 + $0x230] ss:$12 sps:$4 sm:$0xff]   ;;  %s19963_s2 = scalar_lea.vmem [#allocation23], %s17908_s17 }
0x1962   : > { %v6428_v10 = vadd.f32 0.05103104, %v6427_v9  ;;  %v6439_v11 = vadd.f32 %v18635_v41, %v6425_v7  ;;  %14883 = vmatprep.subr.bf16.mxu1 %v15653_v44  ;;  %s19964_s17 = sld [smem:[#allocation42_spill]] }
0x1963   : > { %v6442_v23 = vadd.f32 %v18655_v62, %v6436_v39  ;;  %v6449_v43 = vsel %vm1907_vm1, %v6441_v57, -inf  ;;  %14884 = vmatpush3.bf16.msra.mxu1 %v15653_v44 }
0x1964   : > { %v6443_v12 = vsel %vm1907_vm1, %v6439_v11, -inf  ;;  %v6440_v55 = vadd.f32 %v18642_v37, %v6428_v10 }
0x1965   : > { %6444 = vmax.xlane.f32.xlu0 %v6443_v12  ;;  %v6452_v0 = vsel %vm1907_vm1, %v6442_v23, -inf  ;;  %v6761_v12 = vld [vmem:[%s19960_s29] sm:$0x7] }
0x1966   : > { %v6446_v14 = vsel %vm1907_vm1, %v6440_v55, -inf }
0x1967   : > { %6447 = vmax.xlane.f32.xlu1 %v6446_v14  ;;  %v6770_v14 = vrot.slane %v6761_v12, %v18094_v48 }
0x1968   : > { %p14077_p2 = scmp.ne.s32.totalorder %s19964_s17, 5 }
0x1969   : > { %6450 = vmax.xlane.f32.xlu0 %v6449_v43 }
0x196b   : > { %6453 = vmax.xlane.f32.xlu1 %v6452_v0 }
0x19f2   : > { %v6445_v32 = vpop.xlane.xlu0 %6444 }
0x19f3   : > { %v6455_v41 = vsub.f32 %v6439_v11, %v6445_v32 }
0x19f4   : > { %v6448_v13 = vpop.xlane.xlu1 %6447 }
0x19f5   : > { %v6459_v16 = vmul.f32 1.442695, %v6455_v41  ;;  %v6456_v50 = vsub.f32 %v6440_v55, %v6448_v13  ;;  %v6766_v55 = vrot.slane %v6761_v12, %v18091_v47  ;;  %v6774_v41 = vrot.slane %v6761_v12, %v18111_v6  ;;  %v16591_v13 = vld [vmem:[#allocation2 + $0x8] sm:$0xff] }
0x19f6   : > { %v6451_v37 = vpop.xlane.xlu0 %6450 }
0x19f7   : > { %16558 = vpow2.f32 %v6459_v16  ;;  %v6461_v56 = vmul.f32 1.442695, %v6456_v50  ;;  %v6457_v2 = vsub.f32 %v6441_v57, %v6451_v37 }
0x19f8   : > { %v6454_v19 = vpop.xlane.xlu1 %6453 }
0x19f9   : > { %16560 = vpow2.f32 %v6461_v56  ;;  %v6463_v60 = vmul.f32 1.442695, %v6457_v2  ;;  %v6458_v62 = vsub.f32 %v6442_v23, %v6454_v19  ;;  %v16590_v23 = vld [vmem:[#allocation2] sm:$0xff]  ;;  %v16592_v2 = vld [vmem:[#allocation2 + $0x18] sm:$0xff] }
0x19fb   : > { %16562 = vpow2.f32 %v6463_v60  ;;  %v6465_v21 = vmul.f32 1.442695, %v6458_v62  ;;  %v16593_v60 = vld [vmem:[#allocation2 + $0x10] sm:$0xff] }
0x19fd   : > { %16564 = vpow2.f32 %v6465_v21 }
0x1a01   : > { %v16559_v52 = vpop.eup %16558 }
0x1a02   : > { %v6467_v22 = vsel %vm1907_vm1, %v16559_v52, 0.0 }
0x1a03   : > { %v16561_v58 = vpop.eup %16560  ;;  %6468 = vadd.xlane.f32.xlu0 %v6467_v22 }
0x1a04   : > { %v6470_v42 = vsel %vm1907_vm1, %v16561_v58, 0.0 }
0x1a05   : > { %v16563_v25 = vpop.eup %16562  ;;  %6471 = vadd.xlane.f32.xlu1 %v6470_v42 }
0x1a06   : > { %v6473_v49 = vsel %vm1907_vm1, %v16563_v25, 0.0 }
0x1a07   : > { %v16565_v26 = vpop.eup %16564  ;;  %6474 = vadd.xlane.f32.xlu0 %v6473_v49 }
0x1a08   : > { %v6476_v27 = vsel %vm1907_vm1, %v16565_v26, 0.0 }
0x1a09   : > { %6477 = vadd.xlane.f32.xlu1 %v6476_v27  ;;  %v16595_v27 = vld [vmem:[#allocation2 + $0x28] sm:$0xff] }
0x1a90   : > { %v6469_v15 = vpop.xlane.xlu0 %6468 }
0x1a91   : > { %16566 = vrcp.f32 %v6469_v15 }
0x1a92   : > { %v6472_v54 = vpop.xlane.xlu1 %6471 }
0x1a93   : > { %16568 = vrcp.f32 %v6472_v54 }
0x1a94   : > { %v6475_v45 = vpop.xlane.xlu0 %6474 }
0x1a95   : > { %16570 = vrcp.f32 %v6475_v45 }
0x1a96   : > { %v6478_v24 = vpop.xlane.xlu1 %6477 }
0x1a97   : > { %16572 = vrcp.f32 %v6478_v24  ;;  %v16596_v24 = vld [vmem:[#allocation2 + $0x30] sm:$0xff] }
0x1a9b   : > { %v16567_v61 = vpop.eup %16566 }
0x1a9c   : > { %v6483_v59 = vmul.f32 %v16567_v61, %v16559_v52 }
0x1a9d   : > { %v16569_v20 = vpop.eup %16568 }
0x1a9e   : > { %v6484_v35 = vmul.f32 %v16569_v20, %v16561_v58  ;;  %v16594_v58 = vld [vmem:[#allocation2 + $0x20] sm:$0xff] }
0x1a9f   : > { %v16571_v63 = vpop.eup %16570 }
0x1aa0   : > { %v6487_v1 = vpack.c.bf16 %v6484_v35, %v6483_v59  ;;  %v6485_v34 = vmul.f32 %v16571_v63, %v16563_v25  ;;  %v16597_v59 = vld [vmem:[#allocation2 + $0x40] sm:$0xff]  ;;  %v16598_v63 = vld [vmem:[#allocation2 + $0x38] sm:$0xff] }
0x1aa1   : > { %v16573_v31 = vpop.eup %16572 }
0x1aa2   : > { %v6486_v3 = vmul.f32 %v16573_v31, %v16565_v26  ;;  %14873 = vmatprep.mubr.msk.bf16.mxu0 %vm1907_vm1, %v6487_v1 }
0x1aa4   : > { %v6488_v33 = vpack.c.bf16 %v6486_v3, %v6485_v34 }
0x1aa6   : > { %14874 = vmatmul.mubr.msk.bf16.vlgmr.msra.gmra.mrb[128].mxu0 %vm1907_vm1, %v6488_v33 }
0x1aa7   : > { %6636 = vmatpush1.bf16.msra.mxu0 %v15638_v17  ;;  %6667 = vmatprep.mubr.bf16.mxu0 %v17232_v51  ;;  %v16599_v17 = vld [vmem:[#allocation2 + $0x48] sm:$0xff] }
0x1aa8   : > { %6637 = vmatprep.subr.bf16.mxu0 %v15644_v4 }
0x1aab   : > { %6638 = vmatpush1.bf16.msra.mxu0 %v15642_v40  ;;  %v16600_v40 = vld [vmem:[#allocation2 + $0x58] sm:$0xff] }
0x1aac   : > { %6639 = vmatprep.subr.bf16.mxu0 %v15648_v38 }
0x1aaf   : > { %6640 = vmatpush1.bf16.msra.mxu0 %v15646_v18 }
0x1ab0   : > { %6641 = vmatprep.subr.bf16.mxu0 %v15652_v46  ;;  %v16601_v46 = vld [vmem:[#allocation2 + $0x50] sm:$0xff] }
0x1ab3   : > { %6642 = vmatpush1.bf16.msra.mxu0 %v15650_v5 }
0x1b79   : > { %v14875_v7 = vpop.f32.mrb[128].mxu0 }
0x1b7a   : > { %v6531_v8 = vpop.f32.mrb[129].mxu0 }
0x1b7b   : > { %v14876_v9 = vpop.f32.mrb[130].mxu0 }
0x1b7c   : > { %v6547_v39 = vpack.c.bf16 %v14876_v9, %v14875_v7  ;;  %v6534_v10 = vpop.f32.mrb[131].mxu0 }
0x1b7d   : > { %v6546_v11 = vpack.c.bf16 %v6534_v10, %v6531_v8 }
0x1b7f   : > { %13497 = vmatmul.mubr.msk.bf16.vlgmr.msra.gmra.mrb[36].mxu0 %vm1841_vm0, %v6546_v11  ;;  %14885 = vmatprep.mubr.msk.bf16.mxu1 %vm1841_vm0, %v6546_v11 }
0x1b80   : > { %14886 = vmatmul.mubr.msk.bf16.vlgmr.msra.gmra.mrb[52].mxu1 %vm1841_vm0, %v6547_v39  ;;  %6677 = vmatprep.mubr.bf16.mxu0 %v17232_v51 }
0x1b87   : > { %13498 = vmatmul.mubr.msk.bf16.gmra.mrb[40].mxu0 %vm1841_vm0, %v6547_v39 }
0x1b88   : > { %8815 = vmatprep.mubr.bf16.mxu0 %v17232_v51 }
0x1c52   : > { %v6669_v57 = vpop.f32.mrb[36].mxu0 }
0x1c53   : > { %v6749_v43 = vadd.f32 %v16590_v23, %v6669_v57  ;;  %v6671_v0 = vpop.f32.mrb[37].mxu0  ;;  %v14887_v32 = vpop.f32.mrb[52].mxu1  ;;  %v15656_v57 = vld [vmem:[%s17954_s9 + $0x4] ss:$48 sps:$4 sm:$0xff]   ;;  %v15657_v23 = vld [vmem:[%s17954_s9 + $0x60] ss:$48 sps:$4 sm:$0xff]  }
0x1c54   : > { %v6750_v16 = vadd.f32 %v16591_v13, %v6671_v0  ;;  %v6673_v50 = vpop.f32.mrb[38].mxu0  ;;  %v6722_v37 = vpop.f32.mrb[53].mxu1  ;;  %v6757_v35 = vadd.f32 %v16597_v59, %v14887_v32  ;;  %8730 = vmatprep.subr.bf16.mxu1 %v15656_v57  ;;  %v15678_v0 = vld [vmem:[%s17954_s9 + $0x600] ss:$48 sps:$4 sm:$0xff]   ;;  %v15680_v32 = vld [vmem:[%s17954_s9 + $0x604] ss:$48 sps:$4 sm:$0xff]  }
0x1c55   : > { %v18781_v56 = vadd.f32 %v6766_v55, %v6749_v43  ;;  %v6752_v19 = vadd.f32 %v16592_v2, %v6673_v50  ;;  %v6751_v62 = vadd.f32 %v16593_v60, %v6722_v37  ;;  %v6675_v21 = vpop.f32.mrb[39].mxu0  ;;  %v14888_v52 = vpop.f32.mrb[54].mxu1  ;;  %v15662_v43 = vld [vmem:[%s17954_s9 + $0xc4] ss:$48 sps:$4 sm:$0xff]   ;;  %8783 = vmatprep.subr.bf16.mxu0 %v15680_v32  ;;  %v15684_v50 = vld [vmem:[%s17954_s9 + $0x660] ss:$48 sps:$4 sm:$0xff]  }
0x1c56   : > { %v18783_v22 = vadd.f32 %v6770_v14, %v6750_v16  ;;  %v6753_v42 = vadd.f32 %v16594_v58, %v6675_v21  ;;  %v6725_v25 = vpop.f32.mrb[55].mxu1  ;;  %v6760_v38 = vadd.f32 %v16600_v40, %v14888_v52  ;;  %v18805_v7 = vadd.f32 %v6774_v41, %v6757_v35  ;;  %v15686_v13 = vld [vmem:[%s17954_s9 + $0x664] ss:$48 sps:$4 sm:$0xff]   ;;  %8784 = vmatpush1.bf16.msra.mxu0 %v15678_v0  ;;  %v15663_v37 = vld [vmem:[%s17954_s9 + $0x120] ss:$48 sps:$4 sm:$0xff]  }
0x1c57   : > { %v18785_v49 = vadd.f32 %v6766_v55, %v6752_v19  ;;  %v18787_v26 = vadd.f32 %v6774_v41, %v6751_v62  ;;  %v6754_v28 = vadd.f32 %v16595_v27, %v6725_v25  ;;  %v15665_v16 = vld [vmem:[%s17954_s9 + $0x124] ss:$48 sps:$4 sm:$0xff]   ;;  %8785 = vmatprep.subr.bf16.mxu0 %v15686_v13  ;;  %v15666_v19 = vld [vmem:[%s17954_s9 + $0x180] ss:$48 sps:$4 sm:$0xff]  }
0x1c58   : > { %v18789_v29 = vadd.f32 %v6770_v14, %v6753_v42  ;;  %v6792_v30 = vadd.f32 %v18783_v22, %v18781_v56  ;;  %v18811_v39 = vadd.f32 %v6774_v41, %v6760_v38  ;;  %v15668_v2 = vld [vmem:[%s17954_s9 + $0x184] ss:$48 sps:$4 sm:$0xff]   ;;  %v15669_v62 = vld [vmem:[%s17954_s9 + $0x1e0] ss:$48 sps:$4 sm:$0xff]  }
0x1c59   : > { %v18793_v53 = vadd.f32 %v6774_v41, %v6754_v28  ;;  %v15660_v41 = vld [vmem:[%s17954_s9 + $0xc0] ss:$48 sps:$4 sm:$0xff]   ;;  %v15671_v60 = vld [vmem:[%s17954_s9 + $0x1e4] ss:$48 sps:$4 sm:$0xff]  }
0x1c5a   : > { %v6679_v15 = vpop.f32.mrb[40].mxu0  ;;  %v6793_v54 = vadd.f32 %v6792_v30, %v18787_v26  ;;  %v6796_v45 = vadd.f32 %v18789_v29, %v18785_v49  ;;  %8786 = vmatpush1.bf16.msra.mxu0 %v15684_v50  ;;  %v15674_v21 = vld [vmem:[%s17954_s9 + $0x244] ss:$48 sps:$4 sm:$0xff]   ;;  %v15672_v52 = vld [vmem:[%s17954_s9 + $0x240] ss:$48 sps:$4 sm:$0xff]  }
0x1c5b   : > { %v6755_v61 = vadd.f32 %v16596_v24, %v6679_v15  ;;  %v6681_v20 = vpop.f32.mrb[41].mxu0  ;;  %v15677_v58 = vld [vmem:[%s17954_s9 + $0x2a4] ss:$48 sps:$4 sm:$0xff]   ;;  %v15675_v42 = vld [vmem:[%s17954_s9 + $0x2a0] ss:$48 sps:$4 sm:$0xff]  }
0x1c5c   : > { %v6756_v1 = vadd.f32 %v16598_v63, %v6681_v20  ;;  %6794 = vadd.xlane.f32.xlu0 %v6793_v54  ;;  %v6683_v31 = vpop.f32.mrb[42].mxu0  ;;  %v6797_v34 = vadd.f32 %v6796_v45, %v18793_v53  ;;  %v15683_v25 = vld [vmem:[%s17954_s9 + $0x304] ss:$48 sps:$4 sm:$0xff]   ;;  %v15681_v27 = vld [vmem:[%s17954_s9 + $0x300] ss:$48 sps:$4 sm:$0xff]  }
0x1c5d   : > { %v18799_v3 = vadd.f32 %v6766_v55, %v6755_v61  ;;  %v6758_v33 = vadd.f32 %v16599_v17, %v6683_v31  ;;  %v6685_v4 = vpop.f32.mrb[43].mxu0  ;;  %v15689_v28 = vld [vmem:[%s17954_s9 + $0x364] ss:$48 sps:$4 sm:$0xff]   ;;  %v15687_v30 = vld [vmem:[%s17954_s9 + $0x360] ss:$48 sps:$4 sm:$0xff]  }
0x1c5e   : > { %v18801_v18 = vadd.f32 %v6770_v14, %v6756_v1  ;;  %v6759_v5 = vadd.f32 %v16601_v46, %v6685_v4  ;;  %6798 = vadd.xlane.f32.xlu1 %v6797_v34 }
0x1c5f   : > { %v18803_v44 = vadd.f32 %v6766_v55, %v6758_v33  ;;  %v15654_v55 = vld [vmem:[%s17954_s9] ss:$48 sps:$4 sm:$0xff]  }
0x1c60   : > { %v18807_v8 = vadd.f32 %v6770_v14, %v6759_v5  ;;  %v6800_v9 = vadd.f32 %v18801_v18, %v18799_v3  ;;  %v15659_v14 = vld [vmem:[%s17954_s9 + $0x64] ss:$48 sps:$4 sm:$0xff]   ;;  %8731 = vmatpush1.bf16.msra.mxu1 %v15654_v55 }
0x1c61   : > { %8732 = vmatprep.subr.bf16.mxu1 %v15659_v14 }
0x1c62   : > { %v6801_v10 = vadd.f32 %v6800_v9, %v18805_v7  ;;  %v6804_v11 = vadd.f32 %v18807_v8, %v18803_v44 }
0x1c64   : > { %6802 = vadd.xlane.f32.xlu0 %v6801_v10  ;;  %v6805_v12 = vadd.f32 %v6804_v11, %v18811_v39  ;;  %8733 = vmatpush1.bf16.msra.mxu1 %v15657_v23 }
0x1c65   : > { %8734 = vmatprep.subr.bf16.mxu1 %v15662_v43 }
0x1c66   : > { %6806 = vadd.xlane.f32.xlu1 %v6805_v12 }
0x1c68   : > { %8735 = vmatpush1.bf16.msra.mxu1 %v15660_v41 }
0x1c69   : > { %8736 = vmatprep.subr.bf16.mxu1 %v15665_v16 }
0x1c6c   : > { %8737 = vmatpush1.bf16.msra.mxu1 %v15663_v37 }
0x1c6d   : > { %8738 = vmatprep.subr.bf16.mxu1 %v15668_v2 }
0x1c70   : > { %8739 = vmatpush1.bf16.msra.mxu1 %v15666_v19 }
0x1c71   : > { %8740 = vmatprep.subr.bf16.mxu1 %v15671_v60 }
0x1c74   : > { %8741 = vmatpush1.bf16.msra.mxu1 %v15669_v62 }
0x1c75   : > { %8742 = vmatprep.subr.bf16.mxu1 %v15674_v21 }
0x1c78   : > { %8743 = vmatpush1.bf16.msra.mxu1 %v15672_v52  ;;  %v15692_v52 = vld [vmem:[%s17954_s9 + $0x6c4] ss:$48 sps:$4 sm:$0xff]  }
0x1c79   : > { %8744 = vmatprep.subr.bf16.mxu1 %v15677_v58  ;;  %v15690_v58 = vld [vmem:[%s17954_s9 + $0x6c0] ss:$48 sps:$4 sm:$0xff]   ;;  %8787 = vmatprep.subr.bf16.mxu0 %v15692_v52 }
0x1c7a   : > { %8788 = vmatpush1.bf16.msra.mxu0 %v15690_v58 }
0x1c7c   : > { %8745 = vmatpush1.bf16.msra.mxu1 %v15675_v42  ;;  %v15695_v42 = vld [vmem:[%s17954_s9 + $0x3c4] ss:$48 sps:$4 sm:$0xff]  }
0x1c7d   : > { %8746 = vmatprep.subr.bf16.mxu1 %v15683_v25  ;;  %v15693_v25 = vld [vmem:[%s17954_s9 + $0x3c0] ss:$48 sps:$4 sm:$0xff]  }
0x1c80   : > { %8747 = vmatpush1.bf16.msra.mxu1 %v15681_v27  ;;  %v15698_v27 = vld [vmem:[%s17954_s9 + $0x724] ss:$48 sps:$4 sm:$0xff]  }
0x1c81   : > { %8748 = vmatprep.subr.bf16.mxu1 %v15689_v28  ;;  %v15696_v28 = vld [vmem:[%s17954_s9 + $0x720] ss:$48 sps:$4 sm:$0xff]   ;;  %8789 = vmatprep.subr.bf16.mxu0 %v15698_v27  ;;  %v6791_v27 = vld [vmem:[%s19962_s11] sm:$0x7] }
0x1c82   : > { %8790 = vmatpush1.bf16.msra.mxu0 %v15696_v28 }
0x1c84   : > { %8749 = vmatpush1.bf16.msra.mxu1 %v15687_v30  ;;  %v15701_v30 = vld [vmem:[%s17954_s9 + $0x424] ss:$48 sps:$4 sm:$0xff]  }
0x1c85   : > { %8750 = vmatprep.subr.bf16.mxu1 %v15695_v42  ;;  %v6790_v42 = vld [vmem:[%s19961_s0] sm:$0x7] }
0x1c86   : > { %v6884_v28 = vrot.slane %v6790_v42, %v18094_v48 }
0x1c88   : > { %8751 = vmatpush1.bf16.msra.mxu1 %v15693_v25 }
0x1c89   : > { %8752 = vmatprep.subr.bf16.mxu1 %v15701_v30  ;;  %v6888_v30 = vrot.slane %v6790_v42, %v18111_v6 }
0x1ce9   : > { %v6795_v15 = vpop.xlane.xlu0 %6794 }
0x1cea   : > { %v6808_v54 = vmul.f32 0.0026041667, %v6795_v15  ;;  %v15699_v15 = vld [vmem:[%s17954_s9 + $0x420] ss:$48 sps:$4 sm:$0xff]  }
0x1ceb   : > { %v6799_v45 = vpop.xlane.xlu1 %6798  ;;  %8753 = vmatpush1.bf16.msra.mxu1 %v15699_v15 }
0x1cec   : > { %v18842_v24 = vsub.f32 %v18781_v56, %v6808_v54  ;;  %v18845_v61 = vsub.f32 %v18783_v22, %v6808_v54  ;;  %v6809_v20 = vmul.f32 0.0026041667, %v6799_v45  ;;  %v18848_v59 = vsub.f32 %v18787_v26, %v6808_v54  ;;  %v15704_v54 = vld [vmem:[%s17954_s9 + $0x784] ss:$48 sps:$4 sm:$0xff]   ;;  %v15702_v45 = vld [vmem:[%s17954_s9 + $0x780] ss:$48 sps:$4 sm:$0xff]  }
0x1ced   : > { %8791 = vmatprep.subr.bf16.mxu0 %v15704_v54  ;;  %v6880_v54 = vrot.slane %v6790_v42, %v18091_v47 }
0x1cee   : > { %v18851_v35 = vsub.f32 %v18785_v49, %v6809_v20  ;;  %v18854_v63 = vsub.f32 %v18789_v29, %v6809_v20  ;;  %v6824_v1 = vmul.f32 %v18842_v24, %v18842_v24  ;;  %v18859_v31 = vsub.f32 %v18793_v53, %v6809_v20  ;;  %v15707_v20 = vld [vmem:[%s17954_s9 + $0x484] ss:$48 sps:$4 sm:$0xff]   ;;  %8792 = vmatpush1.bf16.msra.mxu0 %v15702_v45 }
0x1cef   : > { %v6825_v34 = vmul.f32 %v18845_v61, %v18845_v61  ;;  %v6826_v40 = vmul.f32 %v18848_v59, %v18848_v59  ;;  %8754 = vmatprep.subr.bf16.mxu1 %v15707_v20 }
0x1cf0   : > { %v6827_v17 = vmul.f32 %v18851_v35, %v18851_v35  ;;  %v6828_v33 = vmul.f32 %v18854_v63, %v18854_v63  ;;  %v6829_v11 = vmul.f32 %v18859_v31, %v18859_v31 }
0x1cf1   : > { %v6803_v4 = vpop.xlane.xlu0 %6802  ;;  %v6836_v38 = vadd.f32 %v6825_v34, %v6824_v1  ;;  %v15705_v1 = vld [vmem:[%s17954_s9 + $0x480] ss:$48 sps:$4 sm:$0xff]   ;;  %v15710_v34 = vld [vmem:[%s17954_s9 + $0x7e4] ss:$48 sps:$4 sm:$0xff]  }
0x1cf2   : > { %v6810_v46 = vmul.f32 0.0026041667, %v6803_v4  ;;  %v6840_v5 = vadd.f32 %v6828_v33, %v6827_v17  ;;  %8755 = vmatpush1.bf16.msra.mxu1 %v15705_v1  ;;  %v15708_v17 = vld [vmem:[%s17954_s9 + $0x7e0] ss:$48 sps:$4 sm:$0xff]   ;;  %v15713_v33 = vld [vmem:[%s17954_s9 + $0x4e4] ss:$48 sps:$4 sm:$0xff]   ;;  %8793 = vmatprep.subr.bf16.mxu0 %v15710_v34 }
0x1cf3   : > { %v6807_v9 = vpop.xlane.xlu1 %6806  ;;  %v6837_v10 = vadd.f32 %v6836_v38, %v6826_v40  ;;  %v15711_v4 = vld [vmem:[%s17954_s9 + $0x4e0] ss:$48 sps:$4 sm:$0xff]   ;;  %8756 = vmatprep.subr.bf16.mxu1 %v15713_v33  ;;  %8794 = vmatpush1.bf16.msra.mxu0 %v15708_v17  ;;  %v15716_v38 = vld [vmem:[%s17954_s9 + $0x844] ss:$48 sps:$4 sm:$0xff]   ;;  %v6912_v17 = vrot.slane %v6791_v27, %v18094_v48  ;;  %v6916_v33 = vrot.slane %v6791_v27, %v18111_v6 }
0x1cf4   : > { %v18872_v12 = vsub.f32 %v18799_v3, %v6810_v46  ;;  %v18875_v55 = vsub.f32 %v18801_v18, %v6810_v46  ;;  %v6811_v57 = vmul.f32 0.0026041667, %v6807_v9  ;;  %v18878_v14 = vsub.f32 %v18805_v7, %v6810_v46  ;;  %v15714_v40 = vld [vmem:[%s17954_s9 + $0x840] ss:$48 sps:$4 sm:$0xff]   ;;  %v15722_v9 = vld [vmem:[%s17954_s9 + $0x8a4] ss:$48 sps:$4 sm:$0xff]   ;;  %8795 = vmatprep.subr.bf16.mxu0 %v15716_v38 }
0x1cf5   : > { %6838 = vadd.xlane.f32.xlu0 %v6837_v10  ;;  %v6841_v23 = vadd.f32 %v6840_v5, %v6829_v11  ;;  %v15717_v46 = vld [vmem:[%s17954_s9 + $0x540] ss:$48 sps:$4 sm:$0xff]   ;;  %v15719_v5 = vld [vmem:[%s17954_s9 + $0x544] ss:$48 sps:$4 sm:$0xff]  }
0x1cf6   : > { %v18881_v43 = vsub.f32 %v18803_v44, %v6811_v57  ;;  %v18884_v0 = vsub.f32 %v18807_v8, %v6811_v57  ;;  %v18887_v32 = vsub.f32 %v18811_v39, %v6811_v57  ;;  %v6830_v41 = vmul.f32 %v18872_v12, %v18872_v12  ;;  %8757 = vmatpush1.bf16.msra.mxu1 %v15711_v4  ;;  %v15725_v10 = vld [vmem:[%s17954_s9 + $0x5a4] ss:$48 sps:$4 sm:$0xff]   ;;  %v15720_v11 = vld [vmem:[%s17954_s9 + $0x8a0] ss:$48 sps:$4 sm:$0xff]  }
0x1cf7   : > { %6842 = vadd.xlane.f32.xlu1 %v6841_v23  ;;  %v6831_v13 = vmul.f32 %v18875_v55, %v18875_v55  ;;  %v6832_v37 = vmul.f32 %v18878_v14, %v18878_v14  ;;  %8758 = vmatprep.subr.bf16.mxu1 %v15719_v5  ;;  %v15723_v57 = vld [vmem:[%s17954_s9 + $0x5a0] ss:$48 sps:$4 sm:$0xff]   ;;  %v15728_v23 = vld [vmem:[%s17954_s9 + $0x14] ss:$48 sps:$4 sm:$0xff]  }
0x1cf8   : > { %v6833_v16 = vmul.f32 %v18881_v43, %v18881_v43  ;;  %v6834_v50 = vmul.f32 %v18884_v0, %v18884_v0  ;;  %v6835_v19 = vmul.f32 %v18887_v32, %v18887_v32  ;;  %8796 = vmatpush1.bf16.msra.mxu0 %v15714_v40 }
0x1cf9   : > { %v6844_v2 = vadd.f32 %v6831_v13, %v6830_v41  ;;  %8797 = vmatprep.subr.bf16.mxu0 %v15722_v9  ;;  %v15731_v41 = vld [vmem:[%s17954_s9 + $0xc] ss:$48 sps:$4 sm:$0xff]  }
0x1cfa   : > { %v6848_v60 = vadd.f32 %v6834_v50, %v6833_v16  ;;  %8759 = vmatpush1.bf16.msra.mxu1 %v15717_v46 }
0x1cfb   : > { %v6845_v62 = vadd.f32 %v6844_v2, %v6832_v37  ;;  %8760 = vmatprep.subr.bf16.mxu1 %v15725_v10 }
0x1cfc   : > { %v6849_v21 = vadd.f32 %v6848_v60, %v6835_v19  ;;  %8798 = vmatpush1.bf16.msra.mxu0 %v15720_v11 }
0x1cfd   : > { %6846 = vadd.xlane.f32.xlu0 %v6845_v62  ;;  %8942 = vmatprep.subr.bf16.mxu0 %v15728_v23 }
0x1cfe   : > { %6850 = vadd.xlane.f32.xlu1 %v6849_v21  ;;  %8761 = vmatpush1.bf16.msra.mxu1 %v15723_v57 }
0x1cff   : > { %8836 = vmatprep.subr.bf16.mxu1 %v15731_v41 }
0x1d82   : > { %v6839_v13 = vpop.xlane.xlu0 %6838 }
0x1d83   : > { %v6852_v16 = vmul.f32 0.0026041667, %v6839_v13  ;;  %v15726_v13 = vld [vmem:[%s17954_s9 + $0x10] ss:$48 sps:$4 sm:$0xff]  }
0x1d84   : > { %v6843_v50 = vpop.xlane.xlu1 %6842 }
0x1d85   : > { %v6856_v37 = vadd.f32 1e-05, %v6852_v16  ;;  %v6853_v2 = vmul.f32 0.0026041667, %v6843_v50 }
0x1d87   : > { %16574 = vrsqrt.f32 %v6856_v37  ;;  %v6857_v19 = vadd.f32 1e-05, %v6853_v2  ;;  %v15729_v2 = vld [vmem:[%s17954_s9 + $0x8] ss:$48 sps:$4 sm:$0xff]  }
0x1d89   : > { %16576 = vrsqrt.f32 %v6857_v19  ;;  %v15734_v19 = vld [vmem:[%s17954_s9 + $0x74] ss:$48 sps:$4 sm:$0xff]  }
0x1d8a   : > { %v6847_v60 = vpop.xlane.xlu0 %6846 }
0x1d8b   : > { %v6854_v62 = vmul.f32 0.0026041667, %v6847_v60  ;;  %v6851_v21 = vpop.xlane.xlu1 %6850 }
0x1d8c   : > { %v6855_v52 = vmul.f32 0.0026041667, %v6851_v21 }
0x1d8d   : > { %v6858_v58 = vadd.f32 1e-05, %v6854_v62 }
0x1d8e   : > { %v6859_v25 = vadd.f32 1e-05, %v6855_v52  ;;  %v15737_v52 = vld [vmem:[%s17954_s9 + $0x6c] ss:$48 sps:$4 sm:$0xff]  }
0x1d8f   : > { %16578 = vrsqrt.f32 %v6858_v58 }
0x1d90   : > { %16580 = vrsqrt.f32 %v6859_v25 }
0x1d91   : > { %v16575_v15 = vpop.eup %16574 }
0x1d92   : > { %v6865_v45 = vmul.f32 %v16575_v15, %v18845_v61  ;;  %v6866_v20 = vmul.f32 %v16575_v15, %v18848_v59  ;;  %v6864_v1 = vmul.f32 %v16575_v15, %v18842_v24  ;;  %v6908_v61 = vrot.slane %v6791_v27, %v18091_v47 }
0x1d93   : > { %v16577_v34 = vpop.eup %16576 }
0x1d94   : > { %v6868_v4 = vmul.f32 %v16577_v34, %v18854_v63  ;;  %v6893_v40 = vmul.f32 %v6884_v28, %v6865_v45  ;;  %v6869_v38 = vmul.f32 %v16577_v34, %v18859_v31  ;;  %v6894_v46 = vmul.f32 %v6888_v30, %v6866_v20 }
0x1d95   : > { %v6867_v5 = vmul.f32 %v16577_v34, %v18851_v35  ;;  %v6892_v9 = vmul.f32 %v6880_v54, %v6864_v1 }
0x1d96   : > { %v6896_v24 = vmul.f32 %v6884_v28, %v6868_v4  ;;  %v6897_v59 = vmul.f32 %v6888_v30, %v6869_v38  ;;  %v6921_v11 = vadd.f32 %v6912_v17, %v6893_v40  ;;  %v6922_v23 = vadd.f32 %v6916_v33, %v6894_v46  ;;  %v15743_v38 = vld [vmem:[%s17954_s9 + $0xcc] ss:$48 sps:$4 sm:$0xff]   ;;  %v15738_v46 = vld [vmem:[%s17954_s9 + $0xd0] ss:$48 sps:$4 sm:$0xff]  }
0x1d97   : > { %v6895_v10 = vmul.f32 %v6880_v54, %v6867_v5  ;;  %v6920_v16 = vadd.f32 %v6908_v61, %v6892_v9 }
0x1d98   : > { %v6924_v57 = vadd.f32 %v6912_v17, %v6896_v24  ;;  %v6925_v41 = vadd.f32 %v6916_v33, %v6897_v59  ;;  %v15744_v24 = vld [vmem:[%s17954_s9 + $0x130] ss:$48 sps:$4 sm:$0xff]   ;;  %v15747_v59 = vld [vmem:[%s17954_s9 + $0x128] ss:$48 sps:$4 sm:$0xff]  }
0x1d99   : > { %v16579_v63 = vpop.eup %16578  ;;  %v6923_v31 = vadd.f32 %v6908_v61, %v6895_v10  ;;  %v15752_v10 = vld [vmem:[%s17954_s9 + $0x194] ss:$48 sps:$4 sm:$0xff]  }
0x1d9a   : > { %v16581_v50 = vpop.eup %16580  ;;  %v18944_v37 = vpack.c.bf16 %v6924_v57, %v6921_v11  ;;  %v18946_v35 = vpack.c.bf16 %v6925_v41, %v6922_v23  ;;  %v6871_v60 = vmul.f32 %v16579_v63, %v18875_v55  ;;  %v6872_v62 = vmul.f32 %v16579_v63, %v18878_v14  ;;  %v15732_v14 = vld [vmem:[%s17954_s9 + $0x70] ss:$48 sps:$4 sm:$0xff]   ;;  %v15755_v11 = vld [vmem:[%s17954_s9 + $0x18c] ss:$48 sps:$4 sm:$0xff]   ;;  %v15753_v23 = vld [vmem:[%s17954_s9 + $0x188] ss:$48 sps:$4 sm:$0xff]  }
0x1d9b   : > { %v18952_v21 = vpack.c.bf16 %v6923_v31, %v6920_v16  ;;  %v6874_v58 = vmul.f32 %v16581_v50, %v18884_v0  ;;  %v6875_v42 = vmul.f32 %v16581_v50, %v18887_v32  ;;  %v6870_v25 = vmul.f32 %v16579_v63, %v18872_v12  ;;  %v15735_v12 = vld [vmem:[%s17954_s9 + $0x68] ss:$48 sps:$4 sm:$0xff]   ;;  %v15740_v32 = vld [vmem:[%s17954_s9 + $0xd4] ss:$48 sps:$4 sm:$0xff]   ;;  %v15750_v57 = vld [vmem:[%s17954_s9 + $0x190] ss:$48 sps:$4 sm:$0xff]  }
0x1d9c   : > { %8762 = vmatprep.mubr.bf16.mxu1 %v18944_v37  ;;  %8816 = vmatmul.mubr.bf16.vlgmr.msra.gmra.mrb[132].mxu0 %v18946_v35  ;;  %v6899_v27 = vmul.f32 %v6884_v28, %v6871_v60  ;;  %v6900_v15 = vmul.f32 %v6888_v30, %v6872_v62  ;;  %v6873_v55 = vmul.f32 %v16581_v50, %v18881_v43  ;;  %v15758_v41 = vld [vmem:[%s17954_s9 + $0x1f4] ss:$48 sps:$4 sm:$0xff]   ;;  %v15761_v63 = vld [vmem:[%s17954_s9 + $0x1ec] ss:$48 sps:$4 sm:$0xff]   ;;  %v15759_v16 = vld [vmem:[%s17954_s9 + $0x1e8] ss:$48 sps:$4 sm:$0xff]  }
0x1d9d   : > { %8943 = vmatpush1.bf16.msra.mxu0 %v15726_v13  ;;  %8763 = vmatmul.mubr.bf16.vlgmr.msra.gmra.mrb[144].mxu1 %v18952_v21  ;;  %v6902_v0 = vmul.f32 %v6884_v28, %v6874_v58  ;;  %v6903_v45 = vmul.f32 %v6888_v30, %v6875_v42  ;;  %v6898_v20 = vmul.f32 %v6880_v54, %v6870_v25  ;;  %v15756_v13 = vld [vmem:[%s17954_s9 + $0x1f0] ss:$48 sps:$4 sm:$0xff]   ;;  %v15764_v31 = vld [vmem:[%s17954_s9 + $0x254] ss:$48 sps:$4 sm:$0xff]   ;;  %v15767_v50 = vld [vmem:[%s17954_s9 + $0x24c] ss:$48 sps:$4 sm:$0xff]  }
0x1d9e   : > { %8837 = vmatpush1.bf16.msra.mxu1 %v15729_v2  ;;  %8944 = vmatprep.subr.bf16.mxu0 %v15734_v19  ;;  %v6927_v1 = vadd.f32 %v6912_v17, %v6899_v27  ;;  %v6901_v34 = vmul.f32 %v6880_v54, %v6873_v55  ;;  %v6928_v4 = vadd.f32 %v6916_v33, %v6900_v15  ;;  %v15741_v54 = vld [vmem:[%s17954_s9 + $0xc8] ss:$48 sps:$4 sm:$0xff]   ;;  %v15762_v2 = vld [vmem:[%s17954_s9 + $0x250] ss:$48 sps:$4 sm:$0xff]   ;;  %v15770_v60 = vld [vmem:[%s17954_s9 + $0x2b4] ss:$48 sps:$4 sm:$0xff]  }
0x1d9f   : > { %8838 = vmatprep.subr.bf16.mxu1 %v15737_v52  ;;  %8825 = vmatprep.mubr.bf16.mxu0 %v17232_v51  ;;  %v6930_v43 = vadd.f32 %v6912_v17, %v6902_v0  ;;  %v6931_v40 = vadd.f32 %v6916_v33, %v6903_v45  ;;  %v6926_v28 = vadd.f32 %v6908_v61, %v6898_v20  ;;  %v15746_v33 = vld [vmem:[%s17954_s9 + $0x134] ss:$48 sps:$4 sm:$0xff]   ;;  %v15765_v19 = vld [vmem:[%s17954_s9 + $0x248] ss:$48 sps:$4 sm:$0xff]   ;;  %v15773_v62 = vld [vmem:[%s17954_s9 + $0x2ac] ss:$48 sps:$4 sm:$0xff]  }
0x1da0   : > { %v6929_v30 = vadd.f32 %v6908_v61, %v6901_v34  ;;  %v15749_v61 = vld [vmem:[%s17954_s9 + $0x12c] ss:$48 sps:$4 sm:$0xff]   ;;  %v15768_v52 = vld [vmem:[%s17954_s9 + $0x2b0] ss:$48 sps:$4 sm:$0xff]   ;;  %v15771_v58 = vld [vmem:[%s17954_s9 + $0x2a8] ss:$48 sps:$4 sm:$0xff]  }
0x1da1   : > { %8945 = vmatpush1.bf16.msra.mxu0 %v15732_v14  ;;  %v18968_v5 = vpack.c.bf16 %v6930_v43, %v6927_v1  ;;  %v18970_v9 = vpack.c.bf16 %v6931_v40, %v6928_v4  ;;  %v15776_v42 = vld [vmem:[%s17954_s9 + $0x314] ss:$48 sps:$4 sm:$0xff]   ;;  %v15779_v25 = vld [vmem:[%s17954_s9 + $0x30c] ss:$48 sps:$4 sm:$0xff]   ;;  %v15774_v27 = vld [vmem:[%s17954_s9 + $0x310] ss:$48 sps:$4 sm:$0xff]  }
0x1da2   : > { %8839 = vmatpush1.bf16.msra.mxu1 %v15735_v12  ;;  %8946 = vmatprep.subr.bf16.mxu0 %v15740_v32  ;;  %v18973_v17 = vpack.c.bf16 %v6929_v30, %v6926_v28  ;;  %v15777_v15 = vld [vmem:[%s17954_s9 + $0x308] ss:$48 sps:$4 sm:$0xff]   ;;  %v15782_v55 = vld [vmem:[%s17954_s9 + $0x374] ss:$48 sps:$4 sm:$0xff]   ;;  %v15785_v14 = vld [vmem:[%s17954_s9 + $0x36c] ss:$48 sps:$4 sm:$0xff]  }
0x1da3   : > { %8772 = vmatprep.mubr.bf16.mxu1 %v18968_v5  ;;  %8840 = vmatprep.subr.bf16.mxu1 %v15743_v38  ;;  %v15780_v0 = vld [vmem:[%s17954_s9 + $0x370] ss:$48 sps:$4 sm:$0xff]   ;;  %v15783_v45 = vld [vmem:[%s17954_s9 + $0x368] ss:$48 sps:$4 sm:$0xff]   ;;  %v15788_v20 = vld [vmem:[%s17954_s9 + $0x3d4] ss:$48 sps:$4 sm:$0xff]  }
0x1da4   : > { %8826 = vmatmul.mubr.bf16.gmra.mrb[136].mxu0 %v18970_v9  ;;  %v15791_v12 = vld [vmem:[%s17954_s9 + $0x3cc] ss:$48 sps:$4 sm:$0xff]   ;;  %v15786_v32 = vld [vmem:[%s17954_s9 + $0x3d0] ss:$48 sps:$4 sm:$0xff]   ;;  %v15789_v1 = vld [vmem:[%s17954_s9 + $0x3c8] ss:$48 sps:$4 sm:$0xff]  }
0x1da5   : > { %8947 = vmatpush1.bf16.msra.mxu0 %v15738_v46  ;;  %8773 = vmatmul.mubr.bf16.gmra.mrb[148].mxu1 %v18973_v17  ;;  %v15794_v34 = vld [vmem:[%s17954_s9 + $0x434] ss:$48 sps:$4 sm:$0xff]   ;;  %v15797_v43 = vld [vmem:[%s17954_s9 + $0x42c] ss:$48 sps:$4 sm:$0xff]   ;;  %v15792_v4 = vld [vmem:[%s17954_s9 + $0x430] ss:$48 sps:$4 sm:$0xff]  }
0x1da6   : > { %8841 = vmatpush1.bf16.msra.mxu1 %v15741_v54  ;;  %8974 = vmatprep.mubr.bf16.mxu0 %v18944_v37  ;;  %v15795_v40 = vld [vmem:[%s17954_s9 + $0x428] ss:$48 sps:$4 sm:$0xff]   ;;  %v15800_v38 = vld [vmem:[%s17954_s9 + $0x494] ss:$48 sps:$4 sm:$0xff]   ;;  %v15803_v28 = vld [vmem:[%s17954_s9 + $0x48c] ss:$48 sps:$4 sm:$0xff]  }
0x1da7   : > { %8868 = vmatprep.mubr.bf16.mxu1 %v18944_v37  ;;  %8948 = vmatprep.subr.bf16.mxu0 %v15746_v33  ;;  %v15798_v30 = vld [vmem:[%s17954_s9 + $0x490] ss:$48 sps:$4 sm:$0xff]   ;;  %v15801_v46 = vld [vmem:[%s17954_s9 + $0x488] ss:$48 sps:$4 sm:$0xff]   ;;  %v15806_v54 = vld [vmem:[%s17954_s9 + $0x4f4] ss:$48 sps:$4 sm:$0xff]  }
0x1da8   : > { %8842 = vmatprep.subr.bf16.mxu1 %v15749_v61  ;;  %v15809_v33 = vld [vmem:[%s17954_s9 + $0x4ec] ss:$48 sps:$4 sm:$0xff]   ;;  %v15804_v61 = vld [vmem:[%s17954_s9 + $0x4f0] ss:$48 sps:$4 sm:$0xff]  }
0x1da9   : > { %8949 = vmatpush1.bf16.msra.mxu0 %v15744_v24  ;;  %v15807_v24 = vld [vmem:[%s17954_s9 + $0x4e8] ss:$48 sps:$4 sm:$0xff]  }
0x1daa   : > { %8843 = vmatpush1.bf16.msra.mxu1 %v15747_v59  ;;  %8950 = vmatprep.subr.bf16.mxu0 %v15752_v10  ;;  %v15812_v59 = vld [vmem:[%s17954_s9 + $0x554] ss:$48 sps:$4 sm:$0xff]   ;;  %v15815_v10 = vld [vmem:[%s17954_s9 + $0x54c] ss:$48 sps:$4 sm:$0xff]  }
0x1dab   : > { %8844 = vmatprep.subr.bf16.mxu1 %v15755_v11  ;;  %v15810_v11 = vld [vmem:[%s17954_s9 + $0x550] ss:$48 sps:$4 sm:$0xff]  }
0x1dad   : > { %8951 = vmatpush1.bf16.msra.mxu0 %v15750_v57  ;;  %v15813_v57 = vld [vmem:[%s17954_s9 + $0x548] ss:$48 sps:$4 sm:$0xff]  }
0x1dae   : > { %8845 = vmatpush1.bf16.msra.mxu1 %v15753_v23  ;;  %8952 = vmatprep.subr.bf16.mxu0 %v15758_v41  ;;  %v15818_v23 = vld [vmem:[%s17954_s9 + $0x5b4] ss:$48 sps:$4 sm:$0xff]   ;;  %v15821_v41 = vld [vmem:[%s17954_s9 + $0x5ac] ss:$48 sps:$4 sm:$0xff]  }
0x1daf   : > { %8846 = vmatprep.subr.bf16.mxu1 %v15761_v63  ;;  %v15816_v63 = vld [vmem:[%s17954_s9 + $0x5b0] ss:$48 sps:$4 sm:$0xff]  }
0x1db1   : > { %8953 = vmatpush1.bf16.msra.mxu0 %v15756_v13  ;;  %v15819_v13 = vld [vmem:[%s17954_s9 + $0x5a8] ss:$48 sps:$4 sm:$0xff]  }
0x1db2   : > { %8847 = vmatpush1.bf16.msra.mxu1 %v15759_v16  ;;  %8954 = vmatprep.subr.bf16.mxu0 %v15764_v31  ;;  %v15824_v16 = vld [vmem:[%s17954_s9 + $0x614] ss:$48 sps:$4 sm:$0xff]   ;;  %v15827_v31 = vld [vmem:[%s17954_s9 + $0x60c] ss:$48 sps:$4 sm:$0xff]  }
0x1db3   : > { %8848 = vmatprep.subr.bf16.mxu1 %v15767_v50  ;;  %v15822_v50 = vld [vmem:[%s17954_s9 + $0x610] ss:$48 sps:$4 sm:$0xff]  }
0x1db5   : > { %8955 = vmatpush1.bf16.msra.mxu0 %v15762_v2  ;;  %v15825_v2 = vld [vmem:[%s17954_s9 + $0x608] ss:$48 sps:$4 sm:$0xff]  }
0x1db6   : > { %8849 = vmatpush1.bf16.msra.mxu1 %v15765_v19  ;;  %8956 = vmatprep.subr.bf16.mxu0 %v15770_v60  ;;  %v15830_v19 = vld [vmem:[%s17954_s9 + $0x674] ss:$48 sps:$4 sm:$0xff]   ;;  %v15833_v60 = vld [vmem:[%s17954_s9 + $0x66c] ss:$48 sps:$4 sm:$0xff]  }
0x1db7   : > { %8850 = vmatprep.subr.bf16.mxu1 %v15773_v62  ;;  %v15828_v62 = vld [vmem:[%s17954_s9 + $0x670] ss:$48 sps:$4 sm:$0xff]  }
0x1db9   : > { %8957 = vmatpush1.bf16.msra.mxu0 %v15768_v52  ;;  %v15831_v52 = vld [vmem:[%s17954_s9 + $0x668] ss:$48 sps:$4 sm:$0xff]  }
0x1dba   : > { %8851 = vmatpush1.bf16.msra.mxu1 %v15771_v58  ;;  %8958 = vmatprep.subr.bf16.mxu0 %v15776_v42  ;;  %v15836_v58 = vld [vmem:[%s17954_s9 + $0x6d4] ss:$48 sps:$4 sm:$0xff]   ;;  %v15839_v42 = vld [vmem:[%s17954_s9 + $0x6cc] ss:$48 sps:$4 sm:$0xff]  }
0x1dbb   : > { %8852 = vmatprep.subr.bf16.mxu1 %v15779_v25  ;;  %v15834_v25 = vld [vmem:[%s17954_s9 + $0x6d0] ss:$48 sps:$4 sm:$0xff]  }
0x1dbd   : > { %8959 = vmatpush1.bf16.msra.mxu0 %v15774_v27  ;;  %v15837_v27 = vld [vmem:[%s17954_s9 + $0x6c8] ss:$48 sps:$4 sm:$0xff]  }
0x1dbe   : > { %8853 = vmatpush1.bf16.msra.mxu1 %v15777_v15  ;;  %8960 = vmatprep.subr.bf16.mxu0 %v15782_v55  ;;  %v15842_v15 = vld [vmem:[%s17954_s9 + $0x734] ss:$48 sps:$4 sm:$0xff]   ;;  %v15845_v55 = vld [vmem:[%s17954_s9 + $0x72c] ss:$48 sps:$4 sm:$0xff]  }
0x1dbf   : > { %8854 = vmatprep.subr.bf16.mxu1 %v15785_v14  ;;  %v15840_v14 = vld [vmem:[%s17954_s9 + $0x730] ss:$48 sps:$4 sm:$0xff]  }
0x1dc1   : > { %8961 = vmatpush1.bf16.msra.mxu0 %v15780_v0  ;;  %v15843_v0 = vld [vmem:[%s17954_s9 + $0x728] ss:$48 sps:$4 sm:$0xff]  }
0x1dc2   : > { %8855 = vmatpush1.bf16.msra.mxu1 %v15783_v45  ;;  %8962 = vmatprep.subr.bf16.mxu0 %v15788_v20  ;;  %v15848_v45 = vld [vmem:[%s17954_s9 + $0x794] ss:$48 sps:$4 sm:$0xff]   ;;  %v15851_v20 = vld [vmem:[%s17954_s9 + $0x78c] ss:$48 sps:$4 sm:$0xff]  }
0x1dc3   : > { %8856 = vmatprep.subr.bf16.mxu1 %v15791_v12  ;;  %v15846_v12 = vld [vmem:[%s17954_s9 + $0x790] ss:$48 sps:$4 sm:$0xff]  }
0x1dc5   : > { %8963 = vmatpush1.bf16.msra.mxu0 %v15786_v32  ;;  %v15849_v32 = vld [vmem:[%s17954_s9 + $0x788] ss:$48 sps:$4 sm:$0xff]  }
0x1dc6   : > { %8857 = vmatpush1.bf16.msra.mxu1 %v15789_v1  ;;  %8964 = vmatprep.subr.bf16.mxu0 %v15794_v34  ;;  %v15854_v1 = vld [vmem:[%s17954_s9 + $0x7f4] ss:$48 sps:$4 sm:$0xff]   ;;  %v15857_v34 = vld [vmem:[%s17954_s9 + $0x7ec] ss:$48 sps:$4 sm:$0xff]  }
0x1dc7   : > { %8858 = vmatprep.subr.bf16.mxu1 %v15797_v43  ;;  %v15852_v43 = vld [vmem:[%s17954_s9 + $0x7f0] ss:$48 sps:$4 sm:$0xff]  }
0x1dc9   : > { %8965 = vmatpush1.bf16.msra.mxu0 %v15792_v4  ;;  %v15855_v4 = vld [vmem:[%s17954_s9 + $0x7e8] ss:$48 sps:$4 sm:$0xff]  }
0x1dca   : > { %8859 = vmatpush1.bf16.msra.mxu1 %v15795_v40  ;;  %8966 = vmatprep.subr.bf16.mxu0 %v15800_v38  ;;  %v15860_v40 = vld [vmem:[%s17954_s9 + $0x854] ss:$48 sps:$4 sm:$0xff]   ;;  %v15863_v38 = vld [vmem:[%s17954_s9 + $0x84c] ss:$48 sps:$4 sm:$0xff]  }
0x1dcb   : > { %8860 = vmatprep.subr.bf16.mxu1 %v15803_v28  ;;  %v15858_v28 = vld [vmem:[%s17954_s9 + $0x850] ss:$48 sps:$4 sm:$0xff]  }
0x1dcd   : > { %8967 = vmatpush1.bf16.msra.mxu0 %v15798_v30  ;;  %v15861_v30 = vld [vmem:[%s17954_s9 + $0x848] ss:$48 sps:$4 sm:$0xff]  }
0x1dce   : > { %8861 = vmatpush1.bf16.msra.mxu1 %v15801_v46  ;;  %8968 = vmatprep.subr.bf16.mxu0 %v15806_v54  ;;  %v15866_v46 = vld [vmem:[%s17954_s9 + $0x8b4] ss:$48 sps:$4 sm:$0xff]   ;;  %v15869_v54 = vld [vmem:[%s17954_s9 + $0x8ac] ss:$48 sps:$4 sm:$0xff]  }
0x1dcf   : > { %8862 = vmatprep.subr.bf16.mxu1 %v15809_v33  ;;  %v15864_v33 = vld [vmem:[%s17954_s9 + $0x8b0] ss:$48 sps:$4 sm:$0xff]  }
0x1dd1   : > { %8969 = vmatpush1.bf16.msra.mxu0 %v15804_v61  ;;  %v15867_v61 = vld [vmem:[%s17954_s9 + $0x8a8] ss:$48 sps:$4 sm:$0xff]  }
0x1dd2   : > { %8863 = vmatpush1.bf16.msra.mxu1 %v15807_v24  ;;  %8970 = vmatprep.subr.bf16.mxu0 %v15812_v59  ;;  %v15872_v24 = vld [vmem:[%s17954_s9 + $0x24] ss:$48 sps:$4 sm:$0xff]   ;;  %v15875_v59 = vld [vmem:[%s17954_s9 + $0x1c] ss:$48 sps:$4 sm:$0xff]  }
0x1dd3   : > { %8864 = vmatprep.subr.bf16.mxu1 %v15815_v10  ;;  %v15870_v10 = vld [vmem:[%s17954_s9 + $0x20] ss:$48 sps:$4 sm:$0xff]  }
0x1dd5   : > { %8971 = vmatpush1.bf16.msra.mxu0 %v15810_v11  ;;  %v15873_v11 = vld [vmem:[%s17954_s9 + $0x18] ss:$48 sps:$4 sm:$0xff]  }
0x1dd6   : > { %8865 = vmatpush1.bf16.msra.mxu1 %v15813_v57  ;;  %8972 = vmatprep.subr.bf16.mxu0 %v15818_v23  ;;  %v15878_v57 = vld [vmem:[%s17954_s9 + $0x84] ss:$48 sps:$4 sm:$0xff]   ;;  %v15881_v23 = vld [vmem:[%s17954_s9 + $0x7c] ss:$48 sps:$4 sm:$0xff]  }
0x1dd7   : > { %8866 = vmatprep.subr.bf16.mxu1 %v15821_v41  ;;  %v15876_v41 = vld [vmem:[%s17954_s9 + $0x80] ss:$48 sps:$4 sm:$0xff]  }
0x1dd9   : > { %8973 = vmatpush1.bf16.msra.mxu0 %v15816_v63  ;;  %v15879_v63 = vld [vmem:[%s17954_s9 + $0x78] ss:$48 sps:$4 sm:$0xff]  }
0x1dda   : > { %8867 = vmatpush1.bf16.msra.mxu1 %v15819_v13  ;;  %8995 = vmatprep.subr.bf16.mxu0 %v15824_v16  ;;  %v15884_v13 = vld [vmem:[%s17954_s9 + $0xe4] ss:$48 sps:$4 sm:$0xff]   ;;  %v15887_v16 = vld [vmem:[%s17954_s9 + $0xdc] ss:$48 sps:$4 sm:$0xff]  }
0x1ddb   : > { %8889 = vmatprep.subr.bf16.mxu1 %v15827_v31  ;;  %v15882_v31 = vld [vmem:[%s17954_s9 + $0xe0] ss:$48 sps:$4 sm:$0xff]  }
0x1ddc   : > { %8975 = vmatmul.mubr.bf16.vlgmr.msra.gmra.mrb[140].mxu0 %v18952_v21 }
0x1ddd   : > { %8869 = vmatmul.mubr.bf16.vlgmr.msra.gmra.mrb[152].mxu1 %v18952_v21  ;;  %8984 = vmatprep.mubr.bf16.mxu0 %v18968_v5 }
0x1dde   : > { %8996 = vmatpush1.bf16.msra.mxu0 %v15822_v50  ;;  %8878 = vmatprep.mubr.bf16.mxu1 %v18968_v5  ;;  %v15885_v50 = vld [vmem:[%s17954_s9 + $0xd8] ss:$48 sps:$4 sm:$0xff]  }
0x1ddf   : > { %8890 = vmatpush1.bf16.msra.mxu1 %v15825_v2  ;;  %8997 = vmatprep.subr.bf16.mxu0 %v15830_v19  ;;  %v15890_v2 = vld [vmem:[%s17954_s9 + $0x144] ss:$48 sps:$4 sm:$0xff]   ;;  %v15893_v19 = vld [vmem:[%s17954_s9 + $0x13c] ss:$48 sps:$4 sm:$0xff]  }
0x1de0   : > { %8891 = vmatprep.subr.bf16.mxu1 %v15833_v60  ;;  %v15888_v60 = vld [vmem:[%s17954_s9 + $0x140] ss:$48 sps:$4 sm:$0xff]  }
0x1de2   : > { %8998 = vmatpush1.bf16.msra.mxu0 %v15828_v62  ;;  %v15891_v62 = vld [vmem:[%s17954_s9 + $0x138] ss:$48 sps:$4 sm:$0xff]  }
0x1de3   : > { %8892 = vmatpush1.bf16.msra.mxu1 %v15831_v52  ;;  %8999 = vmatprep.subr.bf16.mxu0 %v15836_v58  ;;  %v15896_v52 = vld [vmem:[%s17954_s9 + $0x1a4] ss:$48 sps:$4 sm:$0xff]   ;;  %v15899_v58 = vld [vmem:[%s17954_s9 + $0x19c] ss:$48 sps:$4 sm:$0xff]  }
0x1de4   : > { %8985 = vmatmul.mubr.bf16.gmra.mrb[144].mxu0 %v18973_v17  ;;  %8893 = vmatprep.subr.bf16.mxu1 %v15839_v42  ;;  %v15894_v42 = vld [vmem:[%s17954_s9 + $0x1a0] ss:$48 sps:$4 sm:$0xff]  }
0x1de5   : > { %8879 = vmatmul.mubr.bf16.gmra.mrb[156].mxu1 %v18973_v17  ;;  %9027 = vmatprep.mubr.bf16.mxu0 %v17232_v51 }
0x1de6   : > { %9000 = vmatpush1.bf16.msra.mxu0 %v15834_v25  ;;  %8921 = vmatprep.mubr.bf16.mxu1 %v17232_v51  ;;  %v15897_v25 = vld [vmem:[%s17954_s9 + $0x198] ss:$48 sps:$4 sm:$0xff]  }
0x1de7   : > { %8894 = vmatpush1.bf16.msra.mxu1 %v15837_v27  ;;  %9001 = vmatprep.subr.bf16.mxu0 %v15842_v15  ;;  %v15902_v27 = vld [vmem:[%s17954_s9 + $0x204] ss:$48 sps:$4 sm:$0xff]   ;;  %v15905_v15 = vld [vmem:[%s17954_s9 + $0x1fc] ss:$48 sps:$4 sm:$0xff]  }
0x1de8   : > { %8895 = vmatprep.subr.bf16.mxu1 %v15845_v55  ;;  %v15900_v55 = vld [vmem:[%s17954_s9 + $0x200] ss:$48 sps:$4 sm:$0xff]  }
0x1dea   : > { %9002 = vmatpush1.bf16.msra.mxu0 %v15840_v14  ;;  %v15903_v14 = vld [vmem:[%s17954_s9 + $0x1f8] ss:$48 sps:$4 sm:$0xff]  }
0x1deb   : > { %8896 = vmatpush1.bf16.msra.mxu1 %v15843_v0  ;;  %9003 = vmatprep.subr.bf16.mxu0 %v15848_v45  ;;  %v15908_v0 = vld [vmem:[%s17954_s9 + $0x264] ss:$48 sps:$4 sm:$0xff]   ;;  %v15911_v45 = vld [vmem:[%s17954_s9 + $0x25c] ss:$48 sps:$4 sm:$0xff]  }
0x1dec   : > { %8897 = vmatprep.subr.bf16.mxu1 %v15851_v20  ;;  %v15906_v20 = vld [vmem:[%s17954_s9 + $0x260] ss:$48 sps:$4 sm:$0xff]  }
0x1dee   : > { %9004 = vmatpush1.bf16.msra.mxu0 %v15846_v12  ;;  %v15909_v12 = vld [vmem:[%s17954_s9 + $0x258] ss:$48 sps:$4 sm:$0xff]  }
0x1def   : > { %8898 = vmatpush1.bf16.msra.mxu1 %v15849_v32  ;;  %9005 = vmatprep.subr.bf16.mxu0 %v15854_v1  ;;  %v15914_v32 = vld [vmem:[%s17954_s9 + $0x2c4] ss:$48 sps:$4 sm:$0xff]   ;;  %v15917_v1 = vld [vmem:[%s17954_s9 + $0x2bc] ss:$48 sps:$4 sm:$0xff]  }
0x1df0   : > { %8899 = vmatprep.subr.bf16.mxu1 %v15857_v34  ;;  %v15912_v34 = vld [vmem:[%s17954_s9 + $0x2c0] ss:$48 sps:$4 sm:$0xff]  }
0x1df2   : > { %9006 = vmatpush1.bf16.msra.mxu0 %v15852_v43  ;;  %v15915_v43 = vld [vmem:[%s17954_s9 + $0x2b8] ss:$48 sps:$4 sm:$0xff]  }
0x1df3   : > { %8900 = vmatpush1.bf16.msra.mxu1 %v15855_v4  ;;  %9007 = vmatprep.subr.bf16.mxu0 %v15860_v40  ;;  %v15920_v4 = vld [vmem:[%s17954_s9 + $0x324] ss:$48 sps:$4 sm:$0xff]   ;;  %v15923_v40 = vld [vmem:[%s17954_s9 + $0x31c] ss:$48 sps:$4 sm:$0xff]  }
0x1df4   : > { %8901 = vmatprep.subr.bf16.mxu1 %v15863_v38  ;;  %v15918_v38 = vld [vmem:[%s17954_s9 + $0x320] ss:$48 sps:$4 sm:$0xff]  }
0x1df6   : > { %9008 = vmatpush1.bf16.msra.mxu0 %v15858_v28  ;;  %v15921_v28 = vld [vmem:[%s17954_s9 + $0x318] ss:$48 sps:$4 sm:$0xff]  }
0x1df7   : > { %8902 = vmatpush1.bf16.msra.mxu1 %v15861_v30  ;;  %9009 = vmatprep.subr.bf16.mxu0 %v15866_v46  ;;  %v15926_v30 = vld [vmem:[%s17954_s9 + $0x384] ss:$48 sps:$4 sm:$0xff]   ;;  %v15929_v46 = vld [vmem:[%s17954_s9 + $0x37c] ss:$48 sps:$4 sm:$0xff]  }
0x1df8   : > { %8903 = vmatprep.subr.bf16.mxu1 %v15869_v54  ;;  %v15924_v54 = vld [vmem:[%s17954_s9 + $0x380] ss:$48 sps:$4 sm:$0xff]  }
0x1dfa   : > { %9010 = vmatpush1.bf16.msra.mxu0 %v15864_v33  ;;  %v15927_v33 = vld [vmem:[%s17954_s9 + $0x378] ss:$48 sps:$4 sm:$0xff]  }
0x1dfb   : > { %8904 = vmatpush1.bf16.msra.mxu1 %v15867_v61  ;;  %9154 = vmatprep.subr.bf16.mxu0 %v15872_v24  ;;  %v15932_v61 = vld [vmem:[%s17954_s9 + $0x3e4] ss:$48 sps:$4 sm:$0xff]   ;;  %v15935_v24 = vld [vmem:[%s17954_s9 + $0x3dc] ss:$48 sps:$4 sm:$0xff]  }
0x1dfc   : > { %9048 = vmatprep.subr.bf16.mxu1 %v15875_v59  ;;  %v15930_v59 = vld [vmem:[%s17954_s9 + $0x3e0] ss:$48 sps:$4 sm:$0xff]  }
0x1dfd   : > { %9028 = vmatmul.mubr.bf16.vlgmr.msra.gmra.mrb[140].mxu0 %v18946_v35 }
0x1dfe   : > { %8922 = vmatmul.mubr.bf16.vlgmr.msra.gmra.mrb[152].mxu1 %v18946_v35  ;;  %9155 = vmatpush1.bf16.msra.mxu0 %v15870_v10  ;;  %v15933_v10 = vld [vmem:[%s17954_s9 + $0x3d8] ss:$48 sps:$4 sm:$0xff]  }
0x1dff   : > { %9049 = vmatpush1.bf16.msra.mxu1 %v15873_v11  ;;  %9156 = vmatprep.subr.bf16.mxu0 %v15878_v57  ;;  %v15938_v11 = vld [vmem:[%s17954_s9 + $0x444] ss:$48 sps:$4 sm:$0xff]   ;;  %v15941_v57 = vld [vmem:[%s17954_s9 + $0x43c] ss:$48 sps:$4 sm:$0xff]  }
0x1e00   : > { %9050 = vmatprep.subr.bf16.mxu1 %v15881_v23  ;;  %9037 = vmatprep.mubr.bf16.mxu0 %v17232_v51  ;;  %v15936_v23 = vld [vmem:[%s17954_s9 + $0x440] ss:$48 sps:$4 sm:$0xff]  }
0x1e01   : > { %8931 = vmatprep.mubr.bf16.mxu1 %v17232_v51 }
0x1e02   : > { %9157 = vmatpush1.bf16.msra.mxu0 %v15876_v41  ;;  %v15939_v41 = vld [vmem:[%s17954_s9 + $0x438] ss:$48 sps:$4 sm:$0xff]  }
0x1e03   : > { %9051 = vmatpush1.bf16.msra.mxu1 %v15879_v63  ;;  %9158 = vmatprep.subr.bf16.mxu0 %v15884_v13  ;;  %v15944_v63 = vld [vmem:[%s17954_s9 + $0x4a4] ss:$48 sps:$4 sm:$0xff]   ;;  %v15947_v13 = vld [vmem:[%s17954_s9 + $0x49c] ss:$48 sps:$4 sm:$0xff]  }
0x1e04   : > { %9052 = vmatprep.subr.bf16.mxu1 %v15887_v16  ;;  %v15942_v16 = vld [vmem:[%s17954_s9 + $0x4a0] ss:$48 sps:$4 sm:$0xff]  }
0x1e05   : > { %9038 = vmatmul.mubr.bf16.gmra.mrb[144].mxu0 %v18970_v9 }
0x1e06   : > { %8932 = vmatmul.mubr.bf16.gmra.mrb[156].mxu1 %v18970_v9  ;;  %9159 = vmatpush1.bf16.msra.mxu0 %v15882_v31  ;;  %v15945_v31 = vld [vmem:[%s17954_s9 + $0x498] ss:$48 sps:$4 sm:$0xff]  }
0x1e07   : > { %9186 = vmatprep.mubr.bf16.mxu0 %v18944_v37  ;;  %9053 = vmatpush1.bf16.msra.mxu1 %v15885_v50  ;;  %v15950_v50 = vld [vmem:[%s17954_s9 + $0x504] ss:$48 sps:$4 sm:$0xff]  }
0x1e08   : > { %9080 = vmatprep.mubr.bf16.mxu1 %v18944_v37  ;;  %9160 = vmatprep.subr.bf16.mxu0 %v15890_v2  ;;  %v15953_v2 = vld [vmem:[%s17954_s9 + $0x4fc] ss:$48 sps:$4 sm:$0xff]  }
0x1e09   : > { %9054 = vmatprep.subr.bf16.mxu1 %v15893_v19  ;;  %v15948_v19 = vld [vmem:[%s17954_s9 + $0x500] ss:$48 sps:$4 sm:$0xff]  }
0x1e0a   : > { %9161 = vmatpush1.bf16.msra.mxu0 %v15888_v60  ;;  %v15951_v60 = vld [vmem:[%s17954_s9 + $0x4f8] ss:$48 sps:$4 sm:$0xff]  }
0x1e0b   : > { %9055 = vmatpush1.bf16.msra.mxu1 %v15891_v62  ;;  %9162 = vmatprep.subr.bf16.mxu0 %v15896_v52  ;;  %v15956_v62 = vld [vmem:[%s17954_s9 + $0x564] ss:$48 sps:$4 sm:$0xff]   ;;  %v15959_v52 = vld [vmem:[%s17954_s9 + $0x55c] ss:$48 sps:$4 sm:$0xff]  }
0x1e0c   : > { %9056 = vmatprep.subr.bf16.mxu1 %v15899_v58  ;;  %v15954_v58 = vld [vmem:[%s17954_s9 + $0x560] ss:$48 sps:$4 sm:$0xff]  }
0x1e0e   : > { %9163 = vmatpush1.bf16.msra.mxu0 %v15894_v42  ;;  %v15957_v42 = vld [vmem:[%s17954_s9 + $0x558] ss:$48 sps:$4 sm:$0xff]  }
0x1e0f   : > { %9057 = vmatpush1.bf16.msra.mxu1 %v15897_v25  ;;  %9164 = vmatprep.subr.bf16.mxu0 %v15902_v27  ;;  %v15962_v25 = vld [vmem:[%s17954_s9 + $0x5c4] ss:$48 sps:$4 sm:$0xff]   ;;  %v15965_v27 = vld [vmem:[%s17954_s9 + $0x5bc] ss:$48 sps:$4 sm:$0xff]  }
0x1e10   : > { %9058 = vmatprep.subr.bf16.mxu1 %v15905_v15  ;;  %v15960_v15 = vld [vmem:[%s17954_s9 + $0x5c0] ss:$48 sps:$4 sm:$0xff]  }
0x1e12   : > { %9165 = vmatpush1.bf16.msra.mxu0 %v15900_v55  ;;  %v15963_v55 = vld [vmem:[%s17954_s9 + $0x5b8] ss:$48 sps:$4 sm:$0xff]  }
0x1e13   : > { %9059 = vmatpush1.bf16.msra.mxu1 %v15903_v14  ;;  %9166 = vmatprep.subr.bf16.mxu0 %v15908_v0  ;;  %v15968_v14 = vld [vmem:[%s17954_s9 + $0x624] ss:$48 sps:$4 sm:$0xff]   ;;  %v15971_v0 = vld [vmem:[%s17954_s9 + $0x61c] ss:$48 sps:$4 sm:$0xff]  }
0x1e14   : > { %9060 = vmatprep.subr.bf16.mxu1 %v15911_v45  ;;  %v15966_v45 = vld [vmem:[%s17954_s9 + $0x620] ss:$48 sps:$4 sm:$0xff]  }
0x1e16   : > { %9167 = vmatpush1.bf16.msra.mxu0 %v15906_v20  ;;  %v15969_v20 = vld [vmem:[%s17954_s9 + $0x618] ss:$48 sps:$4 sm:$0xff]  }
0x1e17   : > { %9061 = vmatpush1.bf16.msra.mxu1 %v15909_v12  ;;  %9168 = vmatprep.subr.bf16.mxu0 %v15914_v32  ;;  %v15974_v12 = vld [vmem:[%s17954_s9 + $0x684] ss:$48 sps:$4 sm:$0xff]   ;;  %v15977_v32 = vld [vmem:[%s17954_s9 + $0x67c] ss:$48 sps:$4 sm:$0xff]  }
0x1e18   : > { %9062 = vmatprep.subr.bf16.mxu1 %v15917_v1  ;;  %v15972_v1 = vld [vmem:[%s17954_s9 + $0x680] ss:$48 sps:$4 sm:$0xff]  }
0x1e1a   : > { %9169 = vmatpush1.bf16.msra.mxu0 %v15912_v34  ;;  %v15975_v34 = vld [vmem:[%s17954_s9 + $0x678] ss:$48 sps:$4 sm:$0xff]  }
0x1e1b   : > { %9063 = vmatpush1.bf16.msra.mxu1 %v15915_v43  ;;  %9170 = vmatprep.subr.bf16.mxu0 %v15920_v4  ;;  %v15980_v43 = vld [vmem:[%s17954_s9 + $0x6e4] ss:$48 sps:$4 sm:$0xff]   ;;  %v15983_v4 = vld [vmem:[%s17954_s9 + $0x6dc] ss:$48 sps:$4 sm:$0xff]  }
0x1e1c   : > { %9064 = vmatprep.subr.bf16.mxu1 %v15923_v40  ;;  %v15978_v40 = vld [vmem:[%s17954_s9 + $0x6e0] ss:$48 sps:$4 sm:$0xff]  }
0x1e1e   : > { %9171 = vmatpush1.bf16.msra.mxu0 %v15918_v38  ;;  %v15981_v38 = vld [vmem:[%s17954_s9 + $0x6d8] ss:$48 sps:$4 sm:$0xff]  }
0x1e1f   : > { %9065 = vmatpush1.bf16.msra.mxu1 %v15921_v28  ;;  %9172 = vmatprep.subr.bf16.mxu0 %v15926_v30  ;;  %v15986_v28 = vld [vmem:[%s17954_s9 + $0x744] ss:$48 sps:$4 sm:$0xff]   ;;  %v15989_v30 = vld [vmem:[%s17954_s9 + $0x73c] ss:$48 sps:$4 sm:$0xff]  }
0x1e20   : > { %9066 = vmatprep.subr.bf16.mxu1 %v15929_v46  ;;  %v15984_v46 = vld [vmem:[%s17954_s9 + $0x740] ss:$48 sps:$4 sm:$0xff]  }
0x1e22   : > { %9173 = vmatpush1.bf16.msra.mxu0 %v15924_v54  ;;  %v15987_v54 = vld [vmem:[%s17954_s9 + $0x738] ss:$48 sps:$4 sm:$0xff]  }
0x1e23   : > { %9067 = vmatpush1.bf16.msra.mxu1 %v15927_v33  ;;  %9174 = vmatprep.subr.bf16.mxu0 %v15932_v61  ;;  %v15992_v33 = vld [vmem:[%s17954_s9 + $0x7a4] ss:$48 sps:$4 sm:$0xff]   ;;  %v15995_v61 = vld [vmem:[%s17954_s9 + $0x79c] ss:$48 sps:$4 sm:$0xff]  }
0x1e24   : > { %9068 = vmatprep.subr.bf16.mxu1 %v15935_v24  ;;  %v15990_v24 = vld [vmem:[%s17954_s9 + $0x7a0] ss:$48 sps:$4 sm:$0xff]  }
0x1e26   : > { %9175 = vmatpush1.bf16.msra.mxu0 %v15930_v59  ;;  %v15993_v59 = vld [vmem:[%s17954_s9 + $0x798] ss:$48 sps:$4 sm:$0xff]  }
0x1e27   : > { %9069 = vmatpush1.bf16.msra.mxu1 %v15933_v10  ;;  %9176 = vmatprep.subr.bf16.mxu0 %v15938_v11  ;;  %v15998_v10 = vld [vmem:[%s17954_s9 + $0x804] ss:$48 sps:$4 sm:$0xff]   ;;  %v16001_v11 = vld [vmem:[%s17954_s9 + $0x7fc] ss:$48 sps:$4 sm:$0xff]  }
0x1e28   : > { %9070 = vmatprep.subr.bf16.mxu1 %v15941_v57  ;;  %v15996_v57 = vld [vmem:[%s17954_s9 + $0x800] ss:$48 sps:$4 sm:$0xff]  }
0x1e2a   : > { %9177 = vmatpush1.bf16.msra.mxu0 %v15936_v23  ;;  %v15999_v23 = vld [vmem:[%s17954_s9 + $0x7f8] ss:$48 sps:$4 sm:$0xff]  }
0x1e2b   : > { %9071 = vmatpush1.bf16.msra.mxu1 %v15939_v41  ;;  %9178 = vmatprep.subr.bf16.mxu0 %v15944_v63  ;;  %v16004_v41 = vld [vmem:[%s17954_s9 + $0x864] ss:$48 sps:$4 sm:$0xff]   ;;  %v16007_v63 = vld [vmem:[%s17954_s9 + $0x85c] ss:$48 sps:$4 sm:$0xff]  }
0x1e2c   : > { %9072 = vmatprep.subr.bf16.mxu1 %v15947_v13  ;;  %v16002_v13 = vld [vmem:[%s17954_s9 + $0x860] ss:$48 sps:$4 sm:$0xff]  }
0x1e2e   : > { %9179 = vmatpush1.bf16.msra.mxu0 %v15942_v16  ;;  %v16005_v16 = vld [vmem:[%s17954_s9 + $0x858] ss:$48 sps:$4 sm:$0xff]  }
0x1e2f   : > { %9073 = vmatpush1.bf16.msra.mxu1 %v15945_v31  ;;  %9180 = vmatprep.subr.bf16.mxu0 %v15950_v50  ;;  %v16010_v31 = vld [vmem:[%s17954_s9 + $0x8c4] ss:$48 sps:$4 sm:$0xff]   ;;  %v16013_v50 = vld [vmem:[%s17954_s9 + $0x8bc] ss:$48 sps:$4 sm:$0xff]  }
0x1e30   : > { %9074 = vmatprep.subr.bf16.mxu1 %v15953_v2  ;;  %v16008_v2 = vld [vmem:[%s17954_s9 + $0x8c0] ss:$48 sps:$4 sm:$0xff]  }
0x1e32   : > { %9181 = vmatpush1.bf16.msra.mxu0 %v15948_v19  ;;  %v16011_v19 = vld [vmem:[%s17954_s9 + $0x8b8] ss:$48 sps:$4 sm:$0xff]  }
0x1e33   : > { %9075 = vmatpush1.bf16.msra.mxu1 %v15951_v60  ;;  %9182 = vmatprep.subr.bf16.mxu0 %v15956_v62  ;;  %v16016_v60 = vld [vmem:[%s17964_s21 + $0x4] ss:$12 sps:$4 sm:$0xff]  }
0x1e34   : > { %9076 = vmatprep.subr.bf16.mxu1 %v15959_v52  ;;  %v16019_v62 = vld [vmem:[%s17954_s9 + $0x2c] ss:$48 sps:$4 sm:$0xff]   ;;  %v16014_v52 = vld [vmem:[%s17964_s21] ss:$12 sps:$4 sm:$0xff]  }
0x1e36   : > { %9183 = vmatpush1.bf16.msra.mxu0 %v15954_v58  ;;  %v16017_v58 = vld [vmem:[%s17954_s9 + $0x28] ss:$48 sps:$4 sm:$0xff]  }
0x1e37   : > { %9077 = vmatpush1.bf16.msra.mxu1 %v15957_v42  ;;  %9184 = vmatprep.subr.bf16.mxu0 %v15962_v25  ;;  %v16022_v42 = vld [vmem:[%s17964_s21 + $0x1c] ss:$12 sps:$4 sm:$0xff]   ;;  %v16025_v25 = vld [vmem:[%s17954_s9 + $0x8c] ss:$48 sps:$4 sm:$0xff]  }
0x1e38   : > { %9078 = vmatprep.subr.bf16.mxu1 %v15965_v27  ;;  %v16020_v27 = vld [vmem:[%s17964_s21 + $0x18] ss:$12 sps:$4 sm:$0xff]  }
0x1e3a   : > { %9185 = vmatpush1.bf16.msra.mxu0 %v15960_v15  ;;  %v16023_v15 = vld [vmem:[%s17954_s9 + $0x88] ss:$48 sps:$4 sm:$0xff]  }
0x1e3b   : > { %9079 = vmatpush1.bf16.msra.mxu1 %v15963_v55  ;;  %9207 = vmatprep.subr.bf16.mxu0 %v15968_v14  ;;  %v16028_v55 = vld [vmem:[%s17964_s21 + $0x34] ss:$12 sps:$4 sm:$0xff]  }
0x1e3c   : > { %9101 = vmatprep.subr.bf16.mxu1 %v15971_v0  ;;  %v16031_v14 = vld [vmem:[%s17954_s9 + $0xec] ss:$48 sps:$4 sm:$0xff]   ;;  %v16026_v0 = vld [vmem:[%s17964_s21 + $0x30] ss:$12 sps:$4 sm:$0xff]  }
0x1e3d   : > { %9187 = vmatmul.mubr.bf16.vlgmr.msra.gmra.mrb[148].mxu0 %v18952_v21 }
0x1e3e   : > { %9081 = vmatmul.mubr.bf16.vlgmr.msra.gmra.mrb[160].mxu1 %v18952_v21  ;;  %9196 = vmatprep.mubr.bf16.mxu0 %v18968_v5 }
0x1e3f   : > { %9208 = vmatpush1.bf16.msra.mxu0 %v15966_v45  ;;  %9090 = vmatprep.mubr.bf16.mxu1 %v18968_v5  ;;  %v16029_v45 = vld [vmem:[%s17954_s9 + $0xe8] ss:$48 sps:$4 sm:$0xff]  }
0x1e40   : > { %9102 = vmatpush1.bf16.msra.mxu1 %v15969_v20  ;;  %9209 = vmatprep.subr.bf16.mxu0 %v15974_v12  ;;  %v16034_v20 = vld [vmem:[%s17964_s21 + $0x4c] ss:$12 sps:$4 sm:$0xff]   ;;  %v16037_v12 = vld [vmem:[%s17954_s9 + $0x14c] ss:$48 sps:$4 sm:$0xff]  }
0x1e41   : > { %9103 = vmatprep.subr.bf16.mxu1 %v15977_v32  ;;  %v16032_v32 = vld [vmem:[%s17964_s21 + $0x48] ss:$12 sps:$4 sm:$0xff]  }
0x1e43   : > { %9210 = vmatpush1.bf16.msra.mxu0 %v15972_v1  ;;  %v16035_v1 = vld [vmem:[%s17954_s9 + $0x148] ss:$48 sps:$4 sm:$0xff]  }
0x1e44   : > { %9104 = vmatpush1.bf16.msra.mxu1 %v15975_v34  ;;  %9211 = vmatprep.subr.bf16.mxu0 %v15980_v43  ;;  %v16040_v34 = vld [vmem:[%s17964_s21 + $0x64] ss:$12 sps:$4 sm:$0xff]  }
0x1e45   : > { %9197 = vmatmul.mubr.bf16.gmra.mrb[152].mxu0 %v18973_v17  ;;  %9105 = vmatprep.subr.bf16.mxu1 %v15983_v4  ;;  %v16043_v43 = vld [vmem:[%s17954_s9 + $0x1ac] ss:$48 sps:$4 sm:$0xff]  }
0x1e46   : > { %9091 = vmatmul.mubr.bf16.gmra.mrb[164].mxu1 %v18973_v17  ;;  %9239 = vmatprep.mubr.bf16.mxu0 %v17232_v51  ;;  %v19210_v4 = vld [vmem:[%s17961_s14] sm:$0xff] }
0x1e47   : > { %9212 = vmatpush1.bf16.msra.mxu0 %v15978_v40  ;;  %9133 = vmatprep.mubr.bf16.mxu1 %v17232_v51  ;;  %v16038_v40 = vld [vmem:[%s17964_s21 + $0x60] ss:$12 sps:$4 sm:$0xff]  }
0x1e48   : > { %9106 = vmatpush1.bf16.msra.mxu1 %v15981_v38  ;;  %9213 = vmatprep.subr.bf16.mxu0 %v15986_v28  ;;  %v16041_v38 = vld [vmem:[%s17954_s9 + $0x1a8] ss:$48 sps:$4 sm:$0xff]   ;;  %v16046_v28 = vld [vmem:[%s17964_s21 + $0x7c] ss:$12 sps:$4 sm:$0xff]  }
0x1e49   : > { %9107 = vmatprep.subr.bf16.mxu1 %v15989_v30  ;;  %v16049_v30 = vld [vmem:[%s17954_s9 + $0x20c] ss:$48 sps:$4 sm:$0xff]  }
0x1e4b   : > { %9214 = vmatpush1.bf16.msra.mxu0 %v15984_v46  ;;  %v19220_v46 = vrot.slane %v19210_v4, %v18094_v48 }
0x1e4c   : > { %9108 = vmatpush1.bf16.msra.mxu1 %v15987_v54  ;;  %9215 = vmatprep.subr.bf16.mxu0 %v15992_v33  ;;  %v16044_v33 = vld [vmem:[%s17964_s21 + $0x78] ss:$12 sps:$4 sm:$0xff]  }
0x1e4d   : > { %9109 = vmatprep.subr.bf16.mxu1 %v15995_v61 }
0x1e4f   : > { %9216 = vmatpush1.bf16.msra.mxu0 %v15990_v24 }
0x1e50   : > { %9110 = vmatpush1.bf16.msra.mxu1 %v15993_v59  ;;  %9217 = vmatprep.subr.bf16.mxu0 %v15998_v10  ;;  %v16047_v59 = vld [vmem:[%s17954_s9 + $0x208] ss:$48 sps:$4 sm:$0xff]  }
0x1e51   : > { %9111 = vmatprep.subr.bf16.mxu1 %v16001_v11  ;;  %v16052_v10 = vld [vmem:[%s17964_s21 + $0x94] ss:$12 sps:$4 sm:$0xff]  }
0x1e53   : > { %9218 = vmatpush1.bf16.msra.mxu0 %v15996_v57 }
0x1e54   : > { %9112 = vmatpush1.bf16.msra.mxu1 %v15999_v23  ;;  %9219 = vmatprep.subr.bf16.mxu0 %v16004_v41  ;;  %v16055_v41 = vld [vmem:[%s17954_s9 + $0x26c] ss:$48 sps:$4 sm:$0xff]  }
0x1e55   : > { %9113 = vmatprep.subr.bf16.mxu1 %v16007_v63 }
0x1e57   : > { %9220 = vmatpush1.bf16.msra.mxu0 %v16002_v13 }
0x1e58   : > { %9114 = vmatpush1.bf16.msra.mxu1 %v16005_v16  ;;  %9221 = vmatprep.subr.bf16.mxu0 %v16010_v31 }
0x1e59   : > { %9115 = vmatprep.subr.bf16.mxu1 %v16013_v50 }
0x1e5b   : > { %9222 = vmatpush1.bf16.msra.mxu0 %v16008_v2 }
0x1e5c   : > { %9116 = vmatpush1.bf16.msra.mxu1 %v16011_v19  ;;  %11375 = vmatprep.subr.bf16.mxu0 %v16016_v60  ;;  %v16050_v19 = vld [vmem:[%s17964_s21 + $0x90] ss:$12 sps:$4 sm:$0xff]  }
0x1e5d   : > { %9260 = vmatprep.subr.bf16.mxu1 %v16019_v62 }
0x1e5e   : > { %9240 = vmatmul.mubr.bf16.vlgmr.msra.gmra.mrb[148].mxu0 %v18946_v35 }
0x1e5f   : > { %9134 = vmatmul.mubr.bf16.vlgmr.msra.gmra.mrb[160].mxu1 %v18946_v35  ;;  %11376 = vmatpush1.bf16.msra.mxu0 %v16014_v52  ;;  %v16053_v52 = vld [vmem:[%s17954_s9 + $0x268] ss:$48 sps:$4 sm:$0xff]  }
0x1e60   : > { %9261 = vmatpush1.bf16.msra.mxu1 %v16017_v58  ;;  %11377 = vmatprep.subr.bf16.mxu0 %v16022_v42  ;;  %v16058_v58 = vld [vmem:[%s17964_s21 + $0xac] ss:$12 sps:$4 sm:$0xff]  }
0x1e61   : > { %9262 = vmatprep.subr.bf16.mxu1 %v16025_v25  ;;  %9249 = vmatprep.mubr.bf16.mxu0 %v17232_v51  ;;  %v16061_v25 = vld [vmem:[%s17954_s9 + $0x2cc] ss:$48 sps:$4 sm:$0xff]  }
0x1e62   : > { %9143 = vmatprep.mubr.bf16.mxu1 %v17232_v51 }
0x1e63   : > { %11378 = vmatpush1.bf16.msra.mxu0 %v16020_v27 }
0x1e64   : > { %9263 = vmatpush1.bf16.msra.mxu1 %v16023_v15  ;;  %11379 = vmatprep.subr.bf16.mxu0 %v16028_v55  ;;  %v16056_v15 = vld [vmem:[%s17964_s21 + $0xa8] ss:$12 sps:$4 sm:$0xff]  }
0x1e65   : > { %9264 = vmatprep.subr.bf16.mxu1 %v16031_v14 }
0x1e66   : > { %9250 = vmatmul.mubr.bf16.gmra.mrb[152].mxu0 %v18970_v9 }
0x1e67   : > { %9144 = vmatmul.mubr.bf16.gmra.mrb[164].mxu1 %v18970_v9  ;;  %11380 = vmatpush1.bf16.msra.mxu0 %v16026_v0 }
0x1e68   : > { %9265 = vmatpush1.bf16.msra.mxu1 %v16029_v45  ;;  %9292 = vmatprep.mubr.bf16.mxu1 %v18944_v37  ;;  %v7233_v37 = vrot.slane %v19210_v4, %v18091_v47  ;;  %v16059_v45 = vld [vmem:[%s17954_s9 + $0x2c8] ss:$48 sps:$4 sm:$0xff]  }
0x1e69   : > { %11381 = vmatprep.subr.bf16.mxu0 %v16034_v20  ;;  %9266 = vmatprep.subr.bf16.mxu1 %v16037_v12 }
0x1e6b   : > { %11382 = vmatpush1.bf16.msra.mxu0 %v16032_v32 }
0x1e6c   : > { %9267 = vmatpush1.bf16.msra.mxu1 %v16035_v1  ;;  %11383 = vmatprep.subr.bf16.mxu0 %v16040_v34  ;;  %v16064_v34 = vld [vmem:[%s17964_s21 + $0xc4] ss:$12 sps:$4 sm:$0xff]  }
0x1e6d   : > { %9268 = vmatprep.subr.bf16.mxu1 %v16043_v43 }
0x1e6f   : > { %11384 = vmatpush1.bf16.msra.mxu0 %v16038_v40  ;;  %v8817_v54 = vpop.f32.mrb[132].mxu0 }
0x1e70   : > { %9269 = vmatpush1.bf16.msra.mxu1 %v16041_v38  ;;  %11385 = vmatprep.subr.bf16.mxu0 %v16046_v28  ;;  %v8764_v61 = vpop.f32.mrb[144].mxu1  ;;  %v8819_v24 = vpop.f32.mrb[133].mxu0 }
0x1e71   : > { %v8765_v11 = vadd.f32 %v8764_v61, %v7233_v37  ;;  %9270 = vmatprep.subr.bf16.mxu1 %v16049_v30  ;;  %v8766_v57 = vpop.f32.mrb[145].mxu1  ;;  %v8821_v23 = vpop.f32.mrb[134].mxu0  ;;  %v16067_v30 = vld [vmem:[%s17954_s9 + $0x32c] ss:$48 sps:$4 sm:$0xff]  }
0x1e72   : > { %v8767_v63 = vadd.f32 %v8766_v57, %v19220_v46  ;;  %v8768_v13 = vpop.f32.mrb[146].mxu1  ;;  %v8823_v16 = vpop.f32.mrb[135].mxu0  ;;  %v16062_v57 = vld [vmem:[%s17964_s21 + $0xc0] ss:$12 sps:$4 sm:$0xff]  }
0x1e73   : > { %v8818_v31 = vadd.f32 %v8817_v54, %v8765_v11  ;;  %11386 = vmatpush1.bf16.msra.mxu0 %v16044_v33  ;;  %v8769_v50 = vadd.f32 %v8768_v13, %v7233_v37  ;;  %v8770_v2 = vpop.f32.mrb[147].mxu1  ;;  %v16070_v13 = vld [vmem:[%s17964_s21 + $0xdc] ss:$12 sps:$4 sm:$0xff]  }
0x1e74   : > { %v8820_v60 = vadd.f32 %v8819_v24, %v8767_v63  ;;  %9271 = vmatpush1.bf16.msra.mxu1 %v16047_v59  ;;  %v8771_v62 = vadd.f32 %v8770_v2, %v19220_v46  ;;  %11387 = vmatprep.subr.bf16.mxu0 %v16052_v10  ;;  %v16065_v63 = vld [vmem:[%s17954_s9 + $0x328] ss:$48 sps:$4 sm:$0xff]  }
0x1e75   : > { %v8822_v42 = vadd.f32 %v8821_v23, %v8769_v50  ;;  %9272 = vmatprep.subr.bf16.mxu1 %v16055_v41  ;;  %v9366_v55 = vmax.f32 %v8818_v31, 0.0  ;;  %v16073_v31 = vld [vmem:[%s17954_s9 + $0x38c] ss:$48 sps:$4 sm:$0xff]  }
0x1e76   : > { %v8824_v27 = vadd.f32 %v8823_v16, %v8771_v62  ;;  %v9367_v20 = vmax.f32 %v8820_v60, 0.0  ;;  %v16071_v62 = vld [vmem:[%s17954_s9 + $0x388] ss:$48 sps:$4 sm:$0xff]  }
0x1e77   : > { %v9378_v14 = vmax.f32 %v8822_v42, 0.0  ;;  %11388 = vmatpush1.bf16.msra.mxu0 %v16050_v19  ;;  %v8827_v0 = vpop.f32.mrb[136].mxu0  ;;  %v16068_v19 = vld [vmem:[%s17964_s21 + $0xd8] ss:$12 sps:$4 sm:$0xff]  }
0x1e78   : > { %v9379_v12 = vmax.f32 %v8824_v27, 0.0  ;;  %9273 = vmatpush1.bf16.msra.mxu1 %v16053_v52  ;;  %11389 = vmatprep.subr.bf16.mxu0 %v16058_v58  ;;  %v8774_v32 = vpop.f32.mrb[148].mxu1  ;;  %v8829_v1 = vpop.f32.mrb[137].mxu0  ;;  %v16076_v52 = vld [vmem:[%s17964_s21 + $0xf4] ss:$12 sps:$4 sm:$0xff]  }
0x1e79   : > { %v19235_v43 = vpack.c.bf16 %v9378_v14, %v9366_v55  ;;  %v8775_v40 = vadd.f32 %v8774_v32, %v7233_v37  ;;  %9274 = vmatprep.subr.bf16.mxu1 %v16061_v25  ;;  %v8776_v38 = vpop.f32.mrb[149].mxu1  ;;  %v8831_v28 = vpop.f32.mrb[138].mxu0  ;;  %v16079_v58 = vld [vmem:[%s17954_s9 + $0x3ec] ss:$48 sps:$4 sm:$0xff]   ;;  %v16074_v27 = vld [vmem:[%s17964_s21 + $0xf0] ss:$12 sps:$4 sm:$0xff]  }
0x1e7a   : > { %v8777_v54 = vadd.f32 %v8776_v38, %v19220_v46  ;;  %v8778_v33 = vpop.f32.mrb[150].mxu1  ;;  %v8833_v61 = vpop.f32.mrb[139].mxu0  ;;  %v19239_v24 = vpack.c.bf16 %v9379_v12, %v9367_v20  ;;  %v16082_v55 = vld [vmem:[%s17964_s21 + $0x10c] ss:$12 sps:$4 sm:$0xff]   ;;  %v16085_v14 = vld [vmem:[%s17954_s9 + $0x44c] ss:$48 sps:$4 sm:$0xff]  }
0x1e7b   : > { %v8828_v59 = vadd.f32 %v8827_v0, %v8775_v40  ;;  %11390 = vmatpush1.bf16.msra.mxu0 %v16056_v15  ;;  %v8779_v10 = vadd.f32 %v8778_v33, %v7233_v37  ;;  %v8780_v11 = vpop.f32.mrb[151].mxu1  ;;  %v16077_v15 = vld [vmem:[%s17954_s9 + $0x3e8] ss:$48 sps:$4 sm:$0xff]   ;;  %v16080_v0 = vld [vmem:[%s17964_s21 + $0x108] ss:$12 sps:$4 sm:$0xff]  }
0x1e7c   : > { %v8830_v23 = vadd.f32 %v8829_v1, %v8777_v54  ;;  %9275 = vmatpush1.bf16.msra.mxu1 %v16059_v45  ;;  %v8781_v41 = vadd.f32 %v8780_v11, %v19220_v46  ;;  %11391 = vmatprep.subr.bf16.mxu0 %v16064_v34  ;;  %v16083_v45 = vld [vmem:[%s17954_s9 + $0x448] ss:$48 sps:$4 sm:$0xff]   ;;  %v16091_v12 = vld [vmem:[%s17954_s9 + $0x4ac] ss:$48 sps:$4 sm:$0xff]   ;;  %v16094_v34 = vld [vmem:[%s17964_s21 + $0x13c] ss:$12 sps:$4 sm:$0xff]  }
0x1e7d   : > { %v8832_v16 = vadd.f32 %v8831_v28, %v8779_v10  ;;  %9276 = vmatprep.subr.bf16.mxu1 %v16067_v30  ;;  %11407 = vmatprep.mubr.bf16.mxu0 %v19239_v24  ;;  %v9390_v37 = vmax.f32 %v8828_v59, 0.0  ;;  %v16088_v20 = vld [vmem:[%s17964_s21 + $0x124] ss:$12 sps:$4 sm:$0xff]   ;;  %v16086_v32 = vld [vmem:[%s17964_s21 + $0x120] ss:$12 sps:$4 sm:$0xff]  }
0x1e7e   : > { %v8834_v50 = vadd.f32 %v8833_v61, %v8781_v41  ;;  %v9391_v46 = vmax.f32 %v8830_v23, 0.0  ;;  %v16089_v1 = vld [vmem:[%s17954_s9 + $0x4a8] ss:$48 sps:$4 sm:$0xff]   ;;  %v16097_v40 = vld [vmem:[%s17954_s9 + $0x50c] ss:$48 sps:$4 sm:$0xff]  }
0x1e7f   : > { %v9402_v2 = vmax.f32 %v8832_v16, 0.0  ;;  %11392 = vmatpush1.bf16.msra.mxu0 %v16062_v57  ;;  %v16092_v38 = vld [vmem:[%s17964_s21 + $0x138] ss:$12 sps:$4 sm:$0xff]   ;;  %v16095_v28 = vld [vmem:[%s17954_s9 + $0x508] ss:$48 sps:$4 sm:$0xff]  }
0x1e80   : > { %v9403_v60 = vmax.f32 %v8834_v50, 0.0  ;;  %9277 = vmatpush1.bf16.msra.mxu1 %v16065_v63  ;;  %11393 = vmatprep.subr.bf16.mxu0 %v16070_v13  ;;  %v16100_v30 = vld [vmem:[%s17964_s21 + $0x154] ss:$12 sps:$4 sm:$0xff]   ;;  %v16098_v33 = vld [vmem:[%s17964_s21 + $0x150] ss:$12 sps:$4 sm:$0xff]  }
0x1e81   : > { %9278 = vmatprep.subr.bf16.mxu1 %v16073_v31  ;;  %v19251_v42 = vpack.c.bf16 %v9402_v2, %v9390_v37  ;;  %v16103_v54 = vld [vmem:[%s17954_s9 + $0x56c] ss:$48 sps:$4 sm:$0xff]   ;;  %v16101_v61 = vld [vmem:[%s17954_s9 + $0x568] ss:$48 sps:$4 sm:$0xff]   ;;  %v16106_v59 = vld [vmem:[%s17964_s21 + $0x16c] ss:$12 sps:$4 sm:$0xff]  }
0x1e82   : > { %v19253_v25 = vpack.c.bf16 %v9403_v60, %v9391_v46  ;;  %v16109_v10 = vld [vmem:[%s17954_s9 + $0x5cc] ss:$48 sps:$4 sm:$0xff]   ;;  %v16107_v57 = vld [vmem:[%s17954_s9 + $0x5c8] ss:$48 sps:$4 sm:$0xff]   ;;  %v16118_v16 = vld [vmem:[%s17964_s21 + $0x19c] ss:$12 sps:$4 sm:$0xff]  }
0x1e83   : > { %11394 = vmatpush1.bf16.msra.mxu0 %v16068_v19  ;;  %v16104_v11 = vld [vmem:[%s17964_s21 + $0x168] ss:$12 sps:$4 sm:$0xff]   ;;  %v16112_v23 = vld [vmem:[%s17964_s21 + $0x184] ss:$12 sps:$4 sm:$0xff]   ;;  %v16110_v63 = vld [vmem:[%s17964_s21 + $0x180] ss:$12 sps:$4 sm:$0xff]  }
0x1e84   : > { %9279 = vmatpush1.bf16.msra.mxu1 %v16071_v62  ;;  %11395 = vmatprep.subr.bf16.mxu0 %v16076_v52  ;;  %v16115_v41 = vld [vmem:[%s17954_s9 + $0x62c] ss:$48 sps:$4 sm:$0xff]   ;;  %v16113_v13 = vld [vmem:[%s17954_s9 + $0x628] ss:$48 sps:$4 sm:$0xff]   ;;  %v16130_v60 = vld [vmem:[%s17964_s21 + $0x1cc] ss:$12 sps:$4 sm:$0xff]  }
0x1e85   : > { %9280 = vmatprep.subr.bf16.mxu1 %v16079_v58  ;;  %v16121_v31 = vld [vmem:[%s17954_s9 + $0x68c] ss:$48 sps:$4 sm:$0xff]   ;;  %v16119_v37 = vld [vmem:[%s17954_s9 + $0x688] ss:$48 sps:$4 sm:$0xff]  }
0x1e86   : > { %v16116_v50 = vld [vmem:[%s17964_s21 + $0x198] ss:$12 sps:$4 sm:$0xff]   ;;  %v16124_v2 = vld [vmem:[%s17964_s21 + $0x1b4] ss:$12 sps:$4 sm:$0xff]   ;;  %v16122_v46 = vld [vmem:[%s17964_s21 + $0x1b0] ss:$12 sps:$4 sm:$0xff]  }
0x1e87   : > { %11396 = vmatpush1.bf16.msra.mxu0 %v16074_v27  ;;  %v16127_v19 = vld [vmem:[%s17954_s9 + $0x6ec] ss:$48 sps:$4 sm:$0xff]   ;;  %v16131_v52 = vld [vmem:[%s17954_s9 + $0x748] ss:$48 sps:$4 sm:$0xff]  }
0x1e88   : > { %9281 = vmatpush1.bf16.msra.mxu1 %v16077_v15  ;;  %11397 = vmatprep.subr.bf16.mxu0 %v16082_v55  ;;  %v16128_v62 = vld [vmem:[%s17964_s21 + $0x1c8] ss:$12 sps:$4 sm:$0xff]   ;;  %v16136_v58 = vld [vmem:[%s17964_s21 + $0x1e4] ss:$12 sps:$4 sm:$0xff]   ;;  %v16134_v15 = vld [vmem:[%s17964_s21 + $0x1e0] ss:$12 sps:$4 sm:$0xff]  }
0x1e89   : > { %9282 = vmatprep.subr.bf16.mxu1 %v16085_v14  ;;  %v16139_v27 = vld [vmem:[%s17954_s9 + $0x7ac] ss:$48 sps:$4 sm:$0xff]   ;;  %v16142_v55 = vld [vmem:[%s17964_s21 + $0x1fc] ss:$12 sps:$4 sm:$0xff]  }
0x1e8a   : > { %v16145_v14 = vld [vmem:[%s17954_s9 + $0x80c] ss:$48 sps:$4 sm:$0xff]  }
0x1e8b   : > { %11398 = vmatpush1.bf16.msra.mxu0 %v16080_v0  ;;  %v16140_v0 = vld [vmem:[%s17964_s21 + $0x1f8] ss:$12 sps:$4 sm:$0xff]  }
0x1e8c   : > { %9283 = vmatpush1.bf16.msra.mxu1 %v16083_v45  ;;  %11399 = vmatprep.subr.bf16.mxu0 %v16088_v20  ;;  %v16143_v45 = vld [vmem:[%s17954_s9 + $0x808] ss:$48 sps:$4 sm:$0xff]  }
0x1e8d   : > { %9284 = vmatprep.subr.bf16.mxu1 %v16091_v12  ;;  %v16148_v20 = vld [vmem:[%s17964_s21 + $0x214] ss:$12 sps:$4 sm:$0xff]  }
0x1e8e   : > { %v16151_v12 = vld [vmem:[%s17954_s9 + $0x86c] ss:$48 sps:$4 sm:$0xff]  }
0x1e8f   : > { %11400 = vmatpush1.bf16.msra.mxu0 %v16086_v32  ;;  %v16146_v32 = vld [vmem:[%s17964_s21 + $0x210] ss:$12 sps:$4 sm:$0xff]  }
0x1e90   : > { %9285 = vmatpush1.bf16.msra.mxu1 %v16089_v1  ;;  %11401 = vmatprep.subr.bf16.mxu0 %v16094_v34  ;;  %v16149_v1 = vld [vmem:[%s17954_s9 + $0x868] ss:$48 sps:$4 sm:$0xff]   ;;  %v16154_v34 = vld [vmem:[%s17964_s21 + $0x22c] ss:$12 sps:$4 sm:$0xff]  }
0x1e91   : > { %9286 = vmatprep.subr.bf16.mxu1 %v16097_v40  ;;  %v16157_v40 = vld [vmem:[%s17954_s9 + $0x8cc] ss:$48 sps:$4 sm:$0xff]  }
0x1e93   : > { %11402 = vmatpush1.bf16.msra.mxu0 %v16092_v38  ;;  %v16152_v38 = vld [vmem:[%s17964_s21 + $0x228] ss:$12 sps:$4 sm:$0xff]  }
0x1e94   : > { %9287 = vmatpush1.bf16.msra.mxu1 %v16095_v28  ;;  %11403 = vmatprep.subr.bf16.mxu0 %v16100_v30  ;;  %v16155_v28 = vld [vmem:[%s17954_s9 + $0x8c8] ss:$48 sps:$4 sm:$0xff]  }
0x1e95   : > { %9288 = vmatprep.subr.bf16.mxu1 %v16103_v54  ;;  %v16160_v30 = vld [vmem:[%s17964_s21 + $0x244] ss:$12 sps:$4 sm:$0xff]   ;;  %v16161_v54 = vld [vmem:[%s17964_s21 + $0xc8] ss:$12 sps:$4 sm:$0xff]  }
0x1e97   : > { %11404 = vmatpush1.bf16.msra.mxu0 %v16098_v33  ;;  %v16158_v33 = vld [vmem:[%s17964_s21 + $0x240] ss:$12 sps:$4 sm:$0xff]  }
0x1e98   : > { %9289 = vmatpush1.bf16.msra.mxu1 %v16101_v61  ;;  %11405 = vmatprep.subr.bf16.mxu0 %v16106_v59  ;;  %v16162_v61 = vld [vmem:[%s17964_s21 + $0x8] ss:$12 sps:$4 sm:$0xff]  }
0x1e99   : > { %9290 = vmatprep.subr.bf16.mxu1 %v16109_v10  ;;  %v16165_v59 = vld [vmem:[%s17964_s21 + $0x25c] ss:$12 sps:$4 sm:$0xff]   ;;  %v16166_v10 = vld [vmem:[%s17964_s21 + $0xe0] ss:$12 sps:$4 sm:$0xff]  }
0x1e9b   : > { %11406 = vmatpush1.bf16.msra.mxu0 %v16104_v11  ;;  %v16163_v11 = vld [vmem:[%s17964_s21 + $0x258] ss:$12 sps:$4 sm:$0xff]  }
0x1e9c   : > { %9291 = vmatpush1.bf16.msra.mxu1 %v16107_v57  ;;  %11428 = vmatprep.subr.bf16.mxu0 %v16112_v23  ;;  %v16167_v57 = vld [vmem:[%s17964_s21 + $0x20] ss:$12 sps:$4 sm:$0xff]  }
0x1e9d   : > { %9313 = vmatprep.subr.bf16.mxu1 %v16115_v41  ;;  %v16170_v23 = vld [vmem:[%s17964_s21 + $0x274] ss:$12 sps:$4 sm:$0xff]   ;;  %v16171_v41 = vld [vmem:[%s17964_s21 + $0xf8] ss:$12 sps:$4 sm:$0xff]  }
0x1e9e   : > { %11408 = vmatmul.mubr.bf16.vlgmr.msra.gmra.mrb[156].mxu0 %v19235_v43 }
0x1e9f   : > { %9293 = vmatmul.mubr.bf16.vlgmr.msra.gmra.mrb[168].mxu1 %v18952_v21  ;;  %11417 = vmatprep.mubr.bf16.mxu0 %v19253_v25  ;;  %v16125_v21 = vld [vmem:[%s17954_s9 + $0x6e8] ss:$48 sps:$4 sm:$0xff]  }
0x1ea0   : > { %11429 = vmatpush1.bf16.msra.mxu0 %v16110_v63  ;;  %9302 = vmatprep.mubr.bf16.mxu1 %v18968_v5  ;;  %v16133_v5 = vld [vmem:[%s17954_s9 + $0x74c] ss:$48 sps:$4 sm:$0xff]   ;;  %v16168_v63 = vld [vmem:[%s17964_s21 + $0x270] ss:$12 sps:$4 sm:$0xff]  }
0x1ea1   : > { %9314 = vmatpush1.bf16.msra.mxu1 %v16113_v13  ;;  %11430 = vmatprep.subr.bf16.mxu0 %v16118_v16  ;;  %v16175_v13 = vld [vmem:[%s17964_s21 + $0x28c] ss:$12 sps:$4 sm:$0xff]   ;;  %v16176_v16 = vld [vmem:[%s17964_s21 + $0x110] ss:$12 sps:$4 sm:$0xff]  }
0x1ea2   : > { %9315 = vmatprep.subr.bf16.mxu1 %v16121_v31  ;;  %v16173_v31 = vld [vmem:[%s17964_s21 + $0x288] ss:$12 sps:$4 sm:$0xff]  }
0x1ea4   : > { %11431 = vmatpush1.bf16.msra.mxu0 %v16116_v50  ;;  %v16180_v50 = vld [vmem:[%s17964_s21 + $0x2a4] ss:$12 sps:$4 sm:$0xff]  }
0x1ea5   : > { %9316 = vmatpush1.bf16.msra.mxu1 %v16119_v37  ;;  %11432 = vmatprep.subr.bf16.mxu0 %v16124_v2  ;;  %v7248_v37 = vsub.s32 4, %v18086_v36  ;;  %v16181_v2 = vld [vmem:[%s17964_s21 + $0x128] ss:$12 sps:$4 sm:$0xff]  }
0x1ea6   : > { %11418 = vmatmul.mubr.bf16.gmra.mrb[160].mxu0 %v19251_v42  ;;  %9317 = vmatprep.subr.bf16.mxu1 %v16127_v19  ;;  %v7252_v19 = vsub.s32 5, %v18086_v36 }
0x1ea7   : > { %9303 = vmatmul.mubr.bf16.gmra.mrb[172].mxu1 %v18973_v17  ;;  %v16137_v17 = vld [vmem:[%s17954_s9 + $0x7a8] ss:$48 sps:$4 sm:$0xff]  }
0x1ea8   : > { %11433 = vmatpush1.bf16.msra.mxu0 %v16122_v46  ;;  %9345 = vmatprep.mubr.bf16.mxu1 %v17232_v51  ;;  %v16178_v46 = vld [vmem:[%s17964_s21 + $0x2a0] ss:$12 sps:$4 sm:$0xff]  }
0x1ea9   : > { %9318 = vmatpush1.bf16.msra.mxu1 %v16125_v21  ;;  %11434 = vmatprep.subr.bf16.mxu0 %v16130_v60  ;;  %v16182_v21 = vld [vmem:[%s17964_s21 + $0x68] ss:$12 sps:$4 sm:$0xff]  }
0x1eaa   : > { %9319 = vmatprep.subr.bf16.mxu1 %v16133_v5  ;;  %v16185_v60 = vld [vmem:[%s17964_s21 + $0x2bc] ss:$12 sps:$4 sm:$0xff]   ;;  %v19349_v5 = vrot.slane %v19210_v4, %v18111_v6 }
0x1eac   : > { %11435 = vmatpush1.bf16.msra.mxu0 %v16128_v62  ;;  %v19352_v62 = vrot.slane %v19210_v4, %v7252_v19 }
0x1ead   : > { %9320 = vmatpush1.bf16.msra.mxu1 %v16131_v52  ;;  %11436 = vmatprep.subr.bf16.mxu0 %v16136_v58  ;;  %v16186_v52 = vld [vmem:[%s17964_s21 + $0x140] ss:$12 sps:$4 sm:$0xff]  }
0x1eae   : > { %9321 = vmatprep.subr.bf16.mxu1 %v16139_v27 }
0x1eb0   : > { %11437 = vmatpush1.bf16.msra.mxu0 %v16134_v15  ;;  %v16183_v15 = vld [vmem:[%s17964_s21 + $0x2b8] ss:$12 sps:$4 sm:$0xff]  }
0x1eb1   : > { %9322 = vmatpush1.bf16.msra.mxu1 %v16137_v17  ;;  %11438 = vmatprep.subr.bf16.mxu0 %v16142_v55 }
0x1eb2   : > { %9323 = vmatprep.subr.bf16.mxu1 %v16145_v14 }
0x1eb4   : > { %11439 = vmatpush1.bf16.msra.mxu0 %v16140_v0  ;;  %v16187_v0 = vld [vmem:[%s17964_s21 + $0x80] ss:$12 sps:$4 sm:$0xff]  }
0x1eb5   : > { %9324 = vmatpush1.bf16.msra.mxu1 %v16143_v45  ;;  %11440 = vmatprep.subr.bf16.mxu0 %v16148_v20  ;;  %v16190_v45 = vld [vmem:[%s17964_s21 + $0x2d4] ss:$12 sps:$4 sm:$0xff]  }
0x1eb6   : > { %9325 = vmatprep.subr.bf16.mxu1 %v16151_v12 }
0x1eb8   : > { %11441 = vmatpush1.bf16.msra.mxu0 %v16146_v32 }
0x1eb9   : > { %9326 = vmatpush1.bf16.msra.mxu1 %v16149_v1  ;;  %11442 = vmatprep.subr.bf16.mxu0 %v16154_v34  ;;  %v16191_v1 = vld [vmem:[%s17964_s21 + $0x158] ss:$12 sps:$4 sm:$0xff]  }
0x1eba   : > { %9327 = vmatprep.subr.bf16.mxu1 %v16157_v40 }
0x1ebc   : > { %11443 = vmatpush1.bf16.msra.mxu0 %v16152_v38 }
0x1ebd   : > { %9328 = vmatpush1.bf16.msra.mxu1 %v16155_v28  ;;  %11444 = vmatprep.subr.bf16.mxu0 %v16160_v30 }
0x1ebe   : > { %14299 = vmatprep.subr.bf16.mxu1 %v16161_v54 }
0x1ec0   : > { %9346 = vmatmul.mubr.bf16.vlgmr.msra.gmra.mrb[168].mxu1 %v18946_v35  ;;  %11445 = vmatpush1.bf16.msra.mxu0 %v16158_v33  ;;  %v16172_v35 = vld [vmem:[%s17964_s21 + $0x38] ss:$12 sps:$4 sm:$0xff]  }
0x1ec1   : > { %14300 = vmatpush3.bf16.msra.mxu1 %v16162_v61  ;;  %11446 = vmatprep.subr.bf16.mxu0 %v16165_v59  ;;  %v16188_v61 = vld [vmem:[%s17964_s21 + $0x2d0] ss:$12 sps:$4 sm:$0xff]  }
0x1ec2   : > { %14301 = vmatprep.subr.bf16.mxu1 %v16166_v10  ;;  %9355 = vmatprep.mubr.bf16.mxu1 %v17232_v51  ;;  %v16177_v51 = vld [vmem:[%s17964_s21 + $0x50] ss:$12 sps:$4 sm:$0xff]  }
0x1ec4   : > { %11447 = vmatpush1.bf16.msra.mxu0 %v16163_v11 }
0x1ec5   : > { %14302 = vmatpush3.bf16.msra.mxu1 %v16167_v57  ;;  %11448 = vmatprep.subr.bf16.mxu0 %v16170_v23  ;;  %v16192_v57 = vld [vmem:[%s17964_s21 + $0x98] ss:$12 sps:$4 sm:$0xff]  }
0x1ec6   : > { %14303 = vmatprep.subr.bf16.mxu1 %v16171_v41  ;;  %v16195_v23 = vld [vmem:[%s17964_s21 + $0x2ec] ss:$12 sps:$4 sm:$0xff]  }
0x1ec8   : > { %9356 = vmatmul.mubr.bf16.gmra.mrb[172].mxu1 %v18970_v9  ;;  %11449 = vmatpush1.bf16.msra.mxu0 %v16168_v63  ;;  %v7244_v9 = vsub.s32 3, %v18086_v36 }
0x1ec9   : > { %14304 = vmatpush3.bf16.msra.mxu1 %v16172_v35  ;;  %11725 = vmatprep.mubr.bf16.mxu1 %v19239_v24  ;;  %v19344_v24 = vrot.slane %v19210_v4, %v7248_v37 }
0x1eca   : > { %11450 = vmatprep.subr.bf16.mxu0 %v16175_v13  ;;  %14305 = vmatprep.subr.bf16.mxu1 %v16176_v16  ;;  %v19358_v58 = vrot.slane %v19210_v4, %v7244_v9  ;;  %v16196_v16 = vld [vmem:[%s17964_s21 + $0x170] ss:$12 sps:$4 sm:$0xff]  }
0x1ecc   : > { %11451 = vmatpush1.bf16.msra.mxu0 %v16173_v31 }
0x1ecd   : > { %14306 = vmatpush3.bf16.msra.mxu1 %v16177_v51  ;;  %11452 = vmatprep.subr.bf16.mxu0 %v16180_v50 }
0x1ece   : > { %14307 = vmatprep.subr.bf16.mxu1 %v16181_v2 }
0x1ed0   : > { %11453 = vmatpush1.bf16.msra.mxu0 %v16178_v46  ;;  %v9029_v27 = vpop.f32.mrb[140].mxu0  ;;  %v16193_v46 = vld [vmem:[%s17964_s21 + $0x2e8] ss:$12 sps:$4 sm:$0xff]  }
0x1ed1   : > { %14308 = vmatpush3.bf16.msra.mxu1 %v16182_v21  ;;  %v14933_v17 = vadd.f32 %v9029_v27, %v19344_v24  ;;  %v8923_v55 = vpop.f32.mrb[152].mxu1  ;;  %v9031_v14 = vpop.f32.mrb[141].mxu0  ;;  %11454 = vmatprep.subr.bf16.mxu0 %v16185_v60 }
0x1ed2   : > { %v14925_v20 = vadd.f32 %v8923_v55, %v19349_v5  ;;  %v14934_v12 = vadd.f32 %v9031_v14, %v19352_v62  ;;  %v8925_v32 = vpop.f32.mrb[153].mxu1  ;;  %v9033_v4 = vpop.f32.mrb[142].mxu0  ;;  %14309 = vmatprep.subr.bf16.mxu1 %v16186_v52 }
0x1ed3   : > { %v14926_v34 = vadd.f32 %v8925_v32, %v19358_v58  ;;  %v14935_v40 = vadd.f32 %v9033_v4, %v19344_v24  ;;  %v8927_v38 = vpop.f32.mrb[154].mxu1  ;;  %v9035_v28 = vpop.f32.mrb[143].mxu0  ;;  %v9370_v59 = vmax.f32 %v14933_v17, 0.0  ;;  %v16200_v17 = vld [vmem:[%s17964_s21 + $0x304] ss:$12 sps:$4 sm:$0xff]  }
0x1ed4   : > { %11455 = vmatpush1.bf16.msra.mxu0 %v16183_v15  ;;  %v14927_v30 = vadd.f32 %v8927_v38, %v19349_v5  ;;  %v14936_v54 = vadd.f32 %v9035_v28, %v19352_v62  ;;  %v8929_v33 = vpop.f32.mrb[155].mxu1  ;;  %v9368_v41 = vmax.f32 %v14925_v20, 0.0  ;;  %v9371_v63 = vmax.f32 %v14934_v12, 0.0  ;;  %v16197_v15 = vld [vmem:[%s17964_s21 + $0xb0] ss:$12 sps:$4 sm:$0xff]  }
0x1ed5   : > { %v9382_v10 = vmax.f32 %v14935_v40, 0.0  ;;  %14310 = vmatpush3.bf16.msra.mxu1 %v16187_v0  ;;  %v14928_v11 = vadd.f32 %v8929_v33, %v19358_v58  ;;  %11456 = vmatprep.subr.bf16.mxu0 %v16190_v45  ;;  %v9369_v31 = vmax.f32 %v14926_v34, 0.0  ;;  %v16201_v20 = vld [vmem:[%s17964_s21 + $0x248] ss:$12 sps:$4 sm:$0xff]   ;;  %v16198_v28 = vld [vmem:[%s17964_s21 + $0x300] ss:$12 sps:$4 sm:$0xff]  }
0x1ed6   : > { %v9380_v35 = vmax.f32 %v14927_v30, 0.0  ;;  %v9383_v13 = vmax.f32 %v14936_v54, 0.0  ;;  %14311 = vmatprep.subr.bf16.mxu1 %v16191_v1 }
0x1ed7   : > { %v19376_v51 = vpack.c.bf16 %v9382_v10, %v9370_v59  ;;  %v9381_v50 = vmax.f32 %v14928_v11, 0.0 }
0x1ed8   : > { %v19378_v37 = vpack.c.bf16 %v9380_v35, %v9368_v41  ;;  %v19380_v2 = vpack.c.bf16 %v9383_v13, %v9371_v63  ;;  %11457 = vmatpush1.bf16.msra.mxu0 %v16188_v61  ;;  %v9039_v19 = vpop.f32.mrb[144].mxu0  ;;  %v16202_v61 = vld [vmem:[%s17964_s21 + $0x188] ss:$12 sps:$4 sm:$0xff]   ;;  %v16203_v35 = vld [vmem:[%s17964_s21 + $0x318] ss:$12 sps:$4 sm:$0xff]  }
0x1ed9   : > { %v19383_v21 = vpack.c.bf16 %v9381_v50, %v9369_v31  ;;  %14312 = vmatpush3.bf16.msra.mxu1 %v16192_v57  ;;  %v14937_v60 = vadd.f32 %v9039_v19, %v19344_v24  ;;  %v8933_v52 = vpop.f32.mrb[156].mxu1  ;;  %v9041_v27 = vpop.f32.mrb[145].mxu0  ;;  %11458 = vmatprep.subr.bf16.mxu0 %v16195_v23  ;;  %v16210_v31 = vld [vmem:[%s17964_s21 + $0x334] ss:$12 sps:$4 sm:$0xff]   ;;  %v16211_v50 = vld [vmem:[%s17964_s21 + $0x278] ss:$12 sps:$4 sm:$0xff]  }
0x1eda   : > { %v14929_v55 = vadd.f32 %v8933_v52, %v19349_v5  ;;  %v14938_v14 = vadd.f32 %v9041_v27, %v19352_v62  ;;  %v8935_v0 = vpop.f32.mrb[157].mxu1  ;;  %v9043_v45 = vpop.f32.mrb[146].mxu0  ;;  %14313 = vmatprep.subr.bf16.mxu1 %v16196_v16  ;;  %v16207_v16 = vld [vmem:[%s17964_s21 + $0x1a0] ss:$12 sps:$4 sm:$0xff]   ;;  %v16208_v19 = vld [vmem:[%s17964_s21 + $0x330] ss:$12 sps:$4 sm:$0xff]  }
0x1edb   : > { %v14930_v12 = vadd.f32 %v8935_v0, %v19358_v58  ;;  %v14939_v32 = vadd.f32 %v9043_v45, %v19344_v24  ;;  %v8937_v4 = vpop.f32.mrb[158].mxu1  ;;  %v9045_v1 = vpop.f32.mrb[147].mxu0  ;;  %11460 = vmatprep.mubr.bf16.mxu0 %v19383_v21  ;;  %v9394_v30 = vmax.f32 %v14937_v60, 0.0  ;;  %v16205_v24 = vld [vmem:[%s17964_s21 + $0x31c] ss:$12 sps:$4 sm:$0xff]  }
0x1edc   : > { %11459 = vmatpush1.bf16.msra.mxu0 %v16193_v46  ;;  %v14931_v34 = vadd.f32 %v8937_v4, %v19349_v5  ;;  %v14940_v40 = vadd.f32 %v9045_v1, %v19352_v62  ;;  %v8939_v38 = vpop.f32.mrb[159].mxu1  ;;  %v9392_v59 = vmax.f32 %v14929_v55, 0.0  ;;  %v9395_v10 = vmax.f32 %v14938_v14, 0.0  ;;  %v16206_v5 = vld [vmem:[%s17964_s21 + $0x260] ss:$12 sps:$4 sm:$0xff]  }
0x1edd   : > { %v9406_v54 = vmax.f32 %v14939_v32, 0.0  ;;  %14314 = vmatpush3.bf16.msra.mxu1 %v16197_v15  ;;  %v14932_v33 = vadd.f32 %v8939_v38, %v19358_v58  ;;  %11481 = vmatprep.subr.bf16.mxu0 %v16200_v17  ;;  %v9393_v62 = vmax.f32 %v14930_v12, 0.0  ;;  %v16216_v46 = vld [vmem:[%s17964_s21 + $0x290] ss:$12 sps:$4 sm:$0xff]   ;;  %v16213_v60 = vld [vmem:[%s17964_s21 + $0x348] ss:$12 sps:$4 sm:$0xff]  }
0x1ede   : > { %v9404_v11 = vmax.f32 %v14931_v34, 0.0  ;;  %v9407_v57 = vmax.f32 %v14940_v40, 0.0  ;;  %14327 = vmatprep.subr.bf16.mxu1 %v16201_v20  ;;  %v16220_v52 = vld [vmem:[%s17964_s21 + $0x364] ss:$12 sps:$4 sm:$0xff]   ;;  %v16221_v15 = vld [vmem:[%s17964_s21 + $0x2a8] ss:$12 sps:$4 sm:$0xff]  }
0x1edf   : > { %v19401_v23 = vpack.c.bf16 %v9406_v54, %v9394_v30  ;;  %v9405_v41 = vmax.f32 %v14932_v33, 0.0  ;;  %11461 = vmatmul.mubr.bf16.vlgmr.msra.gmra.mrb[156].mxu0 %v19378_v37  ;;  %v16217_v27 = vld [vmem:[%s17964_s21 + $0x1d0] ss:$12 sps:$4 sm:$0xff]   ;;  %v16218_v17 = vld [vmem:[%s17964_s21 + $0x360] ss:$12 sps:$4 sm:$0xff]  }
0x1ee0   : > { %v19404_v58 = vpack.c.bf16 %v9404_v11, %v9392_v59  ;;  %v19406_v63 = vpack.c.bf16 %v9407_v57, %v9395_v10  ;;  %11482 = vmatpush1.bf16.msra.mxu0 %v16198_v28  ;;  %11726 = vmatmul.mubr.bf16.vlgmr.msra.gmra.mrb[176].mxu1 %v19235_v43  ;;  %v16215_v43 = vld [vmem:[%s17964_s21 + $0x34c] ss:$12 sps:$4 sm:$0xff]   ;;  %v16225_v55 = vld [vmem:[%s17964_s21 + $0x37c] ss:$12 sps:$4 sm:$0xff]   ;;  %v16240_v40 = vld [vmem:[%s17964_s21 + $0x3c4] ss:$12 sps:$4 sm:$0xff]  }
0x1ee1   : > { %v19410_v13 = vpack.c.bf16 %v9405_v41, %v9393_v62  ;;  %11733 = vmatprep.mubr.bf16.mxu1 %v19253_v25  ;;  %14328 = vmatpush3.bf16.msra.mxu1 %v16202_v61  ;;  %v16212_v25 = vld [vmem:[%s17964_s21 + $0x1b8] ss:$12 sps:$4 sm:$0xff]   ;;  %v16226_v14 = vld [vmem:[%s17964_s21 + $0x2c0] ss:$12 sps:$4 sm:$0xff]   ;;  %v16228_v12 = vld [vmem:[%s17964_s21 + $0x390] ss:$12 sps:$4 sm:$0xff]  }
0x1ee2   : > { %11483 = vmatprep.subr.bf16.mxu0 %v16205_v24  ;;  %14329 = vmatprep.subr.bf16.mxu1 %v16206_v5  ;;  %v16223_v0 = vld [vmem:[%s17964_s21 + $0x378] ss:$12 sps:$4 sm:$0xff]   ;;  %v16227_v45 = vld [vmem:[%s17964_s21 + $0x200] ss:$12 sps:$4 sm:$0xff]   ;;  %v16236_v1 = vld [vmem:[%s17964_s21 + $0x2f0] ss:$12 sps:$4 sm:$0xff]  }
0x1ee3   : > { %11470 = vmatprep.mubr.bf16.mxu0 %v19410_v13  ;;  %v16231_v20 = vld [vmem:[%s17964_s21 + $0x2d8] ss:$12 sps:$4 sm:$0xff]   ;;  %v16233_v34 = vld [vmem:[%s17964_s21 + $0x3a8] ss:$12 sps:$4 sm:$0xff]   ;;  %v16237_v38 = vld [vmem:[%s17964_s21 + $0x230] ss:$12 sps:$4 sm:$0xff]  }
0x1ee4   : > { %11484 = vmatpush1.bf16.msra.mxu0 %v16203_v35  ;;  %v16235_v32 = vld [vmem:[%s17964_s21 + $0x3ac] ss:$12 sps:$4 sm:$0xff]   ;;  %v16241_v28 = vld [vmem:[%s17964_s21 + $0x3c8] ss:$12 sps:$4 sm:$0xff]   ;;  %v16248_v57 = vld [vmem:[%s17964_s21 + $0x3f0] ss:$12 sps:$4 sm:$0xff]  }
0x1ee5   : > { %14330 = vmatpush3.bf16.msra.mxu1 %v16207_v16  ;;  %11485 = vmatprep.subr.bf16.mxu0 %v16210_v31  ;;  %v16232_v4 = vld [vmem:[%s17964_s21 + $0x218] ss:$12 sps:$4 sm:$0xff]   ;;  %v16238_v30 = vld [vmem:[%s17964_s21 + $0x3c0] ss:$12 sps:$4 sm:$0xff]   ;;  %v16245_v54 = vld [vmem:[%s17964_s21 + $0x3dc] ss:$12 sps:$4 sm:$0xff]  }
0x1ee6   : > { %14331 = vmatprep.subr.bf16.mxu1 %v16211_v50  ;;  %v16242_v33 = vld [vmem:[%s17964_s21 + $0x308] ss:$12 sps:$4 sm:$0xff]   ;;  %v16246_v61 = vld [vmem:[%s17964_s21 + $0x3e0] ss:$12 sps:$4 sm:$0xff]   ;;  %v16243_v24 = vld [vmem:[%s17964_s21 + $0x3d8] ss:$12 sps:$4 sm:$0xff]  }
0x1ee7   : > { %11471 = vmatmul.mubr.bf16.gmra.mrb[160].mxu0 %v19404_v58  ;;  %v16250_v59 = vld [vmem:[%s17964_s21 + $0x3f4] ss:$12 sps:$4 sm:$0xff]   ;;  %v16251_v11 = vld [vmem:[%s17964_s21 + $0x3f8] ss:$12 sps:$4 sm:$0xff]   ;;  %v16265_v50 = vld [vmem:[%s17964_s21 + $0x43c] ss:$12 sps:$4 sm:$0xff]  }
0x1ee8   : > { %11486 = vmatpush1.bf16.msra.mxu0 %v16208_v19  ;;  %11513 = vmatprep.mubr.bf16.mxu0 %v19380_v2  ;;  %v16247_v10 = vld [vmem:[%s17964_s21 + $0x320] ss:$12 sps:$4 sm:$0xff]   ;;  %v16252_v62 = vld [vmem:[%s17964_s21 + $0x338] ss:$12 sps:$4 sm:$0xff]   ;;  %v16253_v41 = vld [vmem:[%s17964_s21 + $0x408] ss:$12 sps:$4 sm:$0xff]  }
0x1ee9   : > { %11734 = vmatmul.mubr.bf16.gmra.mrb[180].mxu1 %v19251_v42  ;;  %11487 = vmatprep.subr.bf16.mxu0 %v16215_v43  ;;  %v16222_v42 = vld [vmem:[%s17964_s21 + $0x1e8] ss:$12 sps:$4 sm:$0xff]   ;;  %v16255_v5 = vld [vmem:[%s17964_s21 + $0x40c] ss:$12 sps:$4 sm:$0xff]   ;;  %v16260_v35 = vld [vmem:[%s17964_s21 + $0x424] ss:$12 sps:$4 sm:$0xff]  }
0x1eea   : > { %14332 = vmatpush3.bf16.msra.mxu1 %v16212_v25  ;;  %11774 = vmatprep.mubr.bf16.mxu1 %v19383_v21  ;;  %v16230_v21 = vld [vmem:[%s17964_s21 + $0x394] ss:$12 sps:$4 sm:$0xff]   ;;  %v16263_v43 = vld [vmem:[%s17964_s21 + $0x438] ss:$12 sps:$4 sm:$0xff]  }
0x1eeb   : > { %14333 = vmatprep.subr.bf16.mxu1 %v16216_v46  ;;  %v16261_v16 = vld [vmem:[%s17964_s21 + $0x428] ss:$12 sps:$4 sm:$0xff]   ;;  %v16258_v31 = vld [vmem:[%s17964_s21 + $0x420] ss:$12 sps:$4 sm:$0xff]   ;;  %v16271_v46 = vld [vmem:[%s17964_s21 + $0x458] ss:$12 sps:$4 sm:$0xff]  }
0x1eec   : > { %11488 = vmatpush1.bf16.msra.mxu0 %v16213_v60  ;;  %v16266_v19 = vld [vmem:[%s17964_s21 + $0x440] ss:$12 sps:$4 sm:$0xff]   ;;  %v16268_v60 = vld [vmem:[%s17964_s21 + $0x450] ss:$12 sps:$4 sm:$0xff]  }
0x1eed   : > { %11489 = vmatprep.subr.bf16.mxu0 %v16220_v52  ;;  %v16267_v25 = vld [vmem:[%s17964_s21 + $0x380] ss:$12 sps:$4 sm:$0xff]  }
0x1eee   : > { %14334 = vmatpush3.bf16.msra.mxu1 %v16217_v27  ;;  %v16275_v52 = vld [vmem:[%s17964_s21 + $0x46c] ss:$12 sps:$4 sm:$0xff]  }
0x1eef   : > { %14335 = vmatprep.subr.bf16.mxu1 %v16221_v15  ;;  %v16272_v27 = vld [vmem:[%s17964_s21 + $0x398] ss:$12 sps:$4 sm:$0xff]   ;;  %v16276_v15 = vld [vmem:[%s17964_s21 + $0x470] ss:$12 sps:$4 sm:$0xff]  }
0x1ef0   : > { %11490 = vmatpush1.bf16.msra.mxu0 %v16218_v17  ;;  %v16273_v17 = vld [vmem:[%s17964_s21 + $0x468] ss:$12 sps:$4 sm:$0xff]  }
0x1ef1   : > { %11491 = vmatprep.subr.bf16.mxu0 %v16225_v55  ;;  %v16280_v55 = vld [vmem:[%s17964_s21 + $0x484] ss:$12 sps:$4 sm:$0xff]  }
0x1ef2   : > { %14336 = vmatpush3.bf16.msra.mxu1 %v16222_v42  ;;  %v16277_v42 = vld [vmem:[%s17964_s21 + $0x3b0] ss:$12 sps:$4 sm:$0xff]  }
0x1ef3   : > { %14337 = vmatprep.subr.bf16.mxu1 %v16226_v14  ;;  %v16281_v14 = vld [vmem:[%s17964_s21 + $0x548] ss:$12 sps:$4 sm:$0xff]  }
0x1ef4   : > { %11492 = vmatpush1.bf16.msra.mxu0 %v16223_v0  ;;  %v16278_v0 = vld [vmem:[%s17964_s21 + $0x480] ss:$12 sps:$4 sm:$0xff]  }
0x1ef5   : > { %11493 = vmatprep.subr.bf16.mxu0 %v16230_v21  ;;  %v16285_v21 = vld [vmem:[%s17964_s21 + $0x49c] ss:$12 sps:$4 sm:$0xff]  }
0x1ef6   : > { %14338 = vmatpush3.bf16.msra.mxu1 %v16227_v45  ;;  %v16282_v45 = vld [vmem:[%s17964_s21 + $0x488] ss:$12 sps:$4 sm:$0xff]  }
0x1ef7   : > { %14339 = vmatprep.subr.bf16.mxu1 %v16231_v20  ;;  %v16286_v20 = vld [vmem:[%s17964_s21 + $0x560] ss:$12 sps:$4 sm:$0xff]  }
0x1ef8   : > { %11494 = vmatpush1.bf16.msra.mxu0 %v16228_v12  ;;  %v16283_v12 = vld [vmem:[%s17964_s21 + $0x498] ss:$12 sps:$4 sm:$0xff]  }
0x1ef9   : > { %11495 = vmatprep.subr.bf16.mxu0 %v16235_v32  ;;  %v16290_v32 = vld [vmem:[%s17964_s21 + $0x4b4] ss:$12 sps:$4 sm:$0xff]  }
0x1efa   : > { %14340 = vmatpush3.bf16.msra.mxu1 %v16232_v4  ;;  %v16287_v4 = vld [vmem:[%s17964_s21 + $0x4a0] ss:$12 sps:$4 sm:$0xff]  }
0x1efb   : > { %14341 = vmatprep.subr.bf16.mxu1 %v16236_v1  ;;  %v16291_v1 = vld [vmem:[%s17964_s21 + $0x578] ss:$12 sps:$4 sm:$0xff]  }
0x1efc   : > { %11496 = vmatpush1.bf16.msra.mxu0 %v16233_v34  ;;  %v16288_v34 = vld [vmem:[%s17964_s21 + $0x4b0] ss:$12 sps:$4 sm:$0xff]  }
0x1efd   : > { %11497 = vmatprep.subr.bf16.mxu0 %v16240_v40  ;;  %v16295_v40 = vld [vmem:[%s17964_s21 + $0x4cc] ss:$12 sps:$4 sm:$0xff]  }
0x1efe   : > { %14342 = vmatpush3.bf16.msra.mxu1 %v16237_v38  ;;  %v16296_v38 = vld [vmem:[%s17964_s21 + $0x590] ss:$12 sps:$4 sm:$0xff]  }
0x1eff   : > { %14355 = vmatprep.subr.bf16.mxu1 %v16241_v28  ;;  %v16300_v28 = vld [vmem:[%s17964_s21 + $0x4e4] ss:$12 sps:$4 sm:$0xff]  }
0x1f00   : > { %11498 = vmatpush1.bf16.msra.mxu0 %v16238_v30  ;;  %v16297_v30 = vld [vmem:[%s17964_s21 + $0x4d0] ss:$12 sps:$4 sm:$0xff]  }
0x1f01   : > { %11775 = vmatmul.mubr.bf16.vlgmr.msra.gmra.mrb[184].mxu1 %v19378_v37  ;;  %11499 = vmatprep.subr.bf16.mxu0 %v16245_v54  ;;  %v16256_v37 = vld [vmem:[%s17964_s21 + $0x410] ss:$12 sps:$4 sm:$0xff]   ;;  %v16301_v54 = vld [vmem:[%s17964_s21 + $0x5a8] ss:$12 sps:$4 sm:$0xff]  }
0x1f02   : > { %11782 = vmatprep.mubr.bf16.mxu1 %v19410_v13  ;;  %14356 = vmatpush3.bf16.msra.mxu1 %v16242_v33  ;;  %v16257_v13 = vld [vmem:[%s17964_s21 + $0x350] ss:$12 sps:$4 sm:$0xff]  }
0x1f03   : > { %14357 = vmatprep.subr.bf16.mxu1 %v16246_v61  ;;  %v19504_v33 = vld [vmem:[%s17961_s14 + $0x8] sm:$0xf]  ;;  %v7256_v61 = vsub.s32 6, %v18086_v36 }
0x1f04   : > { %11500 = vmatpush1.bf16.msra.mxu0 %v16243_v24  ;;  %v16298_v24 = vld [vmem:[%s17964_s21 + $0x4e0] ss:$12 sps:$4 sm:$0xff]  }
0x1f05   : > { %11501 = vmatprep.subr.bf16.mxu0 %v16250_v59  ;;  %v7260_v59 = vsub.s32 7, %v18086_v36 }
0x1f06   : > { %14358 = vmatpush3.bf16.msra.mxu1 %v16247_v10  ;;  %v16302_v10 = vld [vmem:[%s17964_s21 + $0x4e8] ss:$12 sps:$4 sm:$0xff]  }
0x1f07   : > { %14359 = vmatprep.subr.bf16.mxu1 %v16251_v11  ;;  %v19513_v11 = vrot.slane %v19504_v33, %v18091_v47 }
0x1f08   : > { %11502 = vmatpush1.bf16.msra.mxu0 %v16248_v57  ;;  %v16602_v57 = vld [vmem:[%s17961_s14] sm:$0xff] }
0x1f09   : > { %11783 = vmatmul.mubr.bf16.gmra.mrb[188].mxu1 %v19404_v58  ;;  %11503 = vmatprep.subr.bf16.mxu0 %v16255_v5  ;;  %v16262_v58 = vld [vmem:[%s17964_s21 + $0x368] ss:$12 sps:$4 sm:$0xff]   ;;  %v19516_v5 = vrot.slane %v16602_v57, %v7256_v61 }
0x1f0a   : > { %14360 = vmatpush3.bf16.msra.mxu1 %v16252_v62  ;;  %11823 = vmatprep.mubr.bf16.mxu1 %v19380_v2  ;;  %v16270_v2 = vld [vmem:[%s17964_s21 + $0x454] ss:$12 sps:$4 sm:$0xff]   ;;  %v19520_v62 = vrot.slane %v19504_v33, %v18094_v48 }
0x1f0b   : > { %14361 = vmatprep.subr.bf16.mxu1 %v16256_v37  ;;  %v16306_v37 = vld [vmem:[%s17964_s21 + $0x5c0] ss:$12 sps:$4 sm:$0xff]  }
0x1f0c   : > { %11504 = vmatpush1.bf16.msra.mxu0 %v16253_v41  ;;  %v16303_v41 = vld [vmem:[%s17964_s21 + $0x4f8] ss:$12 sps:$4 sm:$0xff]  }
0x1f0d   : > { %11505 = vmatprep.subr.bf16.mxu0 %v16260_v35  ;;  %v19524_v35 = vrot.slane %v16602_v57, %v7260_v59  ;;  %v16320_v59 = vld [vmem:[%s17964_s21 + $0x544] ss:$12 sps:$4 sm:$0xff]  }
0x1f0e   : > { %14362 = vmatpush3.bf16.msra.mxu1 %v16257_v13 }
0x1f0f   : > { %14363 = vmatprep.subr.bf16.mxu1 %v16261_v16  ;;  %v16310_v16 = vld [vmem:[%s17964_s21 + $0x514] ss:$12 sps:$4 sm:$0xff]  }
0x1f10   : > { %11506 = vmatpush1.bf16.msra.mxu0 %v16258_v31 }
0x1f11   : > { %11507 = vmatprep.subr.bf16.mxu0 %v16265_v50 }
0x1f12   : > { %14364 = vmatpush3.bf16.msra.mxu1 %v16262_v58 }
0x1f13   : > { %14365 = vmatprep.subr.bf16.mxu1 %v16266_v19  ;;  %v16307_v19 = vld [vmem:[%s17964_s21 + $0x500] ss:$12 sps:$4 sm:$0xff]  }
0x1f14   : > { %11508 = vmatpush1.bf16.msra.mxu0 %v16263_v43 }
0x1f15   : > { %11509 = vmatprep.subr.bf16.mxu0 %v16270_v2 }
0x1f16   : > { %14366 = vmatpush3.bf16.msra.mxu1 %v16267_v25 }
0x1f17   : > { %14367 = vmatprep.subr.bf16.mxu1 %v16271_v46 }
0x1f18   : > { %11510 = vmatpush1.bf16.msra.mxu0 %v16268_v60  ;;  %v16311_v60 = vld [vmem:[%s17964_s21 + $0x5d8] ss:$12 sps:$4 sm:$0xff]  }
0x1f19   : > { %11511 = vmatprep.subr.bf16.mxu0 %v16275_v52 }
0x1f1a   : > { %14368 = vmatpush3.bf16.msra.mxu1 %v16272_v27 }
0x1f1b   : > { %14369 = vmatprep.subr.bf16.mxu1 %v16276_v15 }
0x1f1c   : > { %11512 = vmatpush1.bf16.msra.mxu0 %v16273_v17 }
0x1f1d   : > { %11534 = vmatprep.subr.bf16.mxu0 %v16280_v55  ;;  %v16308_v55 = vld [vmem:[%s17964_s21 + $0x510] ss:$12 sps:$4 sm:$0xff]  }
0x1f1e   : > { %14370 = vmatpush3.bf16.msra.mxu1 %v16277_v42 }
0x1f1f   : > { %11514 = vmatmul.mubr.bf16.vlgmr.msra.gmra.mrb[156].mxu0 %v19376_v51  ;;  %14383 = vmatprep.subr.bf16.mxu1 %v16281_v14 }
0x1f20   : > { %11523 = vmatprep.mubr.bf16.mxu0 %v19406_v63  ;;  %11535 = vmatpush1.bf16.msra.mxu0 %v16278_v0 }
0x1f21   : > { %11824 = vmatmul.mubr.bf16.vlgmr.msra.gmra.mrb[192].mxu1 %v19376_v51  ;;  %11536 = vmatprep.subr.bf16.mxu0 %v16285_v21  ;;  %v16292_v51 = vld [vmem:[%s17964_s21 + $0x4b8] ss:$12 sps:$4 sm:$0xff]  }
0x1f22   : > { %11831 = vmatprep.mubr.bf16.mxu1 %v19406_v63  ;;  %14384 = vmatpush3.bf16.msra.mxu1 %v16282_v45  ;;  %v16293_v63 = vld [vmem:[%s17964_s21 + $0x4c8] ss:$12 sps:$4 sm:$0xff]   ;;  %v16315_v21 = vld [vmem:[%s17964_s21 + $0x52c] ss:$12 sps:$4 sm:$0xff]  }
0x1f23   : > { %14385 = vmatprep.subr.bf16.mxu1 %v16286_v20 }
0x1f24   : > { %11537 = vmatpush1.bf16.msra.mxu0 %v16283_v12 }
0x1f25   : > { %11538 = vmatprep.subr.bf16.mxu0 %v16290_v32  ;;  %v16312_v32 = vld [vmem:[%s17964_s21 + $0x518] ss:$12 sps:$4 sm:$0xff]  }
0x1f26   : > { %14386 = vmatpush3.bf16.msra.mxu1 %v16287_v4 }
0x1f27   : > { %11524 = vmatmul.mubr.bf16.gmra.mrb[160].mxu0 %v19401_v23  ;;  %14387 = vmatprep.subr.bf16.mxu1 %v16291_v1 }
0x1f28   : > { %11539 = vmatpush1.bf16.msra.mxu0 %v16288_v34 }
0x1f29   : > { %11832 = vmatmul.mubr.bf16.gmra.mrb[196].mxu1 %v19401_v23  ;;  %11540 = vmatprep.subr.bf16.mxu0 %v16295_v40  ;;  %v16305_v23 = vld [vmem:[%s17964_s21 + $0x4fc] ss:$12 sps:$4 sm:$0xff]  }
0x1f2a   : > { %14388 = vmatpush3.bf16.msra.mxu1 %v16292_v51  ;;  %v16316_v51 = vld [vmem:[%s17964_s21 + $0x5f0] ss:$12 sps:$4 sm:$0xff]  }
0x1f2b   : > { %14389 = vmatprep.subr.bf16.mxu1 %v16296_v38 }
0x1f2c   : > { %11541 = vmatpush1.bf16.msra.mxu0 %v16293_v63 }
0x1f2d   : > { %11542 = vmatprep.subr.bf16.mxu0 %v16300_v28 }
0x1f2e   : > { %14390 = vmatpush3.bf16.msra.mxu1 %v16297_v30  ;;  %v16313_v30 = vld [vmem:[%s17964_s21 + $0x528] ss:$12 sps:$4 sm:$0xff]  }
0x1f2f   : > { %14391 = vmatprep.subr.bf16.mxu1 %v16301_v54 }
0x1f30   : > { %11543 = vmatpush1.bf16.msra.mxu0 %v16298_v24 }
0x1f31   : > { %v9241_v13 = vpop.f32.mrb[148].mxu0  ;;  %11544 = vmatprep.subr.bf16.mxu0 %v16305_v23 }
0x1f32   : > { %14392 = vmatpush3.bf16.msra.mxu1 %v16302_v10  ;;  %v14949_v31 = vadd.f32 %v9241_v13, %v19513_v11  ;;  %v9135_v50 = vpop.f32.mrb[160].mxu1  ;;  %v9243_v58 = vpop.f32.mrb[149].mxu0 }
0x1f33   : > { %v14941_v43 = vadd.f32 %v9135_v50, %v19516_v5  ;;  %v14950_v2 = vadd.f32 %v9243_v58, %v19520_v62  ;;  %v9137_v25 = vpop.f32.mrb[161].mxu1  ;;  %v9245_v46 = vpop.f32.mrb[150].mxu0  ;;  %14393 = vmatprep.subr.bf16.mxu1 %v16306_v37  ;;  %v16321_v58 = vld [vmem:[%s17964_s21 + $0x6c8] ss:$12 sps:$4 sm:$0xff]  }
0x1f34   : > { %v14942_v52 = vadd.f32 %v9137_v25, %v19524_v35  ;;  %v14951_v27 = vadd.f32 %v9245_v46, %v19513_v11  ;;  %11545 = vmatpush1.bf16.msra.mxu0 %v16303_v41  ;;  %v9139_v15 = vpop.f32.mrb[162].mxu1  ;;  %v9247_v17 = vpop.f32.mrb[151].mxu0  ;;  %v9374_v45 = vmax.f32 %v14949_v31, 0.0  ;;  %v16317_v41 = vld [vmem:[%s17964_s21 + $0x530] ss:$12 sps:$4 sm:$0xff]  }
0x1f35   : > { %v14943_v42 = vadd.f32 %v9139_v15, %v19516_v5  ;;  %v14952_v14 = vadd.f32 %v9247_v17, %v19520_v62  ;;  %v9141_v0 = vpop.f32.mrb[163].mxu1  ;;  %11546 = vmatprep.subr.bf16.mxu0 %v16310_v16  ;;  %v9372_v4 = vmax.f32 %v14941_v43, 0.0  ;;  %v9375_v1 = vmax.f32 %v14950_v2, 0.0  ;;  %v16318_v46 = vld [vmem:[%s17964_s21 + $0x540] ss:$12 sps:$4 sm:$0xff]  }
0x1f36   : > { %v9386_v20 = vmax.f32 %v14951_v27, 0.0  ;;  %14394 = vmatpush3.bf16.msra.mxu1 %v16307_v19  ;;  %v14944_v12 = vadd.f32 %v9141_v0, %v19524_v35  ;;  %v9373_v38 = vmax.f32 %v14942_v52, 0.0  ;;  %v16325_v15 = vld [vmem:[%s17964_s21 + $0x55c] ss:$12 sps:$4 sm:$0xff]  }
0x1f37   : > { %v9384_v34 = vmax.f32 %v14943_v42, 0.0  ;;  %v9387_v40 = vmax.f32 %v14952_v14, 0.0  ;;  %14395 = vmatprep.subr.bf16.mxu1 %v16311_v60  ;;  %v16322_v42 = vld [vmem:[%s17964_s21 + $0x608] ss:$12 sps:$4 sm:$0xff]  }
0x1f38   : > { %v19541_v63 = vpack.c.bf16 %v9386_v20, %v9374_v45  ;;  %v9385_v28 = vmax.f32 %v14944_v12, 0.0  ;;  %11547 = vmatpush1.bf16.msra.mxu0 %v16308_v55 }
0x1f39   : > { %v19544_v54 = vpack.c.bf16 %v9384_v34, %v9372_v4  ;;  %v19546_v61 = vpack.c.bf16 %v9387_v40, %v9375_v1  ;;  %v9251_v24 = vpop.f32.mrb[152].mxu0  ;;  %11548 = vmatprep.subr.bf16.mxu0 %v16315_v21  ;;  %v16330_v1 = vld [vmem:[%s17964_s21 + $0x574] ss:$12 sps:$4 sm:$0xff]  }
0x1f3a   : > { %v9421_v23 = vpack.c.bf16 %v9385_v28, %v9373_v38  ;;  %14396 = vmatpush3.bf16.msra.mxu1 %v16312_v32  ;;  %v14953_v10 = vadd.f32 %v9251_v24, %v19513_v11  ;;  %v9145_v57 = vpop.f32.mrb[164].mxu1  ;;  %v9253_v37 = vpop.f32.mrb[153].mxu0  ;;  %v16323_v32 = vld [vmem:[%s17964_s21 + $0x558] ss:$12 sps:$4 sm:$0xff]   ;;  %v16327_v40 = vld [vmem:[%s17964_s21 + $0x620] ss:$12 sps:$4 sm:$0xff]  }
0x1f3b   : > { %v14945_v13 = vadd.f32 %v9145_v57, %v19516_v5  ;;  %v14954_v16 = vadd.f32 %v9253_v37, %v19520_v62  ;;  %v9147_v31 = vpop.f32.mrb[165].mxu1  ;;  %v9255_v50 = vpop.f32.mrb[154].mxu0  ;;  %14397 = vmatprep.subr.bf16.mxu1 %v16316_v51  ;;  %v16331_v51 = vld [vmem:[%s17964_s21 + $0x6f8] ss:$12 sps:$4 sm:$0xff]   ;;  %v16328_v38 = vld [vmem:[%s17964_s21 + $0x570] ss:$12 sps:$4 sm:$0xff]  }
0x1f3c   : > { %v14946_v19 = vadd.f32 %v9147_v31, %v19524_v35  ;;  %v14955_v43 = vadd.f32 %v9255_v50, %v19513_v11  ;;  %11549 = vmatpush1.bf16.msra.mxu0 %v16313_v30  ;;  %v9149_v2 = vpop.f32.mrb[166].mxu1  ;;  %v9257_v25 = vpop.f32.mrb[155].mxu0  ;;  %11566 = vmatprep.mubr.bf16.mxu0 %v9421_v23  ;;  %v9398_v17 = vmax.f32 %v14953_v10, 0.0  ;;  %v16335_v28 = vld [vmem:[%s17964_s21 + $0x58c] ss:$12 sps:$4 sm:$0xff]  }
0x1f3d   : > { %v14947_v60 = vadd.f32 %v9149_v2, %v19516_v5  ;;  %v14956_v52 = vadd.f32 %v9257_v25, %v19520_v62  ;;  %11872 = vmatprep.mubr.bf16.mxu1 %v9421_v23  ;;  %v9151_v27 = vpop.f32.mrb[167].mxu1  ;;  %11550 = vmatprep.subr.bf16.mxu0 %v16320_v59  ;;  %v9396_v14 = vmax.f32 %v14945_v13, 0.0  ;;  %v9399_v0 = vmax.f32 %v14954_v16, 0.0  ;;  %v16326_v62 = vld [vmem:[%s17964_s21 + $0x6e0] ss:$12 sps:$4 sm:$0xff]  }
0x1f3e   : > { %v9410_v55 = vmax.f32 %v14955_v43, 0.0  ;;  %14398 = vmatpush3.bf16.msra.mxu1 %v16317_v41  ;;  %v14948_v11 = vadd.f32 %v9151_v27, %v19524_v35  ;;  %v9397_v45 = vmax.f32 %v14946_v19, 0.0  ;;  %v16332_v30 = vld [vmem:[%s17964_s21 + $0x638] ss:$12 sps:$4 sm:$0xff]   ;;  %v16336_v24 = vld [vmem:[%s17964_s21 + $0x710] ss:$12 sps:$4 sm:$0xff]  }
0x1f3f   : > { %v9408_v21 = vmax.f32 %v14947_v60, 0.0  ;;  %v9411_v5 = vmax.f32 %v14956_v52, 0.0  ;;  %14411 = vmatprep.subr.bf16.mxu1 %v16321_v58  ;;  %v16333_v59 = vld [vmem:[%s17964_s21 + $0x588] ss:$12 sps:$4 sm:$0xff]   ;;  %v16340_v23 = vld [vmem:[%s17964_s21 + $0x5a4] ss:$12 sps:$4 sm:$0xff]  }
0x1f40   : > { %v19563_v20 = vpack.c.bf16 %v9410_v55, %v9398_v17  ;;  %v9409_v12 = vmax.f32 %v14948_v11, 0.0  ;;  %11551 = vmatpush1.bf16.msra.mxu0 %v16318_v46  ;;  %v16337_v10 = vld [vmem:[%s17964_s21 + $0x650] ss:$12 sps:$4 sm:$0xff]   ;;  %v16341_v57 = vld [vmem:[%s17964_s21 + $0x728] ss:$12 sps:$4 sm:$0xff]  }
0x1f41   : > { %v19566_v4 = vpack.c.bf16 %v9408_v21, %v9396_v14  ;;  %v19568_v35 = vpack.c.bf16 %v9411_v5, %v9399_v0  ;;  %11873 = vmatmul.mubr.bf16.vlgmr.msra.gmra.mrb[200].mxu1 %v19544_v54  ;;  %11552 = vmatprep.subr.bf16.mxu0 %v16325_v15  ;;  %v16338_v37 = vld [vmem:[%s17964_s21 + $0x5a0] ss:$12 sps:$4 sm:$0xff]   ;;  %v16345_v41 = vld [vmem:[%s17964_s21 + $0x5bc] ss:$12 sps:$4 sm:$0xff]   ;;  %v16343_v31 = vld [vmem:[%s17964_s21 + $0x5b8] ss:$12 sps:$4 sm:$0xff]  }
0x1f42   : > { %v19572_v34 = vpack.c.bf16 %v9409_v12, %v9397_v45  ;;  %14412 = vmatpush3.bf16.msra.mxu1 %v16322_v42  ;;  %v16342_v13 = vld [vmem:[%s17964_s21 + $0x668] ss:$12 sps:$4 sm:$0xff]   ;;  %v16346_v16 = vld [vmem:[%s17964_s21 + $0x740] ss:$12 sps:$4 sm:$0xff]   ;;  %v16351_v19 = vld [vmem:[%s17964_s21 + $0x758] ss:$12 sps:$4 sm:$0xff]  }
0x1f43   : > { %14413 = vmatprep.subr.bf16.mxu1 %v16326_v62  ;;  %v16350_v50 = vld [vmem:[%s17964_s21 + $0x5d4] ss:$12 sps:$4 sm:$0xff]   ;;  %v16348_v43 = vld [vmem:[%s17964_s21 + $0x5d0] ss:$12 sps:$4 sm:$0xff]   ;;  %v16355_v2 = vld [vmem:[%s17964_s21 + $0x5ec] ss:$12 sps:$4 sm:$0xff]  }
0x1f44   : > { %11553 = vmatpush1.bf16.msra.mxu0 %v16323_v32  ;;  %11880 = vmatprep.mubr.bf16.mxu1 %v19572_v34  ;;  %v16347_v58 = vld [vmem:[%s17964_s21 + $0x680] ss:$12 sps:$4 sm:$0xff]   ;;  %v16352_v25 = vld [vmem:[%s17964_s21 + $0x698] ss:$12 sps:$4 sm:$0xff]   ;;  %v16356_v46 = vld [vmem:[%s17964_s21 + $0x770] ss:$12 sps:$4 sm:$0xff]  }
0x1f45   : > { %11554 = vmatprep.subr.bf16.mxu0 %v16330_v1  ;;  %v16353_v60 = vld [vmem:[%s17964_s21 + $0x5e8] ss:$12 sps:$4 sm:$0xff]   ;;  %v16360_v52 = vld [vmem:[%s17964_s21 + $0x604] ss:$12 sps:$4 sm:$0xff]   ;;  %v16358_v17 = vld [vmem:[%s17964_s21 + $0x600] ss:$12 sps:$4 sm:$0xff]  }
0x1f46   : > { %14414 = vmatpush3.bf16.msra.mxu1 %v16327_v40  ;;  %v16357_v27 = vld [vmem:[%s17964_s21 + $0x6b0] ss:$12 sps:$4 sm:$0xff]   ;;  %v16382_v15 = vld [vmem:[%s17964_s21 + $0x848] ss:$12 sps:$4 sm:$0xff]   ;;  %v16387_v42 = vld [vmem:[%s17964_s21 + $0x860] ss:$12 sps:$4 sm:$0xff]  }
0x1f47   : > { %14415 = vmatprep.subr.bf16.mxu1 %v16331_v51  ;;  %v16363_v55 = vld [vmem:[%s17964_s21 + $0x61c] ss:$12 sps:$4 sm:$0xff]   ;;  %v16361_v14 = vld [vmem:[%s17964_s21 + $0x618] ss:$12 sps:$4 sm:$0xff]   ;;  %v16366_v0 = vld [vmem:[%s17964_s21 + $0x634] ss:$12 sps:$4 sm:$0xff]  }
0x1f48   : > { %11555 = vmatpush1.bf16.msra.mxu0 %v16328_v38  ;;  %v16386_v11 = vld [vmem:[%s17964_s21 + $0x788] ss:$12 sps:$4 sm:$0xff]   ;;  %v16391_v21 = vld [vmem:[%s17964_s21 + $0x7a0] ss:$12 sps:$4 sm:$0xff]   ;;  %v16364_v5 = vld [vmem:[%s17964_s21 + $0x630] ss:$12 sps:$4 sm:$0xff]  }
0x1f49   : > { %11881 = vmatmul.mubr.bf16.gmra.mrb[204].mxu1 %v19566_v4  ;;  %11556 = vmatprep.subr.bf16.mxu0 %v16335_v28  ;;  %v16369_v62 = vld [vmem:[%s17964_s21 + $0x64c] ss:$12 sps:$4 sm:$0xff]   ;;  %v16397_v12 = vld [vmem:[%s17964_s21 + $0x890] ss:$12 sps:$4 sm:$0xff]   ;;  %v16367_v32 = vld [vmem:[%s17964_s21 + $0x648] ss:$12 sps:$4 sm:$0xff]  }
0x1f4a   : > { %14416 = vmatpush3.bf16.msra.mxu1 %v16332_v30  ;;  %11921 = vmatprep.mubr.bf16.mxu1 %v19546_v61  ;;  %v16396_v45 = vld [vmem:[%s17964_s21 + $0x7b8] ss:$12 sps:$4 sm:$0xff]   ;;  %v16370_v40 = vld [vmem:[%s17964_s21 + $0x660] ss:$12 sps:$4 sm:$0xff]   ;;  %v16375_v51 = vld [vmem:[%s17964_s21 + $0x67c] ss:$12 sps:$4 sm:$0xff]  }
0x1f4b   : > { %14417 = vmatprep.subr.bf16.mxu1 %v16336_v24  ;;  %v16372_v1 = vld [vmem:[%s17964_s21 + $0x664] ss:$12 sps:$4 sm:$0xff]   ;;  %v16407_v38 = vld [vmem:[%s17964_s21 + $0x8c0] ss:$12 sps:$4 sm:$0xff]  }
0x1f4c   : > { %11557 = vmatpush1.bf16.msra.mxu0 %v16333_v59  ;;  %v16373_v28 = vld [vmem:[%s17964_s21 + $0x678] ss:$12 sps:$4 sm:$0xff]   ;;  %v16378_v30 = vld [vmem:[%s17964_s21 + $0x694] ss:$12 sps:$4 sm:$0xff]  }
0x1f4d   : > { %11558 = vmatprep.subr.bf16.mxu0 %v16340_v23  ;;  %v16411_v24 = vld [vmem:[%s17964_s21 + $0x800] ss:$12 sps:$4 sm:$0xff]   ;;  %v16412_v59 = vld [vmem:[%s17964_s21 + $0x8d8] ss:$12 sps:$4 sm:$0xff]   ;;  %v16376_v23 = vld [vmem:[%s17964_s21 + $0x690] ss:$12 sps:$4 sm:$0xff]  }
0x1f4e   : > { %14418 = vmatpush3.bf16.msra.mxu1 %v16337_v10  ;;  %v16381_v10 = vld [vmem:[%s17964_s21 + $0x6ac] ss:$12 sps:$4 sm:$0xff]  }
0x1f4f   : > { %14419 = vmatprep.subr.bf16.mxu1 %v16341_v57  ;;  %v16416_v57 = vld [vmem:[%s17964_s21 + $0x818] ss:$12 sps:$4 sm:$0xff]  }
0x1f50   : > { %11559 = vmatpush1.bf16.msra.mxu0 %v16338_v37  ;;  %v16417_v37 = vld [vmem:[%s17964_s21 + $0x8f0] ss:$12 sps:$4 sm:$0xff]  }
0x1f51   : > { %11560 = vmatprep.subr.bf16.mxu0 %v16345_v41  ;;  %v16379_v41 = vld [vmem:[%s17964_s21 + $0x6a8] ss:$12 sps:$4 sm:$0xff]  }
0x1f52   : > { %14420 = vmatpush3.bf16.msra.mxu1 %v16342_v13  ;;  %v16385_v13 = vld [vmem:[%s17964_s21 + $0x6c4] ss:$12 sps:$4 sm:$0xff]  }
0x1f53   : > { %14421 = vmatprep.subr.bf16.mxu1 %v16346_v16  ;;  %v16421_v16 = vld [vmem:[%s17964_s21 + $0x830] ss:$12 sps:$4 sm:$0xff]  }
0x1f54   : > { %11561 = vmatpush1.bf16.msra.mxu0 %v16343_v31  ;;  %v16383_v31 = vld [vmem:[%s17964_s21 + $0x6c0] ss:$12 sps:$4 sm:$0xff]  }
0x1f55   : > { %11562 = vmatprep.subr.bf16.mxu0 %v16350_v50  ;;  %v16390_v50 = vld [vmem:[%s17964_s21 + $0x6dc] ss:$12 sps:$4 sm:$0xff]  }
0x1f56   : > { %14422 = vmatpush3.bf16.msra.mxu1 %v16347_v58  ;;  %v16388_v58 = vld [vmem:[%s17964_s21 + $0x6d8] ss:$12 sps:$4 sm:$0xff]  }
0x1f57   : > { %14423 = vmatprep.subr.bf16.mxu1 %v16351_v19  ;;  %v16395_v19 = vld [vmem:[%s17964_s21 + $0x6f4] ss:$12 sps:$4 sm:$0xff]  }
0x1f58   : > { %11563 = vmatpush1.bf16.msra.mxu0 %v16348_v43  ;;  %v16393_v43 = vld [vmem:[%s17964_s21 + $0x6f0] ss:$12 sps:$4 sm:$0xff]  }
0x1f59   : > { %11564 = vmatprep.subr.bf16.mxu0 %v16355_v2  ;;  %v16400_v2 = vld [vmem:[%s17964_s21 + $0x70c] ss:$12 sps:$4 sm:$0xff]  }
0x1f5a   : > { %14424 = vmatpush3.bf16.msra.mxu1 %v16352_v25  ;;  %v16398_v25 = vld [vmem:[%s17964_s21 + $0x708] ss:$12 sps:$4 sm:$0xff]  }
0x1f5b   : > { %14425 = vmatprep.subr.bf16.mxu1 %v16356_v46  ;;  %v16405_v46 = vld [vmem:[%s17964_s21 + $0x724] ss:$12 sps:$4 sm:$0xff]  }
0x1f5c   : > { %11565 = vmatpush1.bf16.msra.mxu0 %v16353_v60  ;;  %v16403_v60 = vld [vmem:[%s17964_s21 + $0x720] ss:$12 sps:$4 sm:$0xff]  }
0x1f5d   : > { %11587 = vmatprep.subr.bf16.mxu0 %v16360_v52  ;;  %v16410_v52 = vld [vmem:[%s17964_s21 + $0x73c] ss:$12 sps:$4 sm:$0xff]  }
0x1f5e   : > { %14426 = vmatpush3.bf16.msra.mxu1 %v16357_v27  ;;  %v7273_v27 = vrot.slane %v19504_v33, %v18111_v6 }
0x1f5f   : > { %11567 = vmatmul.mubr.bf16.vlgmr.msra.gmra.mrb[156].mxu0 %v19544_v54  ;;  %14439 = vmatprep.subr.bf16.mxu1 %v16382_v15  ;;  %v16392_v54 = vld [vmem:[%s17964_s21 + $0x878] ss:$12 sps:$4 sm:$0xff]  }
0x1f60   : > { %11576 = vmatprep.mubr.bf16.mxu0 %v19572_v34  ;;  %11588 = vmatpush1.bf16.msra.mxu0 %v16358_v17  ;;  %v16401_v34 = vld [vmem:[%s17964_s21 + $0x7d0] ss:$12 sps:$4 sm:$0xff]   ;;  %v16408_v15 = vld [vmem:[%s17964_s21 + $0x738] ss:$12 sps:$4 sm:$0xff]   ;;  %v7277_v17 = vrot.slane %v19504_v33, %v7244_v9  ;;  %v16418_v9 = vld [vmem:[%s17964_s21 + $0x768] ss:$12 sps:$4 sm:$0xff]  }
0x1f61   : > { %11922 = vmatmul.mubr.bf16.vlgmr.msra.gmra.mrb[208].mxu1 %v19541_v63  ;;  %11589 = vmatprep.subr.bf16.mxu0 %v16363_v55  ;;  %v16415_v55 = vld [vmem:[%s17964_s21 + $0x754] ss:$12 sps:$4 sm:$0xff]  }
0x1f62   : > { %11929 = vmatprep.mubr.bf16.mxu1 %v19568_v35  ;;  %14440 = vmatpush3.bf16.msra.mxu1 %v16386_v11 }
0x1f63   : > { %14441 = vmatprep.subr.bf16.mxu1 %v16387_v42 }
0x1f64   : > { %11590 = vmatpush1.bf16.msra.mxu0 %v16361_v14 }
0x1f65   : > { %11591 = vmatprep.subr.bf16.mxu0 %v16366_v0  ;;  %v16413_v0 = vld [vmem:[%s17964_s21 + $0x750] ss:$12 sps:$4 sm:$0xff]  }
0x1f66   : > { %14442 = vmatpush3.bf16.msra.mxu1 %v16391_v21 }
0x1f67   : > { %11577 = vmatmul.mubr.bf16.gmra.mrb[160].mxu0 %v19566_v4  ;;  %14443 = vmatprep.subr.bf16.mxu1 %v16392_v54  ;;  %v16402_v4 = vld [vmem:[%s17964_s21 + $0x8a8] ss:$12 sps:$4 sm:$0xff]  }
0x1f68   : > { %11592 = vmatpush1.bf16.msra.mxu0 %v16364_v5  ;;  %11619 = vmatprep.mubr.bf16.mxu0 %v19546_v61  ;;  %v16406_v61 = vld [vmem:[%s17964_s21 + $0x7e8] ss:$12 sps:$4 sm:$0xff]   ;;  %v16420_v5 = vld [vmem:[%s17964_s21 + $0x76c] ss:$12 sps:$4 sm:$0xff]  }
0x1f69   : > { %11930 = vmatmul.mubr.bf16.gmra.mrb[212].mxu1 %v19563_v20  ;;  %11593 = vmatprep.subr.bf16.mxu0 %v16369_v62 }
0x1f6a   : > { %14444 = vmatpush3.bf16.msra.mxu1 %v16396_v45 }
0x1f6b   : > { %14445 = vmatprep.subr.bf16.mxu1 %v16397_v12 }
0x1f6c   : > { %11594 = vmatpush1.bf16.msra.mxu0 %v16367_v32 }
0x1f6d   : > { %11595 = vmatprep.subr.bf16.mxu0 %v16372_v1 }
0x1f6e   : > { %14446 = vmatpush3.bf16.msra.mxu1 %v16401_v34  ;;  %v16424_v34 = vld [vmem:[%s17964_s21 + $0x784] ss:$12 sps:$4 sm:$0xff]  }
0x1f6f   : > { %14447 = vmatprep.subr.bf16.mxu1 %v16402_v4 }
0x1f70   : > { %11596 = vmatpush1.bf16.msra.mxu0 %v16370_v40 }
0x1f71   : > { %11597 = vmatprep.subr.bf16.mxu0 %v16375_v51 }
0x1f72   : > { %14448 = vmatpush3.bf16.msra.mxu1 %v16406_v61 }
0x1f73   : > { %14449 = vmatprep.subr.bf16.mxu1 %v16407_v38 }
0x1f74   : > { %11598 = vmatpush1.bf16.msra.mxu0 %v16373_v28  ;;  %v16422_v28 = vld [vmem:[%s17964_s21 + $0x780] ss:$12 sps:$4 sm:$0xff]  }
0x1f75   : > { %11599 = vmatprep.subr.bf16.mxu0 %v16378_v30 }
0x1f76   : > { %14450 = vmatpush3.bf16.msra.mxu1 %v16411_v24 }
0x1f77   : > { %14451 = vmatprep.subr.bf16.mxu1 %v16412_v59  ;;  %v16427_v59 = vld [vmem:[%s17964_s21 + $0x79c] ss:$12 sps:$4 sm:$0xff]  }
0x1f78   : > { %11600 = vmatpush1.bf16.msra.mxu0 %v16376_v23 }
0x1f79   : > { %11601 = vmatprep.subr.bf16.mxu0 %v16381_v10 }
0x1f7a   : > { %14452 = vmatpush3.bf16.msra.mxu1 %v16416_v57 }
0x1f7b   : > { %14453 = vmatprep.subr.bf16.mxu1 %v16417_v37 }
0x1f7c   : > { %11602 = vmatpush1.bf16.msra.mxu0 %v16379_v41 }
0x1f7d   : > { %11603 = vmatprep.subr.bf16.mxu0 %v16385_v13  ;;  %v16425_v13 = vld [vmem:[%s17964_s21 + $0x798] ss:$12 sps:$4 sm:$0xff]  }
0x1f7e   : > { %14454 = vmatpush3.bf16.msra.mxu1 %v16421_v16 }
0x1f80   : > { %11604 = vmatpush1.bf16.msra.mxu0 %v16383_v31 }
0x1f81   : > { %11605 = vmatprep.subr.bf16.mxu0 %v16390_v50  ;;  %v16430_v50 = vld [vmem:[%s17964_s21 + $0x7b4] ss:$12 sps:$4 sm:$0xff]  }
0x1f84   : > { %11606 = vmatpush1.bf16.msra.mxu0 %v16388_v58 }
0x1f85   : > { %11607 = vmatprep.subr.bf16.mxu0 %v16395_v19 }
0x1f88   : > { %11608 = vmatpush1.bf16.msra.mxu0 %v16393_v43  ;;  %v16431_v43 = vld [vmem:[%s17964_s21 + $0x7c8] ss:$12 sps:$4 sm:$0xff]  }
0x1f89   : > { %11609 = vmatprep.subr.bf16.mxu0 %v16400_v2  ;;  %v16436_v2 = vld [vmem:[%s17964_s21 + $0x7e4] ss:$12 sps:$4 sm:$0xff]  }
0x1f8c   : > { %11610 = vmatpush1.bf16.msra.mxu0 %v16398_v25  ;;  %v16434_v25 = vld [vmem:[%s17964_s21 + $0x7e0] ss:$12 sps:$4 sm:$0xff]  }
0x1f8d   : > { %11611 = vmatprep.subr.bf16.mxu0 %v16405_v46  ;;  %v16439_v46 = vld [vmem:[%s17964_s21 + $0x7fc] ss:$12 sps:$4 sm:$0xff]  }
0x1f90   : > { %11612 = vmatpush1.bf16.msra.mxu0 %v16403_v60  ;;  %v16437_v60 = vld [vmem:[%s17964_s21 + $0x7f8] ss:$12 sps:$4 sm:$0xff]  }
0x1f91   : > { %11613 = vmatprep.subr.bf16.mxu0 %v16410_v52  ;;  %v16442_v52 = vld [vmem:[%s17964_s21 + $0x814] ss:$12 sps:$4 sm:$0xff]  }
0x1f93   : > { %v9347_v11 = vpop.f32.mrb[168].mxu1 }
0x1f94   : > { %v14957_v42 = vadd.f32 %v9347_v11, %v7273_v27  ;;  %v9349_v14 = vpop.f32.mrb[169].mxu1  ;;  %11614 = vmatpush1.bf16.msra.mxu0 %v16408_v15  ;;  %v16440_v15 = vld [vmem:[%s17964_s21 + $0x810] ss:$12 sps:$4 sm:$0xff]   ;;  %v16445_v11 = vld [vmem:[%s17964_s21 + $0x82c] ss:$12 sps:$4 sm:$0xff]  }
0x1f95   : > { %v14958_v21 = vadd.f32 %v9349_v14, %v7277_v17  ;;  %v9351_v54 = vpop.f32.mrb[170].mxu1  ;;  %11615 = vmatprep.subr.bf16.mxu0 %v16415_v55 }
0x1f96   : > { %v14959_v62 = vadd.f32 %v9351_v54, %v7273_v27  ;;  %v9353_v45 = vpop.f32.mrb[171].mxu1  ;;  %v9376_v32 = vmax.f32 %v14957_v42, 0.0 }
0x1f97   : > { %v14960_v12 = vadd.f32 %v9353_v45, %v7277_v17  ;;  %v9377_v33 = vmax.f32 %v14958_v21, 0.0  ;;  %v16448_v21 = vld [vmem:[%s17964_s21 + $0x844] ss:$12 sps:$4 sm:$0xff]   ;;  %v16451_v45 = vld [vmem:[%s17964_s21 + $0x85c] ss:$12 sps:$4 sm:$0xff]  }
0x1f98   : > { %v9388_v36 = vmax.f32 %v14959_v62, 0.0  ;;  %11616 = vmatpush1.bf16.msra.mxu0 %v16413_v0  ;;  %v16443_v0 = vld [vmem:[%s17964_s21 + $0x828] ss:$12 sps:$4 sm:$0xff]  }
0x1f99   : > { %v9389_v1 = vmax.f32 %v14960_v12, 0.0  ;;  %11617 = vmatprep.subr.bf16.mxu0 %v16420_v5  ;;  %v16446_v5 = vld [vmem:[%s17964_s21 + $0x840] ss:$12 sps:$4 sm:$0xff]  }
0x1f9a   : > { %v19662_v4 = vpack.c.bf16 %v9388_v36, %v9376_v32 }
0x1f9b   : > { %v9425_v40 = vpack.c.bf16 %v9389_v1, %v9377_v33  ;;  %v9357_v51 = vpop.f32.mrb[172].mxu1  ;;  %v16449_v33 = vld [vmem:[%s17964_s21 + $0x858] ss:$12 sps:$4 sm:$0xff]   ;;  %v16454_v1 = vld [vmem:[%s17964_s21 + $0x874] ss:$12 sps:$4 sm:$0xff]  }
0x1f9c   : > { %v14961_v61 = vadd.f32 %v9357_v51, %v7273_v27  ;;  %v9359_v38 = vpop.f32.mrb[173].mxu1  ;;  %11618 = vmatpush1.bf16.msra.mxu0 %v16418_v9  ;;  %v16455_v51 = vld [vmem:[%s17964_s21 + $0x888] ss:$12 sps:$4 sm:$0xff]  }
0x1f9d   : > { %v14962_v30 = vadd.f32 %v9359_v38, %v7277_v17  ;;  %v9361_v24 = vpop.f32.mrb[174].mxu1  ;;  %11970 = vmatprep.mubr.bf16.mxu1 %v9425_v40  ;;  %11640 = vmatprep.subr.bf16.mxu0 %v16424_v34  ;;  %v16452_v34 = vld [vmem:[%s17964_s21 + $0x870] ss:$12 sps:$4 sm:$0xff]   ;;  %v16458_v38 = vld [vmem:[%s17964_s21 + $0x8a0] ss:$12 sps:$4 sm:$0xff]  }
0x1f9e   : > { %v14963_v23 = vadd.f32 %v9361_v24, %v7273_v27  ;;  %v9363_v10 = vpop.f32.mrb[175].mxu1  ;;  %11971 = vmatmul.mubr.bf16.vlgmr.msra.gmra.mrb[216].mxu1 %v19662_v4  ;;  %v9400_v37 = vmax.f32 %v14961_v61, 0.0  ;;  %v16460_v61 = vld [vmem:[%s17964_s21 + $0x8a4] ss:$12 sps:$4 sm:$0xff]  }
0x1f9f   : > { %v14964_v57 = vadd.f32 %v9363_v10, %v7277_v17  ;;  %11620 = vmatmul.mubr.bf16.vlgmr.msra.gmra.mrb[156].mxu0 %v19541_v63  ;;  %v9401_v16 = vmax.f32 %v14962_v30, 0.0  ;;  %v16428_v63 = vld [vmem:[%s17964_s21 + $0x7b0] ss:$12 sps:$4 sm:$0xff]   ;;  %v19702_v30 = vld [vmem:[%s19963_s2] sm:$0x7] }
0x1fa0   : > { %v9412_v41 = vmax.f32 %v14963_v23, 0.0  ;;  %11629 = vmatprep.mubr.bf16.mxu0 %v19568_v35  ;;  %11641 = vmatpush1.bf16.msra.mxu0 %v16422_v28  ;;  %v16433_v35 = vld [vmem:[%s17964_s21 + $0x7cc] ss:$12 sps:$4 sm:$0xff]   ;;  %v16463_v28 = vld [vmem:[%s17964_s21 + $0x8bc] ss:$12 sps:$4 sm:$0xff]   ;;  %v9835_v23 = vrot.slane %v19702_v30, %v18111_v6 }
0x1fa1   : > { %v9413_v31 = vmax.f32 %v14964_v57, 0.0  ;;  %11642 = vmatprep.subr.bf16.mxu0 %v16427_v59  ;;  %v16461_v24 = vld [vmem:[%s17964_s21 + $0x8b8] ss:$12 sps:$4 sm:$0xff]   ;;  %v16466_v59 = vld [vmem:[%s17964_s21 + $0x8d4] ss:$12 sps:$4 sm:$0xff]  }
0x1fa2   : > { %v19671_v58 = vpack.c.bf16 %v9412_v41, %v9400_v37  ;;  %v16464_v57 = vld [vmem:[%s17964_s21 + $0x8d0] ss:$12 sps:$4 sm:$0xff]   ;;  %v16469_v41 = vld [vmem:[%s17964_s21 + $0x8ec] ss:$12 sps:$4 sm:$0xff]  }
0x1fa3   : > { %v19673_v19 = vpack.c.bf16 %v9413_v31, %v9401_v16 }
0x1fa4   : > { %11643 = vmatpush1.bf16.msra.mxu0 %v16425_v13 }
0x1fa5   : > { %11978 = vmatprep.mubr.bf16.mxu1 %v19673_v19  ;;  %11644 = vmatprep.subr.bf16.mxu0 %v16430_v50 }
0x1fa6   : > { %11979 = vmatmul.mubr.bf16.gmra.mrb[220].mxu1 %v19671_v58 }
0x1fa7   : > { %11630 = vmatmul.mubr.bf16.gmra.mrb[160].mxu0 %v19563_v20 }
0x1fa8   : > { %11645 = vmatpush1.bf16.msra.mxu0 %v16428_v63  ;;  %11672 = vmatprep.mubr.bf16.mxu0 %v9425_v40  ;;  %v16457_v40 = vld [vmem:[%s17964_s21 + $0x88c] ss:$12 sps:$4 sm:$0xff]  }
0x1fa9   : > { %11646 = vmatprep.subr.bf16.mxu0 %v16433_v35 }
0x1fac   : > { %11647 = vmatpush1.bf16.msra.mxu0 %v16431_v43 }
0x1fad   : > { %11648 = vmatprep.subr.bf16.mxu0 %v16436_v2  ;;  %v16467_v2 = vld [vmem:[%s17964_s21 + $0x8e8] ss:$12 sps:$4 sm:$0xff]  }
0x1fb0   : > { %11649 = vmatpush1.bf16.msra.mxu0 %v16434_v25 }
0x1fb1   : > { %11650 = vmatprep.subr.bf16.mxu0 %v16439_v46 }
0x1fb3   : > { %v14315_v27 = vpop.f32.mrb[176].mxu1 }
0x1fb4   : > { %11651 = vmatpush1.bf16.msra.mxu0 %v16437_v60  ;;  %v14316_v20 = vpop.f32.mrb[177].mxu1 }
0x1fb5   : > { %v14317_v17 = vadd.f32 %v14316_v20, %v14315_v27  ;;  %v14318_v55 = vpop.f32.mrb[178].mxu1  ;;  %11652 = vmatprep.subr.bf16.mxu0 %v16442_v52 }
0x1fb6   : > { %v14319_v42 = vpop.f32.mrb[179].mxu1 }
0x1fb7   : > { %v14320_v14 = vadd.f32 %v14319_v42, %v14318_v55  ;;  %v11728_v13 = vadd.f32 %v14317_v17, %v9835_v23 }
0x1fb8   : > { %11653 = vmatpush1.bf16.msra.mxu0 %v16440_v15 }
0x1fb9   : > { %11654 = vmatprep.subr.bf16.mxu0 %v16445_v11  ;;  %v11731_v63 = vadd.f32 %v14320_v14, %v9835_v23 }
0x1fbc   : > { %v14321_v54 = vpop.f32.mrb[180].mxu1  ;;  %11655 = vmatpush1.bf16.msra.mxu0 %v16443_v0 }
0x1fbd   : > { %v14322_v62 = vpop.f32.mrb[181].mxu1  ;;  %11656 = vmatprep.subr.bf16.mxu0 %v16448_v21 }
0x1fbe   : > { %v14323_v12 = vadd.f32 %v14322_v62, %v14321_v54  ;;  %v14324_v32 = vpop.f32.mrb[182].mxu1 }
0x1fbf   : > { %v14325_v36 = vpop.f32.mrb[183].mxu1 }
0x1fc0   : > { %v14326_v9 = vadd.f32 %v14325_v36, %v14324_v32  ;;  %11657 = vmatpush1.bf16.msra.mxu0 %v16446_v5  ;;  %v11736_v52 = vadd.f32 %v14323_v12, %v9835_v23 }
0x1fc1   : > { %11658 = vmatprep.subr.bf16.mxu0 %v16451_v45 }
0x1fc2   : > { %v11739_v17 = vadd.f32 %v14326_v9, %v9835_v23 }
0x1fc4   : > { %11659 = vmatpush1.bf16.msra.mxu0 %v16449_v33 }
0x1fc5   : > { %11660 = vmatprep.subr.bf16.mxu0 %v16454_v1 }
0x1fc8   : > { %11661 = vmatpush1.bf16.msra.mxu0 %v16452_v34 }
0x1fc9   : > { %11662 = vmatprep.subr.bf16.mxu0 %v16457_v40 }
0x1fcc   : > { %11663 = vmatpush1.bf16.msra.mxu0 %v16455_v51 }
0x1fcd   : > { %11664 = vmatprep.subr.bf16.mxu0 %v16460_v61 }
0x1fd0   : > { %11665 = vmatpush1.bf16.msra.mxu0 %v16458_v38 }
0x1fd1   : > { %11666 = vmatprep.subr.bf16.mxu0 %v16463_v28 }
0x1fd4   : > { %v14343_v10 = vpop.f32.mrb[184].mxu1  ;;  %11667 = vmatpush1.bf16.msra.mxu0 %v16461_v24 }
0x1fd5   : > { %v14344_v37 = vpop.f32.mrb[185].mxu1  ;;  %11668 = vmatprep.subr.bf16.mxu0 %v16466_v59 }
0x1fd6   : > { %v14345_v16 = vadd.f32 %v14344_v37, %v14343_v10  ;;  %v14346_v31 = vpop.f32.mrb[186].mxu1 }
0x1fd7   : > { %v14347_v50 = vpop.f32.mrb[187].mxu1 }
0x1fd8   : > { %v11777_v35 = vadd.f32 %v14345_v16, %v11728_v13  ;;  %v14348_v43 = vadd.f32 %v14347_v50, %v14346_v31  ;;  %11669 = vmatpush1.bf16.msra.mxu0 %v16464_v57 }
0x1fd9   : > { %11670 = vmatprep.subr.bf16.mxu0 %v16469_v41 }
0x1fda   : > { %v11780_v25 = vadd.f32 %v14348_v43, %v11731_v63 }
0x1fdc   : > { %v14349_v46 = vpop.f32.mrb[188].mxu1  ;;  %11671 = vmatpush1.bf16.msra.mxu0 %v16467_v2 }
0x1fdd   : > { %v14350_v60 = vpop.f32.mrb[189].mxu1 }
0x1fde   : > { %v14351_v27 = vadd.f32 %v14350_v60, %v14349_v46  ;;  %v14352_v20 = vpop.f32.mrb[190].mxu1 }
0x1fdf   : > { %v14353_v15 = vpop.f32.mrb[191].mxu1  ;;  %11673 = vmatmul.mubr.bf16.vlgmr.msra.gmra.mrb[156].mxu0 %v19662_v4 }
0x1fe0   : > { %v11785_v55 = vadd.f32 %v14351_v27, %v11736_v52  ;;  %v14354_v11 = vadd.f32 %v14353_v15, %v14352_v20  ;;  %11682 = vmatprep.mubr.bf16.mxu0 %v19673_v19 }
0x1fe2   : > { %v11788_v42 = vadd.f32 %v14354_v11, %v11739_v17 }
0x1fe7   : > { %11683 = vmatmul.mubr.bf16.gmra.mrb[160].mxu0 %v19671_v58 }
0x1ff4   : > { %v14371_v14 = vpop.f32.mrb[192].mxu1 }
0x1ff5   : > { %v14372_v0 = vpop.f32.mrb[193].mxu1 }
0x1ff6   : > { %v14373_v21 = vadd.f32 %v14372_v0, %v14371_v14  ;;  %v14374_v54 = vpop.f32.mrb[194].mxu1 }
0x1ff7   : > { %v14375_v5 = vpop.f32.mrb[195].mxu1 }
0x1ff8   : > { %v11826_v62 = vadd.f32 %v14373_v21, %v11777_v35  ;;  %v14376_v45 = vadd.f32 %v14375_v5, %v14374_v54 }
0x1ffa   : > { %v11829_v12 = vadd.f32 %v14376_v45, %v11780_v25 }
0x1ffc   : > { %v14377_v32 = vpop.f32.mrb[196].mxu1 }
0x1ffd   : > { %v14378_v36 = vpop.f32.mrb[197].mxu1 }
0x1ffe   : > { %v14379_v33 = vadd.f32 %v14378_v36, %v14377_v32  ;;  %v14380_v4 = vpop.f32.mrb[198].mxu1 }
0x1fff   : > { %v14381_v9 = vpop.f32.mrb[199].mxu1 }
0x2000   : > { %v11834_v1 = vadd.f32 %v14379_v33, %v11785_v55  ;;  %v14382_v34 = vadd.f32 %v14381_v9, %v14380_v4 }
0x2002   : > { %v11837_v40 = vadd.f32 %v14382_v34, %v11788_v42 }
0x2014   : > { %v14399_v19 = vpop.f32.mrb[200].mxu1 }
0x2015   : > { %v14400_v51 = vpop.f32.mrb[201].mxu1 }
0x2016   : > { %v14401_v61 = vadd.f32 %v14400_v51, %v14399_v19  ;;  %v14402_v58 = vpop.f32.mrb[202].mxu1 }
0x2017   : > { %v14403_v38 = vpop.f32.mrb[203].mxu1 }
0x2018   : > { %v11875_v28 = vadd.f32 %v14401_v61, %v11826_v62  ;;  %v14404_v24 = vadd.f32 %v14403_v38, %v14402_v58  ;;  %v9831_v58 = vrot.slane %v19702_v30, %v18094_v48 }
0x201a   : > { %v11878_v59 = vadd.f32 %v14404_v24, %v11829_v12 }
0x201c   : > { %v14405_v23 = vpop.f32.mrb[204].mxu1 }
0x201d   : > { %v14406_v10 = vpop.f32.mrb[205].mxu1 }
0x201e   : > { %v14407_v57 = vadd.f32 %v14406_v10, %v14405_v23  ;;  %v14408_v37 = vpop.f32.mrb[206].mxu1 }
0x201f   : > { %v14409_v41 = vpop.f32.mrb[207].mxu1 }
0x2020   : > { %v11883_v13 = vadd.f32 %v14407_v57, %v11834_v1  ;;  %v14410_v16 = vadd.f32 %v14409_v41, %v14408_v37 }
0x2022   : > { %v11886_v31 = vadd.f32 %v14410_v16, %v11837_v40 }
0x2034   : > { %v14427_v50 = vpop.f32.mrb[208].mxu1 }
0x2035   : > { %v14428_v63 = vpop.f32.mrb[209].mxu1 }
0x2036   : > { %v14429_v35 = vadd.f32 %v14428_v63, %v14427_v50  ;;  %v14430_v43 = vpop.f32.mrb[210].mxu1 }
0x2037   : > { %v14431_v2 = vpop.f32.mrb[211].mxu1 }
0x2038   : > { %v11924_v25 = vadd.f32 %v14429_v35, %v11875_v28  ;;  %v14432_v46 = vadd.f32 %v14431_v2, %v14430_v43 }
0x203a   : > { %v11927_v60 = vadd.f32 %v14432_v46, %v11878_v59 }
0x203c   : > { %v14433_v52 = vpop.f32.mrb[212].mxu1 }
0x203d   : > { %v14434_v27 = vpop.f32.mrb[213].mxu1 }
0x203e   : > { %v14435_v20 = vadd.f32 %v14434_v27, %v14433_v52  ;;  %v14436_v15 = vpop.f32.mrb[214].mxu1 }
0x203f   : > { %v14437_v17 = vpop.f32.mrb[215].mxu1 }
0x2040   : > { %v11932_v55 = vadd.f32 %v14435_v20, %v11883_v13  ;;  %v14438_v11 = vadd.f32 %v14437_v17, %v14436_v15  ;;  %v16604_v20 = vld [vmem:[#allocation27] sm:$0xff] (!%p14077_p2)  }
0x2041   : > { %v16605_v15 = vld [vmem:[#allocation27 + $0x80] sm:$0xff] (!%p14077_p2)  }
0x2042   : > { %v11935_v42 = vadd.f32 %v14438_v11, %v11886_v31  ;;  %14889 = vmatprep.subr.bf16.mxu1 (!%p14077_p2), %v16605_v15 }
0x2043   : > { %14890 = vmatpush3.bf16.msra.mxu1 (!%p14077_p2), %v16605_v15  ;;  %v16626_v15 = vld [vmem:[#allocation27 + $0xb8] sm:$0xff] (!%p14077_p2)  }
0x2071   : > { %v14455_v14 = vpop.f32.mrb[216].mxu1 }
0x2072   : > { %v14456_v0 = vpop.f32.mrb[217].mxu1 }
0x2073   : > { %v14457_v21 = vadd.f32 %v14456_v0, %v14455_v14  ;;  %v14458_v54 = vpop.f32.mrb[218].mxu1 }
0x2074   : > { %v14459_v5 = vpop.f32.mrb[219].mxu1 }
0x2075   : > { %v11973_v62 = vadd.f32 %v14457_v21, %v11924_v25  ;;  %v14460_v45 = vadd.f32 %v14459_v5, %v14458_v54 }
0x2077   : > { %v19715_v12 = vadd.f32 %v11973_v62, %v18787_v26  ;;  %v11976_v32 = vadd.f32 %v14460_v45, %v11927_v60 }
0x2079   : > { %12001 = vst [vmem:[#allocation2 + $0x10] sm:$0xff] %v19715_v12  ;;  %v19719_v36 = vadd.f32 %v11976_v32, %v18793_v53  ;;  %v14461_v33 = vpop.f32.mrb[220].mxu1  ;;  %v9827_v53 = vrot.slane %v19702_v30, %v18091_v47 }
0x207a   : > { %v14462_v4 = vpop.f32.mrb[221].mxu1 }
0x207b   : > { %12004 = vst [vmem:[#allocation2 + $0x28] sm:$0xff] %v19719_v36  ;;  %v14463_v9 = vadd.f32 %v14462_v4, %v14461_v33  ;;  %v14464_v1 = vpop.f32.mrb[222].mxu1 }
0x207c   : > { %v14465_v34 = vpop.f32.mrb[223].mxu1 }
0x207d   : > { %v11981_v40 = vadd.f32 %v14463_v9, %v11932_v55  ;;  %v14466_v19 = vadd.f32 %v14465_v34, %v14464_v1 }
0x207f   : > { %v19723_v51 = vadd.f32 %v11981_v40, %v18805_v7  ;;  %v11984_v26 = vadd.f32 %v14466_v19, %v11935_v42 }
0x2081   : > { %12007 = vst [vmem:[#allocation2 + $0x40] sm:$0xff] %v19723_v51  ;;  %v19727_v61 = vadd.f32 %v11984_v26, %v18811_v39 }
0x2083   : > { %12010 = vst [vmem:[#allocation2 + $0x58] sm:$0xff] %v19727_v61 }
0x20b2   : > { %v11674_v38 = vpop.f32.mrb[156].mxu0 }
0x20b3   : > { %v14965_v28 = vadd.f32 %v11674_v38, %v9827_v53  ;;  %v11676_v24 = vpop.f32.mrb[157].mxu0 }
0x20b4   : > { %v14966_v59 = vadd.f32 %v11676_v24, %v9831_v58  ;;  %v11678_v7 = vpop.f32.mrb[158].mxu0 }
0x20b5   : > { %v11987_v23 = vadd.f32 %v14965_v28, %v18781_v56  ;;  %v14967_v10 = vadd.f32 %v11678_v7, %v9827_v53  ;;  %v11680_v57 = vpop.f32.mrb[159].mxu0 }
0x20b6   : > { %v11988_v39 = vadd.f32 %v14966_v59, %v18783_v22  ;;  %v14968_v37 = vadd.f32 %v11680_v57, %v9831_v58 }
0x20b7   : > { %11999 = vst [vmem:[#allocation2] sm:$0xff] %v11987_v23  ;;  %v11990_v41 = vadd.f32 %v14967_v10, %v18785_v49 }
0x20b8   : > { %12000 = vst [vmem:[#allocation2 + $0x8] sm:$0xff] %v11988_v39  ;;  %v11991_v13 = vadd.f32 %v14968_v37, %v18789_v29  ;;  %v12017_v25 = vadd.f32 (!%p14077_p2), %v11988_v39, %v11987_v23 }
0x20b9   : > { %12002 = vst [vmem:[#allocation2 + $0x18] sm:$0xff] %v11990_v41 }
0x20ba   : > { %12003 = vst [vmem:[#allocation2 + $0x20] sm:$0xff] %v11991_v13  ;;  %v11684_v30 = vpop.f32.mrb[160].mxu0  ;;  %v12021_v60 = vadd.f32 (!%p14077_p2), %v11991_v13, %v11990_v41  ;;  %v12018_v52 = vadd.f32 (!%p14077_p2), %v12017_v25, %v19715_v12  ;;  %v16616_v25 = vld [vmem:[#allocation27 + $0x20] sm:$0xff] (!%p14077_p2)  }
0x20bb   : > { %v14969_v16 = vadd.f32 %v11684_v30, %v9827_v53  ;;  %v11686_v31 = vpop.f32.mrb[161].mxu0 }
0x20bc   : > { %v14970_v50 = vadd.f32 %v11686_v31, %v9831_v58  ;;  %v11688_v63 = vpop.f32.mrb[162].mxu0  ;;  %12014 = sbr.rel (%p14077_p2) target bundleno = 8937 (0x22e9), region = 172  ;;  %12019 = vadd.xlane.f32.xlu0 (!%p14077_p2), %v12018_v52  ;;  %v16606_v31 = vld [vmem:[#allocation27 + $0x48] sm:$0xff] (!%p14077_p2)  }
0x20bd   : > { %v11993_v56 = vadd.f32 %v14969_v16, %v18799_v3  ;;  %v14971_v35 = vadd.f32 %v11688_v63, %v9827_v53  ;;  %v11690_v43 = vpop.f32.mrb[163].mxu0  ;;  %v16608_v63 = vld [vmem:[#allocation27 + $0x88] sm:$0xff] (!%p14077_p2)  }
0x20be   : > { %v11994_v22 = vadd.f32 %v14970_v50, %v18801_v18  ;;  %v14972_v2 = vadd.f32 %v11690_v43, %v9831_v58  ;;  %v16607_v50 = vld [vmem:[#allocation27 + $0x8] sm:$0xff] (!%p14077_p2)   ;;  %14891 = vmatprep.subr.bf16.mxu1 (!%p14077_p2), %v16608_v63  ;;  %v16611_v43 = vld [vmem:[#allocation27 + $0x90] sm:$0xff] (!%p14077_p2)  }
0x20bf   : > { %12005 = vst [vmem:[#allocation2 + $0x30] sm:$0xff] %v11993_v56  ;;  %v11996_v49 = vadd.f32 %v14971_v35, %v18803_v44  ;;  %v12022_v44 = vadd.f32 (!%p14077_p2), %v12021_v60, %v19719_v36  ;;  %v16610_v35 = vld [vmem:[#allocation27 + $0x10] sm:$0xff] (!%p14077_p2)   ;;  %14892 = vmatpush3.bf16.msra.mxu1 (!%p14077_p2), %v16608_v63  ;;  %v16618_v60 = vld [vmem:[#allocation27 + $0x68] sm:$0xff] (!%p14077_p2)  }
0x20c0   : > { %12006 = vst [vmem:[#allocation2 + $0x38] sm:$0xff] %v11994_v22  ;;  %v11997_v29 = vadd.f32 %v14972_v2, %v18807_v8  ;;  %v12025_v46 = vadd.f32 (!%p14077_p2), %v11994_v22, %v11993_v56  ;;  %v16603_v8 = vld [vmem:[#allocation27 + $0x40] sm:$0xff] (!%p14077_p2)   ;;  %14893 = vmatprep.subr.bf16.mxu1 (!%p14077_p2), %v16611_v43  ;;  %v16613_v2 = vld [vmem:[#allocation27 + $0x18] sm:$0xff] (!%p14077_p2)   ;;  %v16620_v52 = vld [vmem:[#allocation27 + $0xa8] sm:$0xff] (!%p14077_p2)  }
0x20c1   : > { %12008 = vst [vmem:[#allocation2 + $0x48] sm:$0xff] %v11996_v49  ;;  %12023 = vadd.xlane.f32.xlu0 (!%p14077_p2), %v12022_v44  ;;  %14467 = vmatprep.subr.bf16.mxu0 (!%p14077_p2), %v16603_v8  ;;  %v16622_v44 = vld [vmem:[#allocation27 + $0x30] sm:$0xff] (!%p14077_p2)   ;;  %v16624_v8 = vld [vmem:[#allocation27 + $0x78] sm:$0xff] (!%p14077_p2)  }
0x20c2   : > { %12009 = vst [vmem:[#allocation2 + $0x50] sm:$0xff] %v11997_v29  ;;  %v12029_v3 = vadd.f32 (!%p14077_p2), %v11997_v29, %v11996_v49  ;;  %v12026_v18 = vadd.f32 (!%p14077_p2), %v12025_v46, %v19723_v51  ;;  %14468 = vmatpush3.bf16.msra.mxu0 (!%p14077_p2), %v16604_v20  ;;  %v16617_v46 = vld [vmem:[#allocation27 + $0xa0] sm:$0xff] (!%p14077_p2)   ;;  %v16625_v20 = vld [vmem:[#allocation27 + $0x38] sm:$0xff] (!%p14077_p2)  }
0x20c3   : > { %14469 = vmatprep.subr.bf16.mxu0 %v16606_v31  ;;  %14894 = vmatpush3.bf16.msra.mxu1 %v16611_v43 }
0x20c4   : > { %12027 = vadd.xlane.f32.xlu1 %v12026_v18  ;;  %v12030_v27 = vadd.f32 %v12029_v3, %v19727_v61  ;;  %v16619_v3 = vld [vmem:[#allocation27 + $0x28] sm:$0xff]   ;;  %v16621_v18 = vld [vmem:[#allocation27 + $0x70] sm:$0xff]  }
0x20c6   : > { %14470 = vmatpush3.bf16.msra.mxu0 %v16607_v50 }
0x20c8   : > { %12031 = vadd.xlane.f32.xlu1 %v12030_v27  ;;  %v16623_v27 = vld [vmem:[#allocation27 + $0xb0] sm:$0xff]  }
0x2149   : > { %v12020_v17 = vpop.xlane.xlu0 %12019 }
0x214a   : > { %v12033_v11 = vmul.f32 0.0026041667, %v12020_v17 }
0x214c   : > { %v19747_v14 = vsub.f32 %v11987_v23, %v12033_v11  ;;  %v19749_v0 = vsub.f32 %v11988_v39, %v12033_v11  ;;  %v19752_v21 = vsub.f32 %v19715_v12, %v12033_v11 }
0x214e   : > { %v12024_v45 = vpop.xlane.xlu0 %12023  ;;  %v12049_v9 = vmul.f32 %v19747_v14, %v19747_v14  ;;  %v12050_v1 = vmul.f32 %v19749_v0, %v19749_v0  ;;  %v12051_v12 = vmul.f32 %v19752_v21, %v19752_v21 }
0x214f   : > { %v12034_v33 = vmul.f32 0.0026041667, %v12024_v45 }
0x2150   : > { %v12061_v24 = vadd.f32 %v12050_v1, %v12049_v9 }
0x2151   : > { %v12028_v55 = vpop.xlane.xlu1 %12027  ;;  %v19775_v26 = vsub.f32 %v11991_v13, %v12034_v33  ;;  %v19778_v53 = vsub.f32 %v19719_v36, %v12034_v33 }
0x2152   : > { %v12035_v42 = vmul.f32 0.0026041667, %v12028_v55  ;;  %v12062_v36 = vadd.f32 %v12061_v24, %v12051_v12 }
0x2153   : > { %v12053_v23 = vmul.f32 %v19775_v26, %v19775_v26  ;;  %v12054_v39 = vmul.f32 %v19778_v53, %v19778_v53 }
0x2154   : > { %v19754_v54 = vsub.f32 %v11993_v56, %v12035_v42  ;;  %v19756_v5 = vsub.f32 %v11994_v22, %v12035_v42  ;;  %v19759_v62 = vsub.f32 %v19723_v51, %v12035_v42  ;;  %v19773_v51 = vsub.f32 %v11990_v41, %v12034_v33  ;;  %12063 = vadd.xlane.f32.xlu0 %v12062_v36  ;;  %v16609_v56 = vld [vmem:[#allocation27 + $0x50] sm:$0xff]   ;;  %v16612_v22 = vld [vmem:[#allocation27 + $0x58] sm:$0xff]  }
0x2155   : > { %v12032_v32 = vpop.xlane.xlu1 %12031  ;;  %14471 = vmatprep.subr.bf16.mxu0 %v16609_v56 }
0x2156   : > { %v12036_v4 = vmul.f32 0.0026041667, %v12032_v32  ;;  %v12055_v34 = vmul.f32 %v19754_v54, %v19754_v54  ;;  %v12056_v40 = vmul.f32 %v19756_v5, %v19756_v5  ;;  %v12057_v19 = vmul.f32 %v19759_v62, %v19759_v62  ;;  %14472 = vmatpush3.bf16.msra.mxu0 %v16610_v35 }
0x2157   : > { %v12052_v7 = vmul.f32 %v19773_v51, %v19773_v51  ;;  %14473 = vmatprep.subr.bf16.mxu0 %v16612_v22 }
0x2158   : > { %v19780_v58 = vsub.f32 %v11996_v49, %v12036_v4  ;;  %v19782_v38 = vsub.f32 %v11997_v29, %v12036_v4  ;;  %v19785_v28 = vsub.f32 %v19727_v61, %v12036_v4  ;;  %v12069_v59 = vadd.f32 %v12056_v40, %v12055_v34  ;;  %v16614_v49 = vld [vmem:[#allocation27 + $0x98] sm:$0xff]   ;;  %v16615_v29 = vld [vmem:[#allocation27 + $0x60] sm:$0xff]  }
0x2159   : > { %v12065_v61 = vadd.f32 %v12053_v23, %v12052_v7  ;;  %14895 = vmatprep.subr.bf16.mxu1 %v16614_v49  ;;  %v12015_v40 = vld [vmem:[#allocation24] sm:$0x7] }
0x215a   : > { %v12058_v10 = vmul.f32 %v19780_v58, %v19780_v58  ;;  %v12059_v57 = vmul.f32 %v19782_v38, %v19782_v38  ;;  %v12060_v37 = vmul.f32 %v19785_v28, %v19785_v28  ;;  %v12070_v41 = vadd.f32 %v12069_v59, %v12057_v19  ;;  %14474 = vmatpush3.bf16.msra.mxu0 %v16613_v2  ;;  %v12016_v19 = vld [vmem:[#allocation26] sm:$0x7] }
0x215b   : > { %v12066_v30 = vadd.f32 %v12065_v61, %v12054_v39  ;;  %14475 = vmatprep.subr.bf16.mxu0 %v16615_v29  ;;  %14896 = vmatpush3.bf16.msra.mxu1 %v16614_v49  ;;  %v12109_v24 = vrot.slane %v12015_v40, %v18094_v48  ;;  %v12113_v59 = vrot.slane %v12015_v40, %v18111_v6 }
0x215c   : > { %v12073_v13 = vadd.f32 %v12059_v57, %v12058_v10  ;;  %12071 = vadd.xlane.f32.xlu0 %v12070_v41  ;;  %14897 = vmatprep.subr.bf16.mxu1 %v16617_v46  ;;  %v12105_v7 = vrot.slane %v12015_v40, %v18091_v47  ;;  %v12137_v39 = vrot.slane %v12016_v19, %v18094_v48 }
0x215d   : > { %12067 = vadd.xlane.f32.xlu1 %v12066_v30  ;;  %v12141_v61 = vrot.slane %v12016_v19, %v18111_v6 }
0x215e   : > { %v12074_v16 = vadd.f32 %v12073_v13, %v12060_v37  ;;  %14476 = vmatpush3.bf16.msra.mxu0 %v16616_v25 }
0x215f   : > { %14477 = vmatprep.subr.bf16.mxu0 %v16618_v60  ;;  %14898 = vmatpush3.bf16.msra.mxu1 %v16617_v46 }
0x2160   : > { %14899 = vmatprep.subr.bf16.mxu1 %v16620_v52 }
0x2161   : > { %12075 = vadd.xlane.f32.xlu1 %v12074_v16  ;;  %v12133_v16 = vrot.slane %v12016_v19, %v18091_v47 }
0x2162   : > { %14478 = vmatpush3.bf16.msra.mxu0 %v16619_v3 }
0x2163   : > { %14479 = vmatprep.subr.bf16.mxu0 %v16621_v18  ;;  %14900 = vmatpush3.bf16.msra.mxu1 %v16620_v52 }
0x2164   : > { %14901 = vmatprep.subr.bf16.mxu1 %v16623_v27 }
0x2166   : > { %14480 = vmatpush3.bf16.msra.mxu0 %v16622_v44 }
0x2167   : > { %14481 = vmatprep.subr.bf16.mxu0 %v16624_v8  ;;  %14902 = vmatpush3.bf16.msra.mxu1 %v16623_v27 }
0x2168   : > { %14903 = vmatprep.subr.bf16.mxu1 %v16626_v15 }
0x216a   : > { %14482 = vmatpush3.bf16.msra.mxu0 %v16625_v20 }
0x216b   : > { %14904 = vmatpush3.bf16.msra.mxu1 %v16626_v15 }
0x21e1   : > { %v12064_v17 = vpop.xlane.xlu0 %12063 }
0x21e2   : > { %v12077_v55 = vmul.f32 0.0026041667, %v12064_v17 }
0x21e4   : > { %v12081_v11 = vadd.f32 1e-05, %v12077_v55 }
0x21e6   : > { %16627 = vrsqrt.f32 %v12081_v11 }
0x21e9   : > { %v12072_v32 = vpop.xlane.xlu0 %12071 }
0x21ea   : > { %v12068_v42 = vpop.xlane.xlu1 %12067  ;;  %v12079_v33 = vmul.f32 0.0026041667, %v12072_v32 }
0x21eb   : > { %v12078_v45 = vmul.f32 0.0026041667, %v12068_v42 }
0x21ec   : > { %v12083_v9 = vadd.f32 1e-05, %v12079_v33 }
0x21ed   : > { %v12082_v4 = vadd.f32 1e-05, %v12078_v45  ;;  %v14078_v45 = vld [vmem:[#allocation29] ss:$0 sm:$0xff] }
0x21ee   : > { %v12076_v1 = vpop.xlane.xlu1 %12075 }
0x21ef   : > { %16629 = vrsqrt.f32 %v12082_v4  ;;  %v12080_v12 = vmul.f32 0.0026041667, %v12076_v1 }
0x21f0   : > { %16631 = vrsqrt.f32 %v12083_v9  ;;  %v16628_v23 = vpop.eup %16627 }
0x21f1   : > { %v12084_v34 = vadd.f32 1e-05, %v12080_v12  ;;  %v12090_v10 = vmul.f32 %v16628_v23, %v19749_v0  ;;  %v12091_v36 = vmul.f32 %v16628_v23, %v19752_v21  ;;  %v12089_v57 = vmul.f32 %v16628_v23, %v19747_v14 }
0x21f3   : > { %16633 = vrsqrt.f32 %v12084_v34  ;;  %v12118_v41 = vmul.f32 %v12109_v24, %v12090_v10  ;;  %v12119_v13 = vmul.f32 %v12113_v59, %v12091_v36  ;;  %v12117_v30 = vmul.f32 %v12105_v7, %v12089_v57 }
0x21f5   : > { %v12146_v43 = vadd.f32 %v12137_v39, %v12118_v41  ;;  %v12147_v22 = vadd.f32 %v12141_v61, %v12119_v13  ;;  %v12145_v2 = vadd.f32 %v12133_v16, %v12117_v30 }
0x21f9   : > { %v16630_v37 = vpop.eup %16629 }
0x21fa   : > { %v16632_v31 = vpop.eup %16631  ;;  %v12093_v50 = vmul.f32 %v16630_v37, %v19775_v26  ;;  %v12094_v63 = vmul.f32 %v16630_v37, %v19778_v53  ;;  %v12092_v0 = vmul.f32 %v16630_v37, %v19773_v51 }
0x21fb   : > { %v12096_v21 = vmul.f32 %v16632_v31, %v19756_v5  ;;  %v12097_v6 = vmul.f32 %v16632_v31, %v19759_v62  ;;  %v12095_v5 = vmul.f32 %v16632_v31, %v19754_v54 }
0x21fc   : > { %v12121_v14 = vmul.f32 %v12109_v24, %v12093_v50  ;;  %v12122_v56 = vmul.f32 %v12113_v59, %v12094_v63  ;;  %v12120_v48 = vmul.f32 %v12105_v7, %v12092_v0 }
0x21fd   : > { %v16634_v35 = vpop.eup %16633  ;;  %v12124_v49 = vmul.f32 %v12109_v24, %v12096_v21  ;;  %v12125_v51 = vmul.f32 %v12113_v59, %v12097_v6  ;;  %v12123_v15 = vmul.f32 %v12105_v7, %v12095_v5 }
0x21fe   : > { %v12149_v47 = vadd.f32 %v12137_v39, %v12121_v14  ;;  %v12150_v29 = vadd.f32 %v12141_v61, %v12122_v56  ;;  %v12148_v25 = vadd.f32 %v12133_v16, %v12120_v48  ;;  %v12099_v26 = vmul.f32 %v16634_v35, %v19782_v38 }
0x21ff   : > { %v12100_v53 = vmul.f32 %v16634_v35, %v19785_v28  ;;  %v12098_v46 = vmul.f32 %v16634_v35, %v19780_v58  ;;  %v12152_v27 = vadd.f32 %v12137_v39, %v12124_v49  ;;  %v12153_v20 = vadd.f32 %v12141_v61, %v12125_v51 }
0x2200   : > { %v12158_v60 = vpack.c.bf16 %v12149_v47, %v12146_v43  ;;  %v12159_v3 = vpack.c.bf16 %v12150_v29, %v12147_v22  ;;  %v12157_v62 = vpack.c.bf16 %v12148_v25, %v12145_v2  ;;  %v12127_v52 = vmul.f32 %v12109_v24, %v12099_v26 }
0x2201   : > { %v12128_v18 = vmul.f32 %v12113_v59, %v12100_v53  ;;  %v12126_v44 = vmul.f32 %v12105_v7, %v12098_v46  ;;  %v12151_v54 = vadd.f32 %v12133_v16, %v12123_v15 }
0x2202   : > { %12394 = vmatprep.mubr.bf16.mxu0 %v12158_v60  ;;  %14905 = vmatprep.mubr.bf16.mxu1 %v12159_v3  ;;  %v12155_v8 = vadd.f32 %v12137_v39, %v12127_v52 }
0x2203   : > { %12395 = vmatmul.mubr.bf16.vlgmr.msra.gmra.mrb[0].mxu0 %v12157_v62  ;;  %v12156_v38 = vadd.f32 %v12141_v61, %v12128_v18  ;;  %v12154_v55 = vadd.f32 %v12133_v16, %v12126_v44 }
0x2204   : > { %v12161_v28 = vpack.c.bf16 %v12155_v8, %v12152_v27 }
0x2205   : > { %v12162_v17 = vpack.c.bf16 %v12156_v38, %v12153_v20  ;;  %v12160_v58 = vpack.c.bf16 %v12154_v55, %v12151_v54 }
0x2206   : > { %12402 = vmatprep.mubr.bf16.mxu0 %v12161_v28 }
0x2207   : > { %14906 = vmatmul.mubr.bf16.vlgmr.msra.gmra.mrb[0].mxu1 %v12162_v17 }
0x220b   : > { %12403 = vmatmul.mubr.bf16.gmra.mrb[4].mxu0 %v12160_v58 }
0x22d6   : > { %v14483_v11 = vpop.f32.mrb[0].mxu0 }
0x22d7   : > { %v14484_v42 = vpop.f32.mrb[1].mxu0 }
0x22d8   : > { %v14485_v32 = vadd.f32 %v14484_v42, %v14483_v11  ;;  %v14486_v33 = vpop.f32.mrb[2].mxu0 }
0x22d9   : > { %v14487_v4 = vpop.f32.mrb[3].mxu0 }
0x22da   : > { %v14488_v9 = vadd.f32 %v14487_v4, %v14486_v33  ;;  %v14907_v1 = vpop.f32.mrb[0].mxu1  ;;  %v12397_v12 = vadd.f32 %v14485_v32, %v14078_v45 }
0x22db   : > { %v12445_v34 = vpop.f32.mrb[1].mxu1 }
0x22dc   : > { %v12446_v40 = vadd.f32 %v12445_v34, %v12397_v12  ;;  %v14908_v19 = vpop.f32.mrb[2].mxu1  ;;  %v12400_v24 = vadd.f32 %v14488_v9, %v14078_v45 }
0x22dd   : > { %v12448_v59 = vpop.f32.mrb[3].mxu1 }
0x22de   : > { %12460 = vst [vmem:[#allocation30] sm:$0xff] %v12446_v40  ;;  %v12449_v7 = vadd.f32 %v12448_v59, %v12400_v24  ;;  %v14489_v23 = vpop.f32.mrb[4].mxu0 }
0x22df   : > { %v14490_v10 = vpop.f32.mrb[5].mxu0 }
0x22e0   : > { %12461 = vst [vmem:[#allocation30 + $0x8] sm:$0xff] %v12449_v7  ;;  %v14491_v36 = vadd.f32 %v14490_v10, %v14489_v23  ;;  %v14492_v57 = vpop.f32.mrb[6].mxu0 }
0x22e1   : > { %v14493_v39 = vpop.f32.mrb[7].mxu0 }
0x22e2   : > { %v12405_v61 = vadd.f32 %v14491_v36, %v14078_v45  ;;  %v14494_v37 = vadd.f32 %v14493_v39, %v14492_v57 }
0x22e4   : > { %v12454_v41 = vadd.f32 %v14907_v1, %v12405_v61  ;;  %v12408_v13 = vadd.f32 %v14494_v37, %v14078_v45 }
0x22e6   : > { %12462 = vst [vmem:[#allocation30 + $0x10] sm:$0xff] %v12454_v41  ;;  %v12457_v30 = vadd.f32 %v14908_v19, %v12408_v13 }
0x22e8   : > { %12463 = vst [vmem:[#allocation30 + $0x18] sm:$0xff] %v12457_v30 }
0x22e9 PF: > { %s19965_s9 = sld [smem:[#allocation42_spill]]  ;;  %s17233_s14 = smov [#allocation30]  }
0x22ea   : > { %s12470_s21 = sshll.u32 %s17233_s14, 4  ;;  %s12471_s21 = int_to_ptr.vmem [resolvable:$true] %s12470_s21 }
0x22eb   : > { %s17111_s15 = scalar_lea.vmem %s12471_s21, 512  ;;  %p17118_p13 = scmp.lt.s32.totalorder %s12471_s21, %s12471_s21 }
0x22ec   : > { %p17112_p3 = scmp.ne.s32.totalorder %s12471_s21, %s17111_s15  ;;  %p17119_p4 = scmp.lt.s32.totalorder %s17111_s15, %s17111_s15 }
0x22ee   : > { %p17120_p11 = por %p17119_p4, %p17118_p13 }
0x22ef   : > { %p15222_p9 = scmp.eq.s32.totalorder %s19965_s9, 5 }
0x22f1   : > { %p17113_p7 = pnand %p17112_p3, %p15222_p9 }
0x22f3   : > { %p17114_p6 = pneg %p17113_p7 }
0x22f5   : > { %p17121_p12 = pnand %p17120_p11, %p17114_p6 }
0x22f7   : > { %17124 = shalt.err (!%p17121_p12)
}
0x22f8   : > { %s19966_s19 = sld [smem:[#allocation60_spill]] }
0x22fe   : > { %s17125_s25 = scalar_lea.hbm %s19966_s19, 512 }
0x22ff   : > { %p17126_p0 = scmp.ne.s32.totalorder %s19966_s19, %s17125_s25  ;;  %p17131_p5 = scmp.lt.u32.totalorder %s17125_s25, %s19966_s19 }
0x2301   : > { %p17127_p1 = pnand %p17126_p0, %p15222_p9 }
0x2303   : > { %p17128_p8 = pneg %p17127_p1 }
0x2305   : > { %p17133_p10 = pnand %p17131_p5, %p17128_p8 }
0x2307   : > { %17136 = shalt.err (!%p17133_p10)
}
0x2308   : > { %s17234_s18 = smov 128   ;;  %s17235_s26 = smov 8  }
0x2309   : > { %15198 = dma.vmem_to_hbm [thread:$0]  (%p15222_p9), %s12471_s21, 512, %s19966_s19, [#allocation5], %s17234_s18, %s17234_s18, %s17235_s26  }
0x230a   : > { %17190 = dma.done.wait (%p15222_p9), [#allocation5], 512  }
0x230b   : > { %17192 = vsyncadd (%p15222_p9), [#allocation5], 4294966784 }
0x230c PF: > { %s19967_s21 = sld [smem:[#allocation43_spill]]  ;;  %s19968_s0 = sld [smem:[#allocation41_spill]] }
0x230d   : > { %s19969_s11 = sld [smem:[#allocation44_spill]]  ;;  %s19970_s30 = smov %s17203_s20 }
0x2312   : > { %p50_p2 = scmp.ge.s32.totalorder %s19967_s21, 8  }
0x2313   : > { %s19971_s20 = smov %s19969_s11 }
0x2314   :  { %52 = sbr.rel (!%p50_p2) target bundleno = 33 (0x21), region = 321 }
0x231b   :  { %12486 = vsyncpa [#allocation4], 1 }
0x231c   :  { %12488 = vsyncpa [#allocation4 + $0x1], 1 }
0x231d   :  { %12489 = vsyncpa [#allocation7], 1 }
0x231e   :  { %12491 = vsyncpa [#allocation7 + $0x1], 1 }
0x231f   :  { %12492 = vsyncpa [#allocation10], 1 }
0x2320   :  { %12494 = vsyncpa [#allocation10 + $0x1], 1 }
0x2321   :  { %12495 = vsyncpa [#allocation13], 1 }
0x2322   :  { %12497 = vsyncpa [#allocation13 + $0x1], 1 }
0x2323   :  { %12498 = vsyncpa [#allocation16], 1 }
0x2324   :  { %12500 = vsyncpa [#allocation16 + $0x1], 1 }
0x2325   :  { %12501 = vsyncpa [#allocation19], 1 }
0x2326   :  { %12503 = vsyncpa [#allocation19 + $0x1], 1 }
0x2327   :  { %12504 = vsyncpa [#allocation22], 1 }
0x2328   :  { %12506 = vsyncpa [#allocation22 + $0x1], 1 }
0x2329   :  { %12507 = vsyncpa [#allocation25], 1 }
0x232a   :  { %12508 = vsyncpa [#allocation28], 1 }
0x232b   :  { %12509 = vsyncpa [#allocation5], 1 }
0x232c   :  { %12511 = vsyncpa [#allocation5 + $0x1], 1 }

</bundles_post_ra>
